<compile_context>
chip_gen: v5e
topology: v5e:2x2
jax: 0.10.0
libtpu: 0.0.40
codegen_flags: <defaults>
</compile_context>

<pallas_src>
import functools

import jax
import jax.numpy as jnp
from jax.experimental import pallas as pl
from jax.experimental.pallas import tpu as pltpu

BN_EPS = 1e-5


def _round_up(x, m):
    return ((x + m - 1) // m) * m


# ---------------------------------------------------------------------------
# Fused (im2col-GEMM + bias/BN scale + residual + ReLU) Pallas kernel
# ---------------------------------------------------------------------------
def _conv_gemm_kernel(*refs, relu, add_residual):
    if add_residual:
        p_ref, w_ref, s_ref, b_ref, r_ref, o_ref = refs
    else:
        p_ref, w_ref, s_ref, b_ref, o_ref = refs

    acc = jnp.dot(
        p_ref[...].astype(jnp.float32),
        w_ref[...].astype(jnp.float32),
        preferred_element_type=jnp.float32,
    )
    acc = acc * s_ref[...] + b_ref[...]          # (bm, Cout) * (1, Cout) + (1, Cout)
    if add_residual:
        acc = acc + r_ref[...].astype(jnp.float32)
    if relu:
        acc = jnp.maximum(acc, 0.0)
    o_ref[...] = acc.astype(o_ref.dtype)


def _fused_gemm(patches, w2d, scale, bias, residual, *, relu):
    """out[m, co] = act( patches[m, :] @ w2d[:, co] * scale[co] + bias[co] (+ residual) )."""
    m, kd = patches.shape
    cout = w2d.shape[1]

    bm = min(512, _round_up(m, 8))
    mp = _round_up(m, bm)
    if mp != m:
        patches = jnp.pad(patches, ((0, mp - m), (0, 0)))
        if residual is not None:
            residual = jnp.pad(residual, ((0, mp - m), (0, 0)))

    in_specs = [
        pl.BlockSpec((bm, kd), lambda i: (i, 0)),
        pl.BlockSpec((kd, cout), lambda i: (0, 0)),
        pl.BlockSpec((1, cout), lambda i: (0, 0)),
        pl.BlockSpec((1, cout), lambda i: (0, 0)),
    ]
    args = [patches, w2d, scale.reshape(1, cout), bias.reshape(1, cout)]
    if residual is not None:
        in_specs.append(pl.BlockSpec((bm, cout), lambda i: (i, 0)))
        args.append(residual)

    kernel = functools.partial(
        _conv_gemm_kernel, relu=relu, add_residual=residual is not None
    )

    out = pl.pallas_call(
        kernel,
        out_shape=jax.ShapeDtypeStruct((mp, cout), jnp.float32),
        grid_spec=pltpu.PrefetchScalarGridSpec(
            num_scalar_prefetch=0,
            grid=(mp // bm,),
            in_specs=in_specs,
            out_specs=pl.BlockSpec((bm, cout), lambda i: (i, 0)),
        ),
        compiler_params=pltpu.CompilerParams(
            dimension_semantics=("parallel",),
        ),
    )(*args)
    return out[:m]


def _extract_patches(x_pad, k, stride, h_out, w_out):
    """(N, Hp, Wp, C) -> (N*Ho*Wo, K*K*C), ordered (kh, kw, c) to match w.reshape(K*K*C, Cout)."""
    n = x_pad.shape[0]
    c = x_pad.shape[3]
    slabs = []
    for kh in range(k):
        for kw in range(k):
            slabs.append(
                x_pad[:, kh:kh + stride * (h_out - 1) + 1:stride,
                      kw:kw + stride * (w_out - 1) + 1:stride, :]
            )
    p = jnp.stack(slabs, axis=3)                      # (N, Ho, Wo, K*K, C)
    return p.reshape(n * h_out * w_out, k * k * c)


def conv_layer(x, w, conv_b, bn, *, stride, padding, relu, residual=None):
    """Fused Conv2d (+bias) [+BatchNorm] [+residual] [+ReLU].  x: NHWC, w: HWIO."""
    n, h, wdt, cin = x.shape
    k = w.shape[0]
    cout = w.shape[3]
    h_out = (h + 2 * padding - k) // stride + 1
    w_out = (wdt + 2 * padding - k) // stride + 1

    if padding:
        x = jnp.pad(x, ((0, 0), (padding, padding), (padding, padding), (0, 0)))
    patches = _extract_patches(x, k, stride, h_out, w_out)
    w2d = w.reshape(k * k * cin, cout)

    if bn is not None:
        gamma, beta, mean, var = bn
        scale = gamma * jax.lax.rsqrt(var + BN_EPS)
        bias = (conv_b - mean) * scale + beta
    else:
        scale = jnp.ones((cout,), jnp.float32)
        bias = conv_b

    res2d = None
    if residual is not None:
        res2d = residual.reshape(n * h_out * w_out, cout)

    out2d = _fused_gemm(patches, w2d, scale, bias, res2d, relu=relu)
    return out2d.reshape(n, h_out, w_out, cout)


# ---------------------------------------------------------------------------
# MaxPool 3x3 / stride 2 / pad 1 Pallas kernel
# ---------------------------------------------------------------------------
def _maxpool_kernel(x_ref, o_ref):
    o_ref[...] = jnp.max(x_ref[...], axis=0)


def maxpool_3x3_s2_p1(x):
    n, h, wdt, c = x.shape
    h_out = (h + 2 - 3) // 2 + 1
    w_out = (wdt + 2 - 3) // 2 + 1
    x_pad = jnp.pad(x, ((0, 0), (1, 1), (1, 1), (0, 0)), constant_values=-jnp.inf)

    windows = []
    for kh in range(3):
        for kw in range(3):
            windows.append(
                x_pad[:, kh:kh + 2 * (h_out - 1) + 1:2,
                      kw:kw + 2 * (w_out - 1) + 1:2, :].reshape(n * h_out * w_out, c)
            )
    stacked = jnp.stack(windows, axis=0)              # (9, M, C)

    m = n * h_out * w_out
    bm = min(512, _round_up(m, 8))
    mp = _round_up(m, bm)
    if mp != m:
        stacked = jnp.pad(stacked, ((0, 0), (0, mp - m), (0, 0)),
                          constant_values=-jnp.inf)

    out = pl.pallas_call(
        _maxpool_kernel,
        out_shape=jax.ShapeDtypeStruct((mp, c), x.dtype),
        grid_spec=pltpu.PrefetchScalarGridSpec(
            num_scalar_prefetch=0,
            grid=(mp // bm,),
            in_specs=[pl.BlockSpec((9, bm, c), lambda i: (0, i, 0))],
            out_specs=pl.BlockSpec((bm, c), lambda i: (i, 0)),
        ),
        compiler_params=pltpu.CompilerParams(
            dimension_semantics=("parallel",),
        ),
    )(stacked)
    return out[:m].reshape(n, h_out, w_out, c)


# ---------------------------------------------------------------------------
# Encoder forward (Pallas path)
# ---------------------------------------------------------------------------
def _residual_forward(blk, x):
    stride = blk["stride"]
    y = conv_layer(x, blk["w1"], blk["b1"], blk["bn1"],
                   stride=stride, padding=1, relu=True)
    if "w3" in blk:
        shortcut = conv_layer(x, blk["w3"], blk["b3"], None,
                              stride=stride, padding=0, relu=False)
    else:
        shortcut = x
    # Y = relu(bn2(conv2(Y)) + shortcut) -- add and relu fused into the second conv kernel.
    y = conv_layer(y, blk["w2"], blk["b2"], blk["bn2"],
                   stride=1, padding=1, relu=True, residual=shortcut)
    return y


def encoder_forward(params, x_nchw):
    x = jnp.transpose(x_nchw, (0, 2, 3, 1))          # NCHW -> NHWC
    p1 = params["b1"]
    x = conv_layer(x, p1["w"], p1["b"], p1["bn"], stride=2, padding=3, relu=True)
    x = maxpool_3x3_s2_p1(x)
    for blk in params["b2"]:
        x = _residual_forward(blk, x)
    for blk in params["b3"]:
        x = _residual_forward(blk, x)
    return jnp.transpose(x, (0, 3, 1, 2))            # NHWC -> NCHW (PyTorch layout)


# ---------------------------------------------------------------------------
# Parameter init + pure-JAX reference (lax.conv / reduce_window) for verification
# ---------------------------------------------------------------------------
def init_encoder_params(key):
    keys = iter(jax.random.split(key, 32))

    def conv_p(k, cin, cout):
        k1, k2 = jax.random.split(next(keys))
        bound = 1.0 / (cin * k * k) ** 0.5
        w = jax.random.uniform(k1, (k, k, cin, cout), jnp.float32, -bound, bound)
        b = jax.random.uniform(k2, (cout,), jnp.float32, -bound, bound)
        return w, b

    def bn_p(c):
        k1, k2, k3, k4 = jax.random.split(next(keys), 4)
        gamma = 1.0 + 0.1 * jax.random.normal(k1, (c,), jnp.float32)
        beta = 0.1 * jax.random.normal(k2, (c,), jnp.float32)
        mean = 0.1 * jax.random.normal(k3, (c,), jnp.float32)
        var = 0.5 + jax.nn.softplus(jax.random.normal(k4, (c,), jnp.float32))
        return (gamma, beta, mean, var)

    def residual_p(cin, cout, use_1x1, stride):
        w1, b1 = conv_p(3, cin, cout)
        w2, b2 = conv_p(3, cout, cout)
        blk = {"w1": w1, "b1": b1, "bn1": bn_p(cout),
               "w2": w2, "b2": b2, "bn2": bn_p(cout), "stride": stride}
        if use_1x1:
            w3, b3 = conv_p(1, cin, cout)
            blk["w3"], blk["b3"] = w3, b3
        return blk

    params = {}
    w, b = conv_p(7, 1, 64)
    params["b1"] = {"w": w, "b": b, "bn": bn_p(64)}
    params["b2"] = [residual_p(64, 64, False, 1), residual_p(64, 64, False, 1)]
    params["b3"] = [residual_p(64, 128, True, 2), residual_p(128, 128, False, 1)]
    return params


def _encoder_reference(params, x_nchw):
    def conv(x, w, b, stride, padding):
        y = jax.lax.conv_general_dilated(
            x, w, (stride, stride), ((padding, padding), (padding, padding)),
            dimension_numbers=("NHWC", "HWIO", "NHWC"))
        return y + b

    def bn(x, p):
        gamma, beta, mean, var = p
        return (x - mean) * (gamma * jax.lax.rsqrt(var + BN_EPS)) + beta

    def residual(x, blk):
        s = blk["stride"]
        y = jax.nn.relu(bn(conv(x, blk["w1"], blk["b1"], s, 1), blk["bn1"]))
        y = bn(conv(y, blk["w2"], blk["b2"], 1, 1), blk["bn2"])
        sc = conv(x, blk["w3"], blk["b3"], s, 0) if "w3" in blk else x
        return jax.nn.relu(y + sc)

    x = jnp.transpose(x_nchw, (0, 2, 3, 1))
    p1 = params["b1"]
    x = jax.nn.relu(bn(conv(x, p1["w"], p1["b"], 2, 3), p1["bn"]))
    x = jax.lax.reduce_window(x, -jnp.inf, jax.lax.max,
                              (1, 3, 3, 1), (1, 2, 2, 1),
                              ((0, 0), (1, 1), (1, 1), (0, 0)))
    for blk in params["b2"]:
        x = residual(x, blk)
    for blk in params["b3"]:
        x = residual(x, blk)
    return jnp.transpose(x, (0, 3, 1, 2))


if __name__ == "__main__":
    key = jax.random.PRNGKey(0)
    kx, kp = jax.random.split(key)

    # Small input consistent with the module: batch=2, 1 input channel, 32x32 spatial.
    x = jax.random.normal(kx, (2, 1, 32, 32), jnp.float32)
    params = init_encoder_params(kp)

    fwd = jax.jit(lambda inp: encoder_forward(params, inp))
    out = jax.block_until_ready(fwd(x))

    ref = jax.block_until_ready(_encoder_reference(params, x))

    assert out.shape == (2, 128, 4, 4), out.shape
    max_err = float(jnp.max(jnp.abs(out - ref)))
    assert jnp.allclose(out, ref, rtol=5e-2, atol=5e-2), max_err

    print("KERNEL_OK")
</pallas_src>

<mosaic_0001>
module attributes {stable_mosaic.version = 11 : i64} {
  func.func @_conv_gemm_kernel(%arg0: i32, %arg1: memref<512x49xf32, #tpu.memory_space<vmem>>, %arg2: memref<49x64xf32, #tpu.memory_space<vmem>>, %arg3: memref<1x64xf32, #tpu.memory_space<vmem>>, %arg4: memref<1x64xf32, #tpu.memory_space<vmem>>, %arg5: memref<512x64xf32, #tpu.memory_space<vmem>>) attributes {dimension_semantics = [#tpu.dimension_semantics<parallel>], iteration_bounds = array<i64: 1>, scalar_prefetch = 0 : i64, scratch_operands = 0 : i64, tpu.core_type = #tpu.core_type<tc>, window_params = [{transform_indices = @transform_0, window_bounds = array<i64: 512, 49>}, {pipeline_mode = #tpu.pipeline_mode<synchronous>, transform_indices = @transform_1, window_bounds = array<i64: 49, 64>}, {pipeline_mode = #tpu.pipeline_mode<synchronous>, transform_indices = @transform_2, window_bounds = array<i64: 1, 64>}, {pipeline_mode = #tpu.pipeline_mode<synchronous>, transform_indices = @transform_3, window_bounds = array<i64: 1, 64>}, {transform_indices = @transform_4, window_bounds = array<i64: 512, 64>}]} {
    %c0 = arith.constant 0 : index
    %c0_0 = arith.constant 0 : index
    %0 = vector.load %arg1[%c0, %c0_0] : memref<512x49xf32, #tpu.memory_space<vmem>>, vector<512x49xf32>
    %c0_1 = arith.constant 0 : index
    %c0_2 = arith.constant 0 : index
    %1 = vector.load %arg2[%c0_1, %c0_2] : memref<49x64xf32, #tpu.memory_space<vmem>>, vector<49x64xf32>
    %cst = arith.constant dense<0.000000e+00> : vector<512x64xf32>
    %2 = tpu.matmul %0, %1, %cst {dimension_numbers = #tpu.dot_dimension_numbers<[1], [0], [0], [1], [0, 0, 1, 1], [], []>} : vector<512x49xf32>, vector<49x64xf32>, vector<512x64xf32> -> vector<512x64xf32>
    %c0_3 = arith.constant 0 : index
    %c0_4 = arith.constant 0 : index
    %3 = vector.load %arg3[%c0_3, %c0_4] : memref<1x64xf32, #tpu.memory_space<vmem>>, vector<1x64xf32>
    %4 = vector.broadcast %3 : vector<1x64xf32> to vector<512x64xf32>
    %5 = arith.mulf %2, %4 : vector<512x64xf32>
    %c0_5 = arith.constant 0 : index
    %c0_6 = arith.constant 0 : index
    %6 = vector.load %arg4[%c0_5, %c0_6] : memref<1x64xf32, #tpu.memory_space<vmem>>, vector<1x64xf32>
    %7 = vector.broadcast %6 : vector<1x64xf32> to vector<512x64xf32>
    %8 = arith.addf %5, %7 : vector<512x64xf32>
    %cst_7 = arith.constant 0.000000e+00 : f32
    %9 = vector.broadcast %cst_7 : f32 to vector<512x64xf32>
    %10 = arith.maximumf %8, %9 : vector<512x64xf32>
    %c0_8 = arith.constant 0 : index
    %c0_9 = arith.constant 0 : index
    %11 = vector.load %arg5[%c0_8, %c0_9] : memref<512x64xf32, #tpu.memory_space<vmem>>, vector<512x64xf32>
    tpu.vector_store %arg5[%c0_8, %c0_9], %10 {strides = array<i32>} : memref<512x64xf32, #tpu.memory_space<vmem>>, vector<512x64xf32>,
    return
  }
  func.func @transform_0(%arg0: i32) -> (i32, i32) {
    %c0_i32 = arith.constant 0 : i32
    %c0_i32_0 = arith.constant 0 : i32
    return %arg0, %c0_i32 : i32, i32
  }
  func.func @transform_1(%arg0: i32) -> (i32, i32) {
    %c0_i32 = arith.constant 0 : i32
    %c0_i32_0 = arith.constant 0 : i32
    %c0_i32_1 = arith.constant 0 : i32
    return %c0_i32, %c0_i32_0 : i32, i32
  }
  func.func @transform_2(%arg0: i32) -> (i32, i32) {
    %c0_i32 = arith.constant 0 : i32
    %c0_i32_0 = arith.constant 0 : i32
    %c0_i32_1 = arith.constant 0 : i32
    return %c0_i32, %c0_i32_0 : i32, i32
  }
  func.func @transform_3(%arg0: i32) -> (i32, i32) {
    %c0_i32 = arith.constant 0 : i32
    %c0_i32_0 = arith.constant 0 : i32
    %c0_i32_1 = arith.constant 0 : i32
    return %c0_i32, %c0_i32_0 : i32, i32
  }
  func.func @transform_4(%arg0: i32) -> (i32, i32) {
    %c0_i32 = arith.constant 0 : i32
    %c0_i32_0 = arith.constant 0 : i32
    return %arg0, %c0_i32 : i32, i32
  }
}

module attributes {stable_mosaic.version = 11 : i64} {
  func.func @_maxpool_kernel(%arg0: i32, %arg1: memref<9x128x64xf32, #tpu.memory_space<vmem>>, %arg2: memref<128x64xf32, #tpu.memory_space<vmem>>) attributes {dimension_semantics = [#tpu.dimension_semantics<parallel>], iteration_bounds = array<i64: 1>, scalar_prefetch = 0 : i64, scratch_operands = 0 : i64, tpu.core_type = #tpu.core_type<tc>, window_params = [{transform_indices = @transform_0, window_bounds = array<i64: 9, 128, 64>}, {transform_indices = @transform_1, window_bounds = array<i64: 128, 64>}]} {
    %c0 = arith.constant 0 : index
    %c0_0 = arith.constant 0 : index
    %c0_1 = arith.constant 0 : index
    %0 = vector.load %arg1[%c0, %c0_0, %c0_1] : memref<9x128x64xf32, #tpu.memory_space<vmem>>, vector<9x128x64xf32>
    %cst = arith.constant dense<0xFF800000> : vector<128x64xf32>
    %1 = vector.multi_reduction <maximumf>, %0, %cst [0] : vector<9x128x64xf32> to vector<128x64xf32>
    %c0_2 = arith.constant 0 : index
    %c0_3 = arith.constant 0 : index
    %2 = vector.load %arg2[%c0_2, %c0_3] : memref<128x64xf32, #tpu.memory_space<vmem>>, vector<128x64xf32>
    tpu.vector_store %arg2[%c0_2, %c0_3], %1 {strides = array<i32>} : memref<128x64xf32, #tpu.memory_space<vmem>>, vector<128x64xf32>,
    return
  }
  func.func @transform_0(%arg0: i32) -> (i32, i32, i32) {
    %c0_i32 = arith.constant 0 : i32
    %c0_i32_0 = arith.constant 0 : i32
    %c0_i32_1 = arith.constant 0 : i32
    return %c0_i32, %arg0, %c0_i32_0 : i32, i32, i32
  }
  func.func @transform_1(%arg0: i32) -> (i32, i32) {
    %c0_i32 = arith.constant 0 : i32
    %c0_i32_0 = arith.constant 0 : i32
    return %arg0, %c0_i32 : i32, i32
  }
}

module attributes {stable_mosaic.version = 11 : i64} {
  func.func @_conv_gemm_kernel(%arg0: i32, %arg1: memref<128x576xf32, #tpu.memory_space<vmem>>, %arg2: memref<576x64xf32, #tpu.memory_space<vmem>>, %arg3: memref<1x64xf32, #tpu.memory_space<vmem>>, %arg4: memref<1x64xf32, #tpu.memory_space<vmem>>, %arg5: memref<128x64xf32, #tpu.memory_space<vmem>>) attributes {dimension_semantics = [#tpu.dimension_semantics<parallel>], iteration_bounds = array<i64: 1>, scalar_prefetch = 0 : i64, scratch_operands = 0 : i64, tpu.core_type = #tpu.core_type<tc>, window_params = [{transform_indices = @transform_0, window_bounds = array<i64: 128, 576>}, {pipeline_mode = #tpu.pipeline_mode<synchronous>, transform_indices = @transform_1, window_bounds = array<i64: 576, 64>}, {pipeline_mode = #tpu.pipeline_mode<synchronous>, transform_indices = @transform_2, window_bounds = array<i64: 1, 64>}, {pipeline_mode = #tpu.pipeline_mode<synchronous>, transform_indices = @transform_3, window_bounds = array<i64: 1, 64>}, {transform_indices = @transform_4, window_bounds = array<i64: 128, 64>}]} {
    %c0 = arith.constant 0 : index
    %c0_0 = arith.constant 0 : index
    %0 = vector.load %arg1[%c0, %c0_0] : memref<128x576xf32, #tpu.memory_space<vmem>>, vector<128x576xf32>
    %c0_1 = arith.constant 0 : index
    %c0_2 = arith.constant 0 : index
    %1 = vector.load %arg2[%c0_1, %c0_2] : memref<576x64xf32, #tpu.memory_space<vmem>>, vector<576x64xf32>
    %cst = arith.constant dense<0.000000e+00> : vector<128x64xf32>
    %2 = tpu.matmul %0, %1, %cst {dimension_numbers = #tpu.dot_dimension_numbers<[1], [0], [0], [1], [0, 0, 1, 1], [], []>} : vector<128x576xf32>, vector<576x64xf32>, vector<128x64xf32> -> vector<128x64xf32>
    %c0_3 = arith.constant 0 : index
    %c0_4 = arith.constant 0 : index
    %3 = vector.load %arg3[%c0_3, %c0_4] : memref<1x64xf32, #tpu.memory_space<vmem>>, vector<1x64xf32>
    %4 = vector.broadcast %3 : vector<1x64xf32> to vector<128x64xf32>
    %5 = arith.mulf %2, %4 : vector<128x64xf32>
    %c0_5 = arith.constant 0 : index
    %c0_6 = arith.constant 0 : index
    %6 = vector.load %arg4[%c0_5, %c0_6] : memref<1x64xf32, #tpu.memory_space<vmem>>, vector<1x64xf32>
    %7 = vector.broadcast %6 : vector<1x64xf32> to vector<128x64xf32>
    %8 = arith.addf %5, %7 : vector<128x64xf32>
    %cst_7 = arith.constant 0.000000e+00 : f32
    %9 = vector.broadcast %cst_7 : f32 to vector<128x64xf32>
    %10 = arith.maximumf %8, %9 : vector<128x64xf32>
    %c0_8 = arith.constant 0 : index
    %c0_9 = arith.constant 0 : index
    %11 = vector.load %arg5[%c0_8, %c0_9] : memref<128x64xf32, #tpu.memory_space<vmem>>, vector<128x64xf32>
    tpu.vector_store %arg5[%c0_8, %c0_9], %10 {strides = array<i32>} : memref<128x64xf32, #tpu.memory_space<vmem>>, vector<128x64xf32>,
    return
  }
  func.func @transform_0(%arg0: i32) -> (i32, i32) {
    %c0_i32 = arith.constant 0 : i32
    %c0_i32_0 = arith.constant 0 : i32
    return %arg0, %c0_i32 : i32, i32
  }
  func.func @transform_1(%arg0: i32) -> (i32, i32) {
    %c0_i32 = arith.constant 0 : i32
    %c0_i32_0 = arith.constant 0 : i32
    %c0_i32_1 = arith.constant 0 : i32
    return %c0_i32, %c0_i32_0 : i32, i32
  }
  func.func @transform_2(%arg0: i32) -> (i32, i32) {
    %c0_i32 = arith.constant 0 : i32
    %c0_i32_0 = arith.constant 0 : i32
    %c0_i32_1 = arith.constant 0 : i32
    return %c0_i32, %c0_i32_0 : i32, i32
  }
  func.func @transform_3(%arg0: i32) -> (i32, i32) {
    %c0_i32 = arith.constant 0 : i32
    %c0_i32_0 = arith.constant 0 : i32
    %c0_i32_1 = arith.constant 0 : i32
    return %c0_i32, %c0_i32_0 : i32, i32
  }
  func.func @transform_4(%arg0: i32) -> (i32, i32) {
    %c0_i32 = arith.constant 0 : i32
    %c0_i32_0 = arith.constant 0 : i32
    return %arg0, %c0_i32 : i32, i32
  }
}

module attributes {stable_mosaic.version = 11 : i64} {
  func.func @_conv_gemm_kernel(%arg0: i32, %arg1: memref<128x576xf32, #tpu.memory_space<vmem>>, %arg2: memref<576x64xf32, #tpu.memory_space<vmem>>, %arg3: memref<1x64xf32, #tpu.memory_space<vmem>>, %arg4: memref<1x64xf32, #tpu.memory_space<vmem>>, %arg5: memref<128x64xf32, #tpu.memory_space<vmem>>, %arg6: memref<128x64xf32, #tpu.memory_space<vmem>>) attributes {dimension_semantics = [#tpu.dimension_semantics<parallel>], iteration_bounds = array<i64: 1>, scalar_prefetch = 0 : i64, scratch_operands = 0 : i64, tpu.core_type = #tpu.core_type<tc>, window_params = [{transform_indices = @transform_0, window_bounds = array<i64: 128, 576>}, {pipeline_mode = #tpu.pipeline_mode<synchronous>, transform_indices = @transform_1, window_bounds = array<i64: 576, 64>}, {pipeline_mode = #tpu.pipeline_mode<synchronous>, transform_indices = @transform_2, window_bounds = array<i64: 1, 64>}, {pipeline_mode = #tpu.pipeline_mode<synchronous>, transform_indices = @transform_3, window_bounds = array<i64: 1, 64>}, {transform_indices = @transform_4, window_bounds = array<i64: 128, 64>}, {transform_indices = @transform_5, window_bounds = array<i64: 128, 64>}]} {
    %c0 = arith.constant 0 : index
    %c0_0 = arith.constant 0 : index
    %0 = vector.load %arg1[%c0, %c0_0] : memref<128x576xf32, #tpu.memory_space<vmem>>, vector<128x576xf32>
    %c0_1 = arith.constant 0 : index
    %c0_2 = arith.constant 0 : index
    %1 = vector.load %arg2[%c0_1, %c0_2] : memref<576x64xf32, #tpu.memory_space<vmem>>, vector<576x64xf32>
    %cst = arith.constant dense<0.000000e+00> : vector<128x64xf32>
    %2 = tpu.matmul %0, %1, %cst {dimension_numbers = #tpu.dot_dimension_numbers<[1], [0], [0], [1], [0, 0, 1, 1], [], []>} : vector<128x576xf32>, vector<576x64xf32>, vector<128x64xf32> -> vector<128x64xf32>
    %c0_3 = arith.constant 0 : index
    %c0_4 = arith.constant 0 : index
    %3 = vector.load %arg3[%c0_3, %c0_4] : memref<1x64xf32, #tpu.memory_space<vmem>>, vector<1x64xf32>
    %4 = vector.broadcast %3 : vector<1x64xf32> to vector<128x64xf32>
    %5 = arith.mulf %2, %4 : vector<128x64xf32>
    %c0_5 = arith.constant 0 : index
    %c0_6 = arith.constant 0 : index
    %6 = vector.load %arg4[%c0_5, %c0_6] : memref<1x64xf32, #tpu.memory_space<vmem>>, vector<1x64xf32>
    %7 = vector.broadcast %6 : vector<1x64xf32> to vector<128x64xf32>
    %8 = arith.addf %5, %7 : vector<128x64xf32>
    %c0_7 = arith.constant 0 : index
    %c0_8 = arith.constant 0 : index
    %9 = vector.load %arg5[%c0_7, %c0_8] : memref<128x64xf32, #tpu.memory_space<vmem>>, vector<128x64xf32>
    %10 = arith.addf %8, %9 : vector<128x64xf32>
    %cst_9 = arith.constant 0.000000e+00 : f32
    %11 = vector.broadcast %cst_9 : f32 to vector<128x64xf32>
    %12 = arith.maximumf %10, %11 : vector<128x64xf32>
    %c0_10 = arith.constant 0 : index
    %c0_11 = arith.constant 0 : index
    %13 = vector.load %arg6[%c0_10, %c0_11] : memref<128x64xf32, #tpu.memory_space<vmem>>, vector<128x64xf32>
    tpu.vector_store %arg6[%c0_10, %c0_11], %12 {strides = array<i32>} : memref<128x64xf32, #tpu.memory_space<vmem>>, vector<128x64xf32>,
    return
  }
  func.func @transform_0(%arg0: i32) -> (i32, i32) {
    %c0_i32 = arith.constant 0 : i32
    %c0_i32_0 = arith.constant 0 : i32
    return %arg0, %c0_i32 : i32, i32
  }
  func.func @transform_1(%arg0: i32) -> (i32, i32) {
    %c0_i32 = arith.constant 0 : i32
    %c0_i32_0 = arith.constant 0 : i32
    %c0_i32_1 = arith.constant 0 : i32
    return %c0_i32, %c0_i32_0 : i32, i32
  }
  func.func @transform_2(%arg0: i32) -> (i32, i32) {
    %c0_i32 = arith.constant 0 : i32
    %c0_i32_0 = arith.constant 0 : i32
    %c0_i32_1 = arith.constant 0 : i32
    return %c0_i32, %c0_i32_0 : i32, i32
  }
  func.func @transform_3(%arg0: i32) -> (i32, i32) {
    %c0_i32 = arith.constant 0 : i32
    %c0_i32_0 = arith.constant 0 : i32
    %c0_i32_1 = arith.constant 0 : i32
    return %c0_i32, %c0_i32_0 : i32, i32
  }
  func.func @transform_4(%arg0: i32) -> (i32, i32) {
    %c0_i32 = arith.constant 0 : i32
    %c0_i32_0 = arith.constant 0 : i32
    return %arg0, %c0_i32 : i32, i32
  }
  func.func @transform_5(%arg0: i32) -> (i32, i32) {
    %c0_i32 = arith.constant 0 : i32
    %c0_i32_0 = arith.constant 0 : i32
    return %arg0, %c0_i32 : i32, i32
  }
}

module attributes {stable_mosaic.version = 11 : i64} {
  func.func @_conv_gemm_kernel(%arg0: i32, %arg1: memref<32x576xf32, #tpu.memory_space<vmem>>, %arg2: memref<576x128xf32, #tpu.memory_space<vmem>>, %arg3: memref<1x128xf32, #tpu.memory_space<vmem>>, %arg4: memref<1x128xf32, #tpu.memory_space<vmem>>, %arg5: memref<32x128xf32, #tpu.memory_space<vmem>>) attributes {dimension_semantics = [#tpu.dimension_semantics<parallel>], iteration_bounds = array<i64: 1>, scalar_prefetch = 0 : i64, scratch_operands = 0 : i64, tpu.core_type = #tpu.core_type<tc>, window_params = [{transform_indices = @transform_0, window_bounds = array<i64: 32, 576>}, {pipeline_mode = #tpu.pipeline_mode<synchronous>, transform_indices = @transform_1, window_bounds = array<i64: 576, 128>}, {pipeline_mode = #tpu.pipeline_mode<synchronous>, transform_indices = @transform_2, window_bounds = array<i64: 1, 128>}, {pipeline_mode = #tpu.pipeline_mode<synchronous>, transform_indices = @transform_3, window_bounds = array<i64: 1, 128>}, {transform_indices = @transform_4, window_bounds = array<i64: 32, 128>}]} {
    %c0 = arith.constant 0 : index
    %c0_0 = arith.constant 0 : index
    %0 = vector.load %arg1[%c0, %c0_0] : memref<32x576xf32, #tpu.memory_space<vmem>>, vector<32x576xf32>
    %c0_1 = arith.constant 0 : index
    %c0_2 = arith.constant 0 : index
    %1 = vector.load %arg2[%c0_1, %c0_2] : memref<576x128xf32, #tpu.memory_space<vmem>>, vector<576x128xf32>
    %cst = arith.constant dense<0.000000e+00> : vector<32x128xf32>
    %2 = tpu.matmul %0, %1, %cst {dimension_numbers = #tpu.dot_dimension_numbers<[1], [0], [0], [1], [0, 0, 1, 1], [], []>} : vector<32x576xf32>, vector<576x128xf32>, vector<32x128xf32> -> vector<32x128xf32>
    %c0_3 = arith.constant 0 : index
    %c0_4 = arith.constant 0 : index
    %3 = vector.load %arg3[%c0_3, %c0_4] : memref<1x128xf32, #tpu.memory_space<vmem>>, vector<1x128xf32>
    %4 = vector.broadcast %3 : vector<1x128xf32> to vector<32x128xf32>
    %5 = arith.mulf %2, %4 : vector<32x128xf32>
    %c0_5 = arith.constant 0 : index
    %c0_6 = arith.constant 0 : index
    %6 = vector.load %arg4[%c0_5, %c0_6] : memref<1x128xf32, #tpu.memory_space<vmem>>, vector<1x128xf32>
    %7 = vector.broadcast %6 : vector<1x128xf32> to vector<32x128xf32>
    %8 = arith.addf %5, %7 : vector<32x128xf32>
    %cst_7 = arith.constant 0.000000e+00 : f32
    %9 = vector.broadcast %cst_7 : f32 to vector<32x128xf32>
    %10 = arith.maximumf %8, %9 : vector<32x128xf32>
    %c0_8 = arith.constant 0 : index
    %c0_9 = arith.constant 0 : index
    %11 = vector.load %arg5[%c0_8, %c0_9] : memref<32x128xf32, #tpu.memory_space<vmem>>, vector<32x128xf32>
    tpu.vector_store %arg5[%c0_8, %c0_9], %10 {strides = array<i32>} : memref<32x128xf32, #tpu.memory_space<vmem>>, vector<32x128xf32>,
    return
  }
  func.func @transform_0(%arg0: i32) -> (i32, i32) {
    %c0_i32 = arith.constant 0 : i32
    %c0_i32_0 = arith.constant 0 : i32
    return %arg0, %c0_i32 : i32, i32
  }
  func.func @transform_1(%arg0: i32) -> (i32, i32) {
    %c0_i32 = arith.constant 0 : i32
    %c0_i32_0 = arith.constant 0 : i32
    %c0_i32_1 = arith.constant 0 : i32
    return %c0_i32, %c0_i32_0 : i32, i32
  }
  func.func @transform_2(%arg0: i32) -> (i32, i32) {
    %c0_i32 = arith.constant 0 : i32
    %c0_i32_0 = arith.constant 0 : i32
    %c0_i32_1 = arith.constant 0 : i32
    return %c0_i32, %c0_i32_0 : i32, i32
  }
  func.func @transform_3(%arg0: i32) -> (i32, i32) {
    %c0_i32 = arith.constant 0 : i32
    %c0_i32_0 = arith.constant 0 : i32
    %c0_i32_1 = arith.constant 0 : i32
    return %c0_i32, %c0_i32_0 : i32, i32
  }
  func.func @transform_4(%arg0: i32) -> (i32, i32) {
    %c0_i32 = arith.constant 0 : i32
    %c0_i32_0 = arith.constant 0 : i32
    return %arg0, %c0_i32 : i32, i32
  }
}

module attributes {stable_mosaic.version = 11 : i64} {
  func.func @_conv_gemm_kernel(%arg0: i32, %arg1: memref<32x64xf32, #tpu.memory_space<vmem>>, %arg2: memref<64x128xf32, #tpu.memory_space<vmem>>, %arg3: memref<1x128xf32, #tpu.memory_space<vmem>>, %arg4: memref<1x128xf32, #tpu.memory_space<vmem>>, %arg5: memref<32x128xf32, #tpu.memory_space<vmem>>) attributes {dimension_semantics = [#tpu.dimension_semantics<parallel>], iteration_bounds = array<i64: 1>, scalar_prefetch = 0 : i64, scratch_operands = 0 : i64, tpu.core_type = #tpu.core_type<tc>, window_params = [{transform_indices = @transform_0, window_bounds = array<i64: 32, 64>}, {pipeline_mode = #tpu.pipeline_mode<synchronous>, transform_indices = @transform_1, window_bounds = array<i64: 64, 128>}, {pipeline_mode = #tpu.pipeline_mode<synchronous>, transform_indices = @transform_2, window_bounds = array<i64: 1, 128>}, {pipeline_mode = #tpu.pipeline_mode<synchronous>, transform_indices = @transform_3, window_bounds = array<i64: 1, 128>}, {transform_indices = @transform_4, window_bounds = array<i64: 32, 128>}]} {
    %c0 = arith.constant 0 : index
    %c0_0 = arith.constant 0 : index
    %0 = vector.load %arg1[%c0, %c0_0] : memref<32x64xf32, #tpu.memory_space<vmem>>, vector<32x64xf32>
    %c0_1 = arith.constant 0 : index
    %c0_2 = arith.constant 0 : index
    %1 = vector.load %arg2[%c0_1, %c0_2] : memref<64x128xf32, #tpu.memory_space<vmem>>, vector<64x128xf32>
    %cst = arith.constant dense<0.000000e+00> : vector<32x128xf32>
    %2 = tpu.matmul %0, %1, %cst {dimension_numbers = #tpu.dot_dimension_numbers<[1], [0], [0], [1], [0, 0, 1, 1], [], []>} : vector<32x64xf32>, vector<64x128xf32>, vector<32x128xf32> -> vector<32x128xf32>
    %c0_3 = arith.constant 0 : index
    %c0_4 = arith.constant 0 : index
    %3 = vector.load %arg3[%c0_3, %c0_4] : memref<1x128xf32, #tpu.memory_space<vmem>>, vector<1x128xf32>
    %4 = vector.broadcast %3 : vector<1x128xf32> to vector<32x128xf32>
    %5 = arith.mulf %2, %4 : vector<32x128xf32>
    %c0_5 = arith.constant 0 : index
    %c0_6 = arith.constant 0 : index
    %6 = vector.load %arg4[%c0_5, %c0_6] : memref<1x128xf32, #tpu.memory_space<vmem>>, vector<1x128xf32>
    %7 = vector.broadcast %6 : vector<1x128xf32> to vector<32x128xf32>
    %8 = arith.addf %5, %7 : vector<32x128xf32>
    %c0_7 = arith.constant 0 : index
    %c0_8 = arith.constant 0 : index
    %9 = vector.load %arg5[%c0_7, %c0_8] : memref<32x128xf32, #tpu.memory_space<vmem>>, vector<32x128xf32>
    tpu.vector_store %arg5[%c0_7, %c0_8], %8 {strides = array<i32>} : memref<32x128xf32, #tpu.memory_space<vmem>>, vector<32x128xf32>,
    return
  }
  func.func @transform_0(%arg0: i32) -> (i32, i32) {
    %c0_i32 = arith.constant 0 : i32
    %c0_i32_0 = arith.constant 0 : i32
    return %arg0, %c0_i32 : i32, i32
  }
  func.func @transform_1(%arg0: i32) -> (i32, i32) {
    %c0_i32 = arith.constant 0 : i32
    %c0_i32_0 = arith.constant 0 : i32
    %c0_i32_1 = arith.constant 0 : i32
    return %c0_i32, %c0_i32_0 : i32, i32
  }
  func.func @transform_2(%arg0: i32) -> (i32, i32) {
    %c0_i32 = arith.constant 0 : i32
    %c0_i32_0 = arith.constant 0 : i32
    %c0_i32_1 = arith.constant 0 : i32
    return %c0_i32, %c0_i32_0 : i32, i32
  }
  func.func @transform_3(%arg0: i32) -> (i32, i32) {
    %c0_i32 = arith.constant 0 : i32
    %c0_i32_0 = arith.constant 0 : i32
    %c0_i32_1 = arith.constant 0 : i32
    return %c0_i32, %c0_i32_0 : i32, i32
  }
  func.func @transform_4(%arg0: i32) -> (i32, i32) {
    %c0_i32 = arith.constant 0 : i32
    %c0_i32_0 = arith.constant 0 : i32
    return %arg0, %c0_i32 : i32, i32
  }
}

module attributes {stable_mosaic.version = 11 : i64} {
  func.func @_conv_gemm_kernel(%arg0: i32, %arg1: memref<32x1152xf32, #tpu.memory_space<vmem>>, %arg2: memref<1152x128xf32, #tpu.memory_space<vmem>>, %arg3: memref<1x128xf32, #tpu.memory_space<vmem>>, %arg4: memref<1x128xf32, #tpu.memory_space<vmem>>, %arg5: memref<32x128xf32, #tpu.memory_space<vmem>>, %arg6: memref<32x128xf32, #tpu.memory_space<vmem>>) attributes {dimension_semantics = [#tpu.dimension_semantics<parallel>], iteration_bounds = array<i64: 1>, scalar_prefetch = 0 : i64, scratch_operands = 0 : i64, tpu.core_type = #tpu.core_type<tc>, window_params = [{transform_indices = @transform_0, window_bounds = array<i64: 32, 1152>}, {pipeline_mode = #tpu.pipeline_mode<synchronous>, transform_indices = @transform_1, window_bounds = array<i64: 1152, 128>}, {pipeline_mode = #tpu.pipeline_mode<synchronous>, transform_indices = @transform_2, window_bounds = array<i64: 1, 128>}, {pipeline_mode = #tpu.pipeline_mode<synchronous>, transform_indices = @transform_3, window_bounds = array<i64: 1, 128>}, {transform_indices = @transform_4, window_bounds = array<i64: 32, 128>}, {transform_indices = @transform_5, window_bounds = array<i64: 32, 128>}]} {
    %c0 = arith.constant 0 : index
    %c0_0 = arith.constant 0 : index
    %0 = vector.load %arg1[%c0, %c0_0] : memref<32x1152xf32, #tpu.memory_space<vmem>>, vector<32x1152xf32>
    %c0_1 = arith.constant 0 : index
    %c0_2 = arith.constant 0 : index
    %1 = vector.load %arg2[%c0_1, %c0_2] : memref<1152x128xf32, #tpu.memory_space<vmem>>, vector<1152x128xf32>
    %cst = arith.constant dense<0.000000e+00> : vector<32x128xf32>
    %2 = tpu.matmul %0, %1, %cst {dimension_numbers = #tpu.dot_dimension_numbers<[1], [0], [0], [1], [0, 0, 1, 1], [], []>} : vector<32x1152xf32>, vector<1152x128xf32>, vector<32x128xf32> -> vector<32x128xf32>
    %c0_3 = arith.constant 0 : index
    %c0_4 = arith.constant 0 : index
    %3 = vector.load %arg3[%c0_3, %c0_4] : memref<1x128xf32, #tpu.memory_space<vmem>>, vector<1x128xf32>
    %4 = vector.broadcast %3 : vector<1x128xf32> to vector<32x128xf32>
    %5 = arith.mulf %2, %4 : vector<32x128xf32>
    %c0_5 = arith.constant 0 : index
    %c0_6 = arith.constant 0 : index
    %6 = vector.load %arg4[%c0_5, %c0_6] : memref<1x128xf32, #tpu.memory_space<vmem>>, vector<1x128xf32>
    %7 = vector.broadcast %6 : vector<1x128xf32> to vector<32x128xf32>
    %8 = arith.addf %5, %7 : vector<32x128xf32>
    %c0_7 = arith.constant 0 : index
    %c0_8 = arith.constant 0 : index
    %9 = vector.load %arg5[%c0_7, %c0_8] : memref<32x128xf32, #tpu.memory_space<vmem>>, vector<32x128xf32>
    %10 = arith.addf %8, %9 : vector<32x128xf32>
    %cst_9 = arith.constant 0.000000e+00 : f32
    %11 = vector.broadcast %cst_9 : f32 to vector<32x128xf32>
    %12 = arith.maximumf %10, %11 : vector<32x128xf32>
    %c0_10 = arith.constant 0 : index
    %c0_11 = arith.constant 0 : index
    %13 = vector.load %arg6[%c0_10, %c0_11] : memref<32x128xf32, #tpu.memory_space<vmem>>, vector<32x128xf32>
    tpu.vector_store %arg6[%c0_10, %c0_11], %12 {strides = array<i32>} : memref<32x128xf32, #tpu.memory_space<vmem>>, vector<32x128xf32>,
    return
  }
  func.func @transform_0(%arg0: i32) -> (i32, i32) {
    %c0_i32 = arith.constant 0 : i32
    %c0_i32_0 = arith.constant 0 : i32
    return %arg0, %c0_i32 : i32, i32
  }
  func.func @transform_1(%arg0: i32) -> (i32, i32) {
    %c0_i32 = arith.constant 0 : i32
    %c0_i32_0 = arith.constant 0 : i32
    %c0_i32_1 = arith.constant 0 : i32
    return %c0_i32, %c0_i32_0 : i32, i32
  }
  func.func @transform_2(%arg0: i32) -> (i32, i32) {
    %c0_i32 = arith.constant 0 : i32
    %c0_i32_0 = arith.constant 0 : i32
    %c0_i32_1 = arith.constant 0 : i32
    return %c0_i32, %c0_i32_0 : i32, i32
  }
  func.func @transform_3(%arg0: i32) -> (i32, i32) {
    %c0_i32 = arith.constant 0 : i32
    %c0_i32_0 = arith.constant 0 : i32
    %c0_i32_1 = arith.constant 0 : i32
    return %c0_i32, %c0_i32_0 : i32, i32
  }
  func.func @transform_4(%arg0: i32) -> (i32, i32) {
    %c0_i32 = arith.constant 0 : i32
    %c0_i32_0 = arith.constant 0 : i32
    return %arg0, %c0_i32 : i32, i32
  }
  func.func @transform_5(%arg0: i32) -> (i32, i32) {
    %c0_i32 = arith.constant 0 : i32
    %c0_i32_0 = arith.constant 0 : i32
    return %arg0, %c0_i32 : i32, i32
  }
}

module attributes {stable_mosaic.version = 11 : i64} {
  func.func @_conv_gemm_kernel(%arg0: i32, %arg1: memref<32x1152xf32, #tpu.memory_space<vmem>>, %arg2: memref<1152x128xf32, #tpu.memory_space<vmem>>, %arg3: memref<1x128xf32, #tpu.memory_space<vmem>>, %arg4: memref<1x128xf32, #tpu.memory_space<vmem>>, %arg5: memref<32x128xf32, #tpu.memory_space<vmem>>) attributes {dimension_semantics = [#tpu.dimension_semantics<parallel>], iteration_bounds = array<i64: 1>, scalar_prefetch = 0 : i64, scratch_operands = 0 : i64, tpu.core_type = #tpu.core_type<tc>, window_params = [{transform_indices = @transform_0, window_bounds = array<i64: 32, 1152>}, {pipeline_mode = #tpu.pipeline_mode<synchronous>, transform_indices = @transform_1, window_bounds = array<i64: 1152, 128>}, {pipeline_mode = #tpu.pipeline_mode<synchronous>, transform_indices = @transform_2, window_bounds = array<i64: 1, 128>}, {pipeline_mode = #tpu.pipeline_mode<synchronous>, transform_indices = @transform_3, window_bounds = array<i64: 1, 128>}, {transform_indices = @transform_4, window_bounds = array<i64: 32, 128>}]} {
    %c0 = arith.constant 0 : index
    %c0_0 = arith.constant 0 : index
    %0 = vector.load %arg1[%c0, %c0_0] : memref<32x1152xf32, #tpu.memory_space<vmem>>, vector<32x1152xf32>
    %c0_1 = arith.constant 0 : index
    %c0_2 = arith.constant 0 : index
    %1 = vector.load %arg2[%c0_1, %c0_2] : memref<1152x128xf32, #tpu.memory_space<vmem>>, vector<1152x128xf32>
    %cst = arith.constant dense<0.000000e+00> : vector<32x128xf32>
    %2 = tpu.matmul %0, %1, %cst {dimension_numbers = #tpu.dot_dimension_numbers<[1], [0], [0], [1], [0, 0, 1, 1], [], []>} : vector<32x1152xf32>, vector<1152x128xf32>, vector<32x128xf32> -> vector<32x128xf32>
    %c0_3 = arith.constant 0 : index
    %c0_4 = arith.constant 0 : index
    %3 = vector.load %arg3[%c0_3, %c0_4] : memref<1x128xf32, #tpu.memory_space<vmem>>, vector<1x128xf32>
    %4 = vector.broadcast %3 : vector<1x128xf32> to vector<32x128xf32>
    %5 = arith.mulf %2, %4 : vector<32x128xf32>
    %c0_5 = arith.constant 0 : index
    %c0_6 = arith.constant 0 : index
    %6 = vector.load %arg4[%c0_5, %c0_6] : memref<1x128xf32, #tpu.memory_space<vmem>>, vector<1x128xf32>
    %7 = vector.broadcast %6 : vector<1x128xf32> to vector<32x128xf32>
    %8 = arith.addf %5, %7 : vector<32x128xf32>
    %cst_7 = arith.constant 0.000000e+00 : f32
    %9 = vector.broadcast %cst_7 : f32 to vector<32x128xf32>
    %10 = arith.maximumf %8, %9 : vector<32x128xf32>
    %c0_8 = arith.constant 0 : index
    %c0_9 = arith.constant 0 : index
    %11 = vector.load %arg5[%c0_8, %c0_9] : memref<32x128xf32, #tpu.memory_space<vmem>>, vector<32x128xf32>
    tpu.vector_store %arg5[%c0_8, %c0_9], %10 {strides = array<i32>} : memref<32x128xf32, #tpu.memory_space<vmem>>, vector<32x128xf32>,
    return
  }
  func.func @transform_0(%arg0: i32) -> (i32, i32) {
    %c0_i32 = arith.constant 0 : i32
    %c0_i32_0 = arith.constant 0 : i32
    return %arg0, %c0_i32 : i32, i32
  }
  func.func @transform_1(%arg0: i32) -> (i32, i32) {
    %c0_i32 = arith.constant 0 : i32
    %c0_i32_0 = arith.constant 0 : i32
    %c0_i32_1 = arith.constant 0 : i32
    return %c0_i32, %c0_i32_0 : i32, i32
  }
  func.func @transform_2(%arg0: i32) -> (i32, i32) {
    %c0_i32 = arith.constant 0 : i32
    %c0_i32_0 = arith.constant 0 : i32
    %c0_i32_1 = arith.constant 0 : i32
    return %c0_i32, %c0_i32_0 : i32, i32
  }
  func.func @transform_3(%arg0: i32) -> (i32, i32) {
    %c0_i32 = arith.constant 0 : i32
    %c0_i32_0 = arith.constant 0 : i32
    %c0_i32_1 = arith.constant 0 : i32
    return %c0_i32, %c0_i32_0 : i32, i32
  }
  func.func @transform_4(%arg0: i32) -> (i32, i32) {
    %c0_i32 = arith.constant 0 : i32
    %c0_i32_0 = arith.constant 0 : i32
    return %arg0, %c0_i32 : i32, i32
  }
}

module attributes {stable_mosaic.version = 11 : i64} {
  func.func @_conv_gemm_kernel(%arg0: i32, %arg1: memref<32x1152xf32, #tpu.memory_space<vmem>>, %arg2: memref<1152x128xf32, #tpu.memory_space<vmem>>, %arg3: memref<1x128xf32, #tpu.memory_space<vmem>>, %arg4: memref<1x128xf32, #tpu.memory_space<vmem>>, %arg5: memref<32x128xf32, #tpu.memory_space<vmem>>, %arg6: memref<32x128xf32, #tpu.memory_space<vmem>>) attributes {dimension_semantics = [#tpu.dimension_semantics<parallel>], iteration_bounds = array<i64: 1>, scalar_prefetch = 0 : i64, scratch_operands = 0 : i64, tpu.core_type = #tpu.core_type<tc>, window_params = [{transform_indices = @transform_0, window_bounds = array<i64: 32, 1152>}, {pipeline_mode = #tpu.pipeline_mode<synchronous>, transform_indices = @transform_1, window_bounds = array<i64: 1152, 128>}, {pipeline_mode = #tpu.pipeline_mode<synchronous>, transform_indices = @transform_2, window_bounds = array<i64: 1, 128>}, {pipeline_mode = #tpu.pipeline_mode<synchronous>, transform_indices = @transform_3, window_bounds = array<i64: 1, 128>}, {transform_indices = @transform_4, window_bounds = array<i64: 32, 128>}, {transform_indices = @transform_5, window_bounds = array<i64: 32, 128>}]} {
    %c0 = arith.constant 0 : index
    %c0_0 = arith.constant 0 : index
    %0 = vector.load %arg1[%c0, %c0_0] : memref<32x1152xf32, #tpu.memory_space<vmem>>, vector<32x1152xf32>
    %c0_1 = arith.constant 0 : index
    %c0_2 = arith.constant 0 : index
    %1 = vector.load %arg2[%c0_1, %c0_2] : memref<1152x128xf32, #tpu.memory_space<vmem>>, vector<1152x128xf32>
    %cst = arith.constant dense<0.000000e+00> : vector<32x128xf32>
    %2 = tpu.matmul %0, %1, %cst {dimension_numbers = #tpu.dot_dimension_numbers<[1], [0], [0], [1], [0, 0, 1, 1], [], []>} : vector<32x1152xf32>, vector<1152x128xf32>, vector<32x128xf32> -> vector<32x128xf32>
    %c0_3 = arith.constant 0 : index
    %c0_4 = arith.constant 0 : index
    %3 = vector.load %arg3[%c0_3, %c0_4] : memref<1x128xf32, #tpu.memory_space<vmem>>, vector<1x128xf32>
    %4 = vector.broadcast %3 : vector<1x128xf32> to vector<32x128xf32>
    %5 = arith.mulf %2, %4 : vector<32x128xf32>
    %c0_5 = arith.constant 0 : index
    %c0_6 = arith.constant 0 : index
    %6 = vector.load %arg4[%c0_5, %c0_6] : memref<1x128xf32, #tpu.memory_space<vmem>>, vector<1x128xf32>
    %7 = vector.broadcast %6 : vector<1x128xf32> to vector<32x128xf32>
    %8 = arith.addf %5, %7 : vector<32x128xf32>
    %c0_7 = arith.constant 0 : index
    %c0_8 = arith.constant 0 : index
    %9 = vector.load %arg5[%c0_7, %c0_8] : memref<32x128xf32, #tpu.memory_space<vmem>>, vector<32x128xf32>
    %10 = arith.addf %8, %9 : vector<32x128xf32>
    %cst_9 = arith.constant 0.000000e+00 : f32
    %11 = vector.broadcast %cst_9 : f32 to vector<32x128xf32>
    %12 = arith.maximumf %10, %11 : vector<32x128xf32>
    %c0_10 = arith.constant 0 : index
    %c0_11 = arith.constant 0 : index
    %13 = vector.load %arg6[%c0_10, %c0_11] : memref<32x128xf32, #tpu.memory_space<vmem>>, vector<32x128xf32>
    tpu.vector_store %arg6[%c0_10, %c0_11], %12 {strides = array<i32>} : memref<32x128xf32, #tpu.memory_space<vmem>>, vector<32x128xf32>,
    return
  }
  func.func @transform_0(%arg0: i32) -> (i32, i32) {
    %c0_i32 = arith.constant 0 : i32
    %c0_i32_0 = arith.constant 0 : i32
    return %arg0, %c0_i32 : i32, i32
  }
  func.func @transform_1(%arg0: i32) -> (i32, i32) {
    %c0_i32 = arith.constant 0 : i32
    %c0_i32_0 = arith.constant 0 : i32
    %c0_i32_1 = arith.constant 0 : i32
    return %c0_i32, %c0_i32_0 : i32, i32
  }
  func.func @transform_2(%arg0: i32) -> (i32, i32) {
    %c0_i32 = arith.constant 0 : i32
    %c0_i32_0 = arith.constant 0 : i32
    %c0_i32_1 = arith.constant 0 : i32
    return %c0_i32, %c0_i32_0 : i32, i32
  }
  func.func @transform_3(%arg0: i32) -> (i32, i32) {
    %c0_i32 = arith.constant 0 : i32
    %c0_i32_0 = arith.constant 0 : i32
    %c0_i32_1 = arith.constant 0 : i32
    return %c0_i32, %c0_i32_0 : i32, i32
  }
  func.func @transform_4(%arg0: i32) -> (i32, i32) {
    %c0_i32 = arith.constant 0 : i32
    %c0_i32_0 = arith.constant 0 : i32
    return %arg0, %c0_i32 : i32, i32
  }
  func.func @transform_5(%arg0: i32) -> (i32, i32) {
    %c0_i32 = arith.constant 0 : i32
    %c0_i32_0 = arith.constant 0 : i32
    return %arg0, %c0_i32 : i32, i32
  }
}

</mosaic_0001>

<bundles_post_ra>
// kernel: _lambda_.11
= control target key start
LH: loop header
LB: loop body
LE: loop exit
PB: predicated region body
PF: predicated region fallthrough
CT: control target
= control target key end

     0   :  { %vm281_vm0 = vcmask 1040384   ;;  %vm88_vm1 = vcmask 400384   ;;  %vm694_vm2 = vcmask 523264   ;;  %s1547_s1 = inlined_call_operand.vmem [shape: f32[49,64], index: 1, kind: input, shape index: {}]   ;;  %s1548_s0 = inlined_call_operand.vmem [shape: f32[512,49], index: 0, kind: input, shape index: {}]   ;;  %s1549_s2 = inlined_call_operand.vmem [shape: f32[1,64], index: 2, kind: input, shape index: {}]   ;;  %s1550_s3 = inlined_call_operand.vmem [shape: f32[1,64], index: 3, kind: input, shape index: {}]   ;;  %s1551_s4 = inlined_call_operand.vmem [shape: f32[512,64], index: 4, kind: output, shape index: {}]  }
   0x1   :  { %v87_v0 = vld [vmem:[%s1547_s1 + $0x30] sm:$0x1]  ;;  %v86_v1 = vld [vmem:[%s1547_s1 + $0x28] sm:$0xff]  ;;  %v85_v2 = vld [vmem:[%s1547_s1 + $0x20] sm:$0xff] }
   0x2   :  { %829 = vmatpush.msk.msra.mxu2 %vm281_vm0, %v87_v0  ;;  %830 = vmatpush.msk.msra.mxu3 %vm281_vm0, %v87_v0  ;;  %v84_v3 = vld [vmem:[%s1547_s1 + $0x18] sm:$0xff]  ;;  %v83_v4 = vld [vmem:[%s1547_s1 + $0x10] sm:$0xff]  ;;  %v82_v5 = vld [vmem:[%s1547_s1 + $0x8] sm:$0xff] }
   0x3   :  { %763 = vmatpush.msk.msra.mxu0 %vm281_vm0, %v87_v0  ;;  %828 = vmatpush.msk.msra.mxu1 %vm281_vm0, %v87_v0  ;;  %v81_v6 = vld [vmem:[%s1547_s1] sm:$0xff]  ;;  %v50_v11 = vld [vmem:[%s1548_s0 + $0x108] sm:$0xff]  ;;  %v51_v15 = vld [vmem:[%s1548_s0 + $0x110] sm:$0xff] }
   0x4   :  { %832 = vmatpush.msra.mxu2 %v86_v1  ;;  %833 = vmatpush.msra.mxu3 %v86_v1  ;;  %v49_v7 = vld [vmem:[%s1548_s0 + $0x100] sm:$0xff]  ;;  %v66_v12 = vld [vmem:[%s1548_s0 + $0x188] sm:$0xff]  ;;  %v67_v16 = vld [vmem:[%s1548_s0 + $0x190] sm:$0xff] }
   0x5   :  { %295 = vmatpush.msra.mxu0 %v86_v1  ;;  %831 = vmatpush.msra.mxu1 %v86_v1  ;;  %v65_v8 = vld [vmem:[%s1548_s0 + $0x180] sm:$0xff]  ;;  %v18_v13 = vld [vmem:[%s1548_s0 + $0x8] sm:$0xff]  ;;  %v19_v17 = vld [vmem:[%s1548_s0 + $0x10] sm:$0xff] }
   0x6   :  { %835 = vmatpush.msra.mxu2 %v85_v2  ;;  %836 = vmatpush.msra.mxu3 %v85_v2  ;;  %v17_v9 = vld [vmem:[%s1548_s0] sm:$0xff]  ;;  %v34_v14 = vld [vmem:[%s1548_s0 + $0x88] sm:$0xff]  ;;  %v35_v18 = vld [vmem:[%s1548_s0 + $0x90] sm:$0xff] }
   0x7   :  { %296 = vmatpush.msra.mxu0 %v85_v2  ;;  %834 = vmatpush.msra.mxu1 %v85_v2  ;;  %v33_v10 = vld [vmem:[%s1548_s0 + $0x80] sm:$0xff]  ;;  %v52_v19 = vld [vmem:[%s1548_s0 + $0x118] sm:$0xff]  ;;  %v54_v27 = vld [vmem:[%s1548_s0 + $0x128] sm:$0xff] }
   0x8   :  { %838 = vmatpush.msra.mxu2 %v84_v3  ;;  %839 = vmatpush.msra.mxu3 %v84_v3  ;;  %v68_v20 = vld [vmem:[%s1548_s0 + $0x198] sm:$0xff]  ;;  %v53_v23 = vld [vmem:[%s1548_s0 + $0x120] sm:$0xff]  ;;  %v70_v28 = vld [vmem:[%s1548_s0 + $0x1a8] sm:$0xff] }
   0x9   :  { %297 = vmatpush.msra.mxu0 %v84_v3  ;;  %837 = vmatpush.msra.mxu1 %v84_v3  ;;  %v20_v21 = vld [vmem:[%s1548_s0 + $0x18] sm:$0xff]  ;;  %v69_v24 = vld [vmem:[%s1548_s0 + $0x1a0] sm:$0xff]  ;;  %v22_v29 = vld [vmem:[%s1548_s0 + $0x28] sm:$0xff] }
   0xa   :  { %841 = vmatpush.msra.mxu2 %v83_v4  ;;  %842 = vmatpush.msra.mxu3 %v83_v4  ;;  %v36_v22 = vld [vmem:[%s1548_s0 + $0x98] sm:$0xff]  ;;  %v21_v25 = vld [vmem:[%s1548_s0 + $0x20] sm:$0xff]  ;;  %v38_v30 = vld [vmem:[%s1548_s0 + $0xa8] sm:$0xff] }
   0xb   :  { %298 = vmatpush.msra.mxu0 %v83_v4  ;;  %840 = vmatpush.msra.mxu1 %v83_v4  ;;  %v37_v26 = vld [vmem:[%s1548_s0 + $0xa0] sm:$0xff]  ;;  %v55_v31 = vld [vmem:[%s1548_s0 + $0x130] sm:$0xff]  ;;  %v56_v35 = vld [vmem:[%s1548_s0 + $0x138] sm:$0xff] }
   0xc   :  { %844 = vmatpush.msra.mxu2 %v82_v5  ;;  %845 = vmatpush.msra.mxu3 %v82_v5  ;;  %v71_v32 = vld [vmem:[%s1548_s0 + $0x1b0] sm:$0xff]  ;;  %v72_v36 = vld [vmem:[%s1548_s0 + $0x1b8] sm:$0xff]  ;;  %v57_v39 = vld [vmem:[%s1548_s0 + $0x140] sm:$0xff] }
   0xd   :  { %299 = vmatpush.msra.mxu0 %v82_v5  ;;  %843 = vmatpush.msra.mxu1 %v82_v5  ;;  %v23_v33 = vld [vmem:[%s1548_s0 + $0x30] sm:$0xff]  ;;  %v24_v37 = vld [vmem:[%s1548_s0 + $0x38] sm:$0xff]  ;;  %v73_v40 = vld [vmem:[%s1548_s0 + $0x1c0] sm:$0xff] }
   0xe   :  { %847 = vmatpush.msra.mxu2 %v81_v6  ;;  %848 = vmatpush.msra.mxu3 %v81_v6  ;;  %v39_v34 = vld [vmem:[%s1548_s0 + $0xb0] sm:$0xff]  ;;  %v40_v38 = vld [vmem:[%s1548_s0 + $0xb8] sm:$0xff]  ;;  %v25_v41 = vld [vmem:[%s1548_s0 + $0x40] sm:$0xff] }
   0xf   :  { %796 = vmatmul.msk.f32.vlgmr.msra.gmra.mxu2 %vm88_vm1, %v49_v7  ;;  %812 = vmatmul.msk.f32.vlgmr.msra.gmra.mxu3 %vm88_vm1, %v65_v8  ;;  %v41_v42 = vld [vmem:[%s1548_s0 + $0xc0] sm:$0xff]  ;;  %v58_v43 = vld [vmem:[%s1548_s0 + $0x148] sm:$0xff]  ;;  %v59_v47 = vld [vmem:[%s1548_s0 + $0x150] sm:$0xff] }
  0x10   :  { %300 = vmatpush.msra.mxu0 %v81_v6  ;;  %846 = vmatpush.msra.mxu1 %v81_v6  ;;  %v74_v44 = vld [vmem:[%s1548_s0 + $0x1c8] sm:$0xff]  ;;  %v75_v48 = vld [vmem:[%s1548_s0 + $0x1d0] sm:$0xff]  ;;  %v60_v51 = vld [vmem:[%s1548_s0 + $0x158] sm:$0xff] }
  0x11   :  { %764 = vmatmul.msk.f32.vlgmr.msra.gmra.mxu0 %vm88_vm1, %v17_v9  ;;  %780 = vmatmul.msk.f32.vlgmr.msra.gmra.mxu1 %vm88_vm1, %v33_v10  ;;  %v26_v45 = vld [vmem:[%s1548_s0 + $0x48] sm:$0xff]  ;;  %v27_v49 = vld [vmem:[%s1548_s0 + $0x50] sm:$0xff]  ;;  %v76_v52 = vld [vmem:[%s1548_s0 + $0x1d8] sm:$0xff] }
  0x12   :  { %v42_v46 = vld [vmem:[%s1548_s0 + $0xc8] sm:$0xff]  ;;  %v43_v50 = vld [vmem:[%s1548_s0 + $0xd0] sm:$0xff]  ;;  %v28_v53 = vld [vmem:[%s1548_s0 + $0x58] sm:$0xff] }
  0x13   :  { %v44_v54 = vld [vmem:[%s1548_s0 + $0xd8] sm:$0xff]  ;;  %v61_v55 = vld [vmem:[%s1548_s0 + $0x160] sm:$0xff]  ;;  %v62_v59 = vld [vmem:[%s1548_s0 + $0x168] sm:$0xff] }
  0x14   :  { %v77_v56 = vld [vmem:[%s1548_s0 + $0x1e0] sm:$0xff]  ;;  %v78_v60 = vld [vmem:[%s1548_s0 + $0x1e8] sm:$0xff]  ;;  %v63_v63 = vld [vmem:[%s1548_s0 + $0x170] sm:$0xff] }
  0x15   :  { %v29_v57 = vld [vmem:[%s1548_s0 + $0x60] sm:$0xff]  ;;  %v30_v61 = vld [vmem:[%s1548_s0 + $0x68] sm:$0xff]  ;;  %v79_v0 = vld [vmem:[%s1548_s0 + $0x1f0] sm:$0xff] }
  0x16   :  { %v45_v58 = vld [vmem:[%s1548_s0 + $0xe0] sm:$0xff]  ;;  %v46_v62 = vld [vmem:[%s1548_s0 + $0xe8] sm:$0xff]  ;;  %v31_v1 = vld [vmem:[%s1548_s0 + $0x70] sm:$0xff] }
  0x17   :  { %797 = vmatmul.msk.f32.gmra.mxu2 %vm88_vm1, %v50_v11  ;;  %813 = vmatmul.msk.f32.gmra.mxu3 %vm88_vm1, %v66_v12  ;;  %v47_v2 = vld [vmem:[%s1548_s0 + $0xf0] sm:$0xff]  ;;  %v64_v3 = vld [vmem:[%s1548_s0 + $0x178] sm:$0xff]  ;;  %v1156_v7 = vld [vmem:[%s1549_s2] ss:$0 sm:$0xff] }
  0x18   :  { %v80_v4 = vld [vmem:[%s1548_s0 + $0x1f8] sm:$0xff]  ;;  %v1161_v8 = vld [vmem:[%s1550_s3] ss:$0 sm:$0xff] }
  0x19   :  { %765 = vmatmul.msk.f32.gmra.mxu0 %vm88_vm1, %v18_v13  ;;  %781 = vmatmul.msk.f32.gmra.mxu1 %vm88_vm1, %v34_v14  ;;  %v32_v5 = vld [vmem:[%s1548_s0 + $0x78] sm:$0xff] }
  0x1a   :  { %v48_v6 = vld [vmem:[%s1548_s0 + $0xf8] sm:$0xff] }
  0x1f   :  { %798 = vmatmul.msk.f32.gmra.mxu2 %vm88_vm1, %v51_v15  ;;  %814 = vmatmul.msk.f32.gmra.mxu3 %vm88_vm1, %v67_v16 }
  0x21   :  { %766 = vmatmul.msk.f32.gmra.mxu0 %vm88_vm1, %v19_v17  ;;  %782 = vmatmul.msk.f32.gmra.mxu1 %vm88_vm1, %v35_v18 }
  0x27   :  { %799 = vmatmul.msk.f32.gmra.mxu2 %vm88_vm1, %v52_v19  ;;  %815 = vmatmul.msk.f32.gmra.mxu3 %vm88_vm1, %v68_v20 }
  0x29   :  { %767 = vmatmul.msk.f32.gmra.mxu0 %vm88_vm1, %v20_v21  ;;  %783 = vmatmul.msk.f32.gmra.mxu1 %vm88_vm1, %v36_v22 }
  0x2f   :  { %800 = vmatmul.msk.f32.gmra.mxu2 %vm88_vm1, %v53_v23  ;;  %816 = vmatmul.msk.f32.gmra.mxu3 %vm88_vm1, %v69_v24 }
  0x31   :  { %768 = vmatmul.msk.f32.gmra.mxu0 %vm88_vm1, %v21_v25  ;;  %784 = vmatmul.msk.f32.gmra.mxu1 %vm88_vm1, %v37_v26 }
  0x37   :  { %801 = vmatmul.msk.f32.gmra.mxu2 %vm88_vm1, %v54_v27  ;;  %817 = vmatmul.msk.f32.gmra.mxu3 %vm88_vm1, %v70_v28 }
  0x39   :  { %769 = vmatmul.msk.f32.gmra.mxu0 %vm88_vm1, %v22_v29  ;;  %785 = vmatmul.msk.f32.gmra.mxu1 %vm88_vm1, %v38_v30 }
  0x3f   :  { %802 = vmatmul.msk.f32.gmra.mxu2 %vm88_vm1, %v55_v31  ;;  %818 = vmatmul.msk.f32.gmra.mxu3 %vm88_vm1, %v71_v32 }
  0x41   :  { %770 = vmatmul.msk.f32.gmra.mxu0 %vm88_vm1, %v23_v33  ;;  %786 = vmatmul.msk.f32.gmra.mxu1 %vm88_vm1, %v39_v34 }
  0x47   :  { %803 = vmatmul.msk.f32.gmra.mxu2 %vm88_vm1, %v56_v35  ;;  %819 = vmatmul.msk.f32.gmra.mxu3 %vm88_vm1, %v72_v36 }
  0x49   :  { %771 = vmatmul.msk.f32.gmra.mxu0 %vm88_vm1, %v24_v37  ;;  %787 = vmatmul.msk.f32.gmra.mxu1 %vm88_vm1, %v40_v38 }
  0x4f   :  { %804 = vmatmul.msk.f32.gmra.mxu2 %vm88_vm1, %v57_v39  ;;  %820 = vmatmul.msk.f32.gmra.mxu3 %vm88_vm1, %v73_v40 }
  0x51   :  { %772 = vmatmul.msk.f32.gmra.mxu0 %vm88_vm1, %v25_v41  ;;  %788 = vmatmul.msk.f32.gmra.mxu1 %vm88_vm1, %v41_v42 }
  0x57   :  { %805 = vmatmul.msk.f32.gmra.mxu2 %vm88_vm1, %v58_v43  ;;  %821 = vmatmul.msk.f32.gmra.mxu3 %vm88_vm1, %v74_v44 }
  0x59   :  { %773 = vmatmul.msk.f32.gmra.mxu0 %vm88_vm1, %v26_v45  ;;  %789 = vmatmul.msk.f32.gmra.mxu1 %vm88_vm1, %v42_v46 }
  0x5f   :  { %806 = vmatmul.msk.f32.gmra.mxu2 %vm88_vm1, %v59_v47  ;;  %822 = vmatmul.msk.f32.gmra.mxu3 %vm88_vm1, %v75_v48 }
  0x61   :  { %774 = vmatmul.msk.f32.gmra.mxu0 %vm88_vm1, %v27_v49  ;;  %790 = vmatmul.msk.f32.gmra.mxu1 %vm88_vm1, %v43_v50 }
  0x67   :  { %807 = vmatmul.msk.f32.gmra.mxu2 %vm88_vm1, %v60_v51  ;;  %823 = vmatmul.msk.f32.gmra.mxu3 %vm88_vm1, %v76_v52 }
  0x69   :  { %775 = vmatmul.msk.f32.gmra.mxu0 %vm88_vm1, %v28_v53  ;;  %791 = vmatmul.msk.f32.gmra.mxu1 %vm88_vm1, %v44_v54 }
  0x6f   :  { %808 = vmatmul.msk.f32.gmra.mxu2 %vm88_vm1, %v61_v55  ;;  %824 = vmatmul.msk.f32.gmra.mxu3 %vm88_vm1, %v77_v56 }
  0x71   :  { %776 = vmatmul.msk.f32.gmra.mxu0 %vm88_vm1, %v29_v57  ;;  %792 = vmatmul.msk.f32.gmra.mxu1 %vm88_vm1, %v45_v58 }
  0x77   :  { %809 = vmatmul.msk.f32.gmra.mxu2 %vm88_vm1, %v62_v59  ;;  %825 = vmatmul.msk.f32.gmra.mxu3 %vm88_vm1, %v78_v60 }
  0x79   :  { %777 = vmatmul.msk.f32.gmra.mxu0 %vm88_vm1, %v30_v61  ;;  %793 = vmatmul.msk.f32.gmra.mxu1 %vm88_vm1, %v46_v62 }
  0x7f   :  { %810 = vmatmul.msk.f32.gmra.mxu2 %vm88_vm1, %v63_v63  ;;  %826 = vmatmul.msk.f32.gmra.mxu3 %vm88_vm1, %v79_v0 }
  0x81   :  { %778 = vmatmul.msk.f32.gmra.mxu0 %vm88_vm1, %v31_v1  ;;  %794 = vmatmul.msk.f32.gmra.mxu1 %vm88_vm1, %v47_v2 }
  0x87   :  { %811 = vmatmul.msk.f32.gmra.mxu2 %vm88_vm1, %v64_v3  ;;  %827 = vmatmul.msk.f32.gmra.mxu3 %vm88_vm1, %v80_v4 }
  0x89   :  { %779 = vmatmul.msk.f32.gmra.mxu0 %vm88_vm1, %v32_v5  ;;  %795 = vmatmul.msk.f32.gmra.mxu1 %vm88_vm1, %v48_v6 }
  0x8e   :  { %v302_v9 = vpop.f32.mrf.mxu0  ;;  %v350_v10 = vpop.f32.mrf.mxu1 }
  0x8f   :  { %v498_v11 = vmul.f32 %v1156_v7, %v302_v9  ;;  %v514_v12 = vmul.f32 %v1156_v7, %v350_v10 }
  0x91   :  { %v566_v13 = vadd.f32 %v1161_v8, %v498_v11  ;;  %v582_v14 = vadd.f32 %v1161_v8, %v514_v12 }
  0x92   :  { %v398_v15 = vpop.f32.mrf.mxu2  ;;  %v446_v16 = vpop.f32.mrf.mxu3 }
  0x93   :  { %v630_v17 = vmax.f32 %v566_v13, 0.0  ;;  %v646_v18 = vmax.f32 %v582_v14, 0.0  ;;  %v530_v19 = vmul.f32 %v1156_v7, %v398_v15  ;;  %v546_v20 = vmul.f32 %v1156_v7, %v446_v16 }
  0x95   :  { %695 = vst.msk [vmem:[%s1551_s4] sm:$0xff] %vm694_vm2, %v630_v17  ;;  %v598_v21 = vadd.f32 %v1161_v8, %v530_v19  ;;  %v614_v22 = vadd.f32 %v1161_v8, %v546_v20 }
  0x96   :  { %711 = vst.msk [vmem:[%s1551_s4 + $0x80] sm:$0xff] %vm694_vm2, %v646_v18  ;;  %v305_v23 = vpop.f32.mrf.mxu0  ;;  %v353_v24 = vpop.f32.mrf.mxu1 }
  0x97   :  { %v662_v25 = vmax.f32 %v598_v21, 0.0  ;;  %v678_v26 = vmax.f32 %v614_v22, 0.0  ;;  %v499_v27 = vmul.f32 %v1156_v7, %v305_v23  ;;  %v515_v28 = vmul.f32 %v1156_v7, %v353_v24 }
  0x99   :  { %727 = vst.msk [vmem:[%s1551_s4 + $0x100] sm:$0xff] %vm694_vm2, %v662_v25  ;;  %v567_v29 = vadd.f32 %v1161_v8, %v499_v27  ;;  %v583_v30 = vadd.f32 %v1161_v8, %v515_v28 }
  0x9a   :  { %743 = vst.msk [vmem:[%s1551_s4 + $0x180] sm:$0xff] %vm694_vm2, %v678_v26  ;;  %v401_v31 = vpop.f32.mrf.mxu2  ;;  %v449_v32 = vpop.f32.mrf.mxu3 }
  0x9b   :  { %v631_v33 = vmax.f32 %v567_v29, 0.0  ;;  %v647_v34 = vmax.f32 %v583_v30, 0.0  ;;  %v531_v35 = vmul.f32 %v1156_v7, %v401_v31  ;;  %v547_v36 = vmul.f32 %v1156_v7, %v449_v32 }
  0x9d   :  { %696 = vst.msk [vmem:[%s1551_s4 + $0x8] sm:$0xff] %vm694_vm2, %v631_v33  ;;  %v599_v37 = vadd.f32 %v1161_v8, %v531_v35  ;;  %v615_v38 = vadd.f32 %v1161_v8, %v547_v36 }
  0x9e   :  { %712 = vst.msk [vmem:[%s1551_s4 + $0x88] sm:$0xff] %vm694_vm2, %v647_v34  ;;  %v308_v39 = vpop.f32.mrf.mxu0  ;;  %v356_v40 = vpop.f32.mrf.mxu1 }
  0x9f   :  { %v663_v41 = vmax.f32 %v599_v37, 0.0  ;;  %v679_v42 = vmax.f32 %v615_v38, 0.0  ;;  %v500_v43 = vmul.f32 %v1156_v7, %v308_v39  ;;  %v516_v44 = vmul.f32 %v1156_v7, %v356_v40 }
  0xa1   :  { %728 = vst.msk [vmem:[%s1551_s4 + $0x108] sm:$0xff] %vm694_vm2, %v663_v41  ;;  %v568_v45 = vadd.f32 %v1161_v8, %v500_v43  ;;  %v584_v46 = vadd.f32 %v1161_v8, %v516_v44 }
  0xa2   :  { %744 = vst.msk [vmem:[%s1551_s4 + $0x188] sm:$0xff] %vm694_vm2, %v679_v42  ;;  %v404_v47 = vpop.f32.mrf.mxu2  ;;  %v452_v48 = vpop.f32.mrf.mxu3 }
  0xa3   :  { %v632_v49 = vmax.f32 %v568_v45, 0.0  ;;  %v648_v50 = vmax.f32 %v584_v46, 0.0  ;;  %v532_v51 = vmul.f32 %v1156_v7, %v404_v47  ;;  %v548_v52 = vmul.f32 %v1156_v7, %v452_v48 }
  0xa5   :  { %697 = vst.msk [vmem:[%s1551_s4 + $0x10] sm:$0xff] %vm694_vm2, %v632_v49  ;;  %v600_v53 = vadd.f32 %v1161_v8, %v532_v51  ;;  %v616_v54 = vadd.f32 %v1161_v8, %v548_v52 }
  0xa6   :  { %713 = vst.msk [vmem:[%s1551_s4 + $0x90] sm:$0xff] %vm694_vm2, %v648_v50  ;;  %v311_v55 = vpop.f32.mrf.mxu0  ;;  %v359_v56 = vpop.f32.mrf.mxu1 }
  0xa7   :  { %v664_v57 = vmax.f32 %v600_v53, 0.0  ;;  %v680_v58 = vmax.f32 %v616_v54, 0.0  ;;  %v501_v59 = vmul.f32 %v1156_v7, %v311_v55  ;;  %v517_v60 = vmul.f32 %v1156_v7, %v359_v56 }
  0xa9   :  { %729 = vst.msk [vmem:[%s1551_s4 + $0x110] sm:$0xff] %vm694_vm2, %v664_v57  ;;  %v569_v61 = vadd.f32 %v1161_v8, %v501_v59  ;;  %v585_v62 = vadd.f32 %v1161_v8, %v517_v60 }
  0xaa   :  { %745 = vst.msk [vmem:[%s1551_s4 + $0x190] sm:$0xff] %vm694_vm2, %v680_v58  ;;  %v407_v63 = vpop.f32.mrf.mxu2  ;;  %v455_v0 = vpop.f32.mrf.mxu3 }
  0xab   :  { %v633_v1 = vmax.f32 %v569_v61, 0.0  ;;  %v649_v2 = vmax.f32 %v585_v62, 0.0  ;;  %v533_v3 = vmul.f32 %v1156_v7, %v407_v63  ;;  %v549_v4 = vmul.f32 %v1156_v7, %v455_v0 }
  0xad   :  { %698 = vst.msk [vmem:[%s1551_s4 + $0x18] sm:$0xff] %vm694_vm2, %v633_v1  ;;  %v601_v5 = vadd.f32 %v1161_v8, %v533_v3  ;;  %v617_v6 = vadd.f32 %v1161_v8, %v549_v4 }
  0xae   :  { %714 = vst.msk [vmem:[%s1551_s4 + $0x98] sm:$0xff] %vm694_vm2, %v649_v2  ;;  %v314_v9 = vpop.f32.mrf.mxu0  ;;  %v362_v10 = vpop.f32.mrf.mxu1 }
  0xaf   :  { %v665_v11 = vmax.f32 %v601_v5, 0.0  ;;  %v681_v12 = vmax.f32 %v617_v6, 0.0  ;;  %v502_v13 = vmul.f32 %v1156_v7, %v314_v9  ;;  %v518_v14 = vmul.f32 %v1156_v7, %v362_v10 }
  0xb1   :  { %730 = vst.msk [vmem:[%s1551_s4 + $0x118] sm:$0xff] %vm694_vm2, %v665_v11  ;;  %v570_v15 = vadd.f32 %v1161_v8, %v502_v13  ;;  %v586_v16 = vadd.f32 %v1161_v8, %v518_v14 }
  0xb2   :  { %746 = vst.msk [vmem:[%s1551_s4 + $0x198] sm:$0xff] %vm694_vm2, %v681_v12  ;;  %v410_v17 = vpop.f32.mrf.mxu2  ;;  %v458_v18 = vpop.f32.mrf.mxu3 }
  0xb3   :  { %v634_v19 = vmax.f32 %v570_v15, 0.0  ;;  %v650_v20 = vmax.f32 %v586_v16, 0.0  ;;  %v534_v21 = vmul.f32 %v1156_v7, %v410_v17  ;;  %v550_v22 = vmul.f32 %v1156_v7, %v458_v18 }
  0xb5   :  { %699 = vst.msk [vmem:[%s1551_s4 + $0x20] sm:$0xff] %vm694_vm2, %v634_v19  ;;  %v602_v23 = vadd.f32 %v1161_v8, %v534_v21  ;;  %v618_v24 = vadd.f32 %v1161_v8, %v550_v22 }
  0xb6   :  { %715 = vst.msk [vmem:[%s1551_s4 + $0xa0] sm:$0xff] %vm694_vm2, %v650_v20  ;;  %v317_v25 = vpop.f32.mrf.mxu0  ;;  %v365_v26 = vpop.f32.mrf.mxu1 }
  0xb7   :  { %v666_v27 = vmax.f32 %v602_v23, 0.0  ;;  %v682_v28 = vmax.f32 %v618_v24, 0.0  ;;  %v503_v29 = vmul.f32 %v1156_v7, %v317_v25  ;;  %v519_v30 = vmul.f32 %v1156_v7, %v365_v26 }
  0xb9   :  { %731 = vst.msk [vmem:[%s1551_s4 + $0x120] sm:$0xff] %vm694_vm2, %v666_v27  ;;  %v571_v31 = vadd.f32 %v1161_v8, %v503_v29  ;;  %v587_v32 = vadd.f32 %v1161_v8, %v519_v30 }
  0xba   :  { %747 = vst.msk [vmem:[%s1551_s4 + $0x1a0] sm:$0xff] %vm694_vm2, %v682_v28  ;;  %v413_v33 = vpop.f32.mrf.mxu2  ;;  %v461_v34 = vpop.f32.mrf.mxu3 }
  0xbb   :  { %v635_v35 = vmax.f32 %v571_v31, 0.0  ;;  %v651_v36 = vmax.f32 %v587_v32, 0.0  ;;  %v535_v37 = vmul.f32 %v1156_v7, %v413_v33  ;;  %v551_v38 = vmul.f32 %v1156_v7, %v461_v34 }
  0xbd   :  { %700 = vst.msk [vmem:[%s1551_s4 + $0x28] sm:$0xff] %vm694_vm2, %v635_v35  ;;  %v603_v39 = vadd.f32 %v1161_v8, %v535_v37  ;;  %v619_v40 = vadd.f32 %v1161_v8, %v551_v38 }
  0xbe   :  { %716 = vst.msk [vmem:[%s1551_s4 + $0xa8] sm:$0xff] %vm694_vm2, %v651_v36  ;;  %v320_v41 = vpop.f32.mrf.mxu0  ;;  %v368_v42 = vpop.f32.mrf.mxu1 }
  0xbf   :  { %v667_v43 = vmax.f32 %v603_v39, 0.0  ;;  %v683_v44 = vmax.f32 %v619_v40, 0.0  ;;  %v504_v45 = vmul.f32 %v1156_v7, %v320_v41  ;;  %v520_v46 = vmul.f32 %v1156_v7, %v368_v42 }
  0xc1   :  { %732 = vst.msk [vmem:[%s1551_s4 + $0x128] sm:$0xff] %vm694_vm2, %v667_v43  ;;  %v572_v47 = vadd.f32 %v1161_v8, %v504_v45  ;;  %v588_v48 = vadd.f32 %v1161_v8, %v520_v46 }
  0xc2   :  { %748 = vst.msk [vmem:[%s1551_s4 + $0x1a8] sm:$0xff] %vm694_vm2, %v683_v44  ;;  %v416_v49 = vpop.f32.mrf.mxu2  ;;  %v464_v50 = vpop.f32.mrf.mxu3 }
  0xc3   :  { %v636_v51 = vmax.f32 %v572_v47, 0.0  ;;  %v652_v52 = vmax.f32 %v588_v48, 0.0  ;;  %v536_v53 = vmul.f32 %v1156_v7, %v416_v49  ;;  %v552_v54 = vmul.f32 %v1156_v7, %v464_v50 }
  0xc5   :  { %701 = vst.msk [vmem:[%s1551_s4 + $0x30] sm:$0xff] %vm694_vm2, %v636_v51  ;;  %v604_v55 = vadd.f32 %v1161_v8, %v536_v53  ;;  %v620_v56 = vadd.f32 %v1161_v8, %v552_v54 }
  0xc6   :  { %717 = vst.msk [vmem:[%s1551_s4 + $0xb0] sm:$0xff] %vm694_vm2, %v652_v52  ;;  %v323_v57 = vpop.f32.mrf.mxu0  ;;  %v371_v58 = vpop.f32.mrf.mxu1 }
  0xc7   :  { %v668_v59 = vmax.f32 %v604_v55, 0.0  ;;  %v684_v60 = vmax.f32 %v620_v56, 0.0  ;;  %v505_v61 = vmul.f32 %v1156_v7, %v323_v57  ;;  %v521_v62 = vmul.f32 %v1156_v7, %v371_v58 }
  0xc9   :  { %733 = vst.msk [vmem:[%s1551_s4 + $0x130] sm:$0xff] %vm694_vm2, %v668_v59  ;;  %v573_v63 = vadd.f32 %v1161_v8, %v505_v61  ;;  %v589_v0 = vadd.f32 %v1161_v8, %v521_v62 }
  0xca   :  { %749 = vst.msk [vmem:[%s1551_s4 + $0x1b0] sm:$0xff] %vm694_vm2, %v684_v60  ;;  %v419_v1 = vpop.f32.mrf.mxu2  ;;  %v467_v2 = vpop.f32.mrf.mxu3 }
  0xcb   :  { %v637_v3 = vmax.f32 %v573_v63, 0.0  ;;  %v653_v4 = vmax.f32 %v589_v0, 0.0  ;;  %v537_v5 = vmul.f32 %v1156_v7, %v419_v1  ;;  %v553_v6 = vmul.f32 %v1156_v7, %v467_v2 }
  0xcd   :  { %702 = vst.msk [vmem:[%s1551_s4 + $0x38] sm:$0xff] %vm694_vm2, %v637_v3  ;;  %v605_v9 = vadd.f32 %v1161_v8, %v537_v5  ;;  %v621_v10 = vadd.f32 %v1161_v8, %v553_v6 }
  0xce   :  { %718 = vst.msk [vmem:[%s1551_s4 + $0xb8] sm:$0xff] %vm694_vm2, %v653_v4  ;;  %v326_v11 = vpop.f32.mrf.mxu0  ;;  %v374_v12 = vpop.f32.mrf.mxu1 }
  0xcf   :  { %v669_v13 = vmax.f32 %v605_v9, 0.0  ;;  %v685_v14 = vmax.f32 %v621_v10, 0.0  ;;  %v506_v15 = vmul.f32 %v1156_v7, %v326_v11  ;;  %v522_v16 = vmul.f32 %v1156_v7, %v374_v12 }
  0xd1   :  { %734 = vst.msk [vmem:[%s1551_s4 + $0x138] sm:$0xff] %vm694_vm2, %v669_v13  ;;  %v574_v17 = vadd.f32 %v1161_v8, %v506_v15  ;;  %v590_v18 = vadd.f32 %v1161_v8, %v522_v16 }
  0xd2   :  { %750 = vst.msk [vmem:[%s1551_s4 + $0x1b8] sm:$0xff] %vm694_vm2, %v685_v14  ;;  %v422_v19 = vpop.f32.mrf.mxu2  ;;  %v470_v20 = vpop.f32.mrf.mxu3 }
  0xd3   :  { %v638_v21 = vmax.f32 %v574_v17, 0.0  ;;  %v654_v22 = vmax.f32 %v590_v18, 0.0  ;;  %v538_v23 = vmul.f32 %v1156_v7, %v422_v19  ;;  %v554_v24 = vmul.f32 %v1156_v7, %v470_v20 }
  0xd5   :  { %703 = vst.msk [vmem:[%s1551_s4 + $0x40] sm:$0xff] %vm694_vm2, %v638_v21  ;;  %v606_v25 = vadd.f32 %v1161_v8, %v538_v23  ;;  %v622_v26 = vadd.f32 %v1161_v8, %v554_v24 }
  0xd6   :  { %719 = vst.msk [vmem:[%s1551_s4 + $0xc0] sm:$0xff] %vm694_vm2, %v654_v22  ;;  %v329_v27 = vpop.f32.mrf.mxu0  ;;  %v377_v28 = vpop.f32.mrf.mxu1 }
  0xd7   :  { %v670_v29 = vmax.f32 %v606_v25, 0.0  ;;  %v686_v30 = vmax.f32 %v622_v26, 0.0  ;;  %v507_v31 = vmul.f32 %v1156_v7, %v329_v27  ;;  %v523_v32 = vmul.f32 %v1156_v7, %v377_v28 }
  0xd9   :  { %735 = vst.msk [vmem:[%s1551_s4 + $0x140] sm:$0xff] %vm694_vm2, %v670_v29  ;;  %v575_v33 = vadd.f32 %v1161_v8, %v507_v31  ;;  %v591_v34 = vadd.f32 %v1161_v8, %v523_v32 }
  0xda   :  { %751 = vst.msk [vmem:[%s1551_s4 + $0x1c0] sm:$0xff] %vm694_vm2, %v686_v30  ;;  %v425_v35 = vpop.f32.mrf.mxu2  ;;  %v473_v36 = vpop.f32.mrf.mxu3 }
  0xdb   :  { %v639_v37 = vmax.f32 %v575_v33, 0.0  ;;  %v655_v38 = vmax.f32 %v591_v34, 0.0  ;;  %v539_v39 = vmul.f32 %v1156_v7, %v425_v35  ;;  %v555_v40 = vmul.f32 %v1156_v7, %v473_v36 }
  0xdd   :  { %704 = vst.msk [vmem:[%s1551_s4 + $0x48] sm:$0xff] %vm694_vm2, %v639_v37  ;;  %v607_v41 = vadd.f32 %v1161_v8, %v539_v39  ;;  %v623_v42 = vadd.f32 %v1161_v8, %v555_v40 }
  0xde   :  { %720 = vst.msk [vmem:[%s1551_s4 + $0xc8] sm:$0xff] %vm694_vm2, %v655_v38  ;;  %v332_v43 = vpop.f32.mrf.mxu0  ;;  %v380_v44 = vpop.f32.mrf.mxu1 }
  0xdf   :  { %v671_v45 = vmax.f32 %v607_v41, 0.0  ;;  %v687_v46 = vmax.f32 %v623_v42, 0.0  ;;  %v508_v47 = vmul.f32 %v1156_v7, %v332_v43  ;;  %v524_v48 = vmul.f32 %v1156_v7, %v380_v44 }
  0xe1   :  { %736 = vst.msk [vmem:[%s1551_s4 + $0x148] sm:$0xff] %vm694_vm2, %v671_v45  ;;  %v576_v49 = vadd.f32 %v1161_v8, %v508_v47  ;;  %v592_v50 = vadd.f32 %v1161_v8, %v524_v48 }
  0xe2   :  { %752 = vst.msk [vmem:[%s1551_s4 + $0x1c8] sm:$0xff] %vm694_vm2, %v687_v46  ;;  %v428_v51 = vpop.f32.mrf.mxu2  ;;  %v476_v52 = vpop.f32.mrf.mxu3 }
  0xe3   :  { %v640_v53 = vmax.f32 %v576_v49, 0.0  ;;  %v656_v54 = vmax.f32 %v592_v50, 0.0  ;;  %v540_v55 = vmul.f32 %v1156_v7, %v428_v51  ;;  %v556_v56 = vmul.f32 %v1156_v7, %v476_v52 }
  0xe5   :  { %705 = vst.msk [vmem:[%s1551_s4 + $0x50] sm:$0xff] %vm694_vm2, %v640_v53  ;;  %v608_v57 = vadd.f32 %v1161_v8, %v540_v55  ;;  %v624_v58 = vadd.f32 %v1161_v8, %v556_v56 }
  0xe6   :  { %721 = vst.msk [vmem:[%s1551_s4 + $0xd0] sm:$0xff] %vm694_vm2, %v656_v54  ;;  %v335_v59 = vpop.f32.mrf.mxu0  ;;  %v383_v60 = vpop.f32.mrf.mxu1 }
  0xe7   :  { %v672_v61 = vmax.f32 %v608_v57, 0.0  ;;  %v688_v62 = vmax.f32 %v624_v58, 0.0  ;;  %v509_v63 = vmul.f32 %v1156_v7, %v335_v59  ;;  %v525_v0 = vmul.f32 %v1156_v7, %v383_v60 }
  0xe9   :  { %737 = vst.msk [vmem:[%s1551_s4 + $0x150] sm:$0xff] %vm694_vm2, %v672_v61  ;;  %v577_v1 = vadd.f32 %v1161_v8, %v509_v63  ;;  %v593_v2 = vadd.f32 %v1161_v8, %v525_v0 }
  0xea   :  { %753 = vst.msk [vmem:[%s1551_s4 + $0x1d0] sm:$0xff] %vm694_vm2, %v688_v62  ;;  %v431_v3 = vpop.f32.mrf.mxu2  ;;  %v479_v4 = vpop.f32.mrf.mxu3 }
  0xeb   :  { %v641_v5 = vmax.f32 %v577_v1, 0.0  ;;  %v657_v6 = vmax.f32 %v593_v2, 0.0  ;;  %v541_v9 = vmul.f32 %v1156_v7, %v431_v3  ;;  %v557_v10 = vmul.f32 %v1156_v7, %v479_v4 }
  0xed   :  { %706 = vst.msk [vmem:[%s1551_s4 + $0x58] sm:$0xff] %vm694_vm2, %v641_v5  ;;  %v609_v11 = vadd.f32 %v1161_v8, %v541_v9  ;;  %v625_v12 = vadd.f32 %v1161_v8, %v557_v10 }
  0xee   :  { %722 = vst.msk [vmem:[%s1551_s4 + $0xd8] sm:$0xff] %vm694_vm2, %v657_v6  ;;  %v338_v13 = vpop.f32.mrf.mxu0  ;;  %v386_v14 = vpop.f32.mrf.mxu1 }
  0xef   :  { %v673_v15 = vmax.f32 %v609_v11, 0.0  ;;  %v689_v16 = vmax.f32 %v625_v12, 0.0  ;;  %v510_v17 = vmul.f32 %v1156_v7, %v338_v13  ;;  %v526_v18 = vmul.f32 %v1156_v7, %v386_v14 }
  0xf1   :  { %738 = vst.msk [vmem:[%s1551_s4 + $0x158] sm:$0xff] %vm694_vm2, %v673_v15  ;;  %v578_v19 = vadd.f32 %v1161_v8, %v510_v17  ;;  %v594_v20 = vadd.f32 %v1161_v8, %v526_v18 }
  0xf2   :  { %754 = vst.msk [vmem:[%s1551_s4 + $0x1d8] sm:$0xff] %vm694_vm2, %v689_v16  ;;  %v434_v21 = vpop.f32.mrf.mxu2  ;;  %v482_v22 = vpop.f32.mrf.mxu3 }
  0xf3   :  { %v642_v23 = vmax.f32 %v578_v19, 0.0  ;;  %v658_v24 = vmax.f32 %v594_v20, 0.0  ;;  %v542_v25 = vmul.f32 %v1156_v7, %v434_v21  ;;  %v558_v26 = vmul.f32 %v1156_v7, %v482_v22 }
  0xf5   :  { %707 = vst.msk [vmem:[%s1551_s4 + $0x60] sm:$0xff] %vm694_vm2, %v642_v23  ;;  %v610_v27 = vadd.f32 %v1161_v8, %v542_v25  ;;  %v626_v28 = vadd.f32 %v1161_v8, %v558_v26 }
  0xf6   :  { %723 = vst.msk [vmem:[%s1551_s4 + $0xe0] sm:$0xff] %vm694_vm2, %v658_v24  ;;  %v341_v29 = vpop.f32.mrf.mxu0  ;;  %v389_v30 = vpop.f32.mrf.mxu1 }
  0xf7   :  { %v674_v31 = vmax.f32 %v610_v27, 0.0  ;;  %v690_v32 = vmax.f32 %v626_v28, 0.0  ;;  %v511_v33 = vmul.f32 %v1156_v7, %v341_v29  ;;  %v527_v34 = vmul.f32 %v1156_v7, %v389_v30 }
  0xf9   :  { %739 = vst.msk [vmem:[%s1551_s4 + $0x160] sm:$0xff] %vm694_vm2, %v674_v31  ;;  %v579_v35 = vadd.f32 %v1161_v8, %v511_v33  ;;  %v595_v36 = vadd.f32 %v1161_v8, %v527_v34 }
  0xfa   :  { %755 = vst.msk [vmem:[%s1551_s4 + $0x1e0] sm:$0xff] %vm694_vm2, %v690_v32  ;;  %v437_v37 = vpop.f32.mrf.mxu2  ;;  %v485_v38 = vpop.f32.mrf.mxu3 }
  0xfb   :  { %v643_v39 = vmax.f32 %v579_v35, 0.0  ;;  %v659_v40 = vmax.f32 %v595_v36, 0.0  ;;  %v543_v41 = vmul.f32 %v1156_v7, %v437_v37  ;;  %v559_v42 = vmul.f32 %v1156_v7, %v485_v38 }
  0xfd   :  { %708 = vst.msk [vmem:[%s1551_s4 + $0x68] sm:$0xff] %vm694_vm2, %v643_v39  ;;  %v611_v43 = vadd.f32 %v1161_v8, %v543_v41  ;;  %v627_v44 = vadd.f32 %v1161_v8, %v559_v42 }
  0xfe   :  { %724 = vst.msk [vmem:[%s1551_s4 + $0xe8] sm:$0xff] %vm694_vm2, %v659_v40  ;;  %v344_v45 = vpop.f32.mrf.mxu0  ;;  %v392_v46 = vpop.f32.mrf.mxu1 }
  0xff   :  { %v675_v47 = vmax.f32 %v611_v43, 0.0  ;;  %v691_v48 = vmax.f32 %v627_v44, 0.0  ;;  %v512_v49 = vmul.f32 %v1156_v7, %v344_v45  ;;  %v528_v50 = vmul.f32 %v1156_v7, %v392_v46 }
 0x101   :  { %740 = vst.msk [vmem:[%s1551_s4 + $0x168] sm:$0xff] %vm694_vm2, %v675_v47  ;;  %v580_v51 = vadd.f32 %v1161_v8, %v512_v49  ;;  %v596_v52 = vadd.f32 %v1161_v8, %v528_v50 }
 0x102   :  { %756 = vst.msk [vmem:[%s1551_s4 + $0x1e8] sm:$0xff] %vm694_vm2, %v691_v48  ;;  %v440_v53 = vpop.f32.mrf.mxu2  ;;  %v488_v54 = vpop.f32.mrf.mxu3 }
 0x103   :  { %v644_v55 = vmax.f32 %v580_v51, 0.0  ;;  %v660_v56 = vmax.f32 %v596_v52, 0.0  ;;  %v544_v57 = vmul.f32 %v1156_v7, %v440_v53  ;;  %v560_v58 = vmul.f32 %v1156_v7, %v488_v54 }
 0x105   :  { %709 = vst.msk [vmem:[%s1551_s4 + $0x70] sm:$0xff] %vm694_vm2, %v644_v55  ;;  %v612_v59 = vadd.f32 %v1161_v8, %v544_v57  ;;  %v628_v60 = vadd.f32 %v1161_v8, %v560_v58 }
 0x106   :  { %725 = vst.msk [vmem:[%s1551_s4 + $0xf0] sm:$0xff] %vm694_vm2, %v660_v56  ;;  %v347_v61 = vpop.f32.mrf.mxu0  ;;  %v395_v62 = vpop.f32.mrf.mxu1 }
 0x107   :  { %v676_v63 = vmax.f32 %v612_v59, 0.0  ;;  %v692_v0 = vmax.f32 %v628_v60, 0.0  ;;  %v513_v1 = vmul.f32 %v1156_v7, %v347_v61  ;;  %v529_v2 = vmul.f32 %v1156_v7, %v395_v62 }
 0x109   :  { %741 = vst.msk [vmem:[%s1551_s4 + $0x170] sm:$0xff] %vm694_vm2, %v676_v63  ;;  %v581_v3 = vadd.f32 %v1161_v8, %v513_v1  ;;  %v597_v4 = vadd.f32 %v1161_v8, %v529_v2 }
 0x10a   :  { %757 = vst.msk [vmem:[%s1551_s4 + $0x1f0] sm:$0xff] %vm694_vm2, %v692_v0  ;;  %v443_v5 = vpop.f32.mrf.mxu2  ;;  %v491_v6 = vpop.f32.mrf.mxu3 }
 0x10b   :  { %v645_v9 = vmax.f32 %v581_v3, 0.0  ;;  %v661_v10 = vmax.f32 %v597_v4, 0.0  ;;  %v545_v11 = vmul.f32 %v1156_v7, %v443_v5  ;;  %v561_v12 = vmul.f32 %v1156_v7, %v491_v6 }
 0x10d   :  { %710 = vst.msk [vmem:[%s1551_s4 + $0x78] sm:$0xff] %vm694_vm2, %v645_v9  ;;  %v613_v13 = vadd.f32 %v1161_v8, %v545_v11  ;;  %v629_v14 = vadd.f32 %v1161_v8, %v561_v12 }
 0x10e   :  { %726 = vst.msk [vmem:[%s1551_s4 + $0xf8] sm:$0xff] %vm694_vm2, %v661_v10 }
 0x10f   :  { %v677_v15 = vmax.f32 %v613_v13, 0.0  ;;  %v693_v16 = vmax.f32 %v629_v14, 0.0 }
 0x111   :  { %742 = vst.msk [vmem:[%s1551_s4 + $0x178] sm:$0xff] %vm694_vm2, %v677_v15 }
 0x112   :  { %758 = vst.msk [vmem:[%s1551_s4 + $0x1f8] sm:$0xff] %vm694_vm2, %v693_v16 }

// kernel: _lambda_.12
= control target key start
LH: loop header
LB: loop body
LE: loop exit
PB: predicated region body
PF: predicated region fallthrough
CT: control target
= control target key end

     0   :  { %vm152_vm0 = vcmask 523264   ;;  %s1095_s0 = inlined_call_operand.vmem [shape: f32[9,128,64], index: 0, kind: input, shape index: {}]   ;;  %s1096_s1 = inlined_call_operand.vmem [shape: f32[128,64], index: 1, kind: output, shape index: {}]  }
   0x1   :  { %v8_v0 = vld [vmem:[%s1095_s0] sm:$0xff]  ;;  %v9_v13 = vld [vmem:[%s1095_s0 + $0x8] sm:$0xff]  ;;  %v10_v32 = vld [vmem:[%s1095_s0 + $0x10] sm:$0xff] }
   0x2   :  { %v24_v1 = vld [vmem:[%s1095_s0 + $0x80] sm:$0xff]  ;;  %v153_v5 = vsel %vm152_vm0, %v8_v0, -inf  ;;  %v25_v14 = vld [vmem:[%s1095_s0 + $0x88] sm:$0xff]  ;;  %v170_v19 = vsel %vm152_vm0, %v9_v13, -inf  ;;  %v26_v33 = vld [vmem:[%s1095_s0 + $0x90] sm:$0xff]  ;;  %v187_v38 = vsel %vm152_vm0, %v10_v32, -inf }
   0x3   :  { %v40_v2 = vld [vmem:[%s1095_s0 + $0x100] sm:$0xff]  ;;  %v154_v6 = vsel %vm152_vm0, %v24_v1, -inf  ;;  %v41_v15 = vld [vmem:[%s1095_s0 + $0x108] sm:$0xff]  ;;  %v171_v20 = vsel %vm152_vm0, %v25_v14, -inf  ;;  %v42_v34 = vld [vmem:[%s1095_s0 + $0x110] sm:$0xff]  ;;  %v188_v39 = vsel %vm152_vm0, %v26_v33, -inf }
   0x4   :  { %v56_v3 = vld [vmem:[%s1095_s0 + $0x180] sm:$0xff]  ;;  %v156_v7 = vsel %vm152_vm0, %v40_v2, -inf  ;;  %v155_v11 = vmax.f32 %v153_v5, %v154_v6  ;;  %v57_v18 = vld [vmem:[%s1095_s0 + $0x188] sm:$0xff]  ;;  %v173_v21 = vsel %vm152_vm0, %v41_v15, -inf  ;;  %v172_v27 = vmax.f32 %v170_v19, %v171_v20  ;;  %v58_v37 = vld [vmem:[%s1095_s0 + $0x190] sm:$0xff] }
   0x5   :  { %v72_v4 = vld [vmem:[%s1095_s0 + $0x200] sm:$0xff]  ;;  %v158_v12 = vsel %vm152_vm0, %v56_v3, -inf  ;;  %v73_v24 = vld [vmem:[%s1095_s0 + $0x208] sm:$0xff]  ;;  %v175_v31 = vsel %vm152_vm0, %v57_v18, -inf  ;;  %v190_v40 = vsel %vm152_vm0, %v42_v34, -inf  ;;  %v74_v45 = vld [vmem:[%s1095_s0 + $0x210] sm:$0xff]  ;;  %v189_v46 = vmax.f32 %v187_v38, %v188_v39 }
   0x6   :  { %v88_v8 = vld [vmem:[%s1095_s0 + $0x280] sm:$0xff]  ;;  %v157_v17 = vmax.f32 %v155_v11, %v156_v7  ;;  %v160_v22 = vsel %vm152_vm0, %v72_v4, -inf  ;;  %v89_v25 = vld [vmem:[%s1095_s0 + $0x288] sm:$0xff]  ;;  %v174_v36 = vmax.f32 %v172_v27, %v173_v21  ;;  %v177_v44 = vsel %vm152_vm0, %v73_v24, -inf  ;;  %v11_v51 = vld [vmem:[%s1095_s0 + $0x18] sm:$0xff] }
   0x7   :  { %v104_v9 = vld [vmem:[%s1095_s0 + $0x300] sm:$0xff]  ;;  %v162_v23 = vsel %vm152_vm0, %v88_v8, -inf  ;;  %v105_v26 = vld [vmem:[%s1095_s0 + $0x308] sm:$0xff]  ;;  %v179_v48 = vsel %vm152_vm0, %v89_v25, -inf  ;;  %v192_v50 = vsel %vm152_vm0, %v58_v37, -inf  ;;  %v27_v52 = vld [vmem:[%s1095_s0 + $0x98] sm:$0xff]  ;;  %v191_v58 = vmax.f32 %v189_v46, %v190_v40 }
   0x8   :  { %v120_v10 = vld [vmem:[%s1095_s0 + $0x380] sm:$0xff]  ;;  %v159_v28 = vmax.f32 %v157_v17, %v158_v12  ;;  %v164_v29 = vsel %vm152_vm0, %v104_v9, -inf  ;;  %v121_v35 = vld [vmem:[%s1095_s0 + $0x388] sm:$0xff]  ;;  %v176_v47 = vmax.f32 %v174_v36, %v175_v31  ;;  %v181_v49 = vsel %vm152_vm0, %v105_v26, -inf  ;;  %v43_v53 = vld [vmem:[%s1095_s0 + $0x118] sm:$0xff] }
   0x9   :  { %v136_v16 = vld [vmem:[%s1095_s0 + $0x400] sm:$0xff]  ;;  %v166_v30 = vsel %vm152_vm0, %v120_v10, -inf  ;;  %v137_v43 = vld [vmem:[%s1095_s0 + $0x408] sm:$0xff]  ;;  %v183_v55 = vsel %vm152_vm0, %v121_v35, -inf  ;;  %v90_v56 = vld [vmem:[%s1095_s0 + $0x290] sm:$0xff]  ;;  %v204_v60 = vsel %vm152_vm0, %v11_v51, -inf  ;;  %v193_v4 = vmax.f32 %v191_v58, %v192_v50 }
   0xa   :  { %v161_v41 = vmax.f32 %v159_v28, %v160_v22  ;;  %v168_v42 = vsel %vm152_vm0, %v136_v16, -inf  ;;  %v106_v57 = vld [vmem:[%s1095_s0 + $0x310] sm:$0xff]  ;;  %v59_v59 = vld [vmem:[%s1095_s0 + $0x198] sm:$0xff]  ;;  %v178_v61 = vmax.f32 %v176_v47, %v177_v44  ;;  %v194_v62 = vsel %vm152_vm0, %v74_v45, -inf  ;;  %v12_v6 = vld [vmem:[%s1095_s0 + $0x20] sm:$0xff] }
   0xb   :  { %v75_v63 = vld [vmem:[%s1095_s0 + $0x218] sm:$0xff]  ;;  %v205_v0 = vsel %vm152_vm0, %v27_v52, -inf  ;;  %v207_v1 = vsel %vm152_vm0, %v43_v53, -inf  ;;  %v185_v3 = vsel %vm152_vm0, %v137_v43, -inf  ;;  %v28_v7 = vld [vmem:[%s1095_s0 + $0xa0] sm:$0xff]  ;;  %v196_v10 = vsel %vm152_vm0, %v90_v56, -inf }
   0xc   :  { %v163_v54 = vmax.f32 %v161_v41, %v162_v23  ;;  %v206_v5 = vmax.f32 %v204_v60, %v205_v0  ;;  %v44_v8 = vld [vmem:[%s1095_s0 + $0x120] sm:$0xff]  ;;  %v180_v9 = vmax.f32 %v178_v61, %v179_v48  ;;  %v198_v11 = vsel %vm152_vm0, %v106_v57, -inf  ;;  %v122_v14 = vld [vmem:[%s1095_s0 + $0x390] sm:$0xff]  ;;  %v91_v16 = vld [vmem:[%s1095_s0 + $0x298] sm:$0xff] }
   0xd   :  { %v209_v12 = vsel %vm152_vm0, %v59_v59, -inf  ;;  %v195_v15 = vmax.f32 %v193_v4, %v194_v62  ;;  %v211_v18 = vsel %vm152_vm0, %v75_v63, -inf  ;;  %v60_v19 = vld [vmem:[%s1095_s0 + $0x1a0] sm:$0xff]  ;;  %v138_v21 = vld [vmem:[%s1095_s0 + $0x410] sm:$0xff]  ;;  %v221_v22 = vsel %vm152_vm0, %v12_v6, -inf  ;;  %v107_v27 = vld [vmem:[%s1095_s0 + $0x318] sm:$0xff] }
   0xe   :  { %v165_v2 = vmax.f32 %v163_v54, %v164_v29  ;;  %v208_v17 = vmax.f32 %v206_v5, %v207_v1  ;;  %v182_v20 = vmax.f32 %v180_v9, %v181_v49  ;;  %v222_v23 = vsel %vm152_vm0, %v28_v7, -inf  ;;  %v76_v29 = vld [vmem:[%s1095_s0 + $0x220] sm:$0xff]  ;;  %v13_v31 = vld [vmem:[%s1095_s0 + $0x28] sm:$0xff]  ;;  %v123_v39 = vld [vmem:[%s1095_s0 + $0x398] sm:$0xff] }
   0xf   :  { %v224_v24 = vsel %vm152_vm0, %v44_v8, -inf  ;;  %v197_v26 = vmax.f32 %v195_v15, %v196_v10  ;;  %v200_v33 = vsel %vm152_vm0, %v122_v14, -inf  ;;  %v213_v34 = vsel %vm152_vm0, %v91_v16, -inf  ;;  %v29_v36 = vld [vmem:[%s1095_s0 + $0xa8] sm:$0xff]  ;;  %v92_v41 = vld [vmem:[%s1095_s0 + $0x2a0] sm:$0xff]  ;;  %v139_v50 = vld [vmem:[%s1095_s0 + $0x418] sm:$0xff] }
  0x10   :  { %v167_v13 = vmax.f32 %v165_v2, %v166_v30  ;;  %v210_v28 = vmax.f32 %v208_v17, %v209_v12  ;;  %v223_v30 = vmax.f32 %v221_v22, %v222_v23  ;;  %v184_v32 = vmax.f32 %v182_v20, %v183_v55  ;;  %v45_v43 = vld [vmem:[%s1095_s0 + $0x128] sm:$0xff]  ;;  %v108_v52 = vld [vmem:[%s1095_s0 + $0x320] sm:$0xff]  ;;  %v14_v60 = vld [vmem:[%s1095_s0 + $0x30] sm:$0xff] }
  0x11   :  { %v226_v35 = vsel %vm152_vm0, %v60_v19, -inf  ;;  %v199_v37 = vmax.f32 %v197_v26, %v198_v11  ;;  %v202_v38 = vsel %vm152_vm0, %v138_v21, -inf  ;;  %v215_v45 = vsel %vm152_vm0, %v107_v27, -inf  ;;  %v61_v47 = vld [vmem:[%s1095_s0 + $0x1a8] sm:$0xff]  ;;  %v30_v61 = vld [vmem:[%s1095_s0 + $0xb0] sm:$0xff]  ;;  %v124_v0 = vld [vmem:[%s1095_s0 + $0x3a0] sm:$0xff] }
  0x12   :  { %v169_v25 = vmax.f32 %v167_v13, %v168_v42  ;;  %v212_v40 = vmax.f32 %v210_v28, %v211_v18  ;;  %v225_v42 = vmax.f32 %v223_v30, %v224_v24  ;;  %v186_v44 = vmax.f32 %v184_v32, %v185_v3  ;;  %v77_v54 = vld [vmem:[%s1095_s0 + $0x228] sm:$0xff]  ;;  %v46_v3 = vld [vmem:[%s1095_s0 + $0x130] sm:$0xff]  ;;  %v140_v11 = vld [vmem:[%s1095_s0 + $0x420] sm:$0xff] }
  0x13   :  { %v228_v46 = vsel %vm152_vm0, %v76_v29, -inf  ;;  %v238_v48 = vsel %vm152_vm0, %v13_v31, -inf  ;;  %v201_v49 = vmax.f32 %v199_v37, %v200_v33  ;;  %v239_v55 = vsel %vm152_vm0, %v29_v36, -inf  ;;  %v93_v6 = vld [vmem:[%s1095_s0 + $0x2a8] sm:$0xff]  ;;  %v62_v9 = vld [vmem:[%s1095_s0 + $0x1b0] sm:$0xff]  ;;  %v15_v21 = vld [vmem:[%s1095_s0 + $0x38] sm:$0xff] }
  0x14   :  { %425 = vst.msk [vmem:[%s1096_s1] sm:$0xff] %vm152_vm0, %v169_v25  ;;  %v214_v51 = vmax.f32 %v212_v40, %v213_v34  ;;  %v227_v53 = vmax.f32 %v225_v42, %v226_v35  ;;  %v217_v56 = vsel %vm152_vm0, %v123_v39, -inf  ;;  %v230_v57 = vsel %vm152_vm0, %v92_v41, -inf  ;;  %v109_v13 = vld [vmem:[%s1095_s0 + $0x328] sm:$0xff]  ;;  %v78_v18 = vld [vmem:[%s1095_s0 + $0x230] sm:$0xff]  ;;  %v31_v22 = vld [vmem:[%s1095_s0 + $0xb8] sm:$0xff] }
  0x15   :  { %426 = vst.msk [vmem:[%s1096_s1 + $0x8] sm:$0xff] %vm152_vm0, %v186_v44  ;;  %v240_v58 = vmax.f32 %v238_v48, %v239_v55  ;;  %v241_v59 = vsel %vm152_vm0, %v45_v43, -inf  ;;  %v203_v62 = vmax.f32 %v201_v49, %v202_v38  ;;  %v243_v2 = vsel %vm152_vm0, %v61_v47, -inf  ;;  %v47_v27 = vld [vmem:[%s1095_s0 + $0x138] sm:$0xff]  ;;  %v125_v29 = vld [vmem:[%s1095_s0 + $0x3a8] sm:$0xff]  ;;  %v94_v32 = vld [vmem:[%s1095_s0 + $0x2b0] sm:$0xff] }
  0x16   :  { %v216_v63 = vmax.f32 %v214_v51, %v215_v45  ;;  %v229_v1 = vmax.f32 %v227_v53, %v228_v46  ;;  %v219_v4 = vsel %vm152_vm0, %v139_v50, -inf  ;;  %v232_v5 = vsel %vm152_vm0, %v108_v52, -inf  ;;  %v63_v34 = vld [vmem:[%s1095_s0 + $0x1b8] sm:$0xff]  ;;  %v141_v36 = vld [vmem:[%s1095_s0 + $0x428] sm:$0xff]  ;;  %v110_v37 = vld [vmem:[%s1095_s0 + $0x330] sm:$0xff] }
  0x17   :  { %v242_v7 = vmax.f32 %v240_v58, %v241_v59  ;;  %v245_v8 = vsel %vm152_vm0, %v77_v54, -inf  ;;  %427 = vst.msk [vmem:[%s1096_s1 + $0x10] sm:$0xff] %vm152_vm0, %v203_v62  ;;  %v255_v14 = vsel %vm152_vm0, %v14_v60, -inf  ;;  %v256_v15 = vsel %vm152_vm0, %v30_v61, -inf  ;;  %v79_v43 = vld [vmem:[%s1095_s0 + $0x238] sm:$0xff]  ;;  %v16_v46 = vld [vmem:[%s1095_s0 + $0x40] sm:$0xff] }
  0x18   :  { %v218_v10 = vmax.f32 %v216_v63, %v217_v56  ;;  %v231_v12 = vmax.f32 %v229_v1, %v230_v57  ;;  %v234_v16 = vsel %vm152_vm0, %v124_v0, -inf  ;;  %v257_v19 = vmax.f32 %v255_v14, %v256_v15  ;;  %v32_v47 = vld [vmem:[%s1095_s0 + $0xc0] sm:$0xff]  ;;  %v126_v50 = vld [vmem:[%s1095_s0 + $0x3b0] sm:$0xff]  ;;  %v95_v56 = vld [vmem:[%s1095_s0 + $0x2b8] sm:$0xff] }
  0x19   :  { %v244_v17 = vmax.f32 %v242_v7, %v243_v2  ;;  %v258_v20 = vsel %vm152_vm0, %v46_v3, -inf  ;;  %v247_v25 = vsel %vm152_vm0, %v93_v6, -inf  ;;  %v260_v26 = vsel %vm152_vm0, %v62_v9, -inf  ;;  %v48_v58 = vld [vmem:[%s1095_s0 + $0x140] sm:$0xff]  ;;  %v142_v60 = vld [vmem:[%s1095_s0 + $0x430] sm:$0xff]  ;;  %v111_v3 = vld [vmem:[%s1095_s0 + $0x338] sm:$0xff] }
  0x1a   :  { %v220_v23 = vmax.f32 %v218_v10, %v219_v4  ;;  %v233_v24 = vmax.f32 %v231_v12, %v232_v5  ;;  %v236_v28 = vsel %vm152_vm0, %v140_v11, -inf  ;;  %v249_v31 = vsel %vm152_vm0, %v109_v13, -inf  ;;  %v64_v59 = vld [vmem:[%s1095_s0 + $0x1c0] sm:$0xff]  ;;  %v17_v7 = vld [vmem:[%s1095_s0 + $0x48] sm:$0xff]  ;;  %v127_v15 = vld [vmem:[%s1095_s0 + $0x3b8] sm:$0xff] }
  0x1b   :  { %v246_v30 = vmax.f32 %v244_v17, %v245_v8  ;;  %v259_v33 = vmax.f32 %v257_v19, %v258_v20  ;;  %v262_v38 = vsel %vm152_vm0, %v78_v18, -inf  ;;  %v272_v39 = vsel %vm152_vm0, %v15_v21, -inf  ;;  %v80_v5 = vld [vmem:[%s1095_s0 + $0x240] sm:$0xff]  ;;  %v33_v12 = vld [vmem:[%s1095_s0 + $0xc8] sm:$0xff] }
  0x1c   :  { %428 = vst.msk [vmem:[%s1096_s1 + $0x18] sm:$0xff] %vm152_vm0, %v220_v23  ;;  %v235_v35 = vmax.f32 %v233_v24, %v234_v16  ;;  %v273_v40 = vsel %vm152_vm0, %v31_v22, -inf  ;;  %v275_v45 = vsel %vm152_vm0, %v47_v27, -inf  ;;  %v251_v49 = vsel %vm152_vm0, %v125_v29, -inf  ;;  %v96_v17 = vld [vmem:[%s1095_s0 + $0x2c0] sm:$0xff]  ;;  %v49_v19 = vld [vmem:[%s1095_s0 + $0x148] sm:$0xff] }
  0x1d   :  { %v248_v41 = vmax.f32 %v246_v30, %v247_v25  ;;  %v261_v42 = vmax.f32 %v259_v33, %v260_v26  ;;  %v274_v44 = vmax.f32 %v272_v39, %v273_v40  ;;  %v264_v51 = vsel %vm152_vm0, %v94_v32, -inf  ;;  %v65_v23 = vld [vmem:[%s1095_s0 + $0x1c8] sm:$0xff]  ;;  %v143_v26 = vld [vmem:[%s1095_s0 + $0x438] sm:$0xff]  ;;  %v128_v40 = vld [vmem:[%s1095_s0 + $0x3c0] sm:$0xff] }
  0x1e   :  { %v237_v48 = vmax.f32 %v235_v35, %v236_v28  ;;  %v277_v52 = vsel %vm152_vm0, %v63_v34, -inf  ;;  %v253_v54 = vsel %vm152_vm0, %v141_v36, -inf  ;;  %v266_v61 = vsel %vm152_vm0, %v110_v37, -inf  ;;  %v112_v28 = vld [vmem:[%s1095_s0 + $0x340] sm:$0xff]  ;;  %v81_v30 = vld [vmem:[%s1095_s0 + $0x248] sm:$0xff]  ;;  %v18_v36 = vld [vmem:[%s1095_s0 + $0x50] sm:$0xff] }
  0x1f   :  { %v250_v53 = vmax.f32 %v248_v41, %v249_v31  ;;  %v263_v55 = vmax.f32 %v261_v42, %v262_v38  ;;  %v276_v57 = vmax.f32 %v274_v44, %v275_v45  ;;  %v279_v62 = vsel %vm152_vm0, %v79_v43, -inf  ;;  %v34_v37 = vld [vmem:[%s1095_s0 + $0xd0] sm:$0xff] }
  0x20   :  { %429 = vst.msk [vmem:[%s1096_s1 + $0x20] sm:$0xff] %vm152_vm0, %v237_v48  ;;  %v289_v63 = vsel %vm152_vm0, %v16_v46, -inf  ;;  %v290_v0 = vsel %vm152_vm0, %v32_v47, -inf  ;;  %v268_v8 = vsel %vm152_vm0, %v126_v50, -inf  ;;  %v281_v9 = vsel %vm152_vm0, %v95_v56, -inf  ;;  %v50_v43 = vld [vmem:[%s1095_s0 + $0x150] sm:$0xff] }
  0x21   :  { %v252_v1 = vmax.f32 %v250_v53, %v251_v49  ;;  %v265_v2 = vmax.f32 %v263_v55, %v264_v51  ;;  %v278_v4 = vmax.f32 %v276_v57, %v277_v52  ;;  %v291_v6 = vmax.f32 %v289_v63, %v290_v0  ;;  %v97_v46 = vld [vmem:[%s1095_s0 + $0x2c8] sm:$0xff]  ;;  %v66_v49 = vld [vmem:[%s1095_s0 + $0x1d0] sm:$0xff]  ;;  %v144_v51 = vld [vmem:[%s1095_s0 + $0x440] sm:$0xff] }
  0x22   :  { %v292_v10 = vsel %vm152_vm0, %v48_v58, -inf  ;;  %v294_v11 = vsel %vm152_vm0, %v64_v59, -inf  ;;  %v270_v20 = vsel %vm152_vm0, %v142_v60, -inf  ;;  %v283_v21 = vsel %vm152_vm0, %v111_v3, -inf  ;;  %v113_v53 = vld [vmem:[%s1095_s0 + $0x348] sm:$0xff]  ;;  %v82_v58 = vld [vmem:[%s1095_s0 + $0x250] sm:$0xff] }
  0x23   :  { %v254_v13 = vmax.f32 %v252_v1, %v253_v54  ;;  %v267_v14 = vmax.f32 %v265_v2, %v266_v61  ;;  %v280_v16 = vmax.f32 %v278_v4, %v279_v62  ;;  %v293_v18 = vmax.f32 %v291_v6, %v292_v10  ;;  %v19_v61 = vld [vmem:[%s1095_s0 + $0x58] sm:$0xff] }
  0x24   :  { %v296_v22 = vsel %vm152_vm0, %v80_v5, -inf  ;;  %v306_v24 = vsel %vm152_vm0, %v17_v7, -inf  ;;  %v307_v31 = vsel %vm152_vm0, %v33_v12, -inf  ;;  %v285_v32 = vsel %vm152_vm0, %v127_v15, -inf  ;;  %v35_v62 = vld [vmem:[%s1095_s0 + $0xd8] sm:$0xff]  ;;  %v129_v5 = vld [vmem:[%s1095_s0 + $0x3c8] sm:$0xff] }
  0x25   :  { %430 = vst.msk [vmem:[%s1096_s1 + $0x28] sm:$0xff] %vm152_vm0, %v254_v13  ;;  %v269_v25 = vmax.f32 %v267_v14, %v268_v8  ;;  %v282_v27 = vmax.f32 %v280_v16, %v281_v9  ;;  %v295_v29 = vmax.f32 %v293_v18, %v294_v11  ;;  %v298_v33 = vsel %vm152_vm0, %v96_v17, -inf  ;;  %v51_v3 = vld [vmem:[%s1095_s0 + $0x158] sm:$0xff]  ;;  %v98_v8 = vld [vmem:[%s1095_s0 + $0x2d0] sm:$0xff]  ;;  %v145_v12 = vld [vmem:[%s1095_s0 + $0x448] sm:$0xff] }
  0x26   :  { %v308_v34 = vmax.f32 %v306_v24, %v307_v31  ;;  %v309_v35 = vsel %vm152_vm0, %v49_v19, -inf  ;;  %v311_v42 = vsel %vm152_vm0, %v65_v23, -inf  ;;  %v287_v44 = vsel %vm152_vm0, %v143_v26, -inf  ;;  %v67_v10 = vld [vmem:[%s1095_s0 + $0x1d8] sm:$0xff]  ;;  %v114_v13 = vld [vmem:[%s1095_s0 + $0x350] sm:$0xff]  ;;  %v36_v23 = vld [vmem:[%s1095_s0 + $0xe0] sm:$0xff] }
  0x27   :  { %v271_v38 = vmax.f32 %v269_v25, %v270_v20  ;;  %v284_v39 = vmax.f32 %v282_v27, %v283_v21  ;;  %v297_v41 = vmax.f32 %v295_v29, %v296_v22  ;;  %v300_v45 = vsel %vm152_vm0, %v112_v28, -inf  ;;  %v83_v19 = vld [vmem:[%s1095_s0 + $0x258] sm:$0xff]  ;;  %v20_v22 = vld [vmem:[%s1095_s0 + $0x60] sm:$0xff]  ;;  %v130_v26 = vld [vmem:[%s1095_s0 + $0x3d0] sm:$0xff] }
  0x28   :  { %v310_v47 = vmax.f32 %v308_v34, %v309_v35  ;;  %v313_v48 = vsel %vm152_vm0, %v81_v30, -inf  ;;  %v323_v54 = vsel %vm152_vm0, %v18_v36, -inf  ;;  %v324_v55 = vsel %vm152_vm0, %v34_v37, -inf  ;;  %v52_v34 = vld [vmem:[%s1095_s0 + $0x160] sm:$0xff]  ;;  %v146_v36 = vld [vmem:[%s1095_s0 + $0x450] sm:$0xff] }
  0x29   :  { %431 = vst.msk [vmem:[%s1096_s1 + $0x30] sm:$0xff] %vm152_vm0, %v271_v38  ;;  %v286_v50 = vmax.f32 %v284_v39, %v285_v32  ;;  %v299_v52 = vmax.f32 %v297_v41, %v298_v33  ;;  %v302_v56 = vsel %vm152_vm0, %v128_v40, -inf  ;;  %v325_v59 = vmax.f32 %v323_v54, %v324_v55  ;;  %v99_v32 = vld [vmem:[%s1095_s0 + $0x2d8] sm:$0xff]  ;;  %v68_v35 = vld [vmem:[%s1095_s0 + $0x1e0] sm:$0xff] }
  0x2a   :  { %v312_v57 = vmax.f32 %v310_v47, %v311_v42  ;;  %v326_v60 = vsel %vm152_vm0, %v50_v43, -inf  ;;  %v315_v1 = vsel %vm152_vm0, %v97_v46, -inf  ;;  %v328_v2 = vsel %vm152_vm0, %v66_v49, -inf  ;;  %v115_v43 = vld [vmem:[%s1095_s0 + $0x358] sm:$0xff]  ;;  %v21_v47 = vld [vmem:[%s1095_s0 + $0x68] sm:$0xff] }
  0x2b   :  { %v288_v63 = vmax.f32 %v286_v50, %v287_v44  ;;  %v301_v0 = vmax.f32 %v299_v52, %v300_v45  ;;  %v304_v4 = vsel %vm152_vm0, %v144_v51, -inf  ;;  %v317_v7 = vsel %vm152_vm0, %v113_v53, -inf  ;;  %v84_v45 = vld [vmem:[%s1095_s0 + $0x260] sm:$0xff]  ;;  %v37_v52 = vld [vmem:[%s1095_s0 + $0xe8] sm:$0xff]  ;;  %v131_v55 = vld [vmem:[%s1095_s0 + $0x3d8] sm:$0xff] }
  0x2c   :  { %v314_v6 = vmax.f32 %v312_v57, %v313_v48  ;;  %v327_v9 = vmax.f32 %v325_v59, %v326_v60  ;;  %v330_v14 = vsel %vm152_vm0, %v82_v58, -inf  ;;  %v340_v15 = vsel %vm152_vm0, %v19_v61, -inf  ;;  %v100_v57 = vld [vmem:[%s1095_s0 + $0x2e0] sm:$0xff]  ;;  %v53_v59 = vld [vmem:[%s1095_s0 + $0x168] sm:$0xff] }
  0x2d   :  { %432 = vst.msk [vmem:[%s1096_s1 + $0x38] sm:$0xff] %vm152_vm0, %v288_v63  ;;  %v303_v11 = vmax.f32 %v301_v0, %v302_v56  ;;  %v341_v16 = vsel %vm152_vm0, %v35_v62, -inf  ;;  %v343_v21 = vsel %vm152_vm0, %v51_v3, -inf  ;;  %v319_v25 = vsel %vm152_vm0, %v129_v5, -inf  ;;  %v69_v63 = vld [vmem:[%s1095_s0 + $0x1e8] sm:$0xff] }
  0x2e   :  { %v316_v17 = vmax.f32 %v314_v6, %v315_v1  ;;  %v329_v18 = vmax.f32 %v327_v9, %v328_v2  ;;  %v342_v20 = vmax.f32 %v340_v15, %v341_v16  ;;  %v332_v27 = vsel %vm152_vm0, %v98_v8, -inf  ;;  %v147_v2 = vld [vmem:[%s1095_s0 + $0x458] sm:$0xff]  ;;  %v85_v6 = vld [vmem:[%s1095_s0 + $0x268] sm:$0xff]  ;;  %v132_v16 = vld [vmem:[%s1095_s0 + $0x3e0] sm:$0xff] }
  0x2f   :  { %v305_v24 = vmax.f32 %v303_v11, %v304_v4  ;;  %v345_v28 = vsel %vm152_vm0, %v67_v10, -inf  ;;  %v321_v30 = vsel %vm152_vm0, %v145_v12, -inf  ;;  %v334_v37 = vsel %vm152_vm0, %v114_v13, -inf  ;;  %v116_v4 = vld [vmem:[%s1095_s0 + $0x360] sm:$0xff]  ;;  %v22_v12 = vld [vmem:[%s1095_s0 + $0x70] sm:$0xff] }
  0x30   :  { %v318_v29 = vmax.f32 %v316_v17, %v317_v7  ;;  %v331_v31 = vmax.f32 %v329_v18, %v330_v14  ;;  %v344_v33 = vmax.f32 %v342_v20, %v343_v21  ;;  %v347_v38 = vsel %vm152_vm0, %v83_v19, -inf  ;;  %v38_v13 = vld [vmem:[%s1095_s0 + $0xf0] sm:$0xff] }
  0x31   :  { %433 = vst.msk [vmem:[%s1096_s1 + $0x40] sm:$0xff] %vm152_vm0, %v305_v24  ;;  %v357_v39 = vsel %vm152_vm0, %v20_v22, -inf  ;;  %v358_v40 = vsel %vm152_vm0, %v36_v23, -inf  ;;  %v336_v48 = vsel %vm152_vm0, %v130_v26, -inf  ;;  %v349_v49 = vsel %vm152_vm0, %v99_v32, -inf  ;;  %v54_v19 = vld [vmem:[%s1095_s0 + $0x170] sm:$0xff] }
  0x32   :  { %v320_v41 = vmax.f32 %v318_v29, %v319_v25  ;;  %v333_v42 = vmax.f32 %v331_v31, %v332_v27  ;;  %v346_v44 = vmax.f32 %v344_v33, %v345_v28  ;;  %v359_v46 = vmax.f32 %v357_v39, %v358_v40  ;;  %v101_v22 = vld [vmem:[%s1095_s0 + $0x2e8] sm:$0xff]  ;;  %v70_v25 = vld [vmem:[%s1095_s0 + $0x1f0] sm:$0xff]  ;;  %v148_v27 = vld [vmem:[%s1095_s0 + $0x460] sm:$0xff] }
  0x33   :  { %v360_v50 = vsel %vm152_vm0, %v52_v34, -inf  ;;  %v362_v51 = vsel %vm152_vm0, %v68_v35, -inf  ;;  %v338_v60 = vsel %vm152_vm0, %v146_v36, -inf  ;;  %v351_v61 = vsel %vm152_vm0, %v115_v43, -inf  ;;  %v117_v29 = vld [vmem:[%s1095_s0 + $0x368] sm:$0xff]  ;;  %v86_v34 = vld [vmem:[%s1095_s0 + $0x270] sm:$0xff] }
  0x34   :  { %v322_v53 = vmax.f32 %v320_v41, %v321_v30  ;;  %v335_v54 = vmax.f32 %v333_v42, %v334_v37  ;;  %v348_v56 = vmax.f32 %v346_v44, %v347_v38  ;;  %v361_v58 = vmax.f32 %v359_v46, %v360_v50  ;;  %v23_v37 = vld [vmem:[%s1095_s0 + $0x78] sm:$0xff] }
  0x35   :  { %v364_v62 = vsel %vm152_vm0, %v84_v45, -inf  ;;  %v374_v0 = vsel %vm152_vm0, %v21_v47, -inf  ;;  %v375_v7 = vsel %vm152_vm0, %v37_v52, -inf  ;;  %v353_v8 = vsel %vm152_vm0, %v131_v55, -inf  ;;  %v39_v38 = vld [vmem:[%s1095_s0 + $0xf8] sm:$0xff]  ;;  %v133_v45 = vld [vmem:[%s1095_s0 + $0x3e8] sm:$0xff] }
  0x36   :  { %434 = vst.msk [vmem:[%s1096_s1 + $0x48] sm:$0xff] %vm152_vm0, %v322_v53  ;;  %v337_v1 = vmax.f32 %v335_v54, %v336_v48  ;;  %v350_v3 = vmax.f32 %v348_v56, %v349_v49  ;;  %v363_v5 = vmax.f32 %v361_v58, %v362_v51  ;;  %v366_v9 = vsel %vm152_vm0, %v100_v57, -inf  ;;  %v55_v43 = vld [vmem:[%s1095_s0 + $0x178] sm:$0xff]  ;;  %v102_v48 = vld [vmem:[%s1095_s0 + $0x2f0] sm:$0xff]  ;;  %v149_v55 = vld [vmem:[%s1095_s0 + $0x468] sm:$0xff] }
  0x37   :  { %v376_v10 = vmax.f32 %v374_v0, %v375_v7  ;;  %v377_v11 = vsel %vm152_vm0, %v53_v59, -inf  ;;  %v379_v18 = vsel %vm152_vm0, %v69_v63, -inf  ;;  %v355_v20 = vsel %vm152_vm0, %v147_v2, -inf  ;;  %v71_v50 = vld [vmem:[%s1095_s0 + $0x1f8] sm:$0xff]  ;;  %v118_v57 = vld [vmem:[%s1095_s0 + $0x370] sm:$0xff] }
  0x38   :  { %v339_v14 = vmax.f32 %v337_v1, %v338_v60  ;;  %v352_v15 = vmax.f32 %v350_v3, %v351_v61  ;;  %v365_v17 = vmax.f32 %v363_v5, %v364_v62  ;;  %v368_v21 = vsel %vm152_vm0, %v116_v4, -inf  ;;  %v87_v59 = vld [vmem:[%s1095_s0 + $0x278] sm:$0xff]  ;;  %v134_v3 = vld [vmem:[%s1095_s0 + $0x3f0] sm:$0xff] }
  0x39   :  { %v378_v23 = vmax.f32 %v376_v10, %v377_v11  ;;  %v381_v24 = vsel %vm152_vm0, %v85_v6, -inf  ;;  %v391_v30 = vsel %vm152_vm0, %v22_v12, -inf  ;;  %v392_v31 = vsel %vm152_vm0, %v38_v13, -inf  ;;  %v103_v5 = vld [vmem:[%s1095_s0 + $0x2f8] sm:$0xff]  ;;  %v150_v11 = vld [vmem:[%s1095_s0 + $0x470] sm:$0xff] }
  0x3a   :  { %435 = vst.msk [vmem:[%s1096_s1 + $0x50] sm:$0xff] %vm152_vm0, %v339_v14  ;;  %v354_v26 = vmax.f32 %v352_v15, %v353_v8  ;;  %v367_v28 = vmax.f32 %v365_v17, %v366_v9  ;;  %v370_v32 = vsel %vm152_vm0, %v132_v16, -inf  ;;  %v393_v35 = vmax.f32 %v391_v30, %v392_v31  ;;  %v119_v13 = vld [vmem:[%s1095_s0 + $0x378] sm:$0xff] }
  0x3b   :  { %v380_v33 = vmax.f32 %v378_v23, %v379_v18  ;;  %v394_v36 = vsel %vm152_vm0, %v54_v19, -inf  ;;  %v383_v41 = vsel %vm152_vm0, %v101_v22, -inf  ;;  %v396_v42 = vsel %vm152_vm0, %v70_v25, -inf  ;;  %v135_v19 = vld [vmem:[%s1095_s0 + $0x3f8] sm:$0xff] }
  0x3c   :  { %v356_v39 = vmax.f32 %v354_v26, %v355_v20  ;;  %v369_v40 = vmax.f32 %v367_v28, %v368_v21  ;;  %v372_v44 = vsel %vm152_vm0, %v148_v27, -inf  ;;  %v385_v47 = vsel %vm152_vm0, %v117_v29, -inf }
  0x3d   :  { %v382_v46 = vmax.f32 %v380_v33, %v381_v24  ;;  %v395_v49 = vmax.f32 %v393_v35, %v394_v36  ;;  %v398_v52 = vsel %vm152_vm0, %v86_v34, -inf  ;;  %v408_v53 = vsel %vm152_vm0, %v23_v37, -inf  ;;  %v151_v24 = vld [vmem:[%s1095_s0 + $0x478] sm:$0xff] }
  0x3e   :  { %436 = vst.msk [vmem:[%s1096_s1 + $0x58] sm:$0xff] %vm152_vm0, %v356_v39  ;;  %v371_v51 = vmax.f32 %v369_v40, %v370_v32  ;;  %v409_v54 = vsel %vm152_vm0, %v39_v38, -inf  ;;  %v411_v61 = vsel %vm152_vm0, %v55_v43, -inf  ;;  %v387_v63 = vsel %vm152_vm0, %v133_v45, -inf }
  0x3f   :  { %v384_v56 = vmax.f32 %v382_v46, %v383_v41  ;;  %v397_v58 = vmax.f32 %v395_v49, %v396_v42  ;;  %v410_v60 = vmax.f32 %v408_v53, %v409_v54  ;;  %v400_v0 = vsel %vm152_vm0, %v102_v48, -inf }
  0x40   :  { %v373_v62 = vmax.f32 %v371_v51, %v372_v44  ;;  %v413_v1 = vsel %vm152_vm0, %v71_v50, -inf  ;;  %v389_v7 = vsel %vm152_vm0, %v149_v55, -inf  ;;  %v402_v8 = vsel %vm152_vm0, %v118_v57, -inf }
  0x41   :  { %v386_v2 = vmax.f32 %v384_v56, %v385_v47  ;;  %v399_v4 = vmax.f32 %v397_v58, %v398_v52  ;;  %v412_v6 = vmax.f32 %v410_v60, %v411_v61  ;;  %v415_v9 = vsel %vm152_vm0, %v87_v59, -inf }
  0x42   :  { %437 = vst.msk [vmem:[%s1096_s1 + $0x60] sm:$0xff] %vm152_vm0, %v373_v62  ;;  %v404_v15 = vsel %vm152_vm0, %v134_v3, -inf  ;;  %v417_v16 = vsel %vm152_vm0, %v103_v5, -inf  ;;  %v406_v21 = vsel %vm152_vm0, %v150_v11, -inf  ;;  %v419_v22 = vsel %vm152_vm0, %v119_v13, -inf }
  0x43   :  { %v388_v10 = vmax.f32 %v386_v2, %v387_v63  ;;  %v401_v12 = vmax.f32 %v399_v4, %v400_v0  ;;  %v414_v14 = vmax.f32 %v412_v6, %v413_v1  ;;  %v421_v26 = vsel %vm152_vm0, %v135_v19, -inf }
  0x44   :  { %v423_v29 = vsel %vm152_vm0, %v151_v24, -inf }
  0x45   :  { %v390_v17 = vmax.f32 %v388_v10, %v389_v7  ;;  %v403_v18 = vmax.f32 %v401_v12, %v402_v8  ;;  %v416_v20 = vmax.f32 %v414_v14, %v415_v9 }
  0x47   :  { %438 = vst.msk [vmem:[%s1096_s1 + $0x68] sm:$0xff] %vm152_vm0, %v390_v17  ;;  %v405_v23 = vmax.f32 %v403_v18, %v404_v15  ;;  %v418_v25 = vmax.f32 %v416_v20, %v417_v16 }
  0x49   :  { %v407_v27 = vmax.f32 %v405_v23, %v406_v21  ;;  %v420_v28 = vmax.f32 %v418_v25, %v419_v22 }
  0x4b   :  { %439 = vst.msk [vmem:[%s1096_s1 + $0x70] sm:$0xff] %vm152_vm0, %v407_v27  ;;  %v422_v30 = vmax.f32 %v420_v28, %v421_v26 }
  0x4d   :  { %v424_v31 = vmax.f32 %v422_v30, %v423_v29 }
  0x4f   :  { %440 = vst.msk [vmem:[%s1096_s1 + $0x78] sm:$0xff] %vm152_vm0, %v424_v31 }

// kernel: _lambda_.13
= control target key start
LH: loop header
LB: loop body
LE: loop exit
PB: predicated region body
PF: predicated region fallthrough
CT: control target
= control target key end

     0   :  { %vm169_vm0 = vcmask 523264   ;;  %s1324_s1 = inlined_call_operand.vmem [shape: f32[576,64], index: 1, kind: input, shape index: {}]   ;;  %s1325_s0 = inlined_call_operand.vmem [shape: f32[128,576], index: 0, kind: input, shape index: {}]   ;;  %s1326_s2 = inlined_call_operand.vmem [shape: f32[1,64], index: 2, kind: input, shape index: {}]   ;;  %s1327_s3 = inlined_call_operand.vmem [shape: f32[1,64], index: 3, kind: input, shape index: {}]   ;;  %s1328_s4 = inlined_call_operand.vmem [shape: f32[128,64], index: 4, kind: output, shape index: {}]  }
   0x1   :  { %v112_v0 = vld [vmem:[%s1324_s1 + $0x78] sm:$0xff]  ;;  %v111_v1 = vld [vmem:[%s1324_s1 + $0x70] sm:$0xff]  ;;  %v110_v2 = vld [vmem:[%s1324_s1 + $0x68] sm:$0xff] }
   0x2   :  { %635 = vmatpush.msra.mxu1 %v112_v0  ;;  %636 = vmatpush.msra.mxu2 %v112_v0  ;;  %v109_v3 = vld [vmem:[%s1324_s1 + $0x60] sm:$0xff]  ;;  %v108_v4 = vld [vmem:[%s1324_s1 + $0x58] sm:$0xff]  ;;  %v107_v5 = vld [vmem:[%s1324_s1 + $0x50] sm:$0xff] }
   0x3   :  { %637 = vmatpush.msra.mxu3 %v112_v0  ;;  %218 = vmatpush.msra.mxu0 %v112_v0  ;;  %v106_v6 = vld [vmem:[%s1324_s1 + $0x48] sm:$0xff]  ;;  %v105_v7 = vld [vmem:[%s1324_s1 + $0x40] sm:$0xff]  ;;  %v104_v8 = vld [vmem:[%s1324_s1 + $0x38] sm:$0xff] }
   0x4   :  { %638 = vmatpush.msra.mxu1 %v111_v1  ;;  %639 = vmatpush.msra.mxu2 %v111_v1  ;;  %v103_v9 = vld [vmem:[%s1324_s1 + $0x30] sm:$0xff]  ;;  %v102_v10 = vld [vmem:[%s1324_s1 + $0x28] sm:$0xff]  ;;  %v101_v11 = vld [vmem:[%s1324_s1 + $0x20] sm:$0xff] }
   0x5   :  { %640 = vmatpush.msra.mxu3 %v111_v1  ;;  %219 = vmatpush.msra.mxu0 %v111_v1  ;;  %v100_v12 = vld [vmem:[%s1324_s1 + $0x18] sm:$0xff]  ;;  %v99_v13 = vld [vmem:[%s1324_s1 + $0x10] sm:$0xff]  ;;  %v98_v14 = vld [vmem:[%s1324_s1 + $0x8] sm:$0xff] }
   0x6   :  { %641 = vmatpush.msra.mxu1 %v110_v2  ;;  %642 = vmatpush.msra.mxu2 %v110_v2  ;;  %v97_v15 = vld [vmem:[%s1324_s1] sm:$0xff]  ;;  %v144_v18 = vld [vmem:[%s1324_s1 + $0x178] sm:$0xff]  ;;  %v143_v21 = vld [vmem:[%s1324_s1 + $0x170] sm:$0xff] }
   0x7   :  { %643 = vmatpush.msra.mxu3 %v110_v2  ;;  %220 = vmatpush.msra.mxu0 %v110_v2  ;;  %v37_v16 = vld [vmem:[%s1325_s0 + $0xa0] sm:$0xff]  ;;  %v128_v19 = vld [vmem:[%s1324_s1 + $0xf8] sm:$0xff]  ;;  %v127_v23 = vld [vmem:[%s1324_s1 + $0xf0] sm:$0xff] }
   0x8   :  { %644 = vmatpush.msra.mxu1 %v109_v3  ;;  %645 = vmatpush.msra.mxu2 %v109_v3  ;;  %v57_v17 = vld [vmem:[%s1325_s0 + $0x140] sm:$0xff]  ;;  %v160_v22 = vld [vmem:[%s1324_s1 + $0x1f8] sm:$0xff]  ;;  %v142_v24 = vld [vmem:[%s1324_s1 + $0x168] sm:$0xff] }
   0x9   :  { %646 = vmatpush.msra.mxu3 %v109_v3  ;;  %221 = vmatpush.msra.mxu0 %v109_v3  ;;  %v77_v20 = vld [vmem:[%s1325_s0 + $0x1e0] sm:$0xff]  ;;  %v159_v25 = vld [vmem:[%s1324_s1 + $0x1f0] sm:$0xff]  ;;  %v126_v26 = vld [vmem:[%s1324_s1 + $0xe8] sm:$0xff] }
   0xa   :  { %647 = vmatpush.msra.mxu1 %v108_v4  ;;  %648 = vmatpush.msra.mxu2 %v108_v4  ;;  %v17_v27 = vld [vmem:[%s1325_s0] sm:$0xff]  ;;  %v158_v29 = vld [vmem:[%s1324_s1 + $0x1e8] sm:$0xff]  ;;  %v140_v33 = vld [vmem:[%s1324_s1 + $0x158] sm:$0xff] }
   0xb   :  { %649 = vmatpush.msra.mxu3 %v108_v4  ;;  %222 = vmatpush.msra.mxu0 %v108_v4  ;;  %v141_v28 = vld [vmem:[%s1324_s1 + $0x160] sm:$0xff]  ;;  %v62_v31 = vld [vmem:[%s1325_s0 + $0x168] sm:$0xff]  ;;  %v124_v35 = vld [vmem:[%s1324_s1 + $0xd8] sm:$0xff] }
   0xc   :  { %650 = vmatpush.msra.mxu1 %v107_v5  ;;  %651 = vmatpush.msra.mxu2 %v107_v5  ;;  %v125_v30 = vld [vmem:[%s1324_s1 + $0xe0] sm:$0xff]  ;;  %v42_v32 = vld [vmem:[%s1325_s0 + $0xc8] sm:$0xff]  ;;  %v139_v37 = vld [vmem:[%s1324_s1 + $0x150] sm:$0xff] }
   0xd   :  { %652 = vmatpush.msra.mxu3 %v107_v5  ;;  %223 = vmatpush.msra.mxu0 %v107_v5  ;;  %v157_v34 = vld [vmem:[%s1324_s1 + $0x1e0] sm:$0xff]  ;;  %v82_v36 = vld [vmem:[%s1325_s0 + $0x208] sm:$0xff]  ;;  %v156_v38 = vld [vmem:[%s1324_s1 + $0x1d8] sm:$0xff] }
   0xe   :  { %653 = vmatpush.msra.mxu1 %v106_v6  ;;  %654 = vmatpush.msra.mxu2 %v106_v6  ;;  %v168_v39 = vld [vmem:[%s1324_s1 + $0x238] sm:$0xff]  ;;  %v123_v40 = vld [vmem:[%s1324_s1 + $0xd0] sm:$0xff]  ;;  %v138_v41 = vld [vmem:[%s1324_s1 + $0x148] sm:$0xff] }
   0xf   :  { %655 = vmatpush.msra.mxu3 %v106_v6  ;;  %224 = vmatpush.msra.mxu0 %v106_v6  ;;  %v155_v42 = vld [vmem:[%s1324_s1 + $0x1d0] sm:$0xff]  ;;  %v122_v44 = vld [vmem:[%s1324_s1 + $0xc8] sm:$0xff]  ;;  %v137_v45 = vld [vmem:[%s1324_s1 + $0x140] sm:$0xff] }
  0x10   :  { %656 = vmatpush.msra.mxu1 %v105_v7  ;;  %657 = vmatpush.msra.mxu2 %v105_v7  ;;  %v167_v43 = vld [vmem:[%s1324_s1 + $0x230] sm:$0xff]  ;;  %v154_v46 = vld [vmem:[%s1324_s1 + $0x1c8] sm:$0xff]  ;;  %v121_v48 = vld [vmem:[%s1324_s1 + $0xc0] sm:$0xff] }
  0x11   :  { %658 = vmatpush.msra.mxu3 %v105_v7  ;;  %225 = vmatpush.msra.mxu0 %v105_v7  ;;  %v67_v47 = vld [vmem:[%s1325_s0 + $0x190] sm:$0xff]  ;;  %v136_v49 = vld [vmem:[%s1324_s1 + $0x138] sm:$0xff]  ;;  %v153_v51 = vld [vmem:[%s1324_s1 + $0x1c0] sm:$0xff] }
  0x12   :  { %659 = vmatpush.msra.mxu1 %v104_v8  ;;  %660 = vmatpush.msra.mxu2 %v104_v8  ;;  %v47_v50 = vld [vmem:[%s1325_s0 + $0xf0] sm:$0xff]  ;;  %v120_v52 = vld [vmem:[%s1324_s1 + $0xb8] sm:$0xff]  ;;  %v22_v53 = vld [vmem:[%s1325_s0 + $0x28] sm:$0xff] }
  0x13   :  { %661 = vmatpush.msra.mxu3 %v104_v8  ;;  %226 = vmatpush.msra.mxu0 %v104_v8  ;;  %v87_v54 = vld [vmem:[%s1325_s0 + $0x230] sm:$0xff]  ;;  %v152_v56 = vld [vmem:[%s1324_s1 + $0x1b8] sm:$0xff]  ;;  %v166_v57 = vld [vmem:[%s1324_s1 + $0x228] sm:$0xff] }
  0x14   :  { %662 = vmatpush.msra.mxu1 %v103_v9  ;;  %663 = vmatpush.msra.mxu2 %v103_v9  ;;  %v135_v55 = vld [vmem:[%s1324_s1 + $0x130] sm:$0xff]  ;;  %v134_v59 = vld [vmem:[%s1324_s1 + $0x128] sm:$0xff]  ;;  %v165_v61 = vld [vmem:[%s1324_s1 + $0x220] sm:$0xff] }
  0x15   :  { %664 = vmatpush.msra.mxu3 %v103_v9  ;;  %227 = vmatpush.msra.mxu0 %v103_v9  ;;  %v119_v58 = vld [vmem:[%s1324_s1 + $0xb0] sm:$0xff]  ;;  %v118_v62 = vld [vmem:[%s1324_s1 + $0xa8] sm:$0xff]  ;;  %v133_v63 = vld [vmem:[%s1324_s1 + $0x120] sm:$0xff] }
  0x16   :  { %665 = vmatpush.msra.mxu1 %v102_v10  ;;  %666 = vmatpush.msra.mxu2 %v102_v10  ;;  %v151_v60 = vld [vmem:[%s1324_s1 + $0x1b0] sm:$0xff]  ;;  %v150_v0 = vld [vmem:[%s1324_s1 + $0x1a8] sm:$0xff]  ;;  %v72_v1 = vld [vmem:[%s1325_s0 + $0x1b8] sm:$0xff] }
  0x17   :  { %667 = vmatpush.msra.mxu3 %v102_v10  ;;  %228 = vmatpush.msra.mxu0 %v102_v10  ;;  %v117_v2 = vld [vmem:[%s1324_s1 + $0xa0] sm:$0xff]  ;;  %v132_v3 = vld [vmem:[%s1324_s1 + $0x118] sm:$0xff]  ;;  %v27_v7 = vld [vmem:[%s1325_s0 + $0x50] sm:$0xff] }
  0x18   :  { %668 = vmatpush.msra.mxu1 %v101_v11  ;;  %669 = vmatpush.msra.mxu2 %v101_v11  ;;  %v52_v4 = vld [vmem:[%s1325_s0 + $0x118] sm:$0xff]  ;;  %v149_v5 = vld [vmem:[%s1324_s1 + $0x1a0] sm:$0xff]  ;;  %v131_v9 = vld [vmem:[%s1324_s1 + $0x110] sm:$0xff] }
  0x19   :  { %670 = vmatpush.msra.mxu3 %v101_v11  ;;  %229 = vmatpush.msra.mxu0 %v101_v11  ;;  %v116_v6 = vld [vmem:[%s1324_s1 + $0x98] sm:$0xff] }
  0x1a   :  { %671 = vmatpush.msra.mxu1 %v100_v12  ;;  %672 = vmatpush.msra.mxu2 %v100_v12  ;;  %v92_v8 = vld [vmem:[%s1325_s0 + $0x258] sm:$0xff] }
  0x1b   :  { %673 = vmatpush.msra.mxu3 %v100_v12  ;;  %230 = vmatpush.msra.mxu0 %v100_v12  ;;  %v148_v10 = vld [vmem:[%s1324_s1 + $0x198] sm:$0xff]  ;;  %v115_v12 = vld [vmem:[%s1324_s1 + $0x90] sm:$0xff] }
  0x1c   :  { %674 = vmatpush.msra.mxu1 %v99_v13  ;;  %675 = vmatpush.msra.mxu2 %v99_v13  ;;  %v164_v11 = vld [vmem:[%s1324_s1 + $0x218] sm:$0xff] }
  0x1d   :  { %676 = vmatpush.msra.mxu3 %v99_v13  ;;  %231 = vmatpush.msra.mxu0 %v99_v13  ;;  %v130_v13 = vld [vmem:[%s1324_s1 + $0x108] sm:$0xff] }
  0x1e   :  { %677 = vmatpush.msra.mxu1 %v98_v14  ;;  %678 = vmatpush.msra.mxu2 %v98_v14 }
  0x1f   :  { %679 = vmatpush.msra.mxu3 %v98_v14  ;;  %232 = vmatpush.msra.mxu0 %v98_v14  ;;  %v147_v14 = vld [vmem:[%s1324_s1 + $0x190] sm:$0xff] }
  0x20   :  { %680 = vmatpush.msra.mxu1 %v97_v15  ;;  %681 = vmatpush.msra.mxu2 %v97_v15 }
  0x21   :  { %246 = vmatmul.f32.vlgmr.msra.gmra.mxu1 %v37_v16  ;;  %258 = vmatmul.f32.vlgmr.msra.gmra.mxu2 %v57_v17  ;;  %v114_v16 = vld [vmem:[%s1324_s1 + $0x88] sm:$0xff]  ;;  %v129_v17 = vld [vmem:[%s1324_s1 + $0x100] sm:$0xff] }
  0x22   :  { %348 = vmatpush.msrb.mxu2 %v144_v18  ;;  %682 = vmatpush.msra.mxu3 %v97_v15  ;;  %v146_v18 = vld [vmem:[%s1324_s1 + $0x188] sm:$0xff] }
  0x23   :  { %283 = vmatpush.msrb.mxu1 %v128_v19  ;;  %270 = vmatmul.f32.vlgmr.msra.gmra.mxu3 %v77_v20  ;;  %v19_v19 = vld [vmem:[%s1325_s0 + $0x10] sm:$0xff]  ;;  %v113_v20 = vld [vmem:[%s1324_s1 + $0x80] sm:$0xff] }
  0x24   :  { %349 = vmatpush.msrb.mxu2 %v143_v21  ;;  %413 = vmatpush.msrb.mxu3 %v160_v22  ;;  %v162_v21 = vld [vmem:[%s1324_s1 + $0x208] sm:$0xff] }
  0x25   :  { %284 = vmatpush.msrb.mxu1 %v127_v23  ;;  %233 = vmatpush.msra.mxu0 %v97_v15  ;;  %v163_v15 = vld [vmem:[%s1324_s1 + $0x210] sm:$0xff]  ;;  %v18_v22 = vld [vmem:[%s1325_s0 + $0x8] sm:$0xff]  ;;  %v145_v23 = vld [vmem:[%s1324_s1 + $0x180] sm:$0xff] }
  0x26   :  { %350 = vmatpush.msrb.mxu2 %v142_v24  ;;  %414 = vmatpush.msrb.mxu3 %v159_v25  ;;  %v32_v24 = vld [vmem:[%s1325_s0 + $0x78] sm:$0xff] }
  0x27   :  { %285 = vmatpush.msrb.mxu1 %v126_v26  ;;  %234 = vmatmul.f32.vlgmr.msra.gmra.mxu0 %v17_v27  ;;  %v20_v25 = vld [vmem:[%s1325_s0 + $0x18] sm:$0xff]  ;;  %v161_v26 = vld [vmem:[%s1324_s1 + $0x200] sm:$0xff] }
  0x28   :  { %351 = vmatpush.msrb.mxu2 %v141_v28  ;;  %415 = vmatpush.msrb.mxu3 %v158_v29  ;;  %v24_v27 = vld [vmem:[%s1325_s0 + $0x38] sm:$0xff]  ;;  %v23_v28 = vld [vmem:[%s1325_s0 + $0x30] sm:$0xff]  ;;  %v25_v29 = vld [vmem:[%s1325_s0 + $0x40] sm:$0xff] }
  0x29   :  { %286 = vmatpush.msrb.mxu1 %v125_v30  ;;  %261 = vmatmul.f32.gmra.mxu2 %v62_v31  ;;  %v21_v30 = vld [vmem:[%s1325_s0 + $0x20] sm:$0xff] }
  0x2a   :  { %249 = vmatmul.f32.gmra.mxu1 %v42_v32  ;;  %352 = vmatpush.msrb.mxu2 %v140_v33  ;;  %v29_v31 = vld [vmem:[%s1325_s0 + $0x60] sm:$0xff]  ;;  %v28_v32 = vld [vmem:[%s1325_s0 + $0x58] sm:$0xff]  ;;  %v30_v33 = vld [vmem:[%s1325_s0 + $0x68] sm:$0xff] }
  0x2b   :  { %416 = vmatpush.msrb.mxu3 %v157_v34  ;;  %287 = vmatpush.msrb.mxu1 %v124_v35  ;;  %v26_v34 = vld [vmem:[%s1325_s0 + $0x48] sm:$0xff] }
  0x2c   :  { %273 = vmatmul.f32.gmra.mxu3 %v82_v36  ;;  %353 = vmatpush.msrb.mxu2 %v139_v37  ;;  %v34_v35 = vld [vmem:[%s1325_s0 + $0x88] sm:$0xff]  ;;  %v33_v36 = vld [vmem:[%s1325_s0 + $0x80] sm:$0xff]  ;;  %v35_v37 = vld [vmem:[%s1325_s0 + $0x90] sm:$0xff] }
  0x2d   :  { %417 = vmatpush.msrb.mxu3 %v156_v38  ;;  %486 = vmatpush.msrb.mxu0 %v168_v39  ;;  %v31_v38 = vld [vmem:[%s1325_s0 + $0x70] sm:$0xff] }
  0x2e   :  { %288 = vmatpush.msrb.mxu1 %v123_v40  ;;  %354 = vmatpush.msrb.mxu2 %v138_v41  ;;  %v39_v39 = vld [vmem:[%s1325_s0 + $0xb0] sm:$0xff]  ;;  %v38_v40 = vld [vmem:[%s1325_s0 + $0xa8] sm:$0xff]  ;;  %v40_v41 = vld [vmem:[%s1325_s0 + $0xb8] sm:$0xff] }
  0x2f   :  { %418 = vmatpush.msrb.mxu3 %v155_v42  ;;  %487 = vmatpush.msrb.mxu0 %v167_v43  ;;  %v36_v42 = vld [vmem:[%s1325_s0 + $0x98] sm:$0xff] }
  0x30   :  { %289 = vmatpush.msrb.mxu1 %v122_v44  ;;  %355 = vmatpush.msrb.mxu2 %v137_v45  ;;  %v44_v43 = vld [vmem:[%s1325_s0 + $0xd8] sm:$0xff]  ;;  %v43_v44 = vld [vmem:[%s1325_s0 + $0xd0] sm:$0xff]  ;;  %v45_v45 = vld [vmem:[%s1325_s0 + $0xe0] sm:$0xff] }
  0x31   :  { %419 = vmatpush.msrb.mxu3 %v154_v46  ;;  %264 = vmatmul.f32.gmra.mxu2 %v67_v47  ;;  %v41_v46 = vld [vmem:[%s1325_s0 + $0xc0] sm:$0xff] }
  0x32   :  { %290 = vmatpush.msrb.mxu1 %v121_v48  ;;  %356 = vmatpush.msrb.mxu2 %v136_v49  ;;  %v49_v47 = vld [vmem:[%s1325_s0 + $0x100] sm:$0xff]  ;;  %v48_v48 = vld [vmem:[%s1325_s0 + $0xf8] sm:$0xff]  ;;  %v50_v49 = vld [vmem:[%s1325_s0 + $0x108] sm:$0xff] }
  0x33   :  { %252 = vmatmul.f32.gmra.mxu1 %v47_v50  ;;  %420 = vmatpush.msrb.mxu3 %v153_v51  ;;  %v46_v50 = vld [vmem:[%s1325_s0 + $0xe8] sm:$0xff] }
  0x34   :  { %291 = vmatpush.msrb.mxu1 %v120_v52  ;;  %237 = vmatmul.f32.gmra.mxu0 %v22_v53  ;;  %v54_v51 = vld [vmem:[%s1325_s0 + $0x128] sm:$0xff]  ;;  %v53_v52 = vld [vmem:[%s1325_s0 + $0x120] sm:$0xff]  ;;  %v55_v53 = vld [vmem:[%s1325_s0 + $0x130] sm:$0xff] }
  0x35   :  { %276 = vmatmul.f32.gmra.mxu3 %v87_v54  ;;  %357 = vmatpush.msrb.mxu2 %v135_v55  ;;  %v51_v54 = vld [vmem:[%s1325_s0 + $0x110] sm:$0xff] }
  0x36   :  { %421 = vmatpush.msrb.mxu3 %v152_v56  ;;  %488 = vmatpush.msrb.mxu0 %v166_v57  ;;  %v59_v55 = vld [vmem:[%s1325_s0 + $0x150] sm:$0xff]  ;;  %v58_v56 = vld [vmem:[%s1325_s0 + $0x148] sm:$0xff]  ;;  %v60_v57 = vld [vmem:[%s1325_s0 + $0x158] sm:$0xff] }
  0x37   :  { %292 = vmatpush.msrb.mxu1 %v119_v58  ;;  %358 = vmatpush.msrb.mxu2 %v134_v59  ;;  %v56_v58 = vld [vmem:[%s1325_s0 + $0x138] sm:$0xff] }
  0x38   :  { %422 = vmatpush.msrb.mxu3 %v151_v60  ;;  %489 = vmatpush.msrb.mxu0 %v165_v61  ;;  %v64_v59 = vld [vmem:[%s1325_s0 + $0x178] sm:$0xff]  ;;  %v63_v60 = vld [vmem:[%s1325_s0 + $0x170] sm:$0xff]  ;;  %v65_v61 = vld [vmem:[%s1325_s0 + $0x180] sm:$0xff] }
  0x39   :  { %293 = vmatpush.msrb.mxu1 %v118_v62  ;;  %359 = vmatpush.msrb.mxu2 %v133_v63  ;;  %v61_v62 = vld [vmem:[%s1325_s0 + $0x160] sm:$0xff] }
  0x3a   :  { %423 = vmatpush.msrb.mxu3 %v150_v0  ;;  %267 = vmatmul.f32.gmra.mxu2 %v72_v1  ;;  %v69_v63 = vld [vmem:[%s1325_s0 + $0x1a0] sm:$0xff]  ;;  %v68_v0 = vld [vmem:[%s1325_s0 + $0x198] sm:$0xff]  ;;  %v70_v1 = vld [vmem:[%s1325_s0 + $0x1a8] sm:$0xff] }
  0x3b   :  { %294 = vmatpush.msrb.mxu1 %v117_v2  ;;  %360 = vmatpush.msrb.mxu2 %v132_v3  ;;  %v66_v2 = vld [vmem:[%s1325_s0 + $0x188] sm:$0xff] }
  0x3c   :  { %255 = vmatmul.f32.gmra.mxu1 %v52_v4  ;;  %424 = vmatpush.msrb.mxu3 %v149_v5  ;;  %v74_v3 = vld [vmem:[%s1325_s0 + $0x1c8] sm:$0xff]  ;;  %v73_v4 = vld [vmem:[%s1325_s0 + $0x1c0] sm:$0xff]  ;;  %v75_v5 = vld [vmem:[%s1325_s0 + $0x1d0] sm:$0xff] }
  0x3d   :  { %295 = vmatpush.msrb.mxu1 %v116_v6  ;;  %240 = vmatmul.f32.gmra.mxu0 %v27_v7  ;;  %v71_v6 = vld [vmem:[%s1325_s0 + $0x1b0] sm:$0xff] }
  0x3e   :  { %279 = vmatmul.f32.gmra.mxu3 %v92_v8  ;;  %361 = vmatpush.msrb.mxu2 %v131_v9  ;;  %v79_v8 = vld [vmem:[%s1325_s0 + $0x1f0] sm:$0xff]  ;;  %v78_v9 = vld [vmem:[%s1325_s0 + $0x1e8] sm:$0xff] }
  0x3f   :  { %425 = vmatpush.msrb.mxu3 %v148_v10  ;;  %490 = vmatpush.msrb.mxu0 %v164_v11  ;;  %v80_v10 = vld [vmem:[%s1325_s0 + $0x1f8] sm:$0xff] }
  0x40   :  { %296 = vmatpush.msrb.mxu1 %v115_v12  ;;  %362 = vmatpush.msrb.mxu2 %v130_v13  ;;  %v76_v11 = vld [vmem:[%s1325_s0 + $0x1d8] sm:$0xff] }
  0x41   :  { %426 = vmatpush.msrb.mxu3 %v147_v14  ;;  %491 = vmatpush.msrb.mxu0 %v163_v15 }
  0x42   :  { %297 = vmatpush.msrb.mxu1 %v114_v16  ;;  %363 = vmatpush.msrb.mxu2 %v129_v17  ;;  %v84_v16 = vld [vmem:[%s1325_s0 + $0x218] sm:$0xff]  ;;  %v83_v17 = vld [vmem:[%s1325_s0 + $0x210] sm:$0xff] }
  0x43   :  { %427 = vmatpush.msrb.mxu3 %v146_v18  ;;  %364 = vmatmul.f32.vlgmr.msrb.gmra.mxu2 %v19_v19  ;;  %v85_v18 = vld [vmem:[%s1325_s0 + $0x220] sm:$0xff] }
  0x44   :  { %298 = vmatpush.msrb.mxu1 %v113_v20  ;;  %492 = vmatpush.msrb.mxu0 %v162_v21  ;;  %v81_v19 = vld [vmem:[%s1325_s0 + $0x200] sm:$0xff] }
  0x45   :  { %299 = vmatmul.f32.vlgmr.msrb.gmra.mxu1 %v18_v22  ;;  %428 = vmatpush.msrb.mxu3 %v145_v23  ;;  %v89_v23 = vld [vmem:[%s1325_s0 + $0x240] sm:$0xff] }
  0x46   :  { %243 = vmatmul.f32.gmra.mxu0 %v32_v24  ;;  %429 = vmatmul.f32.vlgmr.msrb.gmra.mxu3 %v20_v25  ;;  %v88_v25 = vld [vmem:[%s1325_s0 + $0x238] sm:$0xff] }
  0x47   :  { %493 = vmatpush.msrb.mxu0 %v161_v26  ;;  %v90_v26 = vld [vmem:[%s1325_s0 + $0x248] sm:$0xff] }
  0x4b   :  { %367 = vmatmul.f32.gmra.mxu2 %v24_v27  ;;  %v86_v27 = vld [vmem:[%s1325_s0 + $0x228] sm:$0xff] }
  0x4d   :  { %302 = vmatmul.f32.gmra.mxu1 %v23_v28 }
  0x4e   :  { %432 = vmatmul.f32.gmra.mxu3 %v25_v29  ;;  %619 = vmatmul.msk.f32.vlgmr.msrb.gmra.mxu0 %vm169_vm0, %v21_v30  ;;  %v94_v30 = vld [vmem:[%s1325_s0 + $0x268] sm:$0xff] }
  0x53   :  { %370 = vmatmul.f32.gmra.mxu2 %v29_v31 }
  0x55   :  { %305 = vmatmul.f32.gmra.mxu1 %v28_v32 }
  0x56   :  { %435 = vmatmul.f32.gmra.mxu3 %v30_v33  ;;  %620 = vmatmul.msk.f32.gmra.mxu0 %vm169_vm0, %v26_v34  ;;  %v93_v33 = vld [vmem:[%s1325_s0 + $0x260] sm:$0xff]  ;;  %v95_v34 = vld [vmem:[%s1325_s0 + $0x270] sm:$0xff] }
  0x5b   :  { %373 = vmatmul.f32.gmra.mxu2 %v34_v35  ;;  %v91_v35 = vld [vmem:[%s1325_s0 + $0x250] sm:$0xff] }
  0x5d   :  { %308 = vmatmul.f32.gmra.mxu1 %v33_v36 }
  0x5e   :  { %438 = vmatmul.f32.gmra.mxu3 %v35_v37  ;;  %621 = vmatmul.msk.f32.gmra.mxu0 %vm169_vm0, %v31_v38 }
  0x63   :  { %376 = vmatmul.f32.gmra.mxu2 %v39_v39 }
  0x65   :  { %311 = vmatmul.f32.gmra.mxu1 %v38_v40  ;;  %v96_v40 = vld [vmem:[%s1325_s0 + $0x278] sm:$0xff] }
  0x66   :  { %441 = vmatmul.f32.gmra.mxu3 %v40_v41  ;;  %622 = vmatmul.msk.f32.gmra.mxu0 %vm169_vm0, %v36_v42 }
  0x6b   :  { %379 = vmatmul.f32.gmra.mxu2 %v44_v43 }
  0x6d   :  { %314 = vmatmul.f32.gmra.mxu1 %v43_v44 }
  0x6e   :  { %444 = vmatmul.f32.gmra.mxu3 %v45_v45  ;;  %623 = vmatmul.msk.f32.gmra.mxu0 %vm169_vm0, %v41_v46 }
  0x73   :  { %382 = vmatmul.f32.gmra.mxu2 %v49_v47  ;;  %v1209_v47 = vld [vmem:[%s1326_s2] ss:$0 sm:$0xff] }
  0x75   :  { %317 = vmatmul.f32.gmra.mxu1 %v48_v48 }
  0x76   :  { %447 = vmatmul.f32.gmra.mxu3 %v50_v49  ;;  %624 = vmatmul.msk.f32.gmra.mxu0 %vm169_vm0, %v46_v50  ;;  %v1214_v50 = vld [vmem:[%s1327_s3] ss:$0 sm:$0xff] }
  0x7b   :  { %385 = vmatmul.f32.gmra.mxu2 %v54_v51 }
  0x7d   :  { %320 = vmatmul.f32.gmra.mxu1 %v53_v52 }
  0x7e   :  { %450 = vmatmul.f32.gmra.mxu3 %v55_v53  ;;  %625 = vmatmul.msk.f32.gmra.mxu0 %vm169_vm0, %v51_v54 }
  0x83   :  { %388 = vmatmul.f32.gmra.mxu2 %v59_v55 }
  0x85   :  { %323 = vmatmul.f32.gmra.mxu1 %v58_v56 }
  0x86   :  { %453 = vmatmul.f32.gmra.mxu3 %v60_v57  ;;  %626 = vmatmul.msk.f32.gmra.mxu0 %vm169_vm0, %v56_v58 }
  0x8b   :  { %391 = vmatmul.f32.gmra.mxu2 %v64_v59 }
  0x8d   :  { %326 = vmatmul.f32.gmra.mxu1 %v63_v60 }
  0x8e   :  { %456 = vmatmul.f32.gmra.mxu3 %v65_v61  ;;  %627 = vmatmul.msk.f32.gmra.mxu0 %vm169_vm0, %v61_v62 }
  0x93   :  { %394 = vmatmul.f32.gmra.mxu2 %v69_v63 }
  0x95   :  { %329 = vmatmul.f32.gmra.mxu1 %v68_v0 }
  0x96   :  { %459 = vmatmul.f32.gmra.mxu3 %v70_v1  ;;  %628 = vmatmul.msk.f32.gmra.mxu0 %vm169_vm0, %v66_v2 }
  0x9b   :  { %397 = vmatmul.f32.gmra.mxu2 %v74_v3 }
  0x9d   :  { %332 = vmatmul.f32.gmra.mxu1 %v73_v4 }
  0x9e   :  { %462 = vmatmul.f32.gmra.mxu3 %v75_v5  ;;  %629 = vmatmul.msk.f32.gmra.mxu0 %vm169_vm0, %v71_v6  ;;  %v1126_v7 = vpop.f32.mrf.mxu1 }
  0xa3   :  { %400 = vmatmul.f32.gmra.mxu2 %v79_v8 }
  0xa4   :  { %v1140_v12 = vpop.f32.mrf.mxu2  ;;  %v235_v15 = vpop.f32.mrf.mxu0 }
  0xa5   :  { %335 = vmatmul.f32.gmra.mxu1 %v78_v9 }
  0xa6   :  { %465 = vmatmul.f32.gmra.mxu3 %v80_v10  ;;  %630 = vmatmul.msk.f32.gmra.mxu0 %vm169_vm0, %v76_v11  ;;  %v1143_v13 = vpop.f32.mrf.mxu3 }
  0xa7   :  { %v1145_v14 = vpop.f32.mrf.mxu1 }
  0xab   :  { %403 = vmatmul.f32.gmra.mxu2 %v84_v16 }
  0xac   :  { %v1159_v20 = vpop.f32.mrf.mxu2 }
  0xad   :  { %338 = vmatmul.f32.gmra.mxu1 %v83_v17 }
  0xae   :  { %468 = vmatmul.f32.gmra.mxu3 %v85_v18  ;;  %631 = vmatmul.msk.f32.gmra.mxu0 %vm169_vm0, %v81_v19 }
  0xaf   :  { %v1162_v21 = vpop.f32.mrf.mxu3 }
  0xb0   :  { %v1164_v22 = vpop.f32.mrf.mxu1 }
  0xb1   :  { %v238_v24 = vpop.f32.mrf.mxu0 }
  0xb3   :  { %406 = vmatmul.f32.gmra.mxu2 %v89_v23 }
  0xb4   :  { %v1178_v28 = vpop.f32.mrf.mxu2 }
  0xb5   :  { %341 = vmatmul.f32.gmra.mxu1 %v88_v25 }
  0xb6   :  { %471 = vmatmul.f32.gmra.mxu3 %v90_v26  ;;  %632 = vmatmul.msk.f32.gmra.mxu0 %vm169_vm0, %v86_v27 }
  0xb8   :  { %v1181_v29 = vpop.f32.mrf.mxu3 }
  0xb9   :  { %v1186_v31 = vpop.f32.mrf.mxu1 }
  0xba   :  { %v241_v32 = vpop.f32.mrf.mxu0 }
  0xbb   :  { %409 = vmatmul.f32.gmra.mxu2 %v94_v30 }
  0xbd   :  { %344 = vmatmul.f32.gmra.mxu1 %v93_v33  ;;  %v1197_v36 = vpop.f32.mrf.mxu2 }
  0xbe   :  { %474 = vmatmul.f32.gmra.mxu3 %v95_v34  ;;  %633 = vmatmul.msk.f32.gmra.mxu0 %vm169_vm0, %v91_v35 }
  0xc1   :  { %v1200_v37 = vpop.f32.mrf.mxu3 }
  0xc2   :  { %v300_v38 = vpop.f32.mrf.mxu1 }
  0xc3   :  { %v244_v39 = vpop.f32.mrf.mxu0  ;;  %v301_v41 = vadd.f32 %v300_v38, %v235_v15 }
  0xc6   :  { %634 = vmatmul.msk.f32.gmra.mxu0 %vm169_vm0, %v96_v40  ;;  %v365_v42 = vpop.f32.mrf.mxu2 }
  0xc7   :  { %v366_v43 = vadd.f32 %v365_v42, %v301_v41 }
  0xc9   :  { %v430_v44 = vpop.f32.mrf.mxu3 }
  0xca   :  { %v303_v45 = vpop.f32.mrf.mxu1  ;;  %v431_v46 = vadd.f32 %v430_v44, %v366_v43 }
  0xcb   :  { %v495_v48 = vpop.f32.mrf.mxu0  ;;  %v304_v51 = vadd.f32 %v303_v45, %v238_v24 }
  0xcc   :  { %v496_v49 = vadd.f32 %v495_v48, %v431_v46 }
  0xce   :  { %v547_v52 = vmul.f32 %v1209_v47, %v496_v49  ;;  %v368_v53 = vpop.f32.mrf.mxu2 }
  0xcf   :  { %v369_v54 = vadd.f32 %v368_v53, %v304_v51 }
  0xd0   :  { %v567_v55 = vadd.f32 %v1214_v50, %v547_v52 }
  0xd1   :  { %v433_v56 = vpop.f32.mrf.mxu3 }
  0xd2   :  { %v583_v57 = vmax.f32 %v567_v55, 0.0  ;;  %v306_v58 = vpop.f32.mrf.mxu1  ;;  %v434_v59 = vadd.f32 %v433_v56, %v369_v54 }
  0xd3   :  { %v498_v60 = vpop.f32.mrf.mxu0  ;;  %v307_v62 = vadd.f32 %v306_v58, %v241_v32 }
  0xd4   :  { %599 = vst.msk [vmem:[%s1328_s4] sm:$0xff] %vm169_vm0, %v583_v57  ;;  %v499_v61 = vadd.f32 %v498_v60, %v434_v59 }
  0xd6   :  { %v548_v63 = vmul.f32 %v1209_v47, %v499_v61  ;;  %v371_v0 = vpop.f32.mrf.mxu2 }
  0xd7   :  { %v372_v1 = vadd.f32 %v371_v0, %v307_v62 }
  0xd8   :  { %v568_v2 = vadd.f32 %v1214_v50, %v548_v63 }
  0xd9   :  { %v436_v3 = vpop.f32.mrf.mxu3 }
  0xda   :  { %v584_v4 = vmax.f32 %v568_v2, 0.0  ;;  %v309_v5 = vpop.f32.mrf.mxu1  ;;  %v437_v6 = vadd.f32 %v436_v3, %v372_v1 }
  0xdb   :  { %v501_v8 = vpop.f32.mrf.mxu0  ;;  %v310_v10 = vadd.f32 %v309_v5, %v244_v39 }
  0xdc   :  { %600 = vst.msk [vmem:[%s1328_s4 + $0x8] sm:$0xff] %vm169_vm0, %v584_v4  ;;  %v502_v9 = vadd.f32 %v501_v8, %v437_v6 }
  0xde   :  { %v549_v11 = vmul.f32 %v1209_v47, %v502_v9  ;;  %v374_v15 = vpop.f32.mrf.mxu2 }
  0xdf   :  { %v375_v16 = vadd.f32 %v374_v15, %v310_v10 }
  0xe0   :  { %v569_v17 = vadd.f32 %v1214_v50, %v549_v11 }
  0xe1   :  { %v439_v18 = vpop.f32.mrf.mxu3 }
  0xe2   :  { %v585_v19 = vmax.f32 %v569_v17, 0.0  ;;  %v312_v23 = vpop.f32.mrf.mxu1  ;;  %v440_v24 = vadd.f32 %v439_v18, %v375_v16 }
  0xe3   :  { %v504_v25 = vpop.f32.mrf.mxu0  ;;  %v313_v27 = vadd.f32 %v312_v23, %v1126_v7 }
  0xe4   :  { %601 = vst.msk [vmem:[%s1328_s4 + $0x10] sm:$0xff] %vm169_vm0, %v585_v19  ;;  %v505_v26 = vadd.f32 %v504_v25, %v440_v24 }
  0xe6   :  { %v550_v30 = vmul.f32 %v1209_v47, %v505_v26  ;;  %v377_v32 = vpop.f32.mrf.mxu2 }
  0xe7   :  { %v378_v33 = vadd.f32 %v377_v32, %v313_v27 }
  0xe8   :  { %v570_v34 = vadd.f32 %v1214_v50, %v550_v30 }
  0xe9   :  { %v442_v35 = vpop.f32.mrf.mxu3 }
  0xea   :  { %v586_v38 = vmax.f32 %v570_v34, 0.0  ;;  %v315_v39 = vpop.f32.mrf.mxu1  ;;  %v443_v40 = vadd.f32 %v442_v35, %v378_v33 }
  0xeb   :  { %v507_v41 = vpop.f32.mrf.mxu0  ;;  %v316_v43 = vadd.f32 %v315_v39, %v1145_v14 }
  0xec   :  { %602 = vst.msk [vmem:[%s1328_s4 + $0x18] sm:$0xff] %vm169_vm0, %v586_v38  ;;  %v508_v42 = vadd.f32 %v507_v41, %v443_v40 }
  0xee   :  { %v551_v7 = vmul.f32 %v1209_v47, %v508_v42  ;;  %v380_v44 = vpop.f32.mrf.mxu2 }
  0xef   :  { %v381_v45 = vadd.f32 %v380_v44, %v316_v43 }
  0xf0   :  { %v571_v46 = vadd.f32 %v1214_v50, %v551_v7 }
  0xf1   :  { %v445_v48 = vpop.f32.mrf.mxu3 }
  0xf2   :  { %v587_v49 = vmax.f32 %v571_v46, 0.0  ;;  %v318_v51 = vpop.f32.mrf.mxu1  ;;  %v446_v52 = vadd.f32 %v445_v48, %v381_v45 }
  0xf3   :  { %v510_v53 = vpop.f32.mrf.mxu0  ;;  %v319_v55 = vadd.f32 %v318_v51, %v1164_v22 }
  0xf4   :  { %603 = vst.msk [vmem:[%s1328_s4 + $0x20] sm:$0xff] %vm169_vm0, %v587_v49  ;;  %v511_v54 = vadd.f32 %v510_v53, %v446_v52 }
  0xf6   :  { %v552_v14 = vmul.f32 %v1209_v47, %v511_v54  ;;  %v383_v56 = vpop.f32.mrf.mxu2 }
  0xf7   :  { %v384_v57 = vadd.f32 %v383_v56, %v319_v55 }
  0xf8   :  { %v572_v58 = vadd.f32 %v1214_v50, %v552_v14 }
  0xf9   :  { %v448_v59 = vpop.f32.mrf.mxu3 }
  0xfa   :  { %v588_v60 = vmax.f32 %v572_v58, 0.0  ;;  %v321_v61 = vpop.f32.mrf.mxu1  ;;  %v449_v62 = vadd.f32 %v448_v59, %v384_v57 }
  0xfb   :  { %v513_v63 = vpop.f32.mrf.mxu0  ;;  %v322_v1 = vadd.f32 %v321_v61, %v1186_v31 }
  0xfc   :  { %604 = vst.msk [vmem:[%s1328_s4 + $0x28] sm:$0xff] %vm169_vm0, %v588_v60  ;;  %v514_v0 = vadd.f32 %v513_v63, %v449_v62 }
  0xfe   :  { %v553_v22 = vmul.f32 %v1209_v47, %v514_v0  ;;  %v386_v2 = vpop.f32.mrf.mxu2 }
  0xff   :  { %v387_v3 = vadd.f32 %v386_v2, %v322_v1 }
 0x100   :  { %v573_v4 = vadd.f32 %v1214_v50, %v553_v22 }
 0x101   :  { %v451_v5 = vpop.f32.mrf.mxu3 }
 0x102   :  { %v589_v6 = vmax.f32 %v573_v4, 0.0  ;;  %v324_v8 = vpop.f32.mrf.mxu1  ;;  %v452_v9 = vadd.f32 %v451_v5, %v387_v3 }
 0x103   :  { %v516_v10 = vpop.f32.mrf.mxu0  ;;  %v325_v15 = vadd.f32 %v324_v8, %v1140_v12 }
 0x104   :  { %605 = vst.msk [vmem:[%s1328_s4 + $0x30] sm:$0xff] %vm169_vm0, %v589_v6  ;;  %v517_v11 = vadd.f32 %v516_v10, %v452_v9 }
 0x106   :  { %v554_v31 = vmul.f32 %v1209_v47, %v517_v11  ;;  %v389_v16 = vpop.f32.mrf.mxu2 }
 0x107   :  { %v390_v17 = vadd.f32 %v389_v16, %v325_v15 }
 0x108   :  { %v574_v18 = vadd.f32 %v1214_v50, %v554_v31 }
 0x109   :  { %v454_v19 = vpop.f32.mrf.mxu3 }
 0x10a   :  { %v590_v23 = vmax.f32 %v574_v18, 0.0  ;;  %v327_v24 = vpop.f32.mrf.mxu1  ;;  %v455_v25 = vadd.f32 %v454_v19, %v390_v17 }
 0x10b   :  { %v519_v26 = vpop.f32.mrf.mxu0  ;;  %v328_v30 = vadd.f32 %v327_v24, %v1159_v20 }
 0x10c   :  { %606 = vst.msk [vmem:[%s1328_s4 + $0x38] sm:$0xff] %vm169_vm0, %v590_v23  ;;  %v520_v27 = vadd.f32 %v519_v26, %v455_v25 }
 0x10e   :  { %v555_v12 = vmul.f32 %v1209_v47, %v520_v27  ;;  %v392_v32 = vpop.f32.mrf.mxu2 }
 0x10f   :  { %v393_v33 = vadd.f32 %v392_v32, %v328_v30 }
 0x110   :  { %v575_v34 = vadd.f32 %v1214_v50, %v555_v12 }
 0x111   :  { %v457_v35 = vpop.f32.mrf.mxu3 }
 0x112   :  { %v591_v38 = vmax.f32 %v575_v34, 0.0  ;;  %v330_v39 = vpop.f32.mrf.mxu1  ;;  %v458_v40 = vadd.f32 %v457_v35, %v393_v33 }
 0x113   :  { %v522_v41 = vpop.f32.mrf.mxu0  ;;  %v331_v43 = vadd.f32 %v330_v39, %v1178_v28 }
 0x114   :  { %607 = vst.msk [vmem:[%s1328_s4 + $0x40] sm:$0xff] %vm169_vm0, %v591_v38  ;;  %v523_v42 = vadd.f32 %v522_v41, %v458_v40 }
 0x116   :  { %v556_v20 = vmul.f32 %v1209_v47, %v523_v42  ;;  %v395_v7 = vpop.f32.mrf.mxu2 }
 0x117   :  { %v396_v44 = vadd.f32 %v395_v7, %v331_v43 }
 0x118   :  { %v576_v45 = vadd.f32 %v1214_v50, %v556_v20 }
 0x119   :  { %v460_v46 = vpop.f32.mrf.mxu3 }
 0x11a   :  { %v592_v48 = vmax.f32 %v576_v45, 0.0  ;;  %v333_v49 = vpop.f32.mrf.mxu1  ;;  %v461_v51 = vadd.f32 %v460_v46, %v396_v44 }
 0x11b   :  { %v525_v52 = vpop.f32.mrf.mxu0  ;;  %v334_v54 = vadd.f32 %v333_v49, %v1197_v36 }
 0x11c   :  { %608 = vst.msk [vmem:[%s1328_s4 + $0x48] sm:$0xff] %vm169_vm0, %v592_v48  ;;  %v526_v53 = vadd.f32 %v525_v52, %v461_v51 }
 0x11e   :  { %v557_v28 = vmul.f32 %v1209_v47, %v526_v53  ;;  %v398_v55 = vpop.f32.mrf.mxu2 }
 0x11f   :  { %v399_v14 = vadd.f32 %v398_v55, %v334_v54 }
 0x120   :  { %v577_v56 = vadd.f32 %v1214_v50, %v557_v28 }
 0x121   :  { %v463_v57 = vpop.f32.mrf.mxu3 }
 0x122   :  { %v593_v58 = vmax.f32 %v577_v56, 0.0  ;;  %v336_v59 = vpop.f32.mrf.mxu1  ;;  %v464_v60 = vadd.f32 %v463_v57, %v399_v14 }
 0x123   :  { %v528_v61 = vpop.f32.mrf.mxu0  ;;  %v337_v63 = vadd.f32 %v336_v59, %v1143_v13 }
 0x124   :  { %609 = vst.msk [vmem:[%s1328_s4 + $0x50] sm:$0xff] %vm169_vm0, %v593_v58  ;;  %v529_v62 = vadd.f32 %v528_v61, %v464_v60 }
 0x126   :  { %v558_v36 = vmul.f32 %v1209_v47, %v529_v62  ;;  %v401_v0 = vpop.f32.mrf.mxu2 }
 0x127   :  { %v402_v1 = vadd.f32 %v401_v0, %v337_v63 }
 0x128   :  { %v578_v22 = vadd.f32 %v1214_v50, %v558_v36 }
 0x129   :  { %v466_v2 = vpop.f32.mrf.mxu3 }
 0x12a   :  { %v594_v3 = vmax.f32 %v578_v22, 0.0  ;;  %v339_v4 = vpop.f32.mrf.mxu1  ;;  %v467_v5 = vadd.f32 %v466_v2, %v402_v1 }
 0x12b   :  { %v531_v6 = vpop.f32.mrf.mxu0  ;;  %v340_v9 = vadd.f32 %v339_v4, %v1162_v21 }
 0x12c   :  { %610 = vst.msk [vmem:[%s1328_s4 + $0x58] sm:$0xff] %vm169_vm0, %v594_v3  ;;  %v532_v8 = vadd.f32 %v531_v6, %v467_v5 }
 0x12e   :  { %v559_v13 = vmul.f32 %v1209_v47, %v532_v8  ;;  %v404_v10 = vpop.f32.mrf.mxu2 }
 0x12f   :  { %v405_v11 = vadd.f32 %v404_v10, %v340_v9 }
 0x130   :  { %v579_v15 = vadd.f32 %v1214_v50, %v559_v13 }
 0x131   :  { %v469_v31 = vpop.f32.mrf.mxu3 }
 0x132   :  { %v595_v16 = vmax.f32 %v579_v15, 0.0  ;;  %v342_v17 = vpop.f32.mrf.mxu1  ;;  %v470_v18 = vadd.f32 %v469_v31, %v405_v11 }
 0x133   :  { %v534_v19 = vpop.f32.mrf.mxu0  ;;  %v343_v24 = vadd.f32 %v342_v17, %v1181_v29 }
 0x134   :  { %611 = vst.msk [vmem:[%s1328_s4 + $0x60] sm:$0xff] %vm169_vm0, %v595_v16  ;;  %v535_v23 = vadd.f32 %v534_v19, %v470_v18 }
 0x136   :  { %v560_v21 = vmul.f32 %v1209_v47, %v535_v23  ;;  %v407_v25 = vpop.f32.mrf.mxu2 }
 0x137   :  { %v408_v26 = vadd.f32 %v407_v25, %v343_v24 }
 0x138   :  { %v580_v27 = vadd.f32 %v1214_v50, %v560_v21 }
 0x139   :  { %v472_v30 = vpop.f32.mrf.mxu3 }
 0x13a   :  { %v596_v12 = vmax.f32 %v580_v27, 0.0  ;;  %v345_v32 = vpop.f32.mrf.mxu1  ;;  %v473_v33 = vadd.f32 %v472_v30, %v408_v26 }
 0x13b   :  { %v537_v34 = vpop.f32.mrf.mxu0  ;;  %v346_v38 = vadd.f32 %v345_v32, %v1200_v37 }
 0x13c   :  { %612 = vst.msk [vmem:[%s1328_s4 + $0x68] sm:$0xff] %vm169_vm0, %v596_v12  ;;  %v538_v35 = vadd.f32 %v537_v34, %v473_v33 }
 0x13e   :  { %v561_v29 = vmul.f32 %v1209_v47, %v538_v35  ;;  %v410_v39 = vpop.f32.mrf.mxu2 }
 0x13f   :  { %v411_v40 = vadd.f32 %v410_v39, %v346_v38 }
 0x140   :  { %v581_v41 = vadd.f32 %v1214_v50, %v561_v29 }
 0x141   :  { %v475_v42 = vpop.f32.mrf.mxu3 }
 0x142   :  { %v597_v43 = vmax.f32 %v581_v41, 0.0  ;;  %v476_v20 = vadd.f32 %v475_v42, %v411_v40 }
 0x143   :  { %v540_v7 = vpop.f32.mrf.mxu0 }
 0x144   :  { %613 = vst.msk [vmem:[%s1328_s4 + $0x70] sm:$0xff] %vm169_vm0, %v597_v43  ;;  %v541_v44 = vadd.f32 %v540_v7, %v476_v20 }
 0x146   :  { %v562_v45 = vmul.f32 %v1209_v47, %v541_v44 }
 0x148   :  { %v582_v37 = vadd.f32 %v1214_v50, %v562_v45 }
 0x14a   :  { %v598_v46 = vmax.f32 %v582_v37, 0.0 }
 0x14c   :  { %614 = vst.msk [vmem:[%s1328_s4 + $0x78] sm:$0xff] %vm169_vm0, %v598_v46 }

// kernel: _lambda_.14
= control target key start
LH: loop header
LB: loop body
LE: loop exit
PB: predicated region body
PF: predicated region fallthrough
CT: control target
= control target key end

     0   :  { %vm172_vm0 = vcmask 523264   ;;  %s1412_s1 = inlined_call_operand.vmem [shape: f32[576,64], index: 1, kind: input, shape index: {}]   ;;  %s1413_s0 = inlined_call_operand.vmem [shape: f32[128,576], index: 0, kind: input, shape index: {}]   ;;  %s1414_s2 = inlined_call_operand.vmem [shape: f32[1,64], index: 2, kind: input, shape index: {}]   ;;  %s1415_s3 = inlined_call_operand.vmem [shape: f32[1,64], index: 3, kind: input, shape index: {}]   ;;  %s1416_s4 = inlined_call_operand.vmem [shape: f32[128,64], index: 4, kind: input, shape index: {}]   ;;  %s1417_s5 = inlined_call_operand.vmem [shape: f32[128,64], index: 5, kind: output, shape index: {}]  }
   0x1   :  { %v115_v0 = vld [vmem:[%s1412_s1 + $0x78] sm:$0xff]  ;;  %v114_v1 = vld [vmem:[%s1412_s1 + $0x70] sm:$0xff]  ;;  %v113_v2 = vld [vmem:[%s1412_s1 + $0x68] sm:$0xff] }
   0x2   :  { %670 = vmatpush.msra.mxu1 %v115_v0  ;;  %671 = vmatpush.msra.mxu2 %v115_v0  ;;  %v112_v3 = vld [vmem:[%s1412_s1 + $0x60] sm:$0xff]  ;;  %v111_v4 = vld [vmem:[%s1412_s1 + $0x58] sm:$0xff]  ;;  %v110_v5 = vld [vmem:[%s1412_s1 + $0x50] sm:$0xff] }
   0x3   :  { %672 = vmatpush.msra.mxu3 %v115_v0  ;;  %221 = vmatpush.msra.mxu0 %v115_v0  ;;  %v109_v6 = vld [vmem:[%s1412_s1 + $0x48] sm:$0xff]  ;;  %v108_v7 = vld [vmem:[%s1412_s1 + $0x40] sm:$0xff]  ;;  %v107_v8 = vld [vmem:[%s1412_s1 + $0x38] sm:$0xff] }
   0x4   :  { %673 = vmatpush.msra.mxu1 %v114_v1  ;;  %674 = vmatpush.msra.mxu2 %v114_v1  ;;  %v106_v9 = vld [vmem:[%s1412_s1 + $0x30] sm:$0xff]  ;;  %v105_v10 = vld [vmem:[%s1412_s1 + $0x28] sm:$0xff]  ;;  %v104_v11 = vld [vmem:[%s1412_s1 + $0x20] sm:$0xff] }
   0x5   :  { %675 = vmatpush.msra.mxu3 %v114_v1  ;;  %222 = vmatpush.msra.mxu0 %v114_v1  ;;  %v103_v12 = vld [vmem:[%s1412_s1 + $0x18] sm:$0xff]  ;;  %v102_v13 = vld [vmem:[%s1412_s1 + $0x10] sm:$0xff]  ;;  %v101_v14 = vld [vmem:[%s1412_s1 + $0x8] sm:$0xff] }
   0x6   :  { %676 = vmatpush.msra.mxu1 %v113_v2  ;;  %677 = vmatpush.msra.mxu2 %v113_v2  ;;  %v100_v15 = vld [vmem:[%s1412_s1] sm:$0xff]  ;;  %v147_v18 = vld [vmem:[%s1412_s1 + $0x178] sm:$0xff]  ;;  %v146_v21 = vld [vmem:[%s1412_s1 + $0x170] sm:$0xff] }
   0x7   :  { %678 = vmatpush.msra.mxu3 %v113_v2  ;;  %223 = vmatpush.msra.mxu0 %v113_v2  ;;  %v40_v16 = vld [vmem:[%s1413_s0 + $0xa0] sm:$0xff]  ;;  %v131_v19 = vld [vmem:[%s1412_s1 + $0xf8] sm:$0xff]  ;;  %v130_v23 = vld [vmem:[%s1412_s1 + $0xf0] sm:$0xff] }
   0x8   :  { %679 = vmatpush.msra.mxu1 %v112_v3  ;;  %680 = vmatpush.msra.mxu2 %v112_v3  ;;  %v60_v17 = vld [vmem:[%s1413_s0 + $0x140] sm:$0xff]  ;;  %v163_v22 = vld [vmem:[%s1412_s1 + $0x1f8] sm:$0xff]  ;;  %v145_v24 = vld [vmem:[%s1412_s1 + $0x168] sm:$0xff] }
   0x9   :  { %681 = vmatpush.msra.mxu3 %v112_v3  ;;  %224 = vmatpush.msra.mxu0 %v112_v3  ;;  %v80_v20 = vld [vmem:[%s1413_s0 + $0x1e0] sm:$0xff]  ;;  %v162_v25 = vld [vmem:[%s1412_s1 + $0x1f0] sm:$0xff]  ;;  %v129_v26 = vld [vmem:[%s1412_s1 + $0xe8] sm:$0xff] }
   0xa   :  { %682 = vmatpush.msra.mxu1 %v111_v4  ;;  %683 = vmatpush.msra.mxu2 %v111_v4  ;;  %v20_v27 = vld [vmem:[%s1413_s0] sm:$0xff]  ;;  %v161_v29 = vld [vmem:[%s1412_s1 + $0x1e8] sm:$0xff]  ;;  %v143_v33 = vld [vmem:[%s1412_s1 + $0x158] sm:$0xff] }
   0xb   :  { %684 = vmatpush.msra.mxu3 %v111_v4  ;;  %225 = vmatpush.msra.mxu0 %v111_v4  ;;  %v144_v28 = vld [vmem:[%s1412_s1 + $0x160] sm:$0xff]  ;;  %v65_v31 = vld [vmem:[%s1413_s0 + $0x168] sm:$0xff]  ;;  %v127_v35 = vld [vmem:[%s1412_s1 + $0xd8] sm:$0xff] }
   0xc   :  { %685 = vmatpush.msra.mxu1 %v110_v5  ;;  %686 = vmatpush.msra.mxu2 %v110_v5  ;;  %v128_v30 = vld [vmem:[%s1412_s1 + $0xe0] sm:$0xff]  ;;  %v45_v32 = vld [vmem:[%s1413_s0 + $0xc8] sm:$0xff]  ;;  %v142_v37 = vld [vmem:[%s1412_s1 + $0x150] sm:$0xff] }
   0xd   :  { %687 = vmatpush.msra.mxu3 %v110_v5  ;;  %226 = vmatpush.msra.mxu0 %v110_v5  ;;  %v160_v34 = vld [vmem:[%s1412_s1 + $0x1e0] sm:$0xff]  ;;  %v85_v36 = vld [vmem:[%s1413_s0 + $0x208] sm:$0xff]  ;;  %v159_v38 = vld [vmem:[%s1412_s1 + $0x1d8] sm:$0xff] }
   0xe   :  { %688 = vmatpush.msra.mxu1 %v109_v6  ;;  %689 = vmatpush.msra.mxu2 %v109_v6  ;;  %v171_v39 = vld [vmem:[%s1412_s1 + $0x238] sm:$0xff]  ;;  %v126_v40 = vld [vmem:[%s1412_s1 + $0xd0] sm:$0xff]  ;;  %v141_v41 = vld [vmem:[%s1412_s1 + $0x148] sm:$0xff] }
   0xf   :  { %690 = vmatpush.msra.mxu3 %v109_v6  ;;  %227 = vmatpush.msra.mxu0 %v109_v6  ;;  %v158_v42 = vld [vmem:[%s1412_s1 + $0x1d0] sm:$0xff]  ;;  %v125_v44 = vld [vmem:[%s1412_s1 + $0xc8] sm:$0xff]  ;;  %v140_v45 = vld [vmem:[%s1412_s1 + $0x140] sm:$0xff] }
  0x10   :  { %691 = vmatpush.msra.mxu1 %v108_v7  ;;  %692 = vmatpush.msra.mxu2 %v108_v7  ;;  %v170_v43 = vld [vmem:[%s1412_s1 + $0x230] sm:$0xff]  ;;  %v157_v46 = vld [vmem:[%s1412_s1 + $0x1c8] sm:$0xff]  ;;  %v124_v48 = vld [vmem:[%s1412_s1 + $0xc0] sm:$0xff] }
  0x11   :  { %693 = vmatpush.msra.mxu3 %v108_v7  ;;  %228 = vmatpush.msra.mxu0 %v108_v7  ;;  %v70_v47 = vld [vmem:[%s1413_s0 + $0x190] sm:$0xff]  ;;  %v139_v49 = vld [vmem:[%s1412_s1 + $0x138] sm:$0xff]  ;;  %v156_v51 = vld [vmem:[%s1412_s1 + $0x1c0] sm:$0xff] }
  0x12   :  { %694 = vmatpush.msra.mxu1 %v107_v8  ;;  %695 = vmatpush.msra.mxu2 %v107_v8  ;;  %v50_v50 = vld [vmem:[%s1413_s0 + $0xf0] sm:$0xff]  ;;  %v123_v52 = vld [vmem:[%s1412_s1 + $0xb8] sm:$0xff]  ;;  %v25_v53 = vld [vmem:[%s1413_s0 + $0x28] sm:$0xff] }
  0x13   :  { %696 = vmatpush.msra.mxu3 %v107_v8  ;;  %229 = vmatpush.msra.mxu0 %v107_v8  ;;  %v90_v54 = vld [vmem:[%s1413_s0 + $0x230] sm:$0xff]  ;;  %v155_v56 = vld [vmem:[%s1412_s1 + $0x1b8] sm:$0xff]  ;;  %v169_v57 = vld [vmem:[%s1412_s1 + $0x228] sm:$0xff] }
  0x14   :  { %697 = vmatpush.msra.mxu1 %v106_v9  ;;  %698 = vmatpush.msra.mxu2 %v106_v9  ;;  %v138_v55 = vld [vmem:[%s1412_s1 + $0x130] sm:$0xff]  ;;  %v137_v59 = vld [vmem:[%s1412_s1 + $0x128] sm:$0xff]  ;;  %v168_v61 = vld [vmem:[%s1412_s1 + $0x220] sm:$0xff] }
  0x15   :  { %699 = vmatpush.msra.mxu3 %v106_v9  ;;  %230 = vmatpush.msra.mxu0 %v106_v9  ;;  %v122_v58 = vld [vmem:[%s1412_s1 + $0xb0] sm:$0xff]  ;;  %v121_v62 = vld [vmem:[%s1412_s1 + $0xa8] sm:$0xff]  ;;  %v136_v63 = vld [vmem:[%s1412_s1 + $0x120] sm:$0xff] }
  0x16   :  { %700 = vmatpush.msra.mxu1 %v105_v10  ;;  %701 = vmatpush.msra.mxu2 %v105_v10  ;;  %v154_v60 = vld [vmem:[%s1412_s1 + $0x1b0] sm:$0xff]  ;;  %v153_v0 = vld [vmem:[%s1412_s1 + $0x1a8] sm:$0xff]  ;;  %v75_v1 = vld [vmem:[%s1413_s0 + $0x1b8] sm:$0xff] }
  0x17   :  { %702 = vmatpush.msra.mxu3 %v105_v10  ;;  %231 = vmatpush.msra.mxu0 %v105_v10  ;;  %v120_v2 = vld [vmem:[%s1412_s1 + $0xa0] sm:$0xff]  ;;  %v135_v3 = vld [vmem:[%s1412_s1 + $0x118] sm:$0xff]  ;;  %v30_v7 = vld [vmem:[%s1413_s0 + $0x50] sm:$0xff] }
  0x18   :  { %703 = vmatpush.msra.mxu1 %v104_v11  ;;  %704 = vmatpush.msra.mxu2 %v104_v11  ;;  %v55_v4 = vld [vmem:[%s1413_s0 + $0x118] sm:$0xff]  ;;  %v152_v5 = vld [vmem:[%s1412_s1 + $0x1a0] sm:$0xff]  ;;  %v134_v9 = vld [vmem:[%s1412_s1 + $0x110] sm:$0xff] }
  0x19   :  { %705 = vmatpush.msra.mxu3 %v104_v11  ;;  %232 = vmatpush.msra.mxu0 %v104_v11  ;;  %v119_v6 = vld [vmem:[%s1412_s1 + $0x98] sm:$0xff] }
  0x1a   :  { %706 = vmatpush.msra.mxu1 %v103_v12  ;;  %707 = vmatpush.msra.mxu2 %v103_v12  ;;  %v95_v8 = vld [vmem:[%s1413_s0 + $0x258] sm:$0xff] }
  0x1b   :  { %708 = vmatpush.msra.mxu3 %v103_v12  ;;  %233 = vmatpush.msra.mxu0 %v103_v12  ;;  %v151_v10 = vld [vmem:[%s1412_s1 + $0x198] sm:$0xff]  ;;  %v118_v12 = vld [vmem:[%s1412_s1 + $0x90] sm:$0xff] }
  0x1c   :  { %709 = vmatpush.msra.mxu1 %v102_v13  ;;  %710 = vmatpush.msra.mxu2 %v102_v13  ;;  %v167_v11 = vld [vmem:[%s1412_s1 + $0x218] sm:$0xff] }
  0x1d   :  { %711 = vmatpush.msra.mxu3 %v102_v13  ;;  %234 = vmatpush.msra.mxu0 %v102_v13  ;;  %v133_v13 = vld [vmem:[%s1412_s1 + $0x108] sm:$0xff] }
  0x1e   :  { %712 = vmatpush.msra.mxu1 %v101_v14  ;;  %713 = vmatpush.msra.mxu2 %v101_v14 }
  0x1f   :  { %714 = vmatpush.msra.mxu3 %v101_v14  ;;  %235 = vmatpush.msra.mxu0 %v101_v14  ;;  %v150_v14 = vld [vmem:[%s1412_s1 + $0x190] sm:$0xff] }
  0x20   :  { %715 = vmatpush.msra.mxu1 %v100_v15  ;;  %716 = vmatpush.msra.mxu2 %v100_v15 }
  0x21   :  { %249 = vmatmul.f32.vlgmr.msra.gmra.mxu1 %v40_v16  ;;  %261 = vmatmul.f32.vlgmr.msra.gmra.mxu2 %v60_v17  ;;  %v117_v16 = vld [vmem:[%s1412_s1 + $0x88] sm:$0xff]  ;;  %v132_v17 = vld [vmem:[%s1412_s1 + $0x100] sm:$0xff] }
  0x22   :  { %351 = vmatpush.msrb.mxu2 %v147_v18  ;;  %717 = vmatpush.msra.mxu3 %v100_v15  ;;  %v149_v18 = vld [vmem:[%s1412_s1 + $0x188] sm:$0xff] }
  0x23   :  { %286 = vmatpush.msrb.mxu1 %v131_v19  ;;  %273 = vmatmul.f32.vlgmr.msra.gmra.mxu3 %v80_v20  ;;  %v22_v19 = vld [vmem:[%s1413_s0 + $0x10] sm:$0xff]  ;;  %v116_v20 = vld [vmem:[%s1412_s1 + $0x80] sm:$0xff] }
  0x24   :  { %352 = vmatpush.msrb.mxu2 %v146_v21  ;;  %416 = vmatpush.msrb.mxu3 %v163_v22  ;;  %v165_v21 = vld [vmem:[%s1412_s1 + $0x208] sm:$0xff] }
  0x25   :  { %287 = vmatpush.msrb.mxu1 %v130_v23  ;;  %236 = vmatpush.msra.mxu0 %v100_v15  ;;  %v166_v15 = vld [vmem:[%s1412_s1 + $0x210] sm:$0xff]  ;;  %v21_v22 = vld [vmem:[%s1413_s0 + $0x8] sm:$0xff]  ;;  %v148_v23 = vld [vmem:[%s1412_s1 + $0x180] sm:$0xff] }
  0x26   :  { %353 = vmatpush.msrb.mxu2 %v145_v24  ;;  %417 = vmatpush.msrb.mxu3 %v162_v25  ;;  %v35_v24 = vld [vmem:[%s1413_s0 + $0x78] sm:$0xff] }
  0x27   :  { %288 = vmatpush.msrb.mxu1 %v129_v26  ;;  %237 = vmatmul.f32.vlgmr.msra.gmra.mxu0 %v20_v27  ;;  %v23_v25 = vld [vmem:[%s1413_s0 + $0x18] sm:$0xff]  ;;  %v164_v26 = vld [vmem:[%s1412_s1 + $0x200] sm:$0xff] }
  0x28   :  { %354 = vmatpush.msrb.mxu2 %v144_v28  ;;  %418 = vmatpush.msrb.mxu3 %v161_v29  ;;  %v27_v27 = vld [vmem:[%s1413_s0 + $0x38] sm:$0xff]  ;;  %v26_v28 = vld [vmem:[%s1413_s0 + $0x30] sm:$0xff]  ;;  %v28_v29 = vld [vmem:[%s1413_s0 + $0x40] sm:$0xff] }
  0x29   :  { %289 = vmatpush.msrb.mxu1 %v128_v30  ;;  %264 = vmatmul.f32.gmra.mxu2 %v65_v31  ;;  %v24_v30 = vld [vmem:[%s1413_s0 + $0x20] sm:$0xff] }
  0x2a   :  { %252 = vmatmul.f32.gmra.mxu1 %v45_v32  ;;  %355 = vmatpush.msrb.mxu2 %v143_v33  ;;  %v32_v31 = vld [vmem:[%s1413_s0 + $0x60] sm:$0xff]  ;;  %v31_v32 = vld [vmem:[%s1413_s0 + $0x58] sm:$0xff]  ;;  %v33_v33 = vld [vmem:[%s1413_s0 + $0x68] sm:$0xff] }
  0x2b   :  { %419 = vmatpush.msrb.mxu3 %v160_v34  ;;  %290 = vmatpush.msrb.mxu1 %v127_v35  ;;  %v29_v34 = vld [vmem:[%s1413_s0 + $0x48] sm:$0xff] }
  0x2c   :  { %276 = vmatmul.f32.gmra.mxu3 %v85_v36  ;;  %356 = vmatpush.msrb.mxu2 %v142_v37  ;;  %v37_v35 = vld [vmem:[%s1413_s0 + $0x88] sm:$0xff]  ;;  %v36_v36 = vld [vmem:[%s1413_s0 + $0x80] sm:$0xff]  ;;  %v38_v37 = vld [vmem:[%s1413_s0 + $0x90] sm:$0xff] }
  0x2d   :  { %420 = vmatpush.msrb.mxu3 %v159_v38  ;;  %489 = vmatpush.msrb.mxu0 %v171_v39  ;;  %v34_v38 = vld [vmem:[%s1413_s0 + $0x70] sm:$0xff] }
  0x2e   :  { %291 = vmatpush.msrb.mxu1 %v126_v40  ;;  %357 = vmatpush.msrb.mxu2 %v141_v41  ;;  %v42_v39 = vld [vmem:[%s1413_s0 + $0xb0] sm:$0xff]  ;;  %v41_v40 = vld [vmem:[%s1413_s0 + $0xa8] sm:$0xff]  ;;  %v43_v41 = vld [vmem:[%s1413_s0 + $0xb8] sm:$0xff] }
  0x2f   :  { %421 = vmatpush.msrb.mxu3 %v158_v42  ;;  %490 = vmatpush.msrb.mxu0 %v170_v43  ;;  %v39_v42 = vld [vmem:[%s1413_s0 + $0x98] sm:$0xff] }
  0x30   :  { %292 = vmatpush.msrb.mxu1 %v125_v44  ;;  %358 = vmatpush.msrb.mxu2 %v140_v45  ;;  %v47_v43 = vld [vmem:[%s1413_s0 + $0xd8] sm:$0xff]  ;;  %v46_v44 = vld [vmem:[%s1413_s0 + $0xd0] sm:$0xff]  ;;  %v48_v45 = vld [vmem:[%s1413_s0 + $0xe0] sm:$0xff] }
  0x31   :  { %422 = vmatpush.msrb.mxu3 %v157_v46  ;;  %267 = vmatmul.f32.gmra.mxu2 %v70_v47  ;;  %v44_v46 = vld [vmem:[%s1413_s0 + $0xc0] sm:$0xff] }
  0x32   :  { %293 = vmatpush.msrb.mxu1 %v124_v48  ;;  %359 = vmatpush.msrb.mxu2 %v139_v49  ;;  %v52_v47 = vld [vmem:[%s1413_s0 + $0x100] sm:$0xff]  ;;  %v51_v48 = vld [vmem:[%s1413_s0 + $0xf8] sm:$0xff]  ;;  %v53_v49 = vld [vmem:[%s1413_s0 + $0x108] sm:$0xff] }
  0x33   :  { %255 = vmatmul.f32.gmra.mxu1 %v50_v50  ;;  %423 = vmatpush.msrb.mxu3 %v156_v51  ;;  %v49_v50 = vld [vmem:[%s1413_s0 + $0xe8] sm:$0xff] }
  0x34   :  { %294 = vmatpush.msrb.mxu1 %v123_v52  ;;  %240 = vmatmul.f32.gmra.mxu0 %v25_v53  ;;  %v57_v51 = vld [vmem:[%s1413_s0 + $0x128] sm:$0xff]  ;;  %v56_v52 = vld [vmem:[%s1413_s0 + $0x120] sm:$0xff]  ;;  %v58_v53 = vld [vmem:[%s1413_s0 + $0x130] sm:$0xff] }
  0x35   :  { %279 = vmatmul.f32.gmra.mxu3 %v90_v54  ;;  %360 = vmatpush.msrb.mxu2 %v138_v55  ;;  %v54_v54 = vld [vmem:[%s1413_s0 + $0x110] sm:$0xff] }
  0x36   :  { %424 = vmatpush.msrb.mxu3 %v155_v56  ;;  %491 = vmatpush.msrb.mxu0 %v169_v57  ;;  %v62_v55 = vld [vmem:[%s1413_s0 + $0x150] sm:$0xff]  ;;  %v61_v56 = vld [vmem:[%s1413_s0 + $0x148] sm:$0xff]  ;;  %v63_v57 = vld [vmem:[%s1413_s0 + $0x158] sm:$0xff] }
  0x37   :  { %295 = vmatpush.msrb.mxu1 %v122_v58  ;;  %361 = vmatpush.msrb.mxu2 %v137_v59  ;;  %v59_v58 = vld [vmem:[%s1413_s0 + $0x138] sm:$0xff] }
  0x38   :  { %425 = vmatpush.msrb.mxu3 %v154_v60  ;;  %492 = vmatpush.msrb.mxu0 %v168_v61  ;;  %v67_v59 = vld [vmem:[%s1413_s0 + $0x178] sm:$0xff]  ;;  %v66_v60 = vld [vmem:[%s1413_s0 + $0x170] sm:$0xff]  ;;  %v68_v61 = vld [vmem:[%s1413_s0 + $0x180] sm:$0xff] }
  0x39   :  { %296 = vmatpush.msrb.mxu1 %v121_v62  ;;  %362 = vmatpush.msrb.mxu2 %v136_v63  ;;  %v64_v62 = vld [vmem:[%s1413_s0 + $0x160] sm:$0xff] }
  0x3a   :  { %426 = vmatpush.msrb.mxu3 %v153_v0  ;;  %270 = vmatmul.f32.gmra.mxu2 %v75_v1  ;;  %v72_v63 = vld [vmem:[%s1413_s0 + $0x1a0] sm:$0xff]  ;;  %v71_v0 = vld [vmem:[%s1413_s0 + $0x198] sm:$0xff]  ;;  %v73_v1 = vld [vmem:[%s1413_s0 + $0x1a8] sm:$0xff] }
  0x3b   :  { %297 = vmatpush.msrb.mxu1 %v120_v2  ;;  %363 = vmatpush.msrb.mxu2 %v135_v3  ;;  %v69_v2 = vld [vmem:[%s1413_s0 + $0x188] sm:$0xff] }
  0x3c   :  { %258 = vmatmul.f32.gmra.mxu1 %v55_v4  ;;  %427 = vmatpush.msrb.mxu3 %v152_v5  ;;  %v77_v3 = vld [vmem:[%s1413_s0 + $0x1c8] sm:$0xff]  ;;  %v76_v4 = vld [vmem:[%s1413_s0 + $0x1c0] sm:$0xff]  ;;  %v78_v5 = vld [vmem:[%s1413_s0 + $0x1d0] sm:$0xff] }
  0x3d   :  { %298 = vmatpush.msrb.mxu1 %v119_v6  ;;  %243 = vmatmul.f32.gmra.mxu0 %v30_v7  ;;  %v74_v6 = vld [vmem:[%s1413_s0 + $0x1b0] sm:$0xff] }
  0x3e   :  { %282 = vmatmul.f32.gmra.mxu3 %v95_v8  ;;  %364 = vmatpush.msrb.mxu2 %v134_v9  ;;  %v82_v8 = vld [vmem:[%s1413_s0 + $0x1f0] sm:$0xff]  ;;  %v81_v9 = vld [vmem:[%s1413_s0 + $0x1e8] sm:$0xff] }
  0x3f   :  { %428 = vmatpush.msrb.mxu3 %v151_v10  ;;  %493 = vmatpush.msrb.mxu0 %v167_v11  ;;  %v83_v10 = vld [vmem:[%s1413_s0 + $0x1f8] sm:$0xff] }
  0x40   :  { %299 = vmatpush.msrb.mxu1 %v118_v12  ;;  %365 = vmatpush.msrb.mxu2 %v133_v13  ;;  %v79_v11 = vld [vmem:[%s1413_s0 + $0x1d8] sm:$0xff] }
  0x41   :  { %429 = vmatpush.msrb.mxu3 %v150_v14  ;;  %494 = vmatpush.msrb.mxu0 %v166_v15 }
  0x42   :  { %300 = vmatpush.msrb.mxu1 %v117_v16  ;;  %366 = vmatpush.msrb.mxu2 %v132_v17  ;;  %v87_v16 = vld [vmem:[%s1413_s0 + $0x218] sm:$0xff]  ;;  %v86_v17 = vld [vmem:[%s1413_s0 + $0x210] sm:$0xff] }
  0x43   :  { %430 = vmatpush.msrb.mxu3 %v149_v18  ;;  %367 = vmatmul.f32.vlgmr.msrb.gmra.mxu2 %v22_v19  ;;  %v88_v18 = vld [vmem:[%s1413_s0 + $0x220] sm:$0xff] }
  0x44   :  { %301 = vmatpush.msrb.mxu1 %v116_v20  ;;  %495 = vmatpush.msrb.mxu0 %v165_v21  ;;  %v84_v19 = vld [vmem:[%s1413_s0 + $0x200] sm:$0xff] }
  0x45   :  { %302 = vmatmul.f32.vlgmr.msrb.gmra.mxu1 %v21_v22  ;;  %431 = vmatpush.msrb.mxu3 %v148_v23  ;;  %v92_v23 = vld [vmem:[%s1413_s0 + $0x240] sm:$0xff] }
  0x46   :  { %246 = vmatmul.f32.gmra.mxu0 %v35_v24  ;;  %432 = vmatmul.f32.vlgmr.msrb.gmra.mxu3 %v23_v25  ;;  %v91_v25 = vld [vmem:[%s1413_s0 + $0x238] sm:$0xff] }
  0x47   :  { %496 = vmatpush.msrb.mxu0 %v164_v26  ;;  %v93_v26 = vld [vmem:[%s1413_s0 + $0x248] sm:$0xff] }
  0x4b   :  { %370 = vmatmul.f32.gmra.mxu2 %v27_v27  ;;  %v89_v27 = vld [vmem:[%s1413_s0 + $0x228] sm:$0xff] }
  0x4d   :  { %305 = vmatmul.f32.gmra.mxu1 %v26_v28 }
  0x4e   :  { %435 = vmatmul.f32.gmra.mxu3 %v28_v29  ;;  %654 = vmatmul.msk.f32.vlgmr.msrb.gmra.mxu0 %vm172_vm0, %v24_v30  ;;  %v97_v30 = vld [vmem:[%s1413_s0 + $0x268] sm:$0xff] }
  0x53   :  { %373 = vmatmul.f32.gmra.mxu2 %v32_v31 }
  0x55   :  { %308 = vmatmul.f32.gmra.mxu1 %v31_v32 }
  0x56   :  { %438 = vmatmul.f32.gmra.mxu3 %v33_v33  ;;  %655 = vmatmul.msk.f32.gmra.mxu0 %vm172_vm0, %v29_v34  ;;  %v96_v33 = vld [vmem:[%s1413_s0 + $0x260] sm:$0xff]  ;;  %v98_v34 = vld [vmem:[%s1413_s0 + $0x270] sm:$0xff] }
  0x5b   :  { %376 = vmatmul.f32.gmra.mxu2 %v37_v35  ;;  %v94_v35 = vld [vmem:[%s1413_s0 + $0x250] sm:$0xff] }
  0x5d   :  { %311 = vmatmul.f32.gmra.mxu1 %v36_v36 }
  0x5e   :  { %441 = vmatmul.f32.gmra.mxu3 %v38_v37  ;;  %656 = vmatmul.msk.f32.gmra.mxu0 %vm172_vm0, %v34_v38 }
  0x63   :  { %379 = vmatmul.f32.gmra.mxu2 %v42_v39 }
  0x65   :  { %314 = vmatmul.f32.gmra.mxu1 %v41_v40  ;;  %v99_v40 = vld [vmem:[%s1413_s0 + $0x278] sm:$0xff] }
  0x66   :  { %444 = vmatmul.f32.gmra.mxu3 %v43_v41  ;;  %657 = vmatmul.msk.f32.gmra.mxu0 %vm172_vm0, %v39_v42 }
  0x6b   :  { %382 = vmatmul.f32.gmra.mxu2 %v47_v43 }
  0x6d   :  { %317 = vmatmul.f32.gmra.mxu1 %v46_v44 }
  0x6e   :  { %447 = vmatmul.f32.gmra.mxu3 %v48_v45  ;;  %658 = vmatmul.msk.f32.gmra.mxu0 %vm172_vm0, %v44_v46 }
  0x73   :  { %385 = vmatmul.f32.gmra.mxu2 %v52_v47  ;;  %v1249_v47 = vld [vmem:[%s1414_s2] ss:$0 sm:$0xff] }
  0x75   :  { %320 = vmatmul.f32.gmra.mxu1 %v51_v48 }
  0x76   :  { %450 = vmatmul.f32.gmra.mxu3 %v53_v49  ;;  %659 = vmatmul.msk.f32.gmra.mxu0 %vm172_vm0, %v49_v50  ;;  %v1254_v50 = vld [vmem:[%s1415_s3] ss:$0 sm:$0xff] }
  0x7b   :  { %388 = vmatmul.f32.gmra.mxu2 %v57_v51 }
  0x7d   :  { %323 = vmatmul.f32.gmra.mxu1 %v56_v52 }
  0x7e   :  { %453 = vmatmul.f32.gmra.mxu3 %v58_v53  ;;  %660 = vmatmul.msk.f32.gmra.mxu0 %vm172_vm0, %v54_v54  ;;  %v586_v54 = vld [vmem:[%s1416_s4] sm:$0xff] }
  0x83   :  { %391 = vmatmul.f32.gmra.mxu2 %v62_v55 }
  0x85   :  { %326 = vmatmul.f32.gmra.mxu1 %v61_v56 }
  0x86   :  { %456 = vmatmul.f32.gmra.mxu3 %v63_v57  ;;  %661 = vmatmul.msk.f32.gmra.mxu0 %vm172_vm0, %v59_v58 }
  0x8b   :  { %394 = vmatmul.f32.gmra.mxu2 %v67_v59 }
  0x8d   :  { %329 = vmatmul.f32.gmra.mxu1 %v66_v60 }
  0x8e   :  { %459 = vmatmul.f32.gmra.mxu3 %v68_v61  ;;  %662 = vmatmul.msk.f32.gmra.mxu0 %vm172_vm0, %v64_v62 }
  0x93   :  { %397 = vmatmul.f32.gmra.mxu2 %v72_v63 }
  0x95   :  { %332 = vmatmul.f32.gmra.mxu1 %v71_v0 }
  0x96   :  { %462 = vmatmul.f32.gmra.mxu3 %v73_v1  ;;  %663 = vmatmul.msk.f32.gmra.mxu0 %vm172_vm0, %v69_v2 }
  0x9b   :  { %400 = vmatmul.f32.gmra.mxu2 %v77_v3  ;;  %v587_v3 = vld [vmem:[%s1416_s4 + $0x8] sm:$0xff] }
  0x9d   :  { %335 = vmatmul.f32.gmra.mxu1 %v76_v4 }
  0x9e   :  { %465 = vmatmul.f32.gmra.mxu3 %v78_v5  ;;  %664 = vmatmul.msk.f32.gmra.mxu0 %vm172_vm0, %v74_v6  ;;  %v1166_v7 = vpop.f32.mrf.mxu1 }
  0xa3   :  { %403 = vmatmul.f32.gmra.mxu2 %v82_v8 }
  0xa4   :  { %v1180_v12 = vpop.f32.mrf.mxu2  ;;  %v238_v15 = vpop.f32.mrf.mxu0 }
  0xa5   :  { %338 = vmatmul.f32.gmra.mxu1 %v81_v9 }
  0xa6   :  { %468 = vmatmul.f32.gmra.mxu3 %v83_v10  ;;  %665 = vmatmul.msk.f32.gmra.mxu0 %vm172_vm0, %v79_v11  ;;  %v1183_v13 = vpop.f32.mrf.mxu3 }
  0xa7   :  { %v1185_v14 = vpop.f32.mrf.mxu1 }
  0xab   :  { %406 = vmatmul.f32.gmra.mxu2 %v87_v16 }
  0xac   :  { %v1199_v20 = vpop.f32.mrf.mxu2 }
  0xad   :  { %341 = vmatmul.f32.gmra.mxu1 %v86_v17 }
  0xae   :  { %471 = vmatmul.f32.gmra.mxu3 %v88_v18  ;;  %666 = vmatmul.msk.f32.gmra.mxu0 %vm172_vm0, %v84_v19 }
  0xaf   :  { %v1202_v21 = vpop.f32.mrf.mxu3 }
  0xb0   :  { %v1204_v22 = vpop.f32.mrf.mxu1 }
  0xb1   :  { %v241_v24 = vpop.f32.mrf.mxu0 }
  0xb3   :  { %409 = vmatmul.f32.gmra.mxu2 %v92_v23  ;;  %v588_v23 = vld [vmem:[%s1416_s4 + $0x10] sm:$0xff] }
  0xb4   :  { %v1218_v28 = vpop.f32.mrf.mxu2 }
  0xb5   :  { %344 = vmatmul.f32.gmra.mxu1 %v91_v25 }
  0xb6   :  { %474 = vmatmul.f32.gmra.mxu3 %v93_v26  ;;  %667 = vmatmul.msk.f32.gmra.mxu0 %vm172_vm0, %v89_v27 }
  0xb8   :  { %v1221_v29 = vpop.f32.mrf.mxu3 }
  0xb9   :  { %v1226_v31 = vpop.f32.mrf.mxu1 }
  0xba   :  { %v244_v32 = vpop.f32.mrf.mxu0 }
  0xbb   :  { %412 = vmatmul.f32.gmra.mxu2 %v97_v30 }
  0xbd   :  { %347 = vmatmul.f32.gmra.mxu1 %v96_v33  ;;  %v1237_v36 = vpop.f32.mrf.mxu2 }
  0xbe   :  { %477 = vmatmul.f32.gmra.mxu3 %v98_v34  ;;  %668 = vmatmul.msk.f32.gmra.mxu0 %vm172_vm0, %v94_v35 }
  0xc1   :  { %v1240_v37 = vpop.f32.mrf.mxu3 }
  0xc2   :  { %v303_v38 = vpop.f32.mrf.mxu1 }
  0xc3   :  { %v247_v39 = vpop.f32.mrf.mxu0  ;;  %v304_v41 = vadd.f32 %v303_v38, %v238_v15 }
  0xc6   :  { %669 = vmatmul.msk.f32.gmra.mxu0 %vm172_vm0, %v99_v40  ;;  %v368_v42 = vpop.f32.mrf.mxu2 }
  0xc7   :  { %v369_v43 = vadd.f32 %v368_v42, %v304_v41  ;;  %v589_v41 = vld [vmem:[%s1416_s4 + $0x18] sm:$0xff] }
  0xc9   :  { %v433_v44 = vpop.f32.mrf.mxu3 }
  0xca   :  { %v306_v45 = vpop.f32.mrf.mxu1  ;;  %v434_v46 = vadd.f32 %v433_v44, %v369_v43 }
  0xcb   :  { %v498_v48 = vpop.f32.mrf.mxu0  ;;  %v307_v51 = vadd.f32 %v306_v45, %v241_v24 }
  0xcc   :  { %v499_v49 = vadd.f32 %v498_v48, %v434_v46 }
  0xce   :  { %v550_v52 = vmul.f32 %v1249_v47, %v499_v49  ;;  %v371_v53 = vpop.f32.mrf.mxu2 }
  0xcf   :  { %v372_v55 = vadd.f32 %v371_v53, %v307_v51 }
  0xd0   :  { %v570_v56 = vadd.f32 %v1254_v50, %v550_v52 }
  0xd1   :  { %v436_v57 = vpop.f32.mrf.mxu3 }
  0xd2   :  { %v602_v58 = vadd.f32 %v586_v54, %v570_v56  ;;  %v309_v59 = vpop.f32.mrf.mxu1  ;;  %v437_v60 = vadd.f32 %v436_v57, %v372_v55  ;;  %v590_v55 = vld [vmem:[%s1416_s4 + $0x20] sm:$0xff] }
  0xd3   :  { %v501_v61 = vpop.f32.mrf.mxu0  ;;  %v310_v0 = vadd.f32 %v309_v59, %v244_v32 }
  0xd4   :  { %v618_v62 = vmax.f32 %v602_v58, 0.0  ;;  %v502_v63 = vadd.f32 %v501_v61, %v437_v60 }
  0xd6   :  { %634 = vst.msk [vmem:[%s1417_s5] sm:$0xff] %vm172_vm0, %v618_v62  ;;  %v551_v1 = vmul.f32 %v1249_v47, %v502_v63  ;;  %v374_v2 = vpop.f32.mrf.mxu2 }
  0xd7   :  { %v375_v4 = vadd.f32 %v374_v2, %v310_v0 }
  0xd8   :  { %v571_v5 = vadd.f32 %v1254_v50, %v551_v1 }
  0xd9   :  { %v439_v6 = vpop.f32.mrf.mxu3 }
  0xda   :  { %v603_v8 = vadd.f32 %v587_v3, %v571_v5  ;;  %v312_v9 = vpop.f32.mrf.mxu1  ;;  %v440_v10 = vadd.f32 %v439_v6, %v375_v4  ;;  %v591_v3 = vld [vmem:[%s1416_s4 + $0x28] sm:$0xff] }
  0xdb   :  { %v504_v11 = vpop.f32.mrf.mxu0  ;;  %v313_v17 = vadd.f32 %v312_v9, %v247_v39 }
  0xdc   :  { %v619_v15 = vmax.f32 %v603_v8, 0.0  ;;  %v505_v16 = vadd.f32 %v504_v11, %v440_v10 }
  0xde   :  { %635 = vst.msk [vmem:[%s1417_s5 + $0x8] sm:$0xff] %vm172_vm0, %v619_v15  ;;  %v552_v18 = vmul.f32 %v1249_v47, %v505_v16  ;;  %v377_v19 = vpop.f32.mrf.mxu2 }
  0xdf   :  { %v378_v24 = vadd.f32 %v377_v19, %v313_v17  ;;  %v592_v19 = vld [vmem:[%s1416_s4 + $0x30] sm:$0xff] }
  0xe0   :  { %v572_v25 = vadd.f32 %v1254_v50, %v552_v18 }
  0xe1   :  { %v442_v26 = vpop.f32.mrf.mxu3 }
  0xe2   :  { %v604_v27 = vadd.f32 %v588_v23, %v572_v25  ;;  %v315_v30 = vpop.f32.mrf.mxu1  ;;  %v443_v32 = vadd.f32 %v442_v26, %v378_v24 }
  0xe3   :  { %v507_v33 = vpop.f32.mrf.mxu0  ;;  %v316_v38 = vadd.f32 %v315_v30, %v1166_v7 }
  0xe4   :  { %v620_v34 = vmax.f32 %v604_v27, 0.0  ;;  %v508_v35 = vadd.f32 %v507_v33, %v443_v32 }
  0xe6   :  { %636 = vst.msk [vmem:[%s1417_s5 + $0x10] sm:$0xff] %vm172_vm0, %v620_v34  ;;  %v553_v39 = vmul.f32 %v1249_v47, %v508_v35  ;;  %v380_v40 = vpop.f32.mrf.mxu2 }
  0xe7   :  { %v381_v42 = vadd.f32 %v380_v40, %v316_v38 }
  0xe8   :  { %v573_v43 = vadd.f32 %v1254_v50, %v553_v39  ;;  %v593_v39 = vld [vmem:[%s1416_s4 + $0x38] sm:$0xff] }
  0xe9   :  { %v445_v44 = vpop.f32.mrf.mxu3 }
  0xea   :  { %v605_v45 = vadd.f32 %v589_v41, %v573_v43  ;;  %v318_v46 = vpop.f32.mrf.mxu1  ;;  %v446_v48 = vadd.f32 %v445_v44, %v381_v42 }
  0xeb   :  { %v510_v7 = vpop.f32.mrf.mxu0  ;;  %v319_v52 = vadd.f32 %v318_v46, %v1185_v14 }
  0xec   :  { %v621_v49 = vmax.f32 %v605_v45, 0.0  ;;  %v511_v51 = vadd.f32 %v510_v7, %v446_v48 }
  0xee   :  { %637 = vst.msk [vmem:[%s1417_s5 + $0x18] sm:$0xff] %vm172_vm0, %v621_v49  ;;  %v554_v53 = vmul.f32 %v1249_v47, %v511_v51  ;;  %v383_v54 = vpop.f32.mrf.mxu2 }
  0xef   :  { %v384_v56 = vadd.f32 %v383_v54, %v319_v52  ;;  %v594_v52 = vld [vmem:[%s1416_s4 + $0x40] sm:$0xff] }
  0xf0   :  { %v574_v57 = vadd.f32 %v1254_v50, %v554_v53 }
  0xf1   :  { %v448_v58 = vpop.f32.mrf.mxu3 }
  0xf2   :  { %v606_v59 = vadd.f32 %v590_v55, %v574_v57  ;;  %v321_v60 = vpop.f32.mrf.mxu1  ;;  %v449_v61 = vadd.f32 %v448_v58, %v384_v56 }
  0xf3   :  { %v513_v14 = vpop.f32.mrf.mxu0  ;;  %v322_v0 = vadd.f32 %v321_v60, %v1204_v22 }
  0xf4   :  { %v622_v62 = vmax.f32 %v606_v59, 0.0  ;;  %v514_v63 = vadd.f32 %v513_v14, %v449_v61 }
  0xf6   :  { %638 = vst.msk [vmem:[%s1417_s5 + $0x20] sm:$0xff] %vm172_vm0, %v622_v62  ;;  %v555_v1 = vmul.f32 %v1249_v47, %v514_v63  ;;  %v386_v2 = vpop.f32.mrf.mxu2  ;;  %v595_v63 = vld [vmem:[%s1416_s4 + $0x48] sm:$0xff] }
  0xf7   :  { %v387_v4 = vadd.f32 %v386_v2, %v322_v0 }
  0xf8   :  { %v575_v5 = vadd.f32 %v1254_v50, %v555_v1 }
  0xf9   :  { %v451_v6 = vpop.f32.mrf.mxu3 }
  0xfa   :  { %v607_v8 = vadd.f32 %v591_v3, %v575_v5  ;;  %v324_v9 = vpop.f32.mrf.mxu1  ;;  %v452_v10 = vadd.f32 %v451_v6, %v387_v4 }
  0xfb   :  { %v516_v22 = vpop.f32.mrf.mxu0  ;;  %v325_v16 = vadd.f32 %v324_v9, %v1226_v31 }
  0xfc   :  { %v623_v11 = vmax.f32 %v607_v8, 0.0  ;;  %v517_v15 = vadd.f32 %v516_v22, %v452_v10 }
  0xfe   :  { %639 = vst.msk [vmem:[%s1417_s5 + $0x28] sm:$0xff] %vm172_vm0, %v623_v11  ;;  %v556_v17 = vmul.f32 %v1249_v47, %v517_v15  ;;  %v389_v18 = vpop.f32.mrf.mxu2  ;;  %v596_v11 = vld [vmem:[%s1416_s4 + $0x50] sm:$0xff] }
  0xff   :  { %v390_v23 = vadd.f32 %v389_v18, %v325_v16 }
 0x100   :  { %v576_v24 = vadd.f32 %v1254_v50, %v556_v17 }
 0x101   :  { %v454_v25 = vpop.f32.mrf.mxu3 }
 0x102   :  { %v608_v26 = vadd.f32 %v592_v19, %v576_v24  ;;  %v327_v27 = vpop.f32.mrf.mxu1  ;;  %v455_v30 = vadd.f32 %v454_v25, %v390_v23 }
 0x103   :  { %v519_v31 = vpop.f32.mrf.mxu0  ;;  %v328_v34 = vadd.f32 %v327_v27, %v1180_v12 }
 0x104   :  { %v624_v32 = vmax.f32 %v608_v26, 0.0  ;;  %v520_v33 = vadd.f32 %v519_v31, %v455_v30  ;;  %v597_v31 = vld [vmem:[%s1416_s4 + $0x58] sm:$0xff] }
 0x106   :  { %640 = vst.msk [vmem:[%s1417_s5 + $0x30] sm:$0xff] %vm172_vm0, %v624_v32  ;;  %v557_v35 = vmul.f32 %v1249_v47, %v520_v33  ;;  %v392_v38 = vpop.f32.mrf.mxu2 }
 0x107   :  { %v393_v40 = vadd.f32 %v392_v38, %v328_v34 }
 0x108   :  { %v577_v41 = vadd.f32 %v1254_v50, %v557_v35 }
 0x109   :  { %v457_v42 = vpop.f32.mrf.mxu3 }
 0x10a   :  { %v609_v43 = vadd.f32 %v593_v39, %v577_v41  ;;  %v330_v44 = vpop.f32.mrf.mxu1  ;;  %v458_v45 = vadd.f32 %v457_v42, %v393_v40 }
 0x10b   :  { %v522_v12 = vpop.f32.mrf.mxu0  ;;  %v331_v7 = vadd.f32 %v330_v44, %v1199_v20 }
 0x10c   :  { %v625_v46 = vmax.f32 %v609_v43, 0.0  ;;  %v523_v48 = vadd.f32 %v522_v12, %v458_v45  ;;  %v598_v45 = vld [vmem:[%s1416_s4 + $0x60] sm:$0xff] }
 0x10e   :  { %641 = vst.msk [vmem:[%s1417_s5 + $0x38] sm:$0xff] %vm172_vm0, %v625_v46  ;;  %v558_v49 = vmul.f32 %v1249_v47, %v523_v48  ;;  %v395_v51 = vpop.f32.mrf.mxu2 }
 0x10f   :  { %v396_v53 = vadd.f32 %v395_v51, %v331_v7 }
 0x110   :  { %v578_v54 = vadd.f32 %v1254_v50, %v558_v49 }
 0x111   :  { %v460_v55 = vpop.f32.mrf.mxu3 }
 0x112   :  { %v610_v56 = vadd.f32 %v594_v52, %v578_v54  ;;  %v333_v57 = vpop.f32.mrf.mxu1  ;;  %v461_v58 = vadd.f32 %v460_v55, %v396_v53 }
 0x113   :  { %v525_v20 = vpop.f32.mrf.mxu0  ;;  %v334_v61 = vadd.f32 %v333_v57, %v1218_v28  ;;  %v599_v57 = vld [vmem:[%s1416_s4 + $0x68] sm:$0xff] }
 0x114   :  { %v626_v59 = vmax.f32 %v610_v56, 0.0  ;;  %v526_v60 = vadd.f32 %v525_v20, %v461_v58 }
 0x116   :  { %642 = vst.msk [vmem:[%s1417_s5 + $0x40] sm:$0xff] %vm172_vm0, %v626_v59  ;;  %v559_v14 = vmul.f32 %v1249_v47, %v526_v60  ;;  %v398_v62 = vpop.f32.mrf.mxu2 }
 0x117   :  { %v399_v0 = vadd.f32 %v398_v62, %v334_v61 }
 0x118   :  { %v579_v1 = vadd.f32 %v1254_v50, %v559_v14 }
 0x119   :  { %v463_v2 = vpop.f32.mrf.mxu3 }
 0x11a   :  { %v611_v3 = vadd.f32 %v595_v63, %v579_v1  ;;  %v336_v4 = vpop.f32.mrf.mxu1  ;;  %v464_v5 = vadd.f32 %v463_v2, %v399_v0 }
 0x11b   :  { %v528_v28 = vpop.f32.mrf.mxu0  ;;  %v337_v9 = vadd.f32 %v336_v4, %v1237_v36 }
 0x11c   :  { %v627_v6 = vmax.f32 %v611_v3, 0.0  ;;  %v529_v8 = vadd.f32 %v528_v28, %v464_v5  ;;  %v600_v3 = vld [vmem:[%s1416_s4 + $0x70] sm:$0xff] }
 0x11e   :  { %643 = vst.msk [vmem:[%s1417_s5 + $0x48] sm:$0xff] %vm172_vm0, %v627_v6  ;;  %v560_v10 = vmul.f32 %v1249_v47, %v529_v8  ;;  %v401_v22 = vpop.f32.mrf.mxu2 }
 0x11f   :  { %v402_v15 = vadd.f32 %v401_v22, %v337_v9 }
 0x120   :  { %v580_v16 = vadd.f32 %v1254_v50, %v560_v10 }
 0x121   :  { %v466_v17 = vpop.f32.mrf.mxu3 }
 0x122   :  { %v612_v18 = vadd.f32 %v596_v11, %v580_v16  ;;  %v339_v19 = vpop.f32.mrf.mxu1  ;;  %v467_v23 = vadd.f32 %v466_v17, %v402_v15  ;;  %v601_v11 = vld [vmem:[%s1416_s4 + $0x78] sm:$0xff] }
 0x123   :  { %v531_v36 = vpop.f32.mrf.mxu0  ;;  %v340_v26 = vadd.f32 %v339_v19, %v1183_v13 }
 0x124   :  { %v628_v24 = vmax.f32 %v612_v18, 0.0  ;;  %v532_v25 = vadd.f32 %v531_v36, %v467_v23 }
 0x126   :  { %644 = vst.msk [vmem:[%s1417_s5 + $0x50] sm:$0xff] %vm172_vm0, %v628_v24  ;;  %v561_v27 = vmul.f32 %v1249_v47, %v532_v25  ;;  %v404_v30 = vpop.f32.mrf.mxu2 }
 0x127   :  { %v405_v32 = vadd.f32 %v404_v30, %v340_v26 }
 0x128   :  { %v581_v33 = vadd.f32 %v1254_v50, %v561_v27 }
 0x129   :  { %v469_v34 = vpop.f32.mrf.mxu3 }
 0x12a   :  { %v613_v35 = vadd.f32 %v597_v31, %v581_v33  ;;  %v342_v38 = vpop.f32.mrf.mxu1  ;;  %v470_v39 = vadd.f32 %v469_v34, %v405_v32 }
 0x12b   :  { %v534_v13 = vpop.f32.mrf.mxu0  ;;  %v343_v42 = vadd.f32 %v342_v38, %v1202_v21 }
 0x12c   :  { %v629_v40 = vmax.f32 %v613_v35, 0.0  ;;  %v535_v41 = vadd.f32 %v534_v13, %v470_v39 }
 0x12e   :  { %645 = vst.msk [vmem:[%s1417_s5 + $0x58] sm:$0xff] %vm172_vm0, %v629_v40  ;;  %v562_v43 = vmul.f32 %v1249_v47, %v535_v41  ;;  %v407_v44 = vpop.f32.mrf.mxu2 }
 0x12f   :  { %v408_v12 = vadd.f32 %v407_v44, %v343_v42 }
 0x130   :  { %v582_v46 = vadd.f32 %v1254_v50, %v562_v43 }
 0x131   :  { %v472_v48 = vpop.f32.mrf.mxu3 }
 0x132   :  { %v614_v7 = vadd.f32 %v598_v45, %v582_v46  ;;  %v345_v49 = vpop.f32.mrf.mxu1  ;;  %v473_v51 = vadd.f32 %v472_v48, %v408_v12 }
 0x133   :  { %v537_v21 = vpop.f32.mrf.mxu0  ;;  %v346_v54 = vadd.f32 %v345_v49, %v1221_v29 }
 0x134   :  { %v630_v52 = vmax.f32 %v614_v7, 0.0  ;;  %v538_v53 = vadd.f32 %v537_v21, %v473_v51 }
 0x136   :  { %646 = vst.msk [vmem:[%s1417_s5 + $0x60] sm:$0xff] %vm172_vm0, %v630_v52  ;;  %v563_v55 = vmul.f32 %v1249_v47, %v538_v53  ;;  %v410_v56 = vpop.f32.mrf.mxu2 }
 0x137   :  { %v411_v58 = vadd.f32 %v410_v56, %v346_v54 }
 0x138   :  { %v583_v20 = vadd.f32 %v1254_v50, %v563_v55 }
 0x139   :  { %v475_v59 = vpop.f32.mrf.mxu3 }
 0x13a   :  { %v615_v60 = vadd.f32 %v599_v57, %v583_v20  ;;  %v348_v61 = vpop.f32.mrf.mxu1  ;;  %v476_v14 = vadd.f32 %v475_v59, %v411_v58 }
 0x13b   :  { %v540_v29 = vpop.f32.mrf.mxu0  ;;  %v349_v0 = vadd.f32 %v348_v61, %v1240_v37 }
 0x13c   :  { %v631_v62 = vmax.f32 %v615_v60, 0.0  ;;  %v541_v63 = vadd.f32 %v540_v29, %v476_v14 }
 0x13e   :  { %647 = vst.msk [vmem:[%s1417_s5 + $0x68] sm:$0xff] %vm172_vm0, %v631_v62  ;;  %v564_v1 = vmul.f32 %v1249_v47, %v541_v63  ;;  %v413_v2 = vpop.f32.mrf.mxu2 }
 0x13f   :  { %v414_v4 = vadd.f32 %v413_v2, %v349_v0 }
 0x140   :  { %v584_v5 = vadd.f32 %v1254_v50, %v564_v1 }
 0x141   :  { %v478_v28 = vpop.f32.mrf.mxu3 }
 0x142   :  { %v616_v6 = vadd.f32 %v600_v3, %v584_v5  ;;  %v479_v8 = vadd.f32 %v478_v28, %v414_v4 }
 0x143   :  { %v543_v9 = vpop.f32.mrf.mxu0 }
 0x144   :  { %v632_v37 = vmax.f32 %v616_v6, 0.0  ;;  %v544_v10 = vadd.f32 %v543_v9, %v479_v8 }
 0x146   :  { %648 = vst.msk [vmem:[%s1417_s5 + $0x70] sm:$0xff] %vm172_vm0, %v632_v37  ;;  %v565_v22 = vmul.f32 %v1249_v47, %v544_v10 }
 0x148   :  { %v585_v15 = vadd.f32 %v1254_v50, %v565_v22 }
 0x14a   :  { %v617_v16 = vadd.f32 %v601_v11, %v585_v15 }
 0x14c   :  { %v633_v17 = vmax.f32 %v617_v16, 0.0 }
 0x14e   :  { %649 = vst.msk [vmem:[%s1417_s5 + $0x78] sm:$0xff] %vm172_vm0, %v633_v17 }

// kernel: _lambda_.17
= control target key start
LH: loop header
LB: loop body
LE: loop exit
PB: predicated region body
PF: predicated region fallthrough
CT: control target
= control target key end

     0   :  { %vm109_vm0 = vcmask 523264   ;;  %s644_s1 = inlined_call_operand.vmem [shape: f32[576,128], index: 1, kind: input, shape index: {}]   ;;  %s645_s0 = inlined_call_operand.vmem [shape: f32[32,576], index: 0, kind: input, shape index: {}]   ;;  %s646_s2 = inlined_call_operand.vmem [shape: f32[1,128], index: 2, kind: input, shape index: {}]   ;;  %s647_s3 = inlined_call_operand.vmem [shape: f32[1,128], index: 3, kind: input, shape index: {}]   ;;  %s648_s4 = inlined_call_operand.vmem [shape: f32[32,128], index: 4, kind: output, shape index: {}]  }
   0x1   :  { %v52_v0 = vld [vmem:[%s644_s1 + $0x78] sm:$0xff]  ;;  %v51_v4 = vld [vmem:[%s644_s1 + $0x70] sm:$0xff]  ;;  %v50_v8 = vld [vmem:[%s644_s1 + $0x68] sm:$0xff] }
   0x2   :  { %v68_v1 = vld [vmem:[%s644_s1 + $0xf8] sm:$0xff]  ;;  %122 = vmatpush.msra.mxu0 %v52_v0  ;;  %v67_v5 = vld [vmem:[%s644_s1 + $0xf0] sm:$0xff]  ;;  %v66_v9 = vld [vmem:[%s644_s1 + $0xe8] sm:$0xff] }
   0x3   :  { %v84_v2 = vld [vmem:[%s644_s1 + $0x178] sm:$0xff]  ;;  %151 = vmatpush.msra.mxu1 %v68_v1  ;;  %v83_v6 = vld [vmem:[%s644_s1 + $0x170] sm:$0xff]  ;;  %v82_v10 = vld [vmem:[%s644_s1 + $0x168] sm:$0xff] }
   0x4   :  { %v100_v3 = vld [vmem:[%s644_s1 + $0x1f8] sm:$0xff]  ;;  %180 = vmatpush.msra.mxu2 %v84_v2  ;;  %v99_v7 = vld [vmem:[%s644_s1 + $0x1f0] sm:$0xff]  ;;  %123 = vmatpush.msra.mxu0 %v51_v4  ;;  %v98_v11 = vld [vmem:[%s644_s1 + $0x1e8] sm:$0xff] }
   0x5   :  { %209 = vmatpush.msra.mxu3 %v100_v3  ;;  %152 = vmatpush.msra.mxu1 %v67_v5  ;;  %v49_v12 = vld [vmem:[%s644_s1 + $0x60] sm:$0xff]  ;;  %v48_v16 = vld [vmem:[%s644_s1 + $0x58] sm:$0xff]  ;;  %v47_v20 = vld [vmem:[%s644_s1 + $0x50] sm:$0xff] }
   0x6   :  { %181 = vmatpush.msra.mxu2 %v83_v6  ;;  %v65_v13 = vld [vmem:[%s644_s1 + $0xe0] sm:$0xff]  ;;  %124 = vmatpush.msra.mxu0 %v50_v8  ;;  %v64_v17 = vld [vmem:[%s644_s1 + $0xd8] sm:$0xff]  ;;  %v63_v21 = vld [vmem:[%s644_s1 + $0xd0] sm:$0xff] }
   0x7   :  { %210 = vmatpush.msra.mxu3 %v99_v7  ;;  %153 = vmatpush.msra.mxu1 %v66_v9  ;;  %v81_v14 = vld [vmem:[%s644_s1 + $0x160] sm:$0xff]  ;;  %v80_v18 = vld [vmem:[%s644_s1 + $0x158] sm:$0xff]  ;;  %v79_v22 = vld [vmem:[%s644_s1 + $0x150] sm:$0xff] }
   0x8   :  { %v97_v15 = vld [vmem:[%s644_s1 + $0x1e0] sm:$0xff]  ;;  %182 = vmatpush.msra.mxu2 %v82_v10  ;;  %125 = vmatpush.msra.mxu0 %v49_v12  ;;  %v96_v19 = vld [vmem:[%s644_s1 + $0x1d8] sm:$0xff]  ;;  %v95_v23 = vld [vmem:[%s644_s1 + $0x1d0] sm:$0xff] }
   0x9   :  { %211 = vmatpush.msra.mxu3 %v98_v11  ;;  %154 = vmatpush.msra.mxu1 %v65_v13  ;;  %v46_v24 = vld [vmem:[%s644_s1 + $0x48] sm:$0xff]  ;;  %v45_v28 = vld [vmem:[%s644_s1 + $0x40] sm:$0xff]  ;;  %v44_v32 = vld [vmem:[%s644_s1 + $0x38] sm:$0xff] }
   0xa   :  { %183 = vmatpush.msra.mxu2 %v81_v14  ;;  %126 = vmatpush.msra.mxu0 %v48_v16  ;;  %v62_v25 = vld [vmem:[%s644_s1 + $0xc8] sm:$0xff]  ;;  %v61_v29 = vld [vmem:[%s644_s1 + $0xc0] sm:$0xff]  ;;  %v60_v33 = vld [vmem:[%s644_s1 + $0xb8] sm:$0xff] }
   0xb   :  { %212 = vmatpush.msra.mxu3 %v97_v15  ;;  %155 = vmatpush.msra.mxu1 %v64_v17  ;;  %v78_v26 = vld [vmem:[%s644_s1 + $0x148] sm:$0xff]  ;;  %v77_v30 = vld [vmem:[%s644_s1 + $0x140] sm:$0xff]  ;;  %v76_v34 = vld [vmem:[%s644_s1 + $0x138] sm:$0xff] }
   0xc   :  { %184 = vmatpush.msra.mxu2 %v80_v18  ;;  %127 = vmatpush.msra.mxu0 %v47_v20  ;;  %v94_v27 = vld [vmem:[%s644_s1 + $0x1c8] sm:$0xff]  ;;  %v93_v31 = vld [vmem:[%s644_s1 + $0x1c0] sm:$0xff]  ;;  %v92_v35 = vld [vmem:[%s644_s1 + $0x1b8] sm:$0xff] }
   0xd   :  { %213 = vmatpush.msra.mxu3 %v96_v19  ;;  %156 = vmatpush.msra.mxu1 %v63_v21  ;;  %v43_v36 = vld [vmem:[%s644_s1 + $0x30] sm:$0xff]  ;;  %v42_v40 = vld [vmem:[%s644_s1 + $0x28] sm:$0xff]  ;;  %v41_v44 = vld [vmem:[%s644_s1 + $0x20] sm:$0xff] }
   0xe   :  { %185 = vmatpush.msra.mxu2 %v79_v22  ;;  %128 = vmatpush.msra.mxu0 %v46_v24  ;;  %v59_v37 = vld [vmem:[%s644_s1 + $0xb0] sm:$0xff]  ;;  %v58_v41 = vld [vmem:[%s644_s1 + $0xa8] sm:$0xff]  ;;  %v57_v45 = vld [vmem:[%s644_s1 + $0xa0] sm:$0xff] }
   0xf   :  { %214 = vmatpush.msra.mxu3 %v95_v23  ;;  %157 = vmatpush.msra.mxu1 %v62_v25  ;;  %v75_v38 = vld [vmem:[%s644_s1 + $0x130] sm:$0xff]  ;;  %v74_v42 = vld [vmem:[%s644_s1 + $0x128] sm:$0xff]  ;;  %v73_v46 = vld [vmem:[%s644_s1 + $0x120] sm:$0xff] }
  0x10   :  { %186 = vmatpush.msra.mxu2 %v78_v26  ;;  %129 = vmatpush.msra.mxu0 %v45_v28  ;;  %v91_v39 = vld [vmem:[%s644_s1 + $0x1b0] sm:$0xff]  ;;  %v90_v43 = vld [vmem:[%s644_s1 + $0x1a8] sm:$0xff]  ;;  %v89_v47 = vld [vmem:[%s644_s1 + $0x1a0] sm:$0xff] }
  0x11   :  { %215 = vmatpush.msra.mxu3 %v94_v27  ;;  %158 = vmatpush.msra.mxu1 %v61_v29  ;;  %v40_v48 = vld [vmem:[%s644_s1 + $0x18] sm:$0xff]  ;;  %v39_v52 = vld [vmem:[%s644_s1 + $0x10] sm:$0xff]  ;;  %v38_v56 = vld [vmem:[%s644_s1 + $0x8] sm:$0xff] }
  0x12   :  { %187 = vmatpush.msra.mxu2 %v77_v30  ;;  %130 = vmatpush.msra.mxu0 %v44_v32  ;;  %v56_v49 = vld [vmem:[%s644_s1 + $0x98] sm:$0xff]  ;;  %v55_v53 = vld [vmem:[%s644_s1 + $0x90] sm:$0xff]  ;;  %v54_v57 = vld [vmem:[%s644_s1 + $0x88] sm:$0xff] }
  0x13   :  { %216 = vmatpush.msra.mxu3 %v93_v31  ;;  %159 = vmatpush.msra.mxu1 %v60_v33  ;;  %v72_v50 = vld [vmem:[%s644_s1 + $0x118] sm:$0xff]  ;;  %v71_v54 = vld [vmem:[%s644_s1 + $0x110] sm:$0xff]  ;;  %v70_v58 = vld [vmem:[%s644_s1 + $0x108] sm:$0xff] }
  0x14   :  { %188 = vmatpush.msra.mxu2 %v76_v34  ;;  %131 = vmatpush.msra.mxu0 %v43_v36  ;;  %v88_v51 = vld [vmem:[%s644_s1 + $0x198] sm:$0xff]  ;;  %v87_v55 = vld [vmem:[%s644_s1 + $0x190] sm:$0xff]  ;;  %v86_v59 = vld [vmem:[%s644_s1 + $0x188] sm:$0xff] }
  0x15   :  { %217 = vmatpush.msra.mxu3 %v92_v35  ;;  %160 = vmatpush.msra.mxu1 %v59_v37  ;;  %v37_v60 = vld [vmem:[%s644_s1] sm:$0xff]  ;;  %v18_v1 = vld [vmem:[%s645_s0 + $0x8] sm:$0xff]  ;;  %v19_v2 = vld [vmem:[%s645_s0 + $0x10] sm:$0xff] }
  0x16   :  { %189 = vmatpush.msra.mxu2 %v75_v38  ;;  %132 = vmatpush.msra.mxu0 %v42_v40  ;;  %v53_v61 = vld [vmem:[%s644_s1 + $0x80] sm:$0xff]  ;;  %v20_v3 = vld [vmem:[%s645_s0 + $0x18] sm:$0xff]  ;;  %v107_v5 = vld [vmem:[%s644_s1 + $0x230] sm:$0xff] }
  0x17   :  { %218 = vmatpush.msra.mxu3 %v91_v39  ;;  %161 = vmatpush.msra.mxu1 %v58_v41  ;;  %v69_v62 = vld [vmem:[%s644_s1 + $0x100] sm:$0xff]  ;;  %v108_v4 = vld [vmem:[%s644_s1 + $0x238] sm:$0xff]  ;;  %v106_v6 = vld [vmem:[%s644_s1 + $0x228] sm:$0xff] }
  0x18   :  { %190 = vmatpush.msra.mxu2 %v74_v42  ;;  %133 = vmatpush.msra.mxu0 %v41_v44  ;;  %v85_v63 = vld [vmem:[%s644_s1 + $0x180] sm:$0xff]  ;;  %v22_v7 = vld [vmem:[%s645_s0 + $0x28] sm:$0xff]  ;;  %v23_v8 = vld [vmem:[%s645_s0 + $0x30] sm:$0xff] }
  0x19   :  { %219 = vmatpush.msra.mxu3 %v90_v43  ;;  %162 = vmatpush.msra.mxu1 %v57_v45  ;;  %v17_v0 = vld [vmem:[%s645_s0] sm:$0xff]  ;;  %v24_v9 = vld [vmem:[%s645_s0 + $0x38] sm:$0xff]  ;;  %v103_v13 = vld [vmem:[%s644_s1 + $0x210] sm:$0xff] }
  0x1a   :  { %191 = vmatpush.msra.mxu2 %v73_v46  ;;  %134 = vmatpush.msra.mxu0 %v40_v48  ;;  %v25_v10 = vld [vmem:[%s645_s0 + $0x40] sm:$0xff]  ;;  %v104_v12 = vld [vmem:[%s644_s1 + $0x218] sm:$0xff]  ;;  %v27_v14 = vld [vmem:[%s645_s0 + $0x50] sm:$0xff] }
  0x1b   :  { %220 = vmatpush.msra.mxu3 %v89_v47  ;;  %163 = vmatpush.msra.mxu1 %v56_v49  ;;  %v105_v11 = vld [vmem:[%s644_s1 + $0x220] sm:$0xff]  ;;  %v28_v15 = vld [vmem:[%s645_s0 + $0x58] sm:$0xff]  ;;  %v30_v17 = vld [vmem:[%s645_s0 + $0x68] sm:$0xff] }
  0x1c   :  { %192 = vmatpush.msra.mxu2 %v72_v50  ;;  %135 = vmatpush.msra.mxu0 %v39_v52  ;;  %v29_v16 = vld [vmem:[%s645_s0 + $0x60] sm:$0xff]  ;;  %v102_v18 = vld [vmem:[%s644_s1 + $0x208] sm:$0xff]  ;;  %v32_v20 = vld [vmem:[%s645_s0 + $0x78] sm:$0xff] }
  0x1d   :  { %221 = vmatpush.msra.mxu3 %v88_v51  ;;  %164 = vmatpush.msra.mxu1 %v55_v53  ;;  %v101_v19 = vld [vmem:[%s644_s1 + $0x200] sm:$0xff]  ;;  %v34_v22 = vld [vmem:[%s645_s0 + $0x88] sm:$0xff]  ;;  %v35_v23 = vld [vmem:[%s645_s0 + $0x90] sm:$0xff] }
  0x1e   :  { %193 = vmatpush.msra.mxu2 %v71_v54  ;;  %136 = vmatpush.msra.mxu0 %v38_v56  ;;  %v33_v21 = vld [vmem:[%s645_s0 + $0x80] sm:$0xff]  ;;  %v26_v25 = vld [vmem:[%s645_s0 + $0x48] sm:$0xff]  ;;  %v31_v26 = vld [vmem:[%s645_s0 + $0x70] sm:$0xff] }
  0x1f   :  { %222 = vmatpush.msra.mxu3 %v87_v55  ;;  %165 = vmatpush.msra.mxu1 %v54_v57  ;;  %v21_v24 = vld [vmem:[%s645_s0 + $0x20] sm:$0xff]  ;;  %v36_v27 = vld [vmem:[%s645_s0 + $0x98] sm:$0xff] }
  0x20   :  { %194 = vmatpush.msra.mxu2 %v70_v58  ;;  %137 = vmatpush.msra.mxu0 %v37_v60  ;;  %v323_v52 = vld [vmem:[%s646_s2] ss:$0 sm:$0xff] }
  0x21   :  { %223 = vmatpush.msra.mxu3 %v86_v59  ;;  %166 = vmatpush.msra.mxu1 %v53_v61  ;;  %v324_v56 = vld [vmem:[%s647_s3] ss:$0 sm:$0xff] }
  0x22   :  { %195 = vmatpush.msra.mxu2 %v69_v62  ;;  %138 = vmatmul.f32.vlgmr.msra.gmra.mxu0 %v17_v0 }
  0x23   :  { %224 = vmatpush.msra.mxu3 %v85_v63  ;;  %167 = vmatmul.f32.vlgmr.msra.gmra.mxu1 %v18_v1 }
  0x24   :  { %196 = vmatmul.f32.vlgmr.msra.gmra.mxu2 %v19_v2  ;;  %225 = vmatmul.f32.vlgmr.msra.gmra.mxu3 %v20_v3 }
  0x25   :  { %300 = vmatpush.msrb.mxu2 %v108_v4  ;;  %301 = vmatpush.msrb.mxu3 %v108_v4 }
  0x26   :  { %246 = vmatpush.msrb.mxu0 %v108_v4  ;;  %299 = vmatpush.msrb.mxu1 %v108_v4 }
  0x27   :  { %303 = vmatpush.msrb.mxu2 %v107_v5  ;;  %304 = vmatpush.msrb.mxu3 %v107_v5 }
  0x28   :  { %247 = vmatpush.msrb.mxu0 %v107_v5  ;;  %302 = vmatpush.msrb.mxu1 %v107_v5 }
  0x29   :  { %306 = vmatpush.msrb.mxu2 %v106_v6  ;;  %307 = vmatpush.msrb.mxu3 %v106_v6 }
  0x2a   :  { %248 = vmatpush.msrb.mxu0 %v106_v6  ;;  %305 = vmatpush.msrb.mxu1 %v106_v6 }
  0x2b   :  { %141 = vmatmul.f32.gmra.mxu0 %v22_v7  ;;  %170 = vmatmul.f32.gmra.mxu1 %v23_v8 }
  0x2c   :  { %199 = vmatmul.f32.gmra.mxu2 %v24_v9  ;;  %228 = vmatmul.f32.gmra.mxu3 %v25_v10 }
  0x2d   :  { %309 = vmatpush.msrb.mxu2 %v105_v11  ;;  %310 = vmatpush.msrb.mxu3 %v105_v11 }
  0x2e   :  { %249 = vmatpush.msrb.mxu0 %v105_v11  ;;  %308 = vmatpush.msrb.mxu1 %v105_v11 }
  0x2f   :  { %312 = vmatpush.msrb.mxu2 %v104_v12  ;;  %313 = vmatpush.msrb.mxu3 %v104_v12 }
  0x30   :  { %250 = vmatpush.msrb.mxu0 %v104_v12  ;;  %311 = vmatpush.msrb.mxu1 %v104_v12 }
  0x31   :  { %315 = vmatpush.msrb.mxu2 %v103_v13  ;;  %316 = vmatpush.msrb.mxu3 %v103_v13 }
  0x32   :  { %251 = vmatpush.msrb.mxu0 %v103_v13  ;;  %314 = vmatpush.msrb.mxu1 %v103_v13 }
  0x33   :  { %144 = vmatmul.f32.gmra.mxu0 %v27_v14  ;;  %173 = vmatmul.f32.gmra.mxu1 %v28_v15 }
  0x34   :  { %202 = vmatmul.f32.gmra.mxu2 %v29_v16  ;;  %231 = vmatmul.f32.gmra.mxu3 %v30_v17 }
  0x35   :  { %318 = vmatpush.msrb.mxu2 %v102_v18  ;;  %319 = vmatpush.msrb.mxu3 %v102_v18 }
  0x36   :  { %252 = vmatpush.msrb.mxu0 %v102_v18  ;;  %317 = vmatpush.msrb.mxu1 %v102_v18 }
  0x37   :  { %321 = vmatpush.msrb.mxu2 %v101_v19  ;;  %322 = vmatpush.msrb.mxu3 %v101_v19 }
  0x38   :  { %253 = vmatpush.msrb.mxu0 %v101_v19  ;;  %320 = vmatpush.msrb.mxu1 %v101_v19 }
  0x3b   :  { %147 = vmatmul.f32.gmra.mxu0 %v32_v20  ;;  %176 = vmatmul.f32.gmra.mxu1 %v33_v21 }
  0x3c   :  { %205 = vmatmul.f32.gmra.mxu2 %v34_v22  ;;  %234 = vmatmul.f32.gmra.mxu3 %v35_v23 }
  0x43   :  { %295 = vmatmul.msk.f32.vlgmr.msrb.gmra.mxu0 %vm109_vm0, %v21_v24  ;;  %296 = vmatmul.msk.f32.vlgmr.msrb.gmra.mxu1 %vm109_vm0, %v26_v25 }
  0x44   :  { %297 = vmatmul.msk.f32.vlgmr.msrb.gmra.mxu2 %vm109_vm0, %v31_v26  ;;  %298 = vmatmul.msk.f32.vlgmr.msrb.gmra.mxu3 %vm109_vm0, %v36_v27 }
  0x9f   :  { %v139_v28 = vpop.f32.mrf.mxu0 }
  0xa0   :  { %v168_v29 = vpop.f32.mrf.mxu1 }
  0xa1   :  { %v169_v38 = vadd.f32 %v168_v29, %v139_v28 }
  0xa7   :  { %v197_v30 = vpop.f32.mrf.mxu2  ;;  %v226_v31 = vpop.f32.mrf.mxu3 }
  0xa8   :  { %v142_v32 = vpop.f32.mrf.mxu0  ;;  %v171_v33 = vpop.f32.mrf.mxu1  ;;  %v198_v44 = vadd.f32 %v197_v30, %v169_v38 }
  0xa9   :  { %v172_v39 = vadd.f32 %v171_v33, %v142_v32 }
  0xaa   :  { %v227_v48 = vadd.f32 %v226_v31, %v198_v44 }
  0xaf   :  { %v200_v34 = vpop.f32.mrf.mxu2  ;;  %v229_v35 = vpop.f32.mrf.mxu3 }
  0xb0   :  { %v145_v36 = vpop.f32.mrf.mxu0  ;;  %v174_v37 = vpop.f32.mrf.mxu1  ;;  %v201_v45 = vadd.f32 %v200_v34, %v172_v39 }
  0xb1   :  { %v175_v46 = vadd.f32 %v174_v37, %v145_v36 }
  0xb2   :  { %v230_v49 = vadd.f32 %v229_v35, %v201_v45 }
  0xb7   :  { %v203_v40 = vpop.f32.mrf.mxu2  ;;  %v232_v41 = vpop.f32.mrf.mxu3 }
  0xb8   :  { %v148_v42 = vpop.f32.mrf.mxu0  ;;  %v177_v43 = vpop.f32.mrf.mxu1  ;;  %v204_v58 = vadd.f32 %v203_v40, %v175_v46 }
  0xb9   :  { %v178_v47 = vadd.f32 %v177_v43, %v148_v42 }
  0xba   :  { %v233_v0 = vadd.f32 %v232_v41, %v204_v58 }
  0xbf   :  { %v206_v50 = vpop.f32.mrf.mxu2  ;;  %v235_v51 = vpop.f32.mrf.mxu3 }
  0xc0   :  { %v255_v53 = vpop.f32.mrf.mxu0  ;;  %v258_v54 = vpop.f32.mrf.mxu1  ;;  %v207_v59 = vadd.f32 %v206_v50, %v178_v47 }
  0xc1   :  { %v256_v55 = vadd.f32 %v255_v53, %v227_v48  ;;  %v259_v57 = vadd.f32 %v258_v54, %v230_v49 }
  0xc2   :  { %v236_v1 = vadd.f32 %v235_v51, %v207_v59 }
  0xc3   :  { %v271_v60 = vmul.f32 %v323_v52, %v256_v55  ;;  %v272_v61 = vmul.f32 %v323_v52, %v259_v57 }
  0xc5   :  { %v279_v62 = vadd.f32 %v324_v56, %v271_v60  ;;  %v280_v63 = vadd.f32 %v324_v56, %v272_v61 }
  0xc7   :  { %v283_v2 = vmax.f32 %v279_v62, 0.0  ;;  %v284_v3 = vmax.f32 %v280_v63, 0.0  ;;  %v261_v4 = vpop.f32.mrf.mxu2  ;;  %v264_v5 = vpop.f32.mrf.mxu3 }
  0xc8   :  { %v262_v6 = vadd.f32 %v261_v4, %v233_v0  ;;  %v265_v7 = vadd.f32 %v264_v5, %v236_v1 }
  0xc9   :  { %287 = vst [vmem:[%s648_s4] sm:$0xff] %v283_v2 }
  0xca   :  { %288 = vst [vmem:[%s648_s4 + $0x8] sm:$0xff] %v284_v3  ;;  %v273_v8 = vmul.f32 %v323_v52, %v262_v6  ;;  %v274_v9 = vmul.f32 %v323_v52, %v265_v7 }
  0xcc   :  { %v281_v10 = vadd.f32 %v324_v56, %v273_v8  ;;  %v282_v11 = vadd.f32 %v324_v56, %v274_v9 }
  0xce   :  { %v285_v12 = vmax.f32 %v281_v10, 0.0  ;;  %v286_v13 = vmax.f32 %v282_v11, 0.0 }
  0xd0   :  { %289 = vst [vmem:[%s648_s4 + $0x10] sm:$0xff] %v285_v12 }
  0xd1   :  { %290 = vst [vmem:[%s648_s4 + $0x18] sm:$0xff] %v286_v13 }

// kernel: _lambda_.18
= control target key start
LH: loop header
LB: loop body
LE: loop exit
PB: predicated region body
PF: predicated region fallthrough
CT: control target
= control target key end

     0   :  { %vm29_vm0 = vcmask 523264   ;;  %s204_s1 = inlined_call_operand.vmem [shape: f32[64,128], index: 1, kind: input, shape index: {}]   ;;  %s205_s2 = inlined_call_operand.vmem [shape: f32[1,128], index: 2, kind: input, shape index: {}]   ;;  %s206_s3 = inlined_call_operand.vmem [shape: f32[1,128], index: 3, kind: input, shape index: {}]   ;;  %s207_s0 = inlined_call_operand.vmem [shape: f32[32,64], index: 0, kind: input, shape index: {}]   ;;  %s208_s4 = inlined_call_operand.vmem [shape: f32[32,128], index: 4, kind: output, shape index: {}]  }
   0x1   :  { %v28_v0 = vld [vmem:[%s204_s1 + $0x38] sm:$0xff]  ;;  %v27_v1 = vld [vmem:[%s204_s1 + $0x30] sm:$0xff]  ;;  %v26_v2 = vld [vmem:[%s204_s1 + $0x28] sm:$0xff] }
   0x2   :  { %100 = vmatpush.msra.mxu2 %v28_v0  ;;  %101 = vmatpush.msra.mxu3 %v28_v0  ;;  %v25_v3 = vld [vmem:[%s204_s1 + $0x20] sm:$0xff]  ;;  %v24_v4 = vld [vmem:[%s204_s1 + $0x18] sm:$0xff]  ;;  %v23_v5 = vld [vmem:[%s204_s1 + $0x10] sm:$0xff] }
   0x3   :  { %50 = vmatpush.msra.mxu0 %v28_v0  ;;  %99 = vmatpush.msra.mxu1 %v28_v0  ;;  %v22_v6 = vld [vmem:[%s204_s1 + $0x8] sm:$0xff]  ;;  %v21_v7 = vld [vmem:[%s204_s1] sm:$0xff]  ;;  %v19_v8 = vld [vmem:[%s207_s0 + $0x10] sm:$0xff] }
   0x4   :  { %103 = vmatpush.msra.mxu2 %v27_v1  ;;  %104 = vmatpush.msra.mxu3 %v27_v1  ;;  %v20_v9 = vld [vmem:[%s207_s0 + $0x18] sm:$0xff]  ;;  %v17_v10 = vld [vmem:[%s207_s0] sm:$0xff]  ;;  %v18_v11 = vld [vmem:[%s207_s0 + $0x8] sm:$0xff] }
   0x5   :  { %51 = vmatpush.msra.mxu0 %v27_v1  ;;  %102 = vmatpush.msra.mxu1 %v27_v1  ;;  %v123_v12 = vld [vmem:[%s205_s2] ss:$0 sm:$0xff] }
   0x6   :  { %106 = vmatpush.msra.mxu2 %v26_v2  ;;  %107 = vmatpush.msra.mxu3 %v26_v2  ;;  %v124_v13 = vld [vmem:[%s206_s3] ss:$0 sm:$0xff] }
   0x7   :  { %52 = vmatpush.msra.mxu0 %v26_v2  ;;  %105 = vmatpush.msra.mxu1 %v26_v2 }
   0x8   :  { %109 = vmatpush.msra.mxu2 %v25_v3  ;;  %110 = vmatpush.msra.mxu3 %v25_v3 }
   0x9   :  { %53 = vmatpush.msra.mxu0 %v25_v3  ;;  %108 = vmatpush.msra.mxu1 %v25_v3 }
   0xa   :  { %112 = vmatpush.msra.mxu2 %v24_v4  ;;  %113 = vmatpush.msra.mxu3 %v24_v4 }
   0xb   :  { %54 = vmatpush.msra.mxu0 %v24_v4  ;;  %111 = vmatpush.msra.mxu1 %v24_v4 }
   0xc   :  { %115 = vmatpush.msra.mxu2 %v23_v5  ;;  %116 = vmatpush.msra.mxu3 %v23_v5 }
   0xd   :  { %55 = vmatpush.msra.mxu0 %v23_v5  ;;  %114 = vmatpush.msra.mxu1 %v23_v5 }
   0xe   :  { %118 = vmatpush.msra.mxu2 %v22_v6  ;;  %119 = vmatpush.msra.mxu3 %v22_v6 }
   0xf   :  { %56 = vmatpush.msra.mxu0 %v22_v6  ;;  %117 = vmatpush.msra.mxu1 %v22_v6 }
  0x10   :  { %121 = vmatpush.msra.mxu2 %v21_v7  ;;  %122 = vmatpush.msra.mxu3 %v21_v7 }
  0x11   :  { %97 = vmatmul.msk.f32.vlgmr.msra.gmra.mxu2 %vm29_vm0, %v19_v8  ;;  %98 = vmatmul.msk.f32.vlgmr.msra.gmra.mxu3 %vm29_vm0, %v20_v9 }
  0x12   :  { %57 = vmatpush.msra.mxu0 %v21_v7  ;;  %120 = vmatpush.msra.mxu1 %v21_v7 }
  0x13   :  { %95 = vmatmul.msk.f32.vlgmr.msra.gmra.mxu0 %vm29_vm0, %v17_v10  ;;  %96 = vmatmul.msk.f32.vlgmr.msra.gmra.mxu1 %vm29_vm0, %v18_v11 }
  0x90   :  { %v59_v14 = vpop.f32.mrf.mxu0  ;;  %v62_v15 = vpop.f32.mrf.mxu1 }
  0x91   :  { %v75_v16 = vmul.f32 %v123_v12, %v59_v14  ;;  %v76_v17 = vmul.f32 %v123_v12, %v62_v15 }
  0x93   :  { %v83_v18 = vadd.f32 %v124_v13, %v75_v16  ;;  %v84_v19 = vadd.f32 %v124_v13, %v76_v17 }
  0x94   :  { %v65_v20 = vpop.f32.mrf.mxu2  ;;  %v68_v21 = vpop.f32.mrf.mxu3 }
  0x95   :  { %87 = vst [vmem:[%s208_s4] sm:$0xff] %v83_v18  ;;  %v77_v22 = vmul.f32 %v123_v12, %v65_v20  ;;  %v78_v23 = vmul.f32 %v123_v12, %v68_v21 }
  0x96   :  { %88 = vst [vmem:[%s208_s4 + $0x8] sm:$0xff] %v84_v19 }
  0x97   :  { %v85_v24 = vadd.f32 %v124_v13, %v77_v22  ;;  %v86_v25 = vadd.f32 %v124_v13, %v78_v23 }
  0x99   :  { %89 = vst [vmem:[%s208_s4 + $0x10] sm:$0xff] %v85_v24 }
  0x9a   :  { %90 = vst [vmem:[%s208_s4 + $0x18] sm:$0xff] %v86_v25 }

// kernel: _lambda_.19
= control target key start
LH: loop header
LB: loop body
LE: loop exit
PB: predicated region body
PF: predicated region fallthrough
CT: control target
= control target key end

     0   :  { %s1147_s1 = inlined_call_operand.vmem [shape: f32[1152,128], index: 1, kind: input, shape index: {}]   ;;  %s1148_s0 = inlined_call_operand.vmem [shape: f32[32,1152], index: 0, kind: input, shape index: {}]   ;;  %s1149_s2 = inlined_call_operand.vmem [shape: f32[1,128], index: 2, kind: input, shape index: {}]   ;;  %s1150_s3 = inlined_call_operand.vmem [shape: f32[1,128], index: 3, kind: input, shape index: {}]   ;;  %s1151_s4 = inlined_call_operand.vmem [shape: f32[32,128], index: 4, kind: input, shape index: {}]   ;;  %s1152_s5 = inlined_call_operand.vmem [shape: f32[32,128], index: 5, kind: output, shape index: {}]  }
   0x1   :  { %v71_v0 = vld [vmem:[%s1147_s1 + $0x78] sm:$0xff]  ;;  %v70_v4 = vld [vmem:[%s1147_s1 + $0x70] sm:$0xff]  ;;  %v69_v8 = vld [vmem:[%s1147_s1 + $0x68] sm:$0xff] }
   0x2   :  { %v87_v1 = vld [vmem:[%s1147_s1 + $0xf8] sm:$0xff]  ;;  %200 = vmatpush.msra.mxu0 %v71_v0  ;;  %v86_v5 = vld [vmem:[%s1147_s1 + $0xf0] sm:$0xff]  ;;  %v85_v9 = vld [vmem:[%s1147_s1 + $0xe8] sm:$0xff] }
   0x3   :  { %v103_v2 = vld [vmem:[%s1147_s1 + $0x178] sm:$0xff]  ;;  %229 = vmatpush.msra.mxu1 %v87_v1  ;;  %v102_v6 = vld [vmem:[%s1147_s1 + $0x170] sm:$0xff]  ;;  %v101_v10 = vld [vmem:[%s1147_s1 + $0x168] sm:$0xff] }
   0x4   :  { %v119_v3 = vld [vmem:[%s1147_s1 + $0x1f8] sm:$0xff]  ;;  %258 = vmatpush.msra.mxu2 %v103_v2  ;;  %v118_v7 = vld [vmem:[%s1147_s1 + $0x1f0] sm:$0xff]  ;;  %201 = vmatpush.msra.mxu0 %v70_v4  ;;  %v117_v11 = vld [vmem:[%s1147_s1 + $0x1e8] sm:$0xff] }
   0x5   :  { %287 = vmatpush.msra.mxu3 %v119_v3  ;;  %230 = vmatpush.msra.mxu1 %v86_v5  ;;  %v68_v12 = vld [vmem:[%s1147_s1 + $0x60] sm:$0xff]  ;;  %v67_v16 = vld [vmem:[%s1147_s1 + $0x58] sm:$0xff]  ;;  %v66_v20 = vld [vmem:[%s1147_s1 + $0x50] sm:$0xff] }
   0x6   :  { %259 = vmatpush.msra.mxu2 %v102_v6  ;;  %v84_v13 = vld [vmem:[%s1147_s1 + $0xe0] sm:$0xff]  ;;  %202 = vmatpush.msra.mxu0 %v69_v8  ;;  %v83_v17 = vld [vmem:[%s1147_s1 + $0xd8] sm:$0xff]  ;;  %v82_v21 = vld [vmem:[%s1147_s1 + $0xd0] sm:$0xff] }
   0x7   :  { %288 = vmatpush.msra.mxu3 %v118_v7  ;;  %231 = vmatpush.msra.mxu1 %v85_v9  ;;  %v100_v14 = vld [vmem:[%s1147_s1 + $0x160] sm:$0xff]  ;;  %v99_v18 = vld [vmem:[%s1147_s1 + $0x158] sm:$0xff]  ;;  %v98_v22 = vld [vmem:[%s1147_s1 + $0x150] sm:$0xff] }
   0x8   :  { %v116_v15 = vld [vmem:[%s1147_s1 + $0x1e0] sm:$0xff]  ;;  %260 = vmatpush.msra.mxu2 %v101_v10  ;;  %203 = vmatpush.msra.mxu0 %v68_v12  ;;  %v115_v19 = vld [vmem:[%s1147_s1 + $0x1d8] sm:$0xff]  ;;  %v114_v23 = vld [vmem:[%s1147_s1 + $0x1d0] sm:$0xff] }
   0x9   :  { %289 = vmatpush.msra.mxu3 %v117_v11  ;;  %232 = vmatpush.msra.mxu1 %v84_v13  ;;  %v65_v24 = vld [vmem:[%s1147_s1 + $0x48] sm:$0xff]  ;;  %v64_v28 = vld [vmem:[%s1147_s1 + $0x40] sm:$0xff]  ;;  %v63_v32 = vld [vmem:[%s1147_s1 + $0x38] sm:$0xff] }
   0xa   :  { %261 = vmatpush.msra.mxu2 %v100_v14  ;;  %204 = vmatpush.msra.mxu0 %v67_v16  ;;  %v81_v25 = vld [vmem:[%s1147_s1 + $0xc8] sm:$0xff]  ;;  %v80_v29 = vld [vmem:[%s1147_s1 + $0xc0] sm:$0xff]  ;;  %v79_v33 = vld [vmem:[%s1147_s1 + $0xb8] sm:$0xff] }
   0xb   :  { %290 = vmatpush.msra.mxu3 %v116_v15  ;;  %233 = vmatpush.msra.mxu1 %v83_v17  ;;  %v97_v26 = vld [vmem:[%s1147_s1 + $0x148] sm:$0xff]  ;;  %v96_v30 = vld [vmem:[%s1147_s1 + $0x140] sm:$0xff]  ;;  %v95_v34 = vld [vmem:[%s1147_s1 + $0x138] sm:$0xff] }
   0xc   :  { %262 = vmatpush.msra.mxu2 %v99_v18  ;;  %205 = vmatpush.msra.mxu0 %v66_v20  ;;  %v113_v27 = vld [vmem:[%s1147_s1 + $0x1c8] sm:$0xff]  ;;  %v112_v31 = vld [vmem:[%s1147_s1 + $0x1c0] sm:$0xff]  ;;  %v111_v35 = vld [vmem:[%s1147_s1 + $0x1b8] sm:$0xff] }
   0xd   :  { %291 = vmatpush.msra.mxu3 %v115_v19  ;;  %234 = vmatpush.msra.mxu1 %v82_v21  ;;  %v62_v36 = vld [vmem:[%s1147_s1 + $0x30] sm:$0xff]  ;;  %v61_v40 = vld [vmem:[%s1147_s1 + $0x28] sm:$0xff]  ;;  %v60_v44 = vld [vmem:[%s1147_s1 + $0x20] sm:$0xff] }
   0xe   :  { %263 = vmatpush.msra.mxu2 %v98_v22  ;;  %206 = vmatpush.msra.mxu0 %v65_v24  ;;  %v78_v37 = vld [vmem:[%s1147_s1 + $0xb0] sm:$0xff]  ;;  %v77_v41 = vld [vmem:[%s1147_s1 + $0xa8] sm:$0xff]  ;;  %v76_v45 = vld [vmem:[%s1147_s1 + $0xa0] sm:$0xff] }
   0xf   :  { %292 = vmatpush.msra.mxu3 %v114_v23  ;;  %235 = vmatpush.msra.mxu1 %v81_v25  ;;  %v94_v38 = vld [vmem:[%s1147_s1 + $0x130] sm:$0xff]  ;;  %v93_v42 = vld [vmem:[%s1147_s1 + $0x128] sm:$0xff]  ;;  %v92_v46 = vld [vmem:[%s1147_s1 + $0x120] sm:$0xff] }
  0x10   :  { %264 = vmatpush.msra.mxu2 %v97_v26  ;;  %207 = vmatpush.msra.mxu0 %v64_v28  ;;  %v110_v39 = vld [vmem:[%s1147_s1 + $0x1b0] sm:$0xff]  ;;  %v109_v43 = vld [vmem:[%s1147_s1 + $0x1a8] sm:$0xff]  ;;  %v108_v47 = vld [vmem:[%s1147_s1 + $0x1a0] sm:$0xff] }
  0x11   :  { %293 = vmatpush.msra.mxu3 %v113_v27  ;;  %236 = vmatpush.msra.mxu1 %v80_v29  ;;  %v59_v48 = vld [vmem:[%s1147_s1 + $0x18] sm:$0xff]  ;;  %v58_v52 = vld [vmem:[%s1147_s1 + $0x10] sm:$0xff]  ;;  %v57_v56 = vld [vmem:[%s1147_s1 + $0x8] sm:$0xff] }
  0x12   :  { %265 = vmatpush.msra.mxu2 %v96_v30  ;;  %208 = vmatpush.msra.mxu0 %v63_v32  ;;  %v75_v49 = vld [vmem:[%s1147_s1 + $0x98] sm:$0xff]  ;;  %v74_v53 = vld [vmem:[%s1147_s1 + $0x90] sm:$0xff]  ;;  %v73_v57 = vld [vmem:[%s1147_s1 + $0x88] sm:$0xff] }
  0x13   :  { %294 = vmatpush.msra.mxu3 %v112_v31  ;;  %237 = vmatpush.msra.mxu1 %v79_v33  ;;  %v91_v50 = vld [vmem:[%s1147_s1 + $0x118] sm:$0xff]  ;;  %v90_v54 = vld [vmem:[%s1147_s1 + $0x110] sm:$0xff]  ;;  %v89_v58 = vld [vmem:[%s1147_s1 + $0x108] sm:$0xff] }
  0x14   :  { %266 = vmatpush.msra.mxu2 %v95_v34  ;;  %209 = vmatpush.msra.mxu0 %v62_v36  ;;  %v107_v51 = vld [vmem:[%s1147_s1 + $0x198] sm:$0xff]  ;;  %v106_v55 = vld [vmem:[%s1147_s1 + $0x190] sm:$0xff]  ;;  %v105_v59 = vld [vmem:[%s1147_s1 + $0x188] sm:$0xff] }
  0x15   :  { %295 = vmatpush.msra.mxu3 %v111_v35  ;;  %238 = vmatpush.msra.mxu1 %v78_v37  ;;  %v56_v60 = vld [vmem:[%s1147_s1] sm:$0xff]  ;;  %v21_v1 = vld [vmem:[%s1148_s0 + $0x8] sm:$0xff]  ;;  %v22_v2 = vld [vmem:[%s1148_s0 + $0x10] sm:$0xff] }
  0x16   :  { %267 = vmatpush.msra.mxu2 %v94_v38  ;;  %210 = vmatpush.msra.mxu0 %v61_v40  ;;  %v72_v61 = vld [vmem:[%s1147_s1 + $0x80] sm:$0xff]  ;;  %v23_v3 = vld [vmem:[%s1148_s0 + $0x18] sm:$0xff]  ;;  %v166_v8 = vld [vmem:[%s1147_s1 + $0x370] sm:$0xff] }
  0x17   :  { %296 = vmatpush.msra.mxu3 %v110_v39  ;;  %239 = vmatpush.msra.mxu1 %v77_v41  ;;  %v88_v62 = vld [vmem:[%s1147_s1 + $0x100] sm:$0xff]  ;;  %v167_v4 = vld [vmem:[%s1147_s1 + $0x378] sm:$0xff]  ;;  %v182_v9 = vld [vmem:[%s1147_s1 + $0x3f0] sm:$0xff] }
  0x18   :  { %268 = vmatpush.msra.mxu2 %v93_v42  ;;  %211 = vmatpush.msra.mxu0 %v60_v44  ;;  %v104_v63 = vld [vmem:[%s1147_s1 + $0x180] sm:$0xff]  ;;  %v183_v5 = vld [vmem:[%s1147_s1 + $0x3f8] sm:$0xff]  ;;  %v134_v10 = vld [vmem:[%s1147_s1 + $0x270] sm:$0xff] }
  0x19   :  { %297 = vmatpush.msra.mxu3 %v109_v43  ;;  %240 = vmatpush.msra.mxu1 %v76_v45  ;;  %v20_v0 = vld [vmem:[%s1148_s0] sm:$0xff]  ;;  %v135_v6 = vld [vmem:[%s1147_s1 + $0x278] sm:$0xff]  ;;  %v150_v11 = vld [vmem:[%s1147_s1 + $0x2f0] sm:$0xff] }
  0x1a   :  { %269 = vmatpush.msra.mxu2 %v92_v46  ;;  %212 = vmatpush.msra.mxu0 %v59_v48  ;;  %v151_v7 = vld [vmem:[%s1147_s1 + $0x2f8] sm:$0xff]  ;;  %v165_v12 = vld [vmem:[%s1147_s1 + $0x368] sm:$0xff]  ;;  %v164_v16 = vld [vmem:[%s1147_s1 + $0x360] sm:$0xff] }
  0x1b   :  { %298 = vmatpush.msra.mxu3 %v108_v47  ;;  %241 = vmatpush.msra.mxu1 %v75_v49  ;;  %v181_v13 = vld [vmem:[%s1147_s1 + $0x3e8] sm:$0xff]  ;;  %v180_v17 = vld [vmem:[%s1147_s1 + $0x3e0] sm:$0xff]  ;;  %v30_v21 = vld [vmem:[%s1148_s0 + $0x50] sm:$0xff] }
  0x1c   :  { %270 = vmatpush.msra.mxu2 %v91_v50  ;;  %213 = vmatpush.msra.mxu0 %v58_v52  ;;  %v133_v14 = vld [vmem:[%s1147_s1 + $0x268] sm:$0xff]  ;;  %v132_v18 = vld [vmem:[%s1147_s1 + $0x260] sm:$0xff]  ;;  %v31_v22 = vld [vmem:[%s1148_s0 + $0x58] sm:$0xff] }
  0x1d   :  { %299 = vmatpush.msra.mxu3 %v107_v51  ;;  %242 = vmatpush.msra.mxu1 %v74_v53  ;;  %v149_v15 = vld [vmem:[%s1147_s1 + $0x2e8] sm:$0xff]  ;;  %v148_v19 = vld [vmem:[%s1147_s1 + $0x2e0] sm:$0xff]  ;;  %v163_v24 = vld [vmem:[%s1147_s1 + $0x358] sm:$0xff] }
  0x1e   :  { %271 = vmatpush.msra.mxu2 %v90_v54  ;;  %214 = vmatpush.msra.mxu0 %v57_v56  ;;  %v29_v20 = vld [vmem:[%s1148_s0 + $0x48] sm:$0xff]  ;;  %v32_v23 = vld [vmem:[%s1148_s0 + $0x60] sm:$0xff]  ;;  %v179_v25 = vld [vmem:[%s1147_s1 + $0x3d8] sm:$0xff] }
  0x1f   :  { %300 = vmatpush.msra.mxu3 %v106_v55  ;;  %243 = vmatpush.msra.mxu1 %v73_v57  ;;  %v131_v26 = vld [vmem:[%s1147_s1 + $0x258] sm:$0xff]  ;;  %v162_v28 = vld [vmem:[%s1147_s1 + $0x350] sm:$0xff]  ;;  %v161_v32 = vld [vmem:[%s1147_s1 + $0x348] sm:$0xff] }
  0x20   :  { %272 = vmatpush.msra.mxu2 %v89_v58  ;;  %215 = vmatpush.msra.mxu0 %v56_v60  ;;  %v147_v27 = vld [vmem:[%s1147_s1 + $0x2d8] sm:$0xff]  ;;  %v178_v29 = vld [vmem:[%s1147_s1 + $0x3d0] sm:$0xff]  ;;  %v177_v33 = vld [vmem:[%s1147_s1 + $0x3c8] sm:$0xff] }
  0x21   :  { %301 = vmatpush.msra.mxu3 %v105_v59  ;;  %244 = vmatpush.msra.mxu1 %v72_v61  ;;  %v130_v30 = vld [vmem:[%s1147_s1 + $0x250] sm:$0xff]  ;;  %v129_v34 = vld [vmem:[%s1147_s1 + $0x248] sm:$0xff]  ;;  %v160_v36 = vld [vmem:[%s1147_s1 + $0x340] sm:$0xff] }
  0x22   :  { %273 = vmatpush.msra.mxu2 %v88_v62  ;;  %216 = vmatmul.f32.vlgmr.msra.gmra.mxu0 %v20_v0  ;;  %v146_v31 = vld [vmem:[%s1147_s1 + $0x2d0] sm:$0xff]  ;;  %v145_v35 = vld [vmem:[%s1147_s1 + $0x2c8] sm:$0xff]  ;;  %v176_v37 = vld [vmem:[%s1147_s1 + $0x3c0] sm:$0xff] }
  0x23   :  { %302 = vmatpush.msra.mxu3 %v104_v63  ;;  %245 = vmatmul.f32.vlgmr.msra.gmra.mxu1 %v21_v1  ;;  %v128_v38 = vld [vmem:[%s1147_s1 + $0x240] sm:$0xff]  ;;  %v38_v40 = vld [vmem:[%s1148_s0 + $0x90] sm:$0xff]  ;;  %v39_v41 = vld [vmem:[%s1148_s0 + $0x98] sm:$0xff] }
  0x24   :  { %274 = vmatmul.f32.vlgmr.msra.gmra.mxu2 %v22_v2  ;;  %303 = vmatmul.f32.vlgmr.msra.gmra.mxu3 %v23_v3  ;;  %v144_v39 = vld [vmem:[%s1147_s1 + $0x2c0] sm:$0xff]  ;;  %v41_v43 = vld [vmem:[%s1148_s0 + $0xa8] sm:$0xff]  ;;  %v159_v44 = vld [vmem:[%s1147_s1 + $0x338] sm:$0xff] }
  0x25   :  { %374 = vmatpush.msrb.mxu2 %v167_v4  ;;  %403 = vmatpush.msrb.mxu3 %v183_v5  ;;  %v40_v42 = vld [vmem:[%s1148_s0 + $0xa0] sm:$0xff]  ;;  %v175_v45 = vld [vmem:[%s1147_s1 + $0x3b8] sm:$0xff]  ;;  %v158_v48 = vld [vmem:[%s1147_s1 + $0x330] sm:$0xff] }
  0x26   :  { %316 = vmatpush.msrb.mxu0 %v135_v6  ;;  %345 = vmatpush.msrb.mxu1 %v151_v7  ;;  %v127_v46 = vld [vmem:[%s1147_s1 + $0x238] sm:$0xff]  ;;  %v174_v49 = vld [vmem:[%s1147_s1 + $0x3b0] sm:$0xff]  ;;  %v157_v52 = vld [vmem:[%s1147_s1 + $0x328] sm:$0xff] }
  0x27   :  { %375 = vmatpush.msrb.mxu2 %v166_v8  ;;  %404 = vmatpush.msrb.mxu3 %v182_v9  ;;  %v143_v47 = vld [vmem:[%s1147_s1 + $0x2b8] sm:$0xff]  ;;  %v126_v50 = vld [vmem:[%s1147_s1 + $0x230] sm:$0xff]  ;;  %v173_v53 = vld [vmem:[%s1147_s1 + $0x3a8] sm:$0xff] }
  0x28   :  { %317 = vmatpush.msrb.mxu0 %v134_v10  ;;  %346 = vmatpush.msrb.mxu1 %v150_v11  ;;  %v142_v51 = vld [vmem:[%s1147_s1 + $0x2b0] sm:$0xff]  ;;  %v125_v54 = vld [vmem:[%s1147_s1 + $0x228] sm:$0xff]  ;;  %v156_v56 = vld [vmem:[%s1147_s1 + $0x320] sm:$0xff] }
  0x29   :  { %376 = vmatpush.msrb.mxu2 %v165_v12  ;;  %405 = vmatpush.msrb.mxu3 %v181_v13  ;;  %v141_v55 = vld [vmem:[%s1147_s1 + $0x2a8] sm:$0xff]  ;;  %v172_v57 = vld [vmem:[%s1147_s1 + $0x3a0] sm:$0xff]  ;;  %v47_v60 = vld [vmem:[%s1148_s0 + $0xd8] sm:$0xff] }
  0x2a   :  { %318 = vmatpush.msrb.mxu0 %v133_v14  ;;  %347 = vmatpush.msrb.mxu1 %v149_v15  ;;  %v124_v58 = vld [vmem:[%s1147_s1 + $0x220] sm:$0xff]  ;;  %v49_v62 = vld [vmem:[%s1148_s0 + $0xe8] sm:$0xff]  ;;  %v50_v63 = vld [vmem:[%s1148_s0 + $0xf0] sm:$0xff] }
  0x2b   :  { %377 = vmatpush.msrb.mxu2 %v164_v16  ;;  %406 = vmatpush.msrb.mxu3 %v180_v17  ;;  %v140_v59 = vld [vmem:[%s1147_s1 + $0x2a0] sm:$0xff]  ;;  %v155_v0 = vld [vmem:[%s1147_s1 + $0x318] sm:$0xff]  ;;  %v154_v4 = vld [vmem:[%s1147_s1 + $0x310] sm:$0xff] }
  0x2c   :  { %319 = vmatpush.msrb.mxu0 %v132_v18  ;;  %348 = vmatpush.msrb.mxu1 %v148_v19  ;;  %v48_v61 = vld [vmem:[%s1148_s0 + $0xe0] sm:$0xff]  ;;  %v171_v1 = vld [vmem:[%s1147_s1 + $0x398] sm:$0xff]  ;;  %v170_v5 = vld [vmem:[%s1147_s1 + $0x390] sm:$0xff] }
  0x2d   :  { %219 = vmatmul.f32.gmra.mxu0 %v29_v20  ;;  %248 = vmatmul.f32.gmra.mxu1 %v30_v21  ;;  %v123_v2 = vld [vmem:[%s1147_s1 + $0x218] sm:$0xff]  ;;  %v122_v6 = vld [vmem:[%s1147_s1 + $0x210] sm:$0xff]  ;;  %v153_v8 = vld [vmem:[%s1147_s1 + $0x308] sm:$0xff] }
  0x2e   :  { %277 = vmatmul.f32.gmra.mxu2 %v31_v22  ;;  %306 = vmatmul.f32.gmra.mxu3 %v32_v23  ;;  %v139_v3 = vld [vmem:[%s1147_s1 + $0x298] sm:$0xff]  ;;  %v138_v7 = vld [vmem:[%s1147_s1 + $0x290] sm:$0xff]  ;;  %v169_v9 = vld [vmem:[%s1147_s1 + $0x388] sm:$0xff] }
  0x2f   :  { %378 = vmatpush.msrb.mxu2 %v163_v24  ;;  %407 = vmatpush.msrb.mxu3 %v179_v25  ;;  %v121_v10 = vld [vmem:[%s1147_s1 + $0x208] sm:$0xff]  ;;  %v152_v12 = vld [vmem:[%s1147_s1 + $0x300] sm:$0xff]  ;;  %v26_v18 = vld [vmem:[%s1148_s0 + $0x30] sm:$0xff] }
  0x30   :  { %320 = vmatpush.msrb.mxu0 %v131_v26  ;;  %349 = vmatpush.msrb.mxu1 %v147_v27  ;;  %v137_v11 = vld [vmem:[%s1147_s1 + $0x288] sm:$0xff]  ;;  %v168_v13 = vld [vmem:[%s1147_s1 + $0x380] sm:$0xff]  ;;  %v27_v19 = vld [vmem:[%s1148_s0 + $0x38] sm:$0xff] }
  0x31   :  { %379 = vmatpush.msrb.mxu2 %v162_v28  ;;  %408 = vmatpush.msrb.mxu3 %v178_v29  ;;  %v120_v14 = vld [vmem:[%s1147_s1 + $0x200] sm:$0xff]  ;;  %v25_v17 = vld [vmem:[%s1148_s0 + $0x28] sm:$0xff]  ;;  %v199_v20 = vld [vmem:[%s1147_s1 + $0x478] sm:$0xff] }
  0x32   :  { %321 = vmatpush.msrb.mxu0 %v130_v30  ;;  %350 = vmatpush.msrb.mxu1 %v146_v31  ;;  %v136_v15 = vld [vmem:[%s1147_s1 + $0x280] sm:$0xff]  ;;  %v198_v21 = vld [vmem:[%s1147_s1 + $0x470] sm:$0xff]  ;;  %v197_v22 = vld [vmem:[%s1147_s1 + $0x468] sm:$0xff] }
  0x33   :  { %380 = vmatpush.msrb.mxu2 %v161_v32  ;;  %409 = vmatpush.msrb.mxu3 %v177_v33  ;;  %v24_v16 = vld [vmem:[%s1148_s0 + $0x20] sm:$0xff]  ;;  %v33_v24 = vld [vmem:[%s1148_s0 + $0x68] sm:$0xff]  ;;  %v34_v25 = vld [vmem:[%s1148_s0 + $0x70] sm:$0xff] }
  0x34   :  { %322 = vmatpush.msrb.mxu0 %v129_v34  ;;  %351 = vmatpush.msrb.mxu1 %v145_v35  ;;  %v196_v23 = vld [vmem:[%s1147_s1 + $0x460] sm:$0xff]  ;;  %v35_v26 = vld [vmem:[%s1148_s0 + $0x78] sm:$0xff]  ;;  %v194_v29 = vld [vmem:[%s1147_s1 + $0x450] sm:$0xff] }
  0x35   :  { %381 = vmatpush.msrb.mxu2 %v160_v36  ;;  %410 = vmatpush.msrb.mxu3 %v176_v37  ;;  %v36_v27 = vld [vmem:[%s1148_s0 + $0x80] sm:$0xff]  ;;  %v195_v28 = vld [vmem:[%s1147_s1 + $0x458] sm:$0xff]  ;;  %v193_v30 = vld [vmem:[%s1147_s1 + $0x448] sm:$0xff] }
  0x36   :  { %323 = vmatpush.msrb.mxu0 %v128_v38  ;;  %352 = vmatpush.msrb.mxu1 %v144_v39  ;;  %v192_v31 = vld [vmem:[%s1147_s1 + $0x440] sm:$0xff]  ;;  %v42_v32 = vld [vmem:[%s1148_s0 + $0xb0] sm:$0xff]  ;;  %v43_v33 = vld [vmem:[%s1148_s0 + $0xb8] sm:$0xff] }
  0x37   :  { %222 = vmatmul.f32.gmra.mxu0 %v38_v40  ;;  %251 = vmatmul.f32.gmra.mxu1 %v39_v41  ;;  %v44_v34 = vld [vmem:[%s1148_s0 + $0xc0] sm:$0xff]  ;;  %v45_v35 = vld [vmem:[%s1148_s0 + $0xc8] sm:$0xff]  ;;  %v191_v36 = vld [vmem:[%s1147_s1 + $0x438] sm:$0xff] }
  0x38   :  { %280 = vmatmul.f32.gmra.mxu2 %v40_v42  ;;  %309 = vmatmul.f32.gmra.mxu3 %v41_v43  ;;  %v190_v37 = vld [vmem:[%s1147_s1 + $0x430] sm:$0xff]  ;;  %v189_v38 = vld [vmem:[%s1147_s1 + $0x428] sm:$0xff]  ;;  %v188_v39 = vld [vmem:[%s1147_s1 + $0x420] sm:$0xff] }
  0x39   :  { %382 = vmatpush.msrb.mxu2 %v159_v44  ;;  %411 = vmatpush.msrb.mxu3 %v175_v45  ;;  %v51_v40 = vld [vmem:[%s1148_s0 + $0xf8] sm:$0xff]  ;;  %v52_v41 = vld [vmem:[%s1148_s0 + $0x100] sm:$0xff]  ;;  %v53_v42 = vld [vmem:[%s1148_s0 + $0x108] sm:$0xff] }
  0x3a   :  { %324 = vmatpush.msrb.mxu0 %v127_v46  ;;  %353 = vmatpush.msrb.mxu1 %v143_v47  ;;  %v54_v43 = vld [vmem:[%s1148_s0 + $0x110] sm:$0xff]  ;;  %v187_v44 = vld [vmem:[%s1147_s1 + $0x418] sm:$0xff]  ;;  %v185_v46 = vld [vmem:[%s1147_s1 + $0x408] sm:$0xff] }
  0x3b   :  { %383 = vmatpush.msrb.mxu2 %v158_v48  ;;  %412 = vmatpush.msrb.mxu3 %v174_v49  ;;  %v186_v45 = vld [vmem:[%s1147_s1 + $0x410] sm:$0xff]  ;;  %v184_v47 = vld [vmem:[%s1147_s1 + $0x400] sm:$0xff]  ;;  %v37_v49 = vld [vmem:[%s1148_s0 + $0x88] sm:$0xff] }
  0x3c   :  { %325 = vmatpush.msrb.mxu0 %v126_v50  ;;  %354 = vmatpush.msrb.mxu1 %v142_v51  ;;  %v28_v48 = vld [vmem:[%s1148_s0 + $0x40] sm:$0xff]  ;;  %v46_v50 = vld [vmem:[%s1148_s0 + $0xd0] sm:$0xff]  ;;  %v55_v51 = vld [vmem:[%s1148_s0 + $0x118] sm:$0xff] }
  0x3d   :  { %384 = vmatpush.msrb.mxu2 %v157_v52  ;;  %413 = vmatpush.msrb.mxu3 %v173_v53 }
  0x3e   :  { %326 = vmatpush.msrb.mxu0 %v125_v54  ;;  %355 = vmatpush.msrb.mxu1 %v141_v55 }
  0x3f   :  { %385 = vmatpush.msrb.mxu2 %v156_v56  ;;  %414 = vmatpush.msrb.mxu3 %v172_v57 }
  0x40   :  { %327 = vmatpush.msrb.mxu0 %v124_v58  ;;  %356 = vmatpush.msrb.mxu1 %v140_v59 }
  0x41   :  { %225 = vmatmul.f32.gmra.mxu0 %v47_v60  ;;  %254 = vmatmul.f32.gmra.mxu1 %v48_v61 }
  0x42   :  { %283 = vmatmul.f32.gmra.mxu2 %v49_v62  ;;  %312 = vmatmul.f32.gmra.mxu3 %v50_v63 }
  0x43   :  { %386 = vmatpush.msrb.mxu2 %v155_v0  ;;  %415 = vmatpush.msrb.mxu3 %v171_v1 }
  0x44   :  { %328 = vmatpush.msrb.mxu0 %v123_v2  ;;  %357 = vmatpush.msrb.mxu1 %v139_v3 }
  0x45   :  { %387 = vmatpush.msrb.mxu2 %v154_v4  ;;  %416 = vmatpush.msrb.mxu3 %v170_v5 }
  0x46   :  { %329 = vmatpush.msrb.mxu0 %v122_v6  ;;  %358 = vmatpush.msrb.mxu1 %v138_v7 }
  0x47   :  { %388 = vmatpush.msrb.mxu2 %v153_v8  ;;  %417 = vmatpush.msrb.mxu3 %v169_v9 }
  0x48   :  { %330 = vmatpush.msrb.mxu0 %v121_v10  ;;  %359 = vmatpush.msrb.mxu1 %v137_v11 }
  0x49   :  { %389 = vmatpush.msrb.mxu2 %v152_v12  ;;  %418 = vmatpush.msrb.mxu3 %v168_v13 }
  0x4a   :  { %331 = vmatpush.msrb.mxu0 %v120_v14  ;;  %360 = vmatpush.msrb.mxu1 %v136_v15 }
  0x4b   :  { %332 = vmatmul.f32.vlgmr.msrb.gmra.mxu0 %v24_v16  ;;  %361 = vmatmul.f32.vlgmr.msrb.gmra.mxu1 %v25_v17 }
  0x4c   :  { %390 = vmatmul.f32.vlgmr.msrb.gmra.mxu2 %v26_v18  ;;  %419 = vmatmul.f32.vlgmr.msrb.gmra.mxu3 %v27_v19 }
  0x4d   :  { %498 = vmatpush.msra.mxu2 %v199_v20  ;;  %499 = vmatpush.msra.mxu3 %v199_v20 }
  0x4e   :  { %432 = vmatpush.msra.mxu0 %v199_v20  ;;  %497 = vmatpush.msra.mxu1 %v199_v20 }
  0x4f   :  { %501 = vmatpush.msra.mxu2 %v198_v21  ;;  %502 = vmatpush.msra.mxu3 %v198_v21 }
  0x50   :  { %433 = vmatpush.msra.mxu0 %v198_v21  ;;  %500 = vmatpush.msra.mxu1 %v198_v21 }
  0x51   :  { %504 = vmatpush.msra.mxu2 %v197_v22  ;;  %505 = vmatpush.msra.mxu3 %v197_v22 }
  0x52   :  { %434 = vmatpush.msra.mxu0 %v197_v22  ;;  %503 = vmatpush.msra.mxu1 %v197_v22 }
  0x53   :  { %507 = vmatpush.msra.mxu2 %v196_v23  ;;  %508 = vmatpush.msra.mxu3 %v196_v23 }
  0x54   :  { %435 = vmatpush.msra.mxu0 %v196_v23  ;;  %506 = vmatpush.msra.mxu1 %v196_v23 }
  0x55   :  { %335 = vmatmul.f32.gmra.mxu0 %v33_v24  ;;  %364 = vmatmul.f32.gmra.mxu1 %v34_v25 }
  0x56   :  { %393 = vmatmul.f32.gmra.mxu2 %v35_v26  ;;  %422 = vmatmul.f32.gmra.mxu3 %v36_v27 }
  0x57   :  { %510 = vmatpush.msra.mxu2 %v195_v28  ;;  %511 = vmatpush.msra.mxu3 %v195_v28 }
  0x58   :  { %436 = vmatpush.msra.mxu0 %v195_v28  ;;  %509 = vmatpush.msra.mxu1 %v195_v28 }
  0x59   :  { %513 = vmatpush.msra.mxu2 %v194_v29  ;;  %514 = vmatpush.msra.mxu3 %v194_v29 }
  0x5a   :  { %437 = vmatpush.msra.mxu0 %v194_v29  ;;  %512 = vmatpush.msra.mxu1 %v194_v29 }
  0x5b   :  { %516 = vmatpush.msra.mxu2 %v193_v30  ;;  %517 = vmatpush.msra.mxu3 %v193_v30 }
  0x5c   :  { %438 = vmatpush.msra.mxu0 %v193_v30  ;;  %515 = vmatpush.msra.mxu1 %v193_v30 }
  0x5d   :  { %519 = vmatpush.msra.mxu2 %v192_v31  ;;  %520 = vmatpush.msra.mxu3 %v192_v31 }
  0x5e   :  { %439 = vmatpush.msra.mxu0 %v192_v31  ;;  %518 = vmatpush.msra.mxu1 %v192_v31 }
  0x5f   :  { %338 = vmatmul.f32.gmra.mxu0 %v42_v32  ;;  %367 = vmatmul.f32.gmra.mxu1 %v43_v33 }
  0x60   :  { %396 = vmatmul.f32.gmra.mxu2 %v44_v34  ;;  %425 = vmatmul.f32.gmra.mxu3 %v45_v35 }
  0x61   :  { %522 = vmatpush.msra.mxu2 %v191_v36  ;;  %523 = vmatpush.msra.mxu3 %v191_v36 }
  0x62   :  { %440 = vmatpush.msra.mxu0 %v191_v36  ;;  %521 = vmatpush.msra.mxu1 %v191_v36 }
  0x63   :  { %525 = vmatpush.msra.mxu2 %v190_v37  ;;  %526 = vmatpush.msra.mxu3 %v190_v37 }
  0x64   :  { %441 = vmatpush.msra.mxu0 %v190_v37  ;;  %524 = vmatpush.msra.mxu1 %v190_v37 }
  0x65   :  { %528 = vmatpush.msra.mxu2 %v189_v38  ;;  %529 = vmatpush.msra.mxu3 %v189_v38 }
  0x66   :  { %442 = vmatpush.msra.mxu0 %v189_v38  ;;  %527 = vmatpush.msra.mxu1 %v189_v38 }
  0x67   :  { %531 = vmatpush.msra.mxu2 %v188_v39  ;;  %532 = vmatpush.msra.mxu3 %v188_v39 }
  0x68   :  { %443 = vmatpush.msra.mxu0 %v188_v39  ;;  %530 = vmatpush.msra.mxu1 %v188_v39 }
  0x69   :  { %341 = vmatmul.f32.gmra.mxu0 %v51_v40  ;;  %370 = vmatmul.f32.gmra.mxu1 %v52_v41 }
  0x6a   :  { %399 = vmatmul.f32.gmra.mxu2 %v53_v42  ;;  %428 = vmatmul.f32.gmra.mxu3 %v54_v43  ;;  %v545_v42 = vld [vmem:[%s1149_s2] ss:$0 sm:$0xff] }
  0x6b   :  { %534 = vmatpush.msra.mxu2 %v187_v44  ;;  %535 = vmatpush.msra.mxu3 %v187_v44 }
  0x6c   :  { %444 = vmatpush.msra.mxu0 %v187_v44  ;;  %533 = vmatpush.msra.mxu1 %v187_v44 }
  0x6d   :  { %537 = vmatpush.msra.mxu2 %v186_v45  ;;  %538 = vmatpush.msra.mxu3 %v186_v45 }
  0x6e   :  { %445 = vmatpush.msra.mxu0 %v186_v45  ;;  %536 = vmatpush.msra.mxu1 %v186_v45 }
  0x6f   :  { %540 = vmatpush.msra.mxu2 %v185_v46  ;;  %541 = vmatpush.msra.mxu3 %v185_v46 }
  0x70   :  { %446 = vmatpush.msra.mxu0 %v185_v46  ;;  %539 = vmatpush.msra.mxu1 %v185_v46 }
  0x71   :  { %543 = vmatpush.msra.mxu2 %v184_v47  ;;  %544 = vmatpush.msra.mxu3 %v184_v47 }
  0x72   :  { %447 = vmatpush.msra.mxu0 %v184_v47  ;;  %542 = vmatpush.msra.mxu1 %v184_v47 }
  0x73   :  { %448 = vmatmul.f32.vlgmr.msra.gmra.mxu0 %v28_v48  ;;  %451 = vmatmul.f32.vlgmr.msra.gmra.mxu1 %v37_v49  ;;  %v546_v48 = vld [vmem:[%s1150_s3] ss:$0 sm:$0xff] }
  0x74   :  { %454 = vmatmul.f32.vlgmr.msra.gmra.mxu2 %v46_v50  ;;  %457 = vmatmul.f32.vlgmr.msra.gmra.mxu3 %v55_v51 }
  0x9f   :  { %v217_v52 = vpop.f32.mrf.mxu0 }
  0xa0   :  { %v246_v53 = vpop.f32.mrf.mxu1 }
  0xa1   :  { %v247_v12 = vadd.f32 %v246_v53, %v217_v52 }
  0xa7   :  { %v275_v54 = vpop.f32.mrf.mxu2  ;;  %v304_v55 = vpop.f32.mrf.mxu3 }
  0xa8   :  { %v276_v16 = vadd.f32 %v275_v54, %v247_v12  ;;  %v477_v54 = vld [vmem:[%s1151_s4] sm:$0xff] }
  0xaa   :  { %v220_v56 = vpop.f32.mrf.mxu0  ;;  %v249_v57 = vpop.f32.mrf.mxu1  ;;  %v305_v20 = vadd.f32 %v304_v55, %v276_v16  ;;  %v478_v55 = vld [vmem:[%s1151_s4 + $0x8] sm:$0xff] }
  0xab   :  { %v250_v13 = vadd.f32 %v249_v57, %v220_v56 }
  0xb1   :  { %v278_v58 = vpop.f32.mrf.mxu2  ;;  %v307_v59 = vpop.f32.mrf.mxu3 }
  0xb2   :  { %v279_v17 = vadd.f32 %v278_v58, %v250_v13 }
  0xb4   :  { %v223_v60 = vpop.f32.mrf.mxu0  ;;  %v252_v61 = vpop.f32.mrf.mxu1  ;;  %v308_v21 = vadd.f32 %v307_v59, %v279_v17 }
  0xb5   :  { %v253_v18 = vadd.f32 %v252_v61, %v223_v60 }
  0xbb   :  { %v281_v62 = vpop.f32.mrf.mxu2  ;;  %v310_v63 = vpop.f32.mrf.mxu3 }
  0xbc   :  { %v282_v26 = vadd.f32 %v281_v62, %v253_v18 }
  0xbe   :  { %v226_v0 = vpop.f32.mrf.mxu0  ;;  %v255_v1 = vpop.f32.mrf.mxu1  ;;  %v311_v32 = vadd.f32 %v310_v63, %v282_v26 }
  0xbf   :  { %v256_v19 = vadd.f32 %v255_v1, %v226_v0 }
  0xc5   :  { %v284_v2 = vpop.f32.mrf.mxu2  ;;  %v313_v3 = vpop.f32.mrf.mxu3 }
  0xc6   :  { %v285_v27 = vadd.f32 %v284_v2, %v256_v19 }
  0xc8   :  { %v333_v4 = vpop.f32.mrf.mxu0  ;;  %v362_v5 = vpop.f32.mrf.mxu1  ;;  %v314_v33 = vadd.f32 %v313_v3, %v285_v27 }
  0xc9   :  { %v334_v24 = vadd.f32 %v333_v4, %v305_v20 }
  0xcb   :  { %v363_v30 = vadd.f32 %v362_v5, %v334_v24 }
  0xcf   :  { %v391_v6 = vpop.f32.mrf.mxu2  ;;  %v420_v7 = vpop.f32.mrf.mxu3 }
  0xd0   :  { %v392_v34 = vadd.f32 %v391_v6, %v363_v30  ;;  %v479_v6 = vld [vmem:[%s1151_s4 + $0x10] sm:$0xff] }
  0xd2   :  { %v336_v8 = vpop.f32.mrf.mxu0  ;;  %v365_v9 = vpop.f32.mrf.mxu1  ;;  %v421_v40 = vadd.f32 %v420_v7, %v392_v34  ;;  %v480_v7 = vld [vmem:[%s1151_s4 + $0x18] sm:$0xff] }
  0xd3   :  { %v337_v25 = vadd.f32 %v336_v8, %v308_v21 }
  0xd5   :  { %v366_v31 = vadd.f32 %v365_v9, %v337_v25 }
  0xd9   :  { %v394_v10 = vpop.f32.mrf.mxu2  ;;  %v423_v11 = vpop.f32.mrf.mxu3 }
  0xda   :  { %v395_v35 = vadd.f32 %v394_v10, %v366_v31 }
  0xdc   :  { %v339_v14 = vpop.f32.mrf.mxu0  ;;  %v368_v15 = vpop.f32.mrf.mxu1  ;;  %v424_v41 = vadd.f32 %v423_v11, %v395_v35 }
  0xdd   :  { %v340_v36 = vadd.f32 %v339_v14, %v311_v32 }
  0xdf   :  { %v369_v43 = vadd.f32 %v368_v15, %v340_v36 }
  0xe3   :  { %v397_v22 = vpop.f32.mrf.mxu2  ;;  %v426_v23 = vpop.f32.mrf.mxu3 }
  0xe4   :  { %v398_v50 = vadd.f32 %v397_v22, %v369_v43 }
  0xe6   :  { %v342_v28 = vpop.f32.mrf.mxu0  ;;  %v371_v29 = vpop.f32.mrf.mxu1  ;;  %v427_v58 = vadd.f32 %v426_v23, %v398_v50 }
  0xe7   :  { %v343_v37 = vadd.f32 %v342_v28, %v314_v33 }
  0xe9   :  { %v372_v44 = vadd.f32 %v371_v29, %v343_v37 }
  0xed   :  { %v400_v38 = vpop.f32.mrf.mxu2  ;;  %v429_v39 = vpop.f32.mrf.mxu3 }
  0xee   :  { %v401_v51 = vadd.f32 %v400_v38, %v372_v44 }
  0xf0   :  { %v449_v45 = vpop.f32.mrf.mxu0  ;;  %v452_v46 = vpop.f32.mrf.mxu1  ;;  %v430_v59 = vadd.f32 %v429_v39, %v401_v51 }
  0xf1   :  { %v450_v47 = vadd.f32 %v449_v45, %v421_v40  ;;  %v453_v49 = vadd.f32 %v452_v46, %v424_v41 }
  0xf3   :  { %v465_v52 = vmul.f32 %v545_v42, %v450_v47  ;;  %v466_v53 = vmul.f32 %v545_v42, %v453_v49 }
  0xf5   :  { %v473_v56 = vadd.f32 %v546_v48, %v465_v52  ;;  %v474_v57 = vadd.f32 %v546_v48, %v466_v53 }
  0xf7   :  { %v481_v60 = vadd.f32 %v477_v54, %v473_v56  ;;  %v482_v61 = vadd.f32 %v478_v55, %v474_v57  ;;  %v455_v62 = vpop.f32.mrf.mxu2  ;;  %v458_v63 = vpop.f32.mrf.mxu3 }
  0xf8   :  { %v456_v0 = vadd.f32 %v455_v62, %v427_v58  ;;  %v459_v1 = vadd.f32 %v458_v63, %v430_v59 }
  0xf9   :  { %v485_v2 = vmax.f32 %v481_v60, 0.0  ;;  %v486_v3 = vmax.f32 %v482_v61, 0.0 }
  0xfa   :  { %v467_v4 = vmul.f32 %v545_v42, %v456_v0  ;;  %v468_v5 = vmul.f32 %v545_v42, %v459_v1 }
  0xfb   :  { %489 = vst [vmem:[%s1152_s5] sm:$0xff] %v485_v2 }
  0xfc   :  { %490 = vst [vmem:[%s1152_s5 + $0x8] sm:$0xff] %v486_v3  ;;  %v475_v8 = vadd.f32 %v546_v48, %v467_v4  ;;  %v476_v9 = vadd.f32 %v546_v48, %v468_v5 }
  0xfe   :  { %v483_v10 = vadd.f32 %v479_v6, %v475_v8  ;;  %v484_v11 = vadd.f32 %v480_v7, %v476_v9 }
 0x100   :  { %v487_v12 = vmax.f32 %v483_v10, 0.0  ;;  %v488_v13 = vmax.f32 %v484_v11, 0.0 }
 0x102   :  { %491 = vst [vmem:[%s1152_s5 + $0x10] sm:$0xff] %v487_v12 }
 0x103   :  { %492 = vst [vmem:[%s1152_s5 + $0x18] sm:$0xff] %v488_v13 }

// kernel: _lambda_.20
= control target key start
LH: loop header
LB: loop body
LE: loop exit
PB: predicated region body
PF: predicated region fallthrough
CT: control target
= control target key end

     0   :  { %s1119_s1 = inlined_call_operand.vmem [shape: f32[1152,128], index: 1, kind: input, shape index: {}]   ;;  %s1120_s0 = inlined_call_operand.vmem [shape: f32[32,1152], index: 0, kind: input, shape index: {}]   ;;  %s1121_s2 = inlined_call_operand.vmem [shape: f32[1,128], index: 2, kind: input, shape index: {}]   ;;  %s1122_s3 = inlined_call_operand.vmem [shape: f32[1,128], index: 3, kind: input, shape index: {}]   ;;  %s1123_s4 = inlined_call_operand.vmem [shape: f32[32,128], index: 4, kind: output, shape index: {}]  }
   0x1   :  { %v68_v0 = vld [vmem:[%s1119_s1 + $0x78] sm:$0xff]  ;;  %v67_v4 = vld [vmem:[%s1119_s1 + $0x70] sm:$0xff]  ;;  %v66_v8 = vld [vmem:[%s1119_s1 + $0x68] sm:$0xff] }
   0x2   :  { %v84_v1 = vld [vmem:[%s1119_s1 + $0xf8] sm:$0xff]  ;;  %197 = vmatpush.msra.mxu0 %v68_v0  ;;  %v83_v5 = vld [vmem:[%s1119_s1 + $0xf0] sm:$0xff]  ;;  %v82_v9 = vld [vmem:[%s1119_s1 + $0xe8] sm:$0xff] }
   0x3   :  { %v100_v2 = vld [vmem:[%s1119_s1 + $0x178] sm:$0xff]  ;;  %226 = vmatpush.msra.mxu1 %v84_v1  ;;  %v99_v6 = vld [vmem:[%s1119_s1 + $0x170] sm:$0xff]  ;;  %v98_v10 = vld [vmem:[%s1119_s1 + $0x168] sm:$0xff] }
   0x4   :  { %v116_v3 = vld [vmem:[%s1119_s1 + $0x1f8] sm:$0xff]  ;;  %255 = vmatpush.msra.mxu2 %v100_v2  ;;  %v115_v7 = vld [vmem:[%s1119_s1 + $0x1f0] sm:$0xff]  ;;  %198 = vmatpush.msra.mxu0 %v67_v4  ;;  %v114_v11 = vld [vmem:[%s1119_s1 + $0x1e8] sm:$0xff] }
   0x5   :  { %284 = vmatpush.msra.mxu3 %v116_v3  ;;  %227 = vmatpush.msra.mxu1 %v83_v5  ;;  %v65_v12 = vld [vmem:[%s1119_s1 + $0x60] sm:$0xff]  ;;  %v64_v16 = vld [vmem:[%s1119_s1 + $0x58] sm:$0xff]  ;;  %v63_v20 = vld [vmem:[%s1119_s1 + $0x50] sm:$0xff] }
   0x6   :  { %256 = vmatpush.msra.mxu2 %v99_v6  ;;  %v81_v13 = vld [vmem:[%s1119_s1 + $0xe0] sm:$0xff]  ;;  %199 = vmatpush.msra.mxu0 %v66_v8  ;;  %v80_v17 = vld [vmem:[%s1119_s1 + $0xd8] sm:$0xff]  ;;  %v79_v21 = vld [vmem:[%s1119_s1 + $0xd0] sm:$0xff] }
   0x7   :  { %285 = vmatpush.msra.mxu3 %v115_v7  ;;  %228 = vmatpush.msra.mxu1 %v82_v9  ;;  %v97_v14 = vld [vmem:[%s1119_s1 + $0x160] sm:$0xff]  ;;  %v96_v18 = vld [vmem:[%s1119_s1 + $0x158] sm:$0xff]  ;;  %v95_v22 = vld [vmem:[%s1119_s1 + $0x150] sm:$0xff] }
   0x8   :  { %v113_v15 = vld [vmem:[%s1119_s1 + $0x1e0] sm:$0xff]  ;;  %257 = vmatpush.msra.mxu2 %v98_v10  ;;  %200 = vmatpush.msra.mxu0 %v65_v12  ;;  %v112_v19 = vld [vmem:[%s1119_s1 + $0x1d8] sm:$0xff]  ;;  %v111_v23 = vld [vmem:[%s1119_s1 + $0x1d0] sm:$0xff] }
   0x9   :  { %286 = vmatpush.msra.mxu3 %v114_v11  ;;  %229 = vmatpush.msra.mxu1 %v81_v13  ;;  %v62_v24 = vld [vmem:[%s1119_s1 + $0x48] sm:$0xff]  ;;  %v61_v28 = vld [vmem:[%s1119_s1 + $0x40] sm:$0xff]  ;;  %v60_v32 = vld [vmem:[%s1119_s1 + $0x38] sm:$0xff] }
   0xa   :  { %258 = vmatpush.msra.mxu2 %v97_v14  ;;  %201 = vmatpush.msra.mxu0 %v64_v16  ;;  %v78_v25 = vld [vmem:[%s1119_s1 + $0xc8] sm:$0xff]  ;;  %v77_v29 = vld [vmem:[%s1119_s1 + $0xc0] sm:$0xff]  ;;  %v76_v33 = vld [vmem:[%s1119_s1 + $0xb8] sm:$0xff] }
   0xb   :  { %287 = vmatpush.msra.mxu3 %v113_v15  ;;  %230 = vmatpush.msra.mxu1 %v80_v17  ;;  %v94_v26 = vld [vmem:[%s1119_s1 + $0x148] sm:$0xff]  ;;  %v93_v30 = vld [vmem:[%s1119_s1 + $0x140] sm:$0xff]  ;;  %v92_v34 = vld [vmem:[%s1119_s1 + $0x138] sm:$0xff] }
   0xc   :  { %259 = vmatpush.msra.mxu2 %v96_v18  ;;  %202 = vmatpush.msra.mxu0 %v63_v20  ;;  %v110_v27 = vld [vmem:[%s1119_s1 + $0x1c8] sm:$0xff]  ;;  %v109_v31 = vld [vmem:[%s1119_s1 + $0x1c0] sm:$0xff]  ;;  %v108_v35 = vld [vmem:[%s1119_s1 + $0x1b8] sm:$0xff] }
   0xd   :  { %288 = vmatpush.msra.mxu3 %v112_v19  ;;  %231 = vmatpush.msra.mxu1 %v79_v21  ;;  %v59_v36 = vld [vmem:[%s1119_s1 + $0x30] sm:$0xff]  ;;  %v58_v40 = vld [vmem:[%s1119_s1 + $0x28] sm:$0xff]  ;;  %v57_v44 = vld [vmem:[%s1119_s1 + $0x20] sm:$0xff] }
   0xe   :  { %260 = vmatpush.msra.mxu2 %v95_v22  ;;  %203 = vmatpush.msra.mxu0 %v62_v24  ;;  %v75_v37 = vld [vmem:[%s1119_s1 + $0xb0] sm:$0xff]  ;;  %v74_v41 = vld [vmem:[%s1119_s1 + $0xa8] sm:$0xff]  ;;  %v73_v45 = vld [vmem:[%s1119_s1 + $0xa0] sm:$0xff] }
   0xf   :  { %289 = vmatpush.msra.mxu3 %v111_v23  ;;  %232 = vmatpush.msra.mxu1 %v78_v25  ;;  %v91_v38 = vld [vmem:[%s1119_s1 + $0x130] sm:$0xff]  ;;  %v90_v42 = vld [vmem:[%s1119_s1 + $0x128] sm:$0xff]  ;;  %v89_v46 = vld [vmem:[%s1119_s1 + $0x120] sm:$0xff] }
  0x10   :  { %261 = vmatpush.msra.mxu2 %v94_v26  ;;  %204 = vmatpush.msra.mxu0 %v61_v28  ;;  %v107_v39 = vld [vmem:[%s1119_s1 + $0x1b0] sm:$0xff]  ;;  %v106_v43 = vld [vmem:[%s1119_s1 + $0x1a8] sm:$0xff]  ;;  %v105_v47 = vld [vmem:[%s1119_s1 + $0x1a0] sm:$0xff] }
  0x11   :  { %290 = vmatpush.msra.mxu3 %v110_v27  ;;  %233 = vmatpush.msra.mxu1 %v77_v29  ;;  %v56_v48 = vld [vmem:[%s1119_s1 + $0x18] sm:$0xff]  ;;  %v55_v52 = vld [vmem:[%s1119_s1 + $0x10] sm:$0xff]  ;;  %v54_v56 = vld [vmem:[%s1119_s1 + $0x8] sm:$0xff] }
  0x12   :  { %262 = vmatpush.msra.mxu2 %v93_v30  ;;  %205 = vmatpush.msra.mxu0 %v60_v32  ;;  %v72_v49 = vld [vmem:[%s1119_s1 + $0x98] sm:$0xff]  ;;  %v71_v53 = vld [vmem:[%s1119_s1 + $0x90] sm:$0xff]  ;;  %v70_v57 = vld [vmem:[%s1119_s1 + $0x88] sm:$0xff] }
  0x13   :  { %291 = vmatpush.msra.mxu3 %v109_v31  ;;  %234 = vmatpush.msra.mxu1 %v76_v33  ;;  %v88_v50 = vld [vmem:[%s1119_s1 + $0x118] sm:$0xff]  ;;  %v87_v54 = vld [vmem:[%s1119_s1 + $0x110] sm:$0xff]  ;;  %v86_v58 = vld [vmem:[%s1119_s1 + $0x108] sm:$0xff] }
  0x14   :  { %263 = vmatpush.msra.mxu2 %v92_v34  ;;  %206 = vmatpush.msra.mxu0 %v59_v36  ;;  %v104_v51 = vld [vmem:[%s1119_s1 + $0x198] sm:$0xff]  ;;  %v103_v55 = vld [vmem:[%s1119_s1 + $0x190] sm:$0xff]  ;;  %v102_v59 = vld [vmem:[%s1119_s1 + $0x188] sm:$0xff] }
  0x15   :  { %292 = vmatpush.msra.mxu3 %v108_v35  ;;  %235 = vmatpush.msra.mxu1 %v75_v37  ;;  %v53_v60 = vld [vmem:[%s1119_s1] sm:$0xff]  ;;  %v18_v1 = vld [vmem:[%s1120_s0 + $0x8] sm:$0xff]  ;;  %v19_v2 = vld [vmem:[%s1120_s0 + $0x10] sm:$0xff] }
  0x16   :  { %264 = vmatpush.msra.mxu2 %v91_v38  ;;  %207 = vmatpush.msra.mxu0 %v58_v40  ;;  %v69_v61 = vld [vmem:[%s1119_s1 + $0x80] sm:$0xff]  ;;  %v20_v3 = vld [vmem:[%s1120_s0 + $0x18] sm:$0xff]  ;;  %v163_v8 = vld [vmem:[%s1119_s1 + $0x370] sm:$0xff] }
  0x17   :  { %293 = vmatpush.msra.mxu3 %v107_v39  ;;  %236 = vmatpush.msra.mxu1 %v74_v41  ;;  %v85_v62 = vld [vmem:[%s1119_s1 + $0x100] sm:$0xff]  ;;  %v164_v4 = vld [vmem:[%s1119_s1 + $0x378] sm:$0xff]  ;;  %v179_v9 = vld [vmem:[%s1119_s1 + $0x3f0] sm:$0xff] }
  0x18   :  { %265 = vmatpush.msra.mxu2 %v90_v42  ;;  %208 = vmatpush.msra.mxu0 %v57_v44  ;;  %v101_v63 = vld [vmem:[%s1119_s1 + $0x180] sm:$0xff]  ;;  %v180_v5 = vld [vmem:[%s1119_s1 + $0x3f8] sm:$0xff]  ;;  %v131_v10 = vld [vmem:[%s1119_s1 + $0x270] sm:$0xff] }
  0x19   :  { %294 = vmatpush.msra.mxu3 %v106_v43  ;;  %237 = vmatpush.msra.mxu1 %v73_v45  ;;  %v17_v0 = vld [vmem:[%s1120_s0] sm:$0xff]  ;;  %v132_v6 = vld [vmem:[%s1119_s1 + $0x278] sm:$0xff]  ;;  %v147_v11 = vld [vmem:[%s1119_s1 + $0x2f0] sm:$0xff] }
  0x1a   :  { %266 = vmatpush.msra.mxu2 %v89_v46  ;;  %209 = vmatpush.msra.mxu0 %v56_v48  ;;  %v148_v7 = vld [vmem:[%s1119_s1 + $0x2f8] sm:$0xff]  ;;  %v162_v12 = vld [vmem:[%s1119_s1 + $0x368] sm:$0xff]  ;;  %v161_v16 = vld [vmem:[%s1119_s1 + $0x360] sm:$0xff] }
  0x1b   :  { %295 = vmatpush.msra.mxu3 %v105_v47  ;;  %238 = vmatpush.msra.mxu1 %v72_v49  ;;  %v178_v13 = vld [vmem:[%s1119_s1 + $0x3e8] sm:$0xff]  ;;  %v177_v17 = vld [vmem:[%s1119_s1 + $0x3e0] sm:$0xff]  ;;  %v27_v21 = vld [vmem:[%s1120_s0 + $0x50] sm:$0xff] }
  0x1c   :  { %267 = vmatpush.msra.mxu2 %v88_v50  ;;  %210 = vmatpush.msra.mxu0 %v55_v52  ;;  %v130_v14 = vld [vmem:[%s1119_s1 + $0x268] sm:$0xff]  ;;  %v129_v18 = vld [vmem:[%s1119_s1 + $0x260] sm:$0xff]  ;;  %v28_v22 = vld [vmem:[%s1120_s0 + $0x58] sm:$0xff] }
  0x1d   :  { %296 = vmatpush.msra.mxu3 %v104_v51  ;;  %239 = vmatpush.msra.mxu1 %v71_v53  ;;  %v146_v15 = vld [vmem:[%s1119_s1 + $0x2e8] sm:$0xff]  ;;  %v145_v19 = vld [vmem:[%s1119_s1 + $0x2e0] sm:$0xff]  ;;  %v160_v24 = vld [vmem:[%s1119_s1 + $0x358] sm:$0xff] }
  0x1e   :  { %268 = vmatpush.msra.mxu2 %v87_v54  ;;  %211 = vmatpush.msra.mxu0 %v54_v56  ;;  %v26_v20 = vld [vmem:[%s1120_s0 + $0x48] sm:$0xff]  ;;  %v29_v23 = vld [vmem:[%s1120_s0 + $0x60] sm:$0xff]  ;;  %v176_v25 = vld [vmem:[%s1119_s1 + $0x3d8] sm:$0xff] }
  0x1f   :  { %297 = vmatpush.msra.mxu3 %v103_v55  ;;  %240 = vmatpush.msra.mxu1 %v70_v57  ;;  %v128_v26 = vld [vmem:[%s1119_s1 + $0x258] sm:$0xff]  ;;  %v159_v28 = vld [vmem:[%s1119_s1 + $0x350] sm:$0xff]  ;;  %v158_v32 = vld [vmem:[%s1119_s1 + $0x348] sm:$0xff] }
  0x20   :  { %269 = vmatpush.msra.mxu2 %v86_v58  ;;  %212 = vmatpush.msra.mxu0 %v53_v60  ;;  %v144_v27 = vld [vmem:[%s1119_s1 + $0x2d8] sm:$0xff]  ;;  %v175_v29 = vld [vmem:[%s1119_s1 + $0x3d0] sm:$0xff]  ;;  %v174_v33 = vld [vmem:[%s1119_s1 + $0x3c8] sm:$0xff] }
  0x21   :  { %298 = vmatpush.msra.mxu3 %v102_v59  ;;  %241 = vmatpush.msra.mxu1 %v69_v61  ;;  %v127_v30 = vld [vmem:[%s1119_s1 + $0x250] sm:$0xff]  ;;  %v126_v34 = vld [vmem:[%s1119_s1 + $0x248] sm:$0xff]  ;;  %v157_v36 = vld [vmem:[%s1119_s1 + $0x340] sm:$0xff] }
  0x22   :  { %270 = vmatpush.msra.mxu2 %v85_v62  ;;  %213 = vmatmul.f32.vlgmr.msra.gmra.mxu0 %v17_v0  ;;  %v143_v31 = vld [vmem:[%s1119_s1 + $0x2d0] sm:$0xff]  ;;  %v142_v35 = vld [vmem:[%s1119_s1 + $0x2c8] sm:$0xff]  ;;  %v173_v37 = vld [vmem:[%s1119_s1 + $0x3c0] sm:$0xff] }
  0x23   :  { %299 = vmatpush.msra.mxu3 %v101_v63  ;;  %242 = vmatmul.f32.vlgmr.msra.gmra.mxu1 %v18_v1  ;;  %v125_v38 = vld [vmem:[%s1119_s1 + $0x240] sm:$0xff]  ;;  %v35_v40 = vld [vmem:[%s1120_s0 + $0x90] sm:$0xff]  ;;  %v36_v41 = vld [vmem:[%s1120_s0 + $0x98] sm:$0xff] }
  0x24   :  { %271 = vmatmul.f32.vlgmr.msra.gmra.mxu2 %v19_v2  ;;  %300 = vmatmul.f32.vlgmr.msra.gmra.mxu3 %v20_v3  ;;  %v141_v39 = vld [vmem:[%s1119_s1 + $0x2c0] sm:$0xff]  ;;  %v38_v43 = vld [vmem:[%s1120_s0 + $0xa8] sm:$0xff]  ;;  %v156_v44 = vld [vmem:[%s1119_s1 + $0x338] sm:$0xff] }
  0x25   :  { %371 = vmatpush.msrb.mxu2 %v164_v4  ;;  %400 = vmatpush.msrb.mxu3 %v180_v5  ;;  %v37_v42 = vld [vmem:[%s1120_s0 + $0xa0] sm:$0xff]  ;;  %v172_v45 = vld [vmem:[%s1119_s1 + $0x3b8] sm:$0xff]  ;;  %v155_v48 = vld [vmem:[%s1119_s1 + $0x330] sm:$0xff] }
  0x26   :  { %313 = vmatpush.msrb.mxu0 %v132_v6  ;;  %342 = vmatpush.msrb.mxu1 %v148_v7  ;;  %v124_v46 = vld [vmem:[%s1119_s1 + $0x238] sm:$0xff]  ;;  %v171_v49 = vld [vmem:[%s1119_s1 + $0x3b0] sm:$0xff]  ;;  %v154_v52 = vld [vmem:[%s1119_s1 + $0x328] sm:$0xff] }
  0x27   :  { %372 = vmatpush.msrb.mxu2 %v163_v8  ;;  %401 = vmatpush.msrb.mxu3 %v179_v9  ;;  %v140_v47 = vld [vmem:[%s1119_s1 + $0x2b8] sm:$0xff]  ;;  %v123_v50 = vld [vmem:[%s1119_s1 + $0x230] sm:$0xff]  ;;  %v170_v53 = vld [vmem:[%s1119_s1 + $0x3a8] sm:$0xff] }
  0x28   :  { %314 = vmatpush.msrb.mxu0 %v131_v10  ;;  %343 = vmatpush.msrb.mxu1 %v147_v11  ;;  %v139_v51 = vld [vmem:[%s1119_s1 + $0x2b0] sm:$0xff]  ;;  %v122_v54 = vld [vmem:[%s1119_s1 + $0x228] sm:$0xff]  ;;  %v153_v56 = vld [vmem:[%s1119_s1 + $0x320] sm:$0xff] }
  0x29   :  { %373 = vmatpush.msrb.mxu2 %v162_v12  ;;  %402 = vmatpush.msrb.mxu3 %v178_v13  ;;  %v138_v55 = vld [vmem:[%s1119_s1 + $0x2a8] sm:$0xff]  ;;  %v169_v57 = vld [vmem:[%s1119_s1 + $0x3a0] sm:$0xff]  ;;  %v44_v60 = vld [vmem:[%s1120_s0 + $0xd8] sm:$0xff] }
  0x2a   :  { %315 = vmatpush.msrb.mxu0 %v130_v14  ;;  %344 = vmatpush.msrb.mxu1 %v146_v15  ;;  %v121_v58 = vld [vmem:[%s1119_s1 + $0x220] sm:$0xff]  ;;  %v46_v62 = vld [vmem:[%s1120_s0 + $0xe8] sm:$0xff]  ;;  %v47_v63 = vld [vmem:[%s1120_s0 + $0xf0] sm:$0xff] }
  0x2b   :  { %374 = vmatpush.msrb.mxu2 %v161_v16  ;;  %403 = vmatpush.msrb.mxu3 %v177_v17  ;;  %v137_v59 = vld [vmem:[%s1119_s1 + $0x2a0] sm:$0xff]  ;;  %v152_v0 = vld [vmem:[%s1119_s1 + $0x318] sm:$0xff]  ;;  %v151_v4 = vld [vmem:[%s1119_s1 + $0x310] sm:$0xff] }
  0x2c   :  { %316 = vmatpush.msrb.mxu0 %v129_v18  ;;  %345 = vmatpush.msrb.mxu1 %v145_v19  ;;  %v45_v61 = vld [vmem:[%s1120_s0 + $0xe0] sm:$0xff]  ;;  %v168_v1 = vld [vmem:[%s1119_s1 + $0x398] sm:$0xff]  ;;  %v167_v5 = vld [vmem:[%s1119_s1 + $0x390] sm:$0xff] }
  0x2d   :  { %216 = vmatmul.f32.gmra.mxu0 %v26_v20  ;;  %245 = vmatmul.f32.gmra.mxu1 %v27_v21  ;;  %v120_v2 = vld [vmem:[%s1119_s1 + $0x218] sm:$0xff]  ;;  %v119_v6 = vld [vmem:[%s1119_s1 + $0x210] sm:$0xff]  ;;  %v150_v8 = vld [vmem:[%s1119_s1 + $0x308] sm:$0xff] }
  0x2e   :  { %274 = vmatmul.f32.gmra.mxu2 %v28_v22  ;;  %303 = vmatmul.f32.gmra.mxu3 %v29_v23  ;;  %v136_v3 = vld [vmem:[%s1119_s1 + $0x298] sm:$0xff]  ;;  %v135_v7 = vld [vmem:[%s1119_s1 + $0x290] sm:$0xff]  ;;  %v166_v9 = vld [vmem:[%s1119_s1 + $0x388] sm:$0xff] }
  0x2f   :  { %375 = vmatpush.msrb.mxu2 %v160_v24  ;;  %404 = vmatpush.msrb.mxu3 %v176_v25  ;;  %v118_v10 = vld [vmem:[%s1119_s1 + $0x208] sm:$0xff]  ;;  %v149_v12 = vld [vmem:[%s1119_s1 + $0x300] sm:$0xff]  ;;  %v23_v18 = vld [vmem:[%s1120_s0 + $0x30] sm:$0xff] }
  0x30   :  { %317 = vmatpush.msrb.mxu0 %v128_v26  ;;  %346 = vmatpush.msrb.mxu1 %v144_v27  ;;  %v134_v11 = vld [vmem:[%s1119_s1 + $0x288] sm:$0xff]  ;;  %v165_v13 = vld [vmem:[%s1119_s1 + $0x380] sm:$0xff]  ;;  %v24_v19 = vld [vmem:[%s1120_s0 + $0x38] sm:$0xff] }
  0x31   :  { %376 = vmatpush.msrb.mxu2 %v159_v28  ;;  %405 = vmatpush.msrb.mxu3 %v175_v29  ;;  %v117_v14 = vld [vmem:[%s1119_s1 + $0x200] sm:$0xff]  ;;  %v22_v17 = vld [vmem:[%s1120_s0 + $0x28] sm:$0xff]  ;;  %v196_v20 = vld [vmem:[%s1119_s1 + $0x478] sm:$0xff] }
  0x32   :  { %318 = vmatpush.msrb.mxu0 %v127_v30  ;;  %347 = vmatpush.msrb.mxu1 %v143_v31  ;;  %v133_v15 = vld [vmem:[%s1119_s1 + $0x280] sm:$0xff]  ;;  %v195_v21 = vld [vmem:[%s1119_s1 + $0x470] sm:$0xff]  ;;  %v194_v22 = vld [vmem:[%s1119_s1 + $0x468] sm:$0xff] }
  0x33   :  { %377 = vmatpush.msrb.mxu2 %v158_v32  ;;  %406 = vmatpush.msrb.mxu3 %v174_v33  ;;  %v21_v16 = vld [vmem:[%s1120_s0 + $0x20] sm:$0xff]  ;;  %v30_v24 = vld [vmem:[%s1120_s0 + $0x68] sm:$0xff]  ;;  %v31_v25 = vld [vmem:[%s1120_s0 + $0x70] sm:$0xff] }
  0x34   :  { %319 = vmatpush.msrb.mxu0 %v126_v34  ;;  %348 = vmatpush.msrb.mxu1 %v142_v35  ;;  %v193_v23 = vld [vmem:[%s1119_s1 + $0x460] sm:$0xff]  ;;  %v32_v26 = vld [vmem:[%s1120_s0 + $0x78] sm:$0xff]  ;;  %v191_v29 = vld [vmem:[%s1119_s1 + $0x450] sm:$0xff] }
  0x35   :  { %378 = vmatpush.msrb.mxu2 %v157_v36  ;;  %407 = vmatpush.msrb.mxu3 %v173_v37  ;;  %v33_v27 = vld [vmem:[%s1120_s0 + $0x80] sm:$0xff]  ;;  %v192_v28 = vld [vmem:[%s1119_s1 + $0x458] sm:$0xff]  ;;  %v190_v30 = vld [vmem:[%s1119_s1 + $0x448] sm:$0xff] }
  0x36   :  { %320 = vmatpush.msrb.mxu0 %v125_v38  ;;  %349 = vmatpush.msrb.mxu1 %v141_v39  ;;  %v189_v31 = vld [vmem:[%s1119_s1 + $0x440] sm:$0xff]  ;;  %v39_v32 = vld [vmem:[%s1120_s0 + $0xb0] sm:$0xff]  ;;  %v40_v33 = vld [vmem:[%s1120_s0 + $0xb8] sm:$0xff] }
  0x37   :  { %219 = vmatmul.f32.gmra.mxu0 %v35_v40  ;;  %248 = vmatmul.f32.gmra.mxu1 %v36_v41  ;;  %v41_v34 = vld [vmem:[%s1120_s0 + $0xc0] sm:$0xff]  ;;  %v42_v35 = vld [vmem:[%s1120_s0 + $0xc8] sm:$0xff]  ;;  %v188_v36 = vld [vmem:[%s1119_s1 + $0x438] sm:$0xff] }
  0x38   :  { %277 = vmatmul.f32.gmra.mxu2 %v37_v42  ;;  %306 = vmatmul.f32.gmra.mxu3 %v38_v43  ;;  %v187_v37 = vld [vmem:[%s1119_s1 + $0x430] sm:$0xff]  ;;  %v186_v38 = vld [vmem:[%s1119_s1 + $0x428] sm:$0xff]  ;;  %v185_v39 = vld [vmem:[%s1119_s1 + $0x420] sm:$0xff] }
  0x39   :  { %379 = vmatpush.msrb.mxu2 %v156_v44  ;;  %408 = vmatpush.msrb.mxu3 %v172_v45  ;;  %v48_v40 = vld [vmem:[%s1120_s0 + $0xf8] sm:$0xff]  ;;  %v49_v41 = vld [vmem:[%s1120_s0 + $0x100] sm:$0xff]  ;;  %v50_v42 = vld [vmem:[%s1120_s0 + $0x108] sm:$0xff] }
  0x3a   :  { %321 = vmatpush.msrb.mxu0 %v124_v46  ;;  %350 = vmatpush.msrb.mxu1 %v140_v47  ;;  %v51_v43 = vld [vmem:[%s1120_s0 + $0x110] sm:$0xff]  ;;  %v184_v44 = vld [vmem:[%s1119_s1 + $0x418] sm:$0xff]  ;;  %v182_v46 = vld [vmem:[%s1119_s1 + $0x408] sm:$0xff] }
  0x3b   :  { %380 = vmatpush.msrb.mxu2 %v155_v48  ;;  %409 = vmatpush.msrb.mxu3 %v171_v49  ;;  %v183_v45 = vld [vmem:[%s1119_s1 + $0x410] sm:$0xff]  ;;  %v181_v47 = vld [vmem:[%s1119_s1 + $0x400] sm:$0xff]  ;;  %v34_v49 = vld [vmem:[%s1120_s0 + $0x88] sm:$0xff] }
  0x3c   :  { %322 = vmatpush.msrb.mxu0 %v123_v50  ;;  %351 = vmatpush.msrb.mxu1 %v139_v51  ;;  %v25_v48 = vld [vmem:[%s1120_s0 + $0x40] sm:$0xff]  ;;  %v43_v50 = vld [vmem:[%s1120_s0 + $0xd0] sm:$0xff]  ;;  %v52_v51 = vld [vmem:[%s1120_s0 + $0x118] sm:$0xff] }
  0x3d   :  { %381 = vmatpush.msrb.mxu2 %v154_v52  ;;  %410 = vmatpush.msrb.mxu3 %v170_v53 }
  0x3e   :  { %323 = vmatpush.msrb.mxu0 %v122_v54  ;;  %352 = vmatpush.msrb.mxu1 %v138_v55 }
  0x3f   :  { %382 = vmatpush.msrb.mxu2 %v153_v56  ;;  %411 = vmatpush.msrb.mxu3 %v169_v57 }
  0x40   :  { %324 = vmatpush.msrb.mxu0 %v121_v58  ;;  %353 = vmatpush.msrb.mxu1 %v137_v59 }
  0x41   :  { %222 = vmatmul.f32.gmra.mxu0 %v44_v60  ;;  %251 = vmatmul.f32.gmra.mxu1 %v45_v61 }
  0x42   :  { %280 = vmatmul.f32.gmra.mxu2 %v46_v62  ;;  %309 = vmatmul.f32.gmra.mxu3 %v47_v63 }
  0x43   :  { %383 = vmatpush.msrb.mxu2 %v152_v0  ;;  %412 = vmatpush.msrb.mxu3 %v168_v1 }
  0x44   :  { %325 = vmatpush.msrb.mxu0 %v120_v2  ;;  %354 = vmatpush.msrb.mxu1 %v136_v3 }
  0x45   :  { %384 = vmatpush.msrb.mxu2 %v151_v4  ;;  %413 = vmatpush.msrb.mxu3 %v167_v5 }
  0x46   :  { %326 = vmatpush.msrb.mxu0 %v119_v6  ;;  %355 = vmatpush.msrb.mxu1 %v135_v7 }
  0x47   :  { %385 = vmatpush.msrb.mxu2 %v150_v8  ;;  %414 = vmatpush.msrb.mxu3 %v166_v9 }
  0x48   :  { %327 = vmatpush.msrb.mxu0 %v118_v10  ;;  %356 = vmatpush.msrb.mxu1 %v134_v11 }
  0x49   :  { %386 = vmatpush.msrb.mxu2 %v149_v12  ;;  %415 = vmatpush.msrb.mxu3 %v165_v13 }
  0x4a   :  { %328 = vmatpush.msrb.mxu0 %v117_v14  ;;  %357 = vmatpush.msrb.mxu1 %v133_v15 }
  0x4b   :  { %329 = vmatmul.f32.vlgmr.msrb.gmra.mxu0 %v21_v16  ;;  %358 = vmatmul.f32.vlgmr.msrb.gmra.mxu1 %v22_v17 }
  0x4c   :  { %387 = vmatmul.f32.vlgmr.msrb.gmra.mxu2 %v23_v18  ;;  %416 = vmatmul.f32.vlgmr.msrb.gmra.mxu3 %v24_v19 }
  0x4d   :  { %487 = vmatpush.msra.mxu2 %v196_v20  ;;  %488 = vmatpush.msra.mxu3 %v196_v20 }
  0x4e   :  { %429 = vmatpush.msra.mxu0 %v196_v20  ;;  %486 = vmatpush.msra.mxu1 %v196_v20 }
  0x4f   :  { %490 = vmatpush.msra.mxu2 %v195_v21  ;;  %491 = vmatpush.msra.mxu3 %v195_v21 }
  0x50   :  { %430 = vmatpush.msra.mxu0 %v195_v21  ;;  %489 = vmatpush.msra.mxu1 %v195_v21 }
  0x51   :  { %493 = vmatpush.msra.mxu2 %v194_v22  ;;  %494 = vmatpush.msra.mxu3 %v194_v22 }
  0x52   :  { %431 = vmatpush.msra.mxu0 %v194_v22  ;;  %492 = vmatpush.msra.mxu1 %v194_v22 }
  0x53   :  { %496 = vmatpush.msra.mxu2 %v193_v23  ;;  %497 = vmatpush.msra.mxu3 %v193_v23 }
  0x54   :  { %432 = vmatpush.msra.mxu0 %v193_v23  ;;  %495 = vmatpush.msra.mxu1 %v193_v23 }
  0x55   :  { %332 = vmatmul.f32.gmra.mxu0 %v30_v24  ;;  %361 = vmatmul.f32.gmra.mxu1 %v31_v25 }
  0x56   :  { %390 = vmatmul.f32.gmra.mxu2 %v32_v26  ;;  %419 = vmatmul.f32.gmra.mxu3 %v33_v27 }
  0x57   :  { %499 = vmatpush.msra.mxu2 %v192_v28  ;;  %500 = vmatpush.msra.mxu3 %v192_v28 }
  0x58   :  { %433 = vmatpush.msra.mxu0 %v192_v28  ;;  %498 = vmatpush.msra.mxu1 %v192_v28 }
  0x59   :  { %502 = vmatpush.msra.mxu2 %v191_v29  ;;  %503 = vmatpush.msra.mxu3 %v191_v29 }
  0x5a   :  { %434 = vmatpush.msra.mxu0 %v191_v29  ;;  %501 = vmatpush.msra.mxu1 %v191_v29 }
  0x5b   :  { %505 = vmatpush.msra.mxu2 %v190_v30  ;;  %506 = vmatpush.msra.mxu3 %v190_v30 }
  0x5c   :  { %435 = vmatpush.msra.mxu0 %v190_v30  ;;  %504 = vmatpush.msra.mxu1 %v190_v30 }
  0x5d   :  { %508 = vmatpush.msra.mxu2 %v189_v31  ;;  %509 = vmatpush.msra.mxu3 %v189_v31 }
  0x5e   :  { %436 = vmatpush.msra.mxu0 %v189_v31  ;;  %507 = vmatpush.msra.mxu1 %v189_v31 }
  0x5f   :  { %335 = vmatmul.f32.gmra.mxu0 %v39_v32  ;;  %364 = vmatmul.f32.gmra.mxu1 %v40_v33 }
  0x60   :  { %393 = vmatmul.f32.gmra.mxu2 %v41_v34  ;;  %422 = vmatmul.f32.gmra.mxu3 %v42_v35 }
  0x61   :  { %511 = vmatpush.msra.mxu2 %v188_v36  ;;  %512 = vmatpush.msra.mxu3 %v188_v36 }
  0x62   :  { %437 = vmatpush.msra.mxu0 %v188_v36  ;;  %510 = vmatpush.msra.mxu1 %v188_v36 }
  0x63   :  { %514 = vmatpush.msra.mxu2 %v187_v37  ;;  %515 = vmatpush.msra.mxu3 %v187_v37 }
  0x64   :  { %438 = vmatpush.msra.mxu0 %v187_v37  ;;  %513 = vmatpush.msra.mxu1 %v187_v37 }
  0x65   :  { %517 = vmatpush.msra.mxu2 %v186_v38  ;;  %518 = vmatpush.msra.mxu3 %v186_v38 }
  0x66   :  { %439 = vmatpush.msra.mxu0 %v186_v38  ;;  %516 = vmatpush.msra.mxu1 %v186_v38 }
  0x67   :  { %520 = vmatpush.msra.mxu2 %v185_v39  ;;  %521 = vmatpush.msra.mxu3 %v185_v39 }
  0x68   :  { %440 = vmatpush.msra.mxu0 %v185_v39  ;;  %519 = vmatpush.msra.mxu1 %v185_v39 }
  0x69   :  { %338 = vmatmul.f32.gmra.mxu0 %v48_v40  ;;  %367 = vmatmul.f32.gmra.mxu1 %v49_v41 }
  0x6a   :  { %396 = vmatmul.f32.gmra.mxu2 %v50_v42  ;;  %425 = vmatmul.f32.gmra.mxu3 %v51_v43  ;;  %v534_v42 = vld [vmem:[%s1121_s2] ss:$0 sm:$0xff] }
  0x6b   :  { %523 = vmatpush.msra.mxu2 %v184_v44  ;;  %524 = vmatpush.msra.mxu3 %v184_v44 }
  0x6c   :  { %441 = vmatpush.msra.mxu0 %v184_v44  ;;  %522 = vmatpush.msra.mxu1 %v184_v44 }
  0x6d   :  { %526 = vmatpush.msra.mxu2 %v183_v45  ;;  %527 = vmatpush.msra.mxu3 %v183_v45 }
  0x6e   :  { %442 = vmatpush.msra.mxu0 %v183_v45  ;;  %525 = vmatpush.msra.mxu1 %v183_v45 }
  0x6f   :  { %529 = vmatpush.msra.mxu2 %v182_v46  ;;  %530 = vmatpush.msra.mxu3 %v182_v46 }
  0x70   :  { %443 = vmatpush.msra.mxu0 %v182_v46  ;;  %528 = vmatpush.msra.mxu1 %v182_v46 }
  0x71   :  { %532 = vmatpush.msra.mxu2 %v181_v47  ;;  %533 = vmatpush.msra.mxu3 %v181_v47 }
  0x72   :  { %444 = vmatpush.msra.mxu0 %v181_v47  ;;  %531 = vmatpush.msra.mxu1 %v181_v47 }
  0x73   :  { %445 = vmatmul.f32.vlgmr.msra.gmra.mxu0 %v25_v48  ;;  %448 = vmatmul.f32.vlgmr.msra.gmra.mxu1 %v34_v49  ;;  %v535_v48 = vld [vmem:[%s1122_s3] ss:$0 sm:$0xff] }
  0x74   :  { %451 = vmatmul.f32.vlgmr.msra.gmra.mxu2 %v43_v50  ;;  %454 = vmatmul.f32.vlgmr.msra.gmra.mxu3 %v52_v51 }
  0x9f   :  { %v214_v52 = vpop.f32.mrf.mxu0 }
  0xa0   :  { %v243_v53 = vpop.f32.mrf.mxu1 }
  0xa1   :  { %v244_v12 = vadd.f32 %v243_v53, %v214_v52 }
  0xa7   :  { %v272_v54 = vpop.f32.mrf.mxu2  ;;  %v301_v55 = vpop.f32.mrf.mxu3 }
  0xa8   :  { %v273_v16 = vadd.f32 %v272_v54, %v244_v12 }
  0xaa   :  { %v217_v56 = vpop.f32.mrf.mxu0  ;;  %v246_v57 = vpop.f32.mrf.mxu1  ;;  %v302_v20 = vadd.f32 %v301_v55, %v273_v16 }
  0xab   :  { %v247_v13 = vadd.f32 %v246_v57, %v217_v56 }
  0xb1   :  { %v275_v58 = vpop.f32.mrf.mxu2  ;;  %v304_v59 = vpop.f32.mrf.mxu3 }
  0xb2   :  { %v276_v17 = vadd.f32 %v275_v58, %v247_v13 }
  0xb4   :  { %v220_v60 = vpop.f32.mrf.mxu0  ;;  %v249_v61 = vpop.f32.mrf.mxu1  ;;  %v305_v21 = vadd.f32 %v304_v59, %v276_v17 }
  0xb5   :  { %v250_v18 = vadd.f32 %v249_v61, %v220_v60 }
  0xbb   :  { %v278_v62 = vpop.f32.mrf.mxu2  ;;  %v307_v63 = vpop.f32.mrf.mxu3 }
  0xbc   :  { %v279_v26 = vadd.f32 %v278_v62, %v250_v18 }
  0xbe   :  { %v223_v0 = vpop.f32.mrf.mxu0  ;;  %v252_v1 = vpop.f32.mrf.mxu1  ;;  %v308_v32 = vadd.f32 %v307_v63, %v279_v26 }
  0xbf   :  { %v253_v19 = vadd.f32 %v252_v1, %v223_v0 }
  0xc5   :  { %v281_v2 = vpop.f32.mrf.mxu2  ;;  %v310_v3 = vpop.f32.mrf.mxu3 }
  0xc6   :  { %v282_v27 = vadd.f32 %v281_v2, %v253_v19 }
  0xc8   :  { %v330_v4 = vpop.f32.mrf.mxu0  ;;  %v359_v5 = vpop.f32.mrf.mxu1  ;;  %v311_v33 = vadd.f32 %v310_v3, %v282_v27 }
  0xc9   :  { %v331_v24 = vadd.f32 %v330_v4, %v302_v20 }
  0xcb   :  { %v360_v30 = vadd.f32 %v359_v5, %v331_v24 }
  0xcf   :  { %v388_v6 = vpop.f32.mrf.mxu2  ;;  %v417_v7 = vpop.f32.mrf.mxu3 }
  0xd0   :  { %v389_v34 = vadd.f32 %v388_v6, %v360_v30 }
  0xd2   :  { %v333_v8 = vpop.f32.mrf.mxu0  ;;  %v362_v9 = vpop.f32.mrf.mxu1  ;;  %v418_v40 = vadd.f32 %v417_v7, %v389_v34 }
  0xd3   :  { %v334_v25 = vadd.f32 %v333_v8, %v305_v21 }
  0xd5   :  { %v363_v31 = vadd.f32 %v362_v9, %v334_v25 }
  0xd9   :  { %v391_v10 = vpop.f32.mrf.mxu2  ;;  %v420_v11 = vpop.f32.mrf.mxu3 }
  0xda   :  { %v392_v35 = vadd.f32 %v391_v10, %v363_v31 }
  0xdc   :  { %v336_v14 = vpop.f32.mrf.mxu0  ;;  %v365_v15 = vpop.f32.mrf.mxu1  ;;  %v421_v41 = vadd.f32 %v420_v11, %v392_v35 }
  0xdd   :  { %v337_v36 = vadd.f32 %v336_v14, %v308_v32 }
  0xdf   :  { %v366_v43 = vadd.f32 %v365_v15, %v337_v36 }
  0xe3   :  { %v394_v22 = vpop.f32.mrf.mxu2  ;;  %v423_v23 = vpop.f32.mrf.mxu3 }
  0xe4   :  { %v395_v50 = vadd.f32 %v394_v22, %v366_v43 }
  0xe6   :  { %v339_v28 = vpop.f32.mrf.mxu0  ;;  %v368_v29 = vpop.f32.mrf.mxu1  ;;  %v424_v56 = vadd.f32 %v423_v23, %v395_v50 }
  0xe7   :  { %v340_v37 = vadd.f32 %v339_v28, %v311_v33 }
  0xe9   :  { %v369_v44 = vadd.f32 %v368_v29, %v340_v37 }
  0xed   :  { %v397_v38 = vpop.f32.mrf.mxu2  ;;  %v426_v39 = vpop.f32.mrf.mxu3 }
  0xee   :  { %v398_v51 = vadd.f32 %v397_v38, %v369_v44 }
  0xf0   :  { %v446_v45 = vpop.f32.mrf.mxu0  ;;  %v449_v46 = vpop.f32.mrf.mxu1  ;;  %v427_v57 = vadd.f32 %v426_v39, %v398_v51 }
  0xf1   :  { %v447_v47 = vadd.f32 %v446_v45, %v418_v40  ;;  %v450_v49 = vadd.f32 %v449_v46, %v421_v41 }
  0xf3   :  { %v462_v52 = vmul.f32 %v534_v42, %v447_v47  ;;  %v463_v53 = vmul.f32 %v534_v42, %v450_v49 }
  0xf5   :  { %v470_v54 = vadd.f32 %v535_v48, %v462_v52  ;;  %v471_v55 = vadd.f32 %v535_v48, %v463_v53 }
  0xf7   :  { %v474_v58 = vmax.f32 %v470_v54, 0.0  ;;  %v475_v59 = vmax.f32 %v471_v55, 0.0  ;;  %v452_v60 = vpop.f32.mrf.mxu2  ;;  %v455_v61 = vpop.f32.mrf.mxu3 }
  0xf8   :  { %v453_v62 = vadd.f32 %v452_v60, %v424_v56  ;;  %v456_v63 = vadd.f32 %v455_v61, %v427_v57 }
  0xf9   :  { %478 = vst [vmem:[%s1123_s4] sm:$0xff] %v474_v58 }
  0xfa   :  { %479 = vst [vmem:[%s1123_s4 + $0x8] sm:$0xff] %v475_v59  ;;  %v464_v0 = vmul.f32 %v534_v42, %v453_v62  ;;  %v465_v1 = vmul.f32 %v534_v42, %v456_v63 }
  0xfc   :  { %v472_v2 = vadd.f32 %v535_v48, %v464_v0  ;;  %v473_v3 = vadd.f32 %v535_v48, %v465_v1 }
  0xfe   :  { %v476_v4 = vmax.f32 %v472_v2, 0.0  ;;  %v477_v5 = vmax.f32 %v473_v3, 0.0 }
 0x100   :  { %480 = vst [vmem:[%s1123_s4 + $0x10] sm:$0xff] %v476_v4 }
 0x101   :  { %481 = vst [vmem:[%s1123_s4 + $0x18] sm:$0xff] %v477_v5 }

// kernel: _lambda_.21
= control target key start
LH: loop header
LB: loop body
LE: loop exit
PB: predicated region body
PF: predicated region fallthrough
CT: control target
= control target key end

     0   :  { %s1185_s0 = inlined_call_operand.vmem [shape: f32[32,1152], index: 0, kind: input, shape index: {}]   ;;  %s1186_s1 = inlined_call_operand.vmem [shape: f32[1152,128], index: 1, kind: input, shape index: {}]   ;;  %s1187_s2 = inlined_call_operand.vmem [shape: f32[1,128], index: 2, kind: input, shape index: {}]   ;;  %s1188_s3 = inlined_call_operand.vmem [shape: f32[1,128], index: 3, kind: input, shape index: {}]   ;;  %s1189_s4 = inlined_call_operand.vmem [shape: f32[32,128], index: 4, kind: input, shape index: {}]   ;;  %s1190_s5 = inlined_call_operand.hbm [shape: f32[32,128], index: 5, kind: output, shape index: {}]  }
   0x1   :  { %v72_v0 = vld [vmem:[%s1186_s1 + $0x78] sm:$0xff]  ;;  %v71_v4 = vld [vmem:[%s1186_s1 + $0x70] sm:$0xff]  ;;  %v70_v8 = vld [vmem:[%s1186_s1 + $0x68] sm:$0xff] }
   0x2   :  { %v88_v1 = vld [vmem:[%s1186_s1 + $0xf8] sm:$0xff]  ;;  %201 = vmatpush.msra.mxu0 %v72_v0  ;;  %v87_v5 = vld [vmem:[%s1186_s1 + $0xf0] sm:$0xff]  ;;  %v86_v9 = vld [vmem:[%s1186_s1 + $0xe8] sm:$0xff] }
   0x3   :  { %v104_v2 = vld [vmem:[%s1186_s1 + $0x178] sm:$0xff]  ;;  %230 = vmatpush.msra.mxu1 %v88_v1  ;;  %v103_v6 = vld [vmem:[%s1186_s1 + $0x170] sm:$0xff]  ;;  %v102_v10 = vld [vmem:[%s1186_s1 + $0x168] sm:$0xff] }
   0x4   :  { %v120_v3 = vld [vmem:[%s1186_s1 + $0x1f8] sm:$0xff]  ;;  %259 = vmatpush.msra.mxu2 %v104_v2  ;;  %v119_v7 = vld [vmem:[%s1186_s1 + $0x1f0] sm:$0xff]  ;;  %202 = vmatpush.msra.mxu0 %v71_v4  ;;  %v118_v11 = vld [vmem:[%s1186_s1 + $0x1e8] sm:$0xff] }
   0x5   :  { %288 = vmatpush.msra.mxu3 %v120_v3  ;;  %231 = vmatpush.msra.mxu1 %v87_v5  ;;  %v69_v12 = vld [vmem:[%s1186_s1 + $0x60] sm:$0xff]  ;;  %v68_v16 = vld [vmem:[%s1186_s1 + $0x58] sm:$0xff]  ;;  %v67_v20 = vld [vmem:[%s1186_s1 + $0x50] sm:$0xff] }
   0x6   :  { %260 = vmatpush.msra.mxu2 %v103_v6  ;;  %v85_v13 = vld [vmem:[%s1186_s1 + $0xe0] sm:$0xff]  ;;  %203 = vmatpush.msra.mxu0 %v70_v8  ;;  %v84_v17 = vld [vmem:[%s1186_s1 + $0xd8] sm:$0xff]  ;;  %v83_v21 = vld [vmem:[%s1186_s1 + $0xd0] sm:$0xff] }
   0x7   :  { %289 = vmatpush.msra.mxu3 %v119_v7  ;;  %232 = vmatpush.msra.mxu1 %v86_v9  ;;  %v101_v14 = vld [vmem:[%s1186_s1 + $0x160] sm:$0xff]  ;;  %v100_v18 = vld [vmem:[%s1186_s1 + $0x158] sm:$0xff]  ;;  %v99_v22 = vld [vmem:[%s1186_s1 + $0x150] sm:$0xff] }
   0x8   :  { %v117_v15 = vld [vmem:[%s1186_s1 + $0x1e0] sm:$0xff]  ;;  %261 = vmatpush.msra.mxu2 %v102_v10  ;;  %204 = vmatpush.msra.mxu0 %v69_v12  ;;  %v116_v19 = vld [vmem:[%s1186_s1 + $0x1d8] sm:$0xff]  ;;  %v115_v23 = vld [vmem:[%s1186_s1 + $0x1d0] sm:$0xff] }
   0x9   :  { %290 = vmatpush.msra.mxu3 %v118_v11  ;;  %233 = vmatpush.msra.mxu1 %v85_v13  ;;  %v66_v24 = vld [vmem:[%s1186_s1 + $0x48] sm:$0xff]  ;;  %v65_v28 = vld [vmem:[%s1186_s1 + $0x40] sm:$0xff]  ;;  %v64_v32 = vld [vmem:[%s1186_s1 + $0x38] sm:$0xff] }
   0xa   :  { %262 = vmatpush.msra.mxu2 %v101_v14  ;;  %205 = vmatpush.msra.mxu0 %v68_v16  ;;  %v82_v25 = vld [vmem:[%s1186_s1 + $0xc8] sm:$0xff]  ;;  %v81_v29 = vld [vmem:[%s1186_s1 + $0xc0] sm:$0xff]  ;;  %v80_v33 = vld [vmem:[%s1186_s1 + $0xb8] sm:$0xff] }
   0xb   :  { %291 = vmatpush.msra.mxu3 %v117_v15  ;;  %234 = vmatpush.msra.mxu1 %v84_v17  ;;  %v98_v26 = vld [vmem:[%s1186_s1 + $0x148] sm:$0xff]  ;;  %v97_v30 = vld [vmem:[%s1186_s1 + $0x140] sm:$0xff]  ;;  %v96_v34 = vld [vmem:[%s1186_s1 + $0x138] sm:$0xff] }
   0xc   :  { %263 = vmatpush.msra.mxu2 %v100_v18  ;;  %206 = vmatpush.msra.mxu0 %v67_v20  ;;  %v114_v27 = vld [vmem:[%s1186_s1 + $0x1c8] sm:$0xff]  ;;  %v113_v31 = vld [vmem:[%s1186_s1 + $0x1c0] sm:$0xff]  ;;  %v112_v35 = vld [vmem:[%s1186_s1 + $0x1b8] sm:$0xff] }
   0xd   :  { %292 = vmatpush.msra.mxu3 %v116_v19  ;;  %235 = vmatpush.msra.mxu1 %v83_v21  ;;  %v63_v36 = vld [vmem:[%s1186_s1 + $0x30] sm:$0xff]  ;;  %v62_v40 = vld [vmem:[%s1186_s1 + $0x28] sm:$0xff]  ;;  %v61_v44 = vld [vmem:[%s1186_s1 + $0x20] sm:$0xff] }
   0xe   :  { %264 = vmatpush.msra.mxu2 %v99_v22  ;;  %207 = vmatpush.msra.mxu0 %v66_v24  ;;  %v79_v37 = vld [vmem:[%s1186_s1 + $0xb0] sm:$0xff]  ;;  %v78_v41 = vld [vmem:[%s1186_s1 + $0xa8] sm:$0xff]  ;;  %v77_v45 = vld [vmem:[%s1186_s1 + $0xa0] sm:$0xff] }
   0xf   :  { %293 = vmatpush.msra.mxu3 %v115_v23  ;;  %236 = vmatpush.msra.mxu1 %v82_v25  ;;  %v95_v38 = vld [vmem:[%s1186_s1 + $0x130] sm:$0xff]  ;;  %v94_v42 = vld [vmem:[%s1186_s1 + $0x128] sm:$0xff]  ;;  %v93_v46 = vld [vmem:[%s1186_s1 + $0x120] sm:$0xff] }
  0x10   :  { %265 = vmatpush.msra.mxu2 %v98_v26  ;;  %208 = vmatpush.msra.mxu0 %v65_v28  ;;  %v111_v39 = vld [vmem:[%s1186_s1 + $0x1b0] sm:$0xff]  ;;  %v110_v43 = vld [vmem:[%s1186_s1 + $0x1a8] sm:$0xff]  ;;  %v109_v47 = vld [vmem:[%s1186_s1 + $0x1a0] sm:$0xff] }
  0x11   :  { %294 = vmatpush.msra.mxu3 %v114_v27  ;;  %237 = vmatpush.msra.mxu1 %v81_v29  ;;  %v60_v48 = vld [vmem:[%s1186_s1 + $0x18] sm:$0xff]  ;;  %v59_v52 = vld [vmem:[%s1186_s1 + $0x10] sm:$0xff]  ;;  %v58_v56 = vld [vmem:[%s1186_s1 + $0x8] sm:$0xff] }
  0x12   :  { %266 = vmatpush.msra.mxu2 %v97_v30  ;;  %209 = vmatpush.msra.mxu0 %v64_v32  ;;  %v76_v49 = vld [vmem:[%s1186_s1 + $0x98] sm:$0xff]  ;;  %v75_v53 = vld [vmem:[%s1186_s1 + $0x90] sm:$0xff]  ;;  %v74_v57 = vld [vmem:[%s1186_s1 + $0x88] sm:$0xff] }
  0x13   :  { %295 = vmatpush.msra.mxu3 %v113_v31  ;;  %238 = vmatpush.msra.mxu1 %v80_v33  ;;  %v92_v50 = vld [vmem:[%s1186_s1 + $0x118] sm:$0xff]  ;;  %v91_v54 = vld [vmem:[%s1186_s1 + $0x110] sm:$0xff]  ;;  %v90_v58 = vld [vmem:[%s1186_s1 + $0x108] sm:$0xff] }
  0x14   :  { %267 = vmatpush.msra.mxu2 %v96_v34  ;;  %210 = vmatpush.msra.mxu0 %v63_v36  ;;  %v108_v51 = vld [vmem:[%s1186_s1 + $0x198] sm:$0xff]  ;;  %v107_v55 = vld [vmem:[%s1186_s1 + $0x190] sm:$0xff]  ;;  %v106_v59 = vld [vmem:[%s1186_s1 + $0x188] sm:$0xff] }
  0x15   :  { %296 = vmatpush.msra.mxu3 %v112_v35  ;;  %239 = vmatpush.msra.mxu1 %v79_v37  ;;  %v57_v60 = vld [vmem:[%s1186_s1] sm:$0xff]  ;;  %v22_v1 = vld [vmem:[%s1185_s0 + $0x8] sm:$0xff]  ;;  %v23_v2 = vld [vmem:[%s1185_s0 + $0x10] sm:$0xff] }
  0x16   :  { %268 = vmatpush.msra.mxu2 %v95_v38  ;;  %211 = vmatpush.msra.mxu0 %v62_v40  ;;  %v73_v61 = vld [vmem:[%s1186_s1 + $0x80] sm:$0xff]  ;;  %v24_v3 = vld [vmem:[%s1185_s0 + $0x18] sm:$0xff]  ;;  %v167_v8 = vld [vmem:[%s1186_s1 + $0x370] sm:$0xff] }
  0x17   :  { %297 = vmatpush.msra.mxu3 %v111_v39  ;;  %240 = vmatpush.msra.mxu1 %v78_v41  ;;  %v89_v62 = vld [vmem:[%s1186_s1 + $0x100] sm:$0xff]  ;;  %v168_v4 = vld [vmem:[%s1186_s1 + $0x378] sm:$0xff]  ;;  %v183_v9 = vld [vmem:[%s1186_s1 + $0x3f0] sm:$0xff] }
  0x18   :  { %269 = vmatpush.msra.mxu2 %v94_v42  ;;  %212 = vmatpush.msra.mxu0 %v61_v44  ;;  %v105_v63 = vld [vmem:[%s1186_s1 + $0x180] sm:$0xff]  ;;  %v184_v5 = vld [vmem:[%s1186_s1 + $0x3f8] sm:$0xff]  ;;  %v135_v10 = vld [vmem:[%s1186_s1 + $0x270] sm:$0xff] }
  0x19   :  { %298 = vmatpush.msra.mxu3 %v110_v43  ;;  %241 = vmatpush.msra.mxu1 %v77_v45  ;;  %v21_v0 = vld [vmem:[%s1185_s0] sm:$0xff]  ;;  %v136_v6 = vld [vmem:[%s1186_s1 + $0x278] sm:$0xff]  ;;  %v151_v11 = vld [vmem:[%s1186_s1 + $0x2f0] sm:$0xff] }
  0x1a   :  { %270 = vmatpush.msra.mxu2 %v93_v46  ;;  %213 = vmatpush.msra.mxu0 %v60_v48  ;;  %v152_v7 = vld [vmem:[%s1186_s1 + $0x2f8] sm:$0xff]  ;;  %v166_v12 = vld [vmem:[%s1186_s1 + $0x368] sm:$0xff]  ;;  %v165_v16 = vld [vmem:[%s1186_s1 + $0x360] sm:$0xff] }
  0x1b   :  { %299 = vmatpush.msra.mxu3 %v109_v47  ;;  %242 = vmatpush.msra.mxu1 %v76_v49  ;;  %v182_v13 = vld [vmem:[%s1186_s1 + $0x3e8] sm:$0xff]  ;;  %v181_v17 = vld [vmem:[%s1186_s1 + $0x3e0] sm:$0xff]  ;;  %v31_v21 = vld [vmem:[%s1185_s0 + $0x50] sm:$0xff] }
  0x1c   :  { %271 = vmatpush.msra.mxu2 %v92_v50  ;;  %214 = vmatpush.msra.mxu0 %v59_v52  ;;  %v134_v14 = vld [vmem:[%s1186_s1 + $0x268] sm:$0xff]  ;;  %v133_v18 = vld [vmem:[%s1186_s1 + $0x260] sm:$0xff]  ;;  %v32_v22 = vld [vmem:[%s1185_s0 + $0x58] sm:$0xff] }
  0x1d   :  { %300 = vmatpush.msra.mxu3 %v108_v51  ;;  %243 = vmatpush.msra.mxu1 %v75_v53  ;;  %v150_v15 = vld [vmem:[%s1186_s1 + $0x2e8] sm:$0xff]  ;;  %v149_v19 = vld [vmem:[%s1186_s1 + $0x2e0] sm:$0xff]  ;;  %v164_v24 = vld [vmem:[%s1186_s1 + $0x358] sm:$0xff] }
  0x1e   :  { %272 = vmatpush.msra.mxu2 %v91_v54  ;;  %215 = vmatpush.msra.mxu0 %v58_v56  ;;  %v30_v20 = vld [vmem:[%s1185_s0 + $0x48] sm:$0xff]  ;;  %v33_v23 = vld [vmem:[%s1185_s0 + $0x60] sm:$0xff]  ;;  %v180_v25 = vld [vmem:[%s1186_s1 + $0x3d8] sm:$0xff] }
  0x1f   :  { %301 = vmatpush.msra.mxu3 %v107_v55  ;;  %244 = vmatpush.msra.mxu1 %v74_v57  ;;  %v132_v26 = vld [vmem:[%s1186_s1 + $0x258] sm:$0xff]  ;;  %v163_v28 = vld [vmem:[%s1186_s1 + $0x350] sm:$0xff]  ;;  %v162_v32 = vld [vmem:[%s1186_s1 + $0x348] sm:$0xff] }
  0x20   :  { %273 = vmatpush.msra.mxu2 %v90_v58  ;;  %216 = vmatpush.msra.mxu0 %v57_v60  ;;  %v148_v27 = vld [vmem:[%s1186_s1 + $0x2d8] sm:$0xff]  ;;  %v179_v29 = vld [vmem:[%s1186_s1 + $0x3d0] sm:$0xff]  ;;  %v178_v33 = vld [vmem:[%s1186_s1 + $0x3c8] sm:$0xff] }
  0x21   :  { %302 = vmatpush.msra.mxu3 %v106_v59  ;;  %245 = vmatpush.msra.mxu1 %v73_v61  ;;  %v131_v30 = vld [vmem:[%s1186_s1 + $0x250] sm:$0xff]  ;;  %v130_v34 = vld [vmem:[%s1186_s1 + $0x248] sm:$0xff]  ;;  %v161_v36 = vld [vmem:[%s1186_s1 + $0x340] sm:$0xff] }
  0x22   :  { %274 = vmatpush.msra.mxu2 %v89_v62  ;;  %217 = vmatmul.f32.vlgmr.msra.gmra.mxu0 %v21_v0  ;;  %v147_v31 = vld [vmem:[%s1186_s1 + $0x2d0] sm:$0xff]  ;;  %v146_v35 = vld [vmem:[%s1186_s1 + $0x2c8] sm:$0xff]  ;;  %v177_v37 = vld [vmem:[%s1186_s1 + $0x3c0] sm:$0xff] }
  0x23   :  { %303 = vmatpush.msra.mxu3 %v105_v63  ;;  %246 = vmatmul.f32.vlgmr.msra.gmra.mxu1 %v22_v1  ;;  %v129_v38 = vld [vmem:[%s1186_s1 + $0x240] sm:$0xff]  ;;  %v39_v40 = vld [vmem:[%s1185_s0 + $0x90] sm:$0xff]  ;;  %v40_v41 = vld [vmem:[%s1185_s0 + $0x98] sm:$0xff] }
  0x24   :  { %275 = vmatmul.f32.vlgmr.msra.gmra.mxu2 %v23_v2  ;;  %304 = vmatmul.f32.vlgmr.msra.gmra.mxu3 %v24_v3  ;;  %v145_v39 = vld [vmem:[%s1186_s1 + $0x2c0] sm:$0xff]  ;;  %v42_v43 = vld [vmem:[%s1185_s0 + $0xa8] sm:$0xff]  ;;  %v160_v44 = vld [vmem:[%s1186_s1 + $0x338] sm:$0xff] }
  0x25   :  { %375 = vmatpush.msrb.mxu2 %v168_v4  ;;  %404 = vmatpush.msrb.mxu3 %v184_v5  ;;  %v41_v42 = vld [vmem:[%s1185_s0 + $0xa0] sm:$0xff]  ;;  %v176_v45 = vld [vmem:[%s1186_s1 + $0x3b8] sm:$0xff] }
  0x26   :  { %317 = vmatpush.msrb.mxu0 %v136_v6  ;;  %346 = vmatpush.msrb.mxu1 %v152_v7  ;;  %v128_v46 = vld [vmem:[%s1186_s1 + $0x238] sm:$0xff] }
  0x27   :  { %376 = vmatpush.msrb.mxu2 %v167_v8  ;;  %405 = vmatpush.msrb.mxu3 %v183_v9  ;;  %v144_v47 = vld [vmem:[%s1186_s1 + $0x2b8] sm:$0xff] }
  0x28   :  { %318 = vmatpush.msrb.mxu0 %v135_v10  ;;  %347 = vmatpush.msrb.mxu1 %v151_v11 }
  0x29   :  { %377 = vmatpush.msrb.mxu2 %v166_v12  ;;  %406 = vmatpush.msrb.mxu3 %v182_v13 }
  0x2a   :  { %319 = vmatpush.msrb.mxu0 %v134_v14  ;;  %348 = vmatpush.msrb.mxu1 %v150_v15 }
  0x2b   :  { %378 = vmatpush.msrb.mxu2 %v165_v16  ;;  %407 = vmatpush.msrb.mxu3 %v181_v17 }
  0x2c   :  { %320 = vmatpush.msrb.mxu0 %v133_v18  ;;  %349 = vmatpush.msrb.mxu1 %v149_v19 }
  0x2d   :  { %220 = vmatmul.f32.gmra.mxu0 %v30_v20  ;;  %249 = vmatmul.f32.gmra.mxu1 %v31_v21 }
  0x2e   :  { %278 = vmatmul.f32.gmra.mxu2 %v32_v22  ;;  %307 = vmatmul.f32.gmra.mxu3 %v33_v23 }
  0x2f   :  { %379 = vmatpush.msrb.mxu2 %v164_v24  ;;  %408 = vmatpush.msrb.mxu3 %v180_v25 }
  0x30   :  { %321 = vmatpush.msrb.mxu0 %v132_v26  ;;  %350 = vmatpush.msrb.mxu1 %v148_v27 }
  0x31   :  { %380 = vmatpush.msrb.mxu2 %v163_v28  ;;  %409 = vmatpush.msrb.mxu3 %v179_v29 }
  0x32   :  { %322 = vmatpush.msrb.mxu0 %v131_v30  ;;  %351 = vmatpush.msrb.mxu1 %v147_v31 }
  0x33   :  { %381 = vmatpush.msrb.mxu2 %v162_v32  ;;  %410 = vmatpush.msrb.mxu3 %v178_v33 }
  0x34   :  { %323 = vmatpush.msrb.mxu0 %v130_v34  ;;  %352 = vmatpush.msrb.mxu1 %v146_v35 }
  0x35   :  { %382 = vmatpush.msrb.mxu2 %v161_v36  ;;  %411 = vmatpush.msrb.mxu3 %v177_v37 }
  0x36   :  { %324 = vmatpush.msrb.mxu0 %v129_v38  ;;  %353 = vmatpush.msrb.mxu1 %v145_v39 }
  0x37   :  { %223 = vmatmul.f32.gmra.mxu0 %v39_v40  ;;  %252 = vmatmul.f32.gmra.mxu1 %v40_v41 }
  0x38   :  { %10 = vsyncpa [#allocation3], 0  ;;  %281 = vmatmul.f32.gmra.mxu2 %v41_v42  ;;  %310 = vmatmul.f32.gmra.mxu3 %v42_v43  ;;  %v159_v48 = vld [vmem:[%s1186_s1 + $0x330] sm:$0xff]  ;;  %v158_v52 = vld [vmem:[%s1186_s1 + $0x328] sm:$0xff]  ;;  %s591_s11 = smov [#allocation2]   ;;  %s500_s15 = sshll.u32 %s1190_s5, 4  ;;  %s501_s15 = int_to_ptr.hbm [resolvable:$true] %s500_s15 }
  0x39   :  { %v175_v49 = vld [vmem:[%s1186_s1 + $0x3b0] sm:$0xff]  ;;  %383 = vmatpush.msrb.mxu2 %v160_v44  ;;  %412 = vmatpush.msrb.mxu3 %v176_v45  ;;  %v174_v53 = vld [vmem:[%s1186_s1 + $0x3a8] sm:$0xff]  ;;  %v157_v56 = vld [vmem:[%s1186_s1 + $0x320] sm:$0xff]  ;;  %s498_s12 = sshll.u32 %s591_s11, 4  ;;  %s592_s16 = smov 128   ;;  %s499_s12 = int_to_ptr.vmem [resolvable:$true] %s498_s12 }
  0x3a   :  { %v127_v50 = vld [vmem:[%s1186_s1 + $0x230] sm:$0xff]  ;;  %325 = vmatpush.msrb.mxu0 %v128_v46  ;;  %354 = vmatpush.msrb.mxu1 %v144_v47  ;;  %v126_v54 = vld [vmem:[%s1186_s1 + $0x228] sm:$0xff]  ;;  %v173_v57 = vld [vmem:[%s1186_s1 + $0x3a0] sm:$0xff]  ;;  %s593_s17 = smov 8  }
  0x3b   :  { %v143_v51 = vld [vmem:[%s1186_s1 + $0x2b0] sm:$0xff]  ;;  %384 = vmatpush.msrb.mxu2 %v159_v48  ;;  %413 = vmatpush.msrb.mxu3 %v175_v49  ;;  %v142_v55 = vld [vmem:[%s1186_s1 + $0x2a8] sm:$0xff]  ;;  %v125_v58 = vld [vmem:[%s1186_s1 + $0x220] sm:$0xff] }
  0x3c   :  { %326 = vmatpush.msrb.mxu0 %v127_v50  ;;  %355 = vmatpush.msrb.mxu1 %v143_v51  ;;  %v141_v59 = vld [vmem:[%s1186_s1 + $0x2a0] sm:$0xff]  ;;  %v48_v60 = vld [vmem:[%s1185_s0 + $0xd8] sm:$0xff]  ;;  %v50_v62 = vld [vmem:[%s1185_s0 + $0xe8] sm:$0xff] }
  0x3d   :  { %385 = vmatpush.msrb.mxu2 %v158_v52  ;;  %414 = vmatpush.msrb.mxu3 %v174_v53  ;;  %v49_v61 = vld [vmem:[%s1185_s0 + $0xe0] sm:$0xff]  ;;  %v51_v63 = vld [vmem:[%s1185_s0 + $0xf0] sm:$0xff]  ;;  %v156_v0 = vld [vmem:[%s1186_s1 + $0x318] sm:$0xff] }
  0x3e   :  { %327 = vmatpush.msrb.mxu0 %v126_v54  ;;  %356 = vmatpush.msrb.mxu1 %v142_v55  ;;  %v172_v1 = vld [vmem:[%s1186_s1 + $0x398] sm:$0xff]  ;;  %v155_v4 = vld [vmem:[%s1186_s1 + $0x310] sm:$0xff]  ;;  %v154_v8 = vld [vmem:[%s1186_s1 + $0x308] sm:$0xff] }
  0x3f   :  { %386 = vmatpush.msrb.mxu2 %v157_v56  ;;  %415 = vmatpush.msrb.mxu3 %v173_v57  ;;  %v124_v2 = vld [vmem:[%s1186_s1 + $0x218] sm:$0xff]  ;;  %v171_v5 = vld [vmem:[%s1186_s1 + $0x390] sm:$0xff]  ;;  %v170_v9 = vld [vmem:[%s1186_s1 + $0x388] sm:$0xff] }
  0x40   :  { %328 = vmatpush.msrb.mxu0 %v125_v58  ;;  %357 = vmatpush.msrb.mxu1 %v141_v59  ;;  %v140_v3 = vld [vmem:[%s1186_s1 + $0x298] sm:$0xff]  ;;  %v123_v6 = vld [vmem:[%s1186_s1 + $0x210] sm:$0xff]  ;;  %v122_v10 = vld [vmem:[%s1186_s1 + $0x208] sm:$0xff] }
  0x41   :  { %226 = vmatmul.f32.gmra.mxu0 %v48_v60  ;;  %255 = vmatmul.f32.gmra.mxu1 %v49_v61  ;;  %v139_v7 = vld [vmem:[%s1186_s1 + $0x290] sm:$0xff]  ;;  %v138_v11 = vld [vmem:[%s1186_s1 + $0x288] sm:$0xff]  ;;  %v153_v12 = vld [vmem:[%s1186_s1 + $0x300] sm:$0xff] }
  0x42   :  { %284 = vmatmul.f32.gmra.mxu2 %v50_v62  ;;  %313 = vmatmul.f32.gmra.mxu3 %v51_v63  ;;  %v169_v13 = vld [vmem:[%s1186_s1 + $0x380] sm:$0xff]  ;;  %v26_v17 = vld [vmem:[%s1185_s0 + $0x28] sm:$0xff]  ;;  %v27_v18 = vld [vmem:[%s1185_s0 + $0x30] sm:$0xff] }
  0x43   :  { %387 = vmatpush.msrb.mxu2 %v156_v0  ;;  %416 = vmatpush.msrb.mxu3 %v172_v1  ;;  %v121_v14 = vld [vmem:[%s1186_s1 + $0x200] sm:$0xff]  ;;  %v28_v19 = vld [vmem:[%s1185_s0 + $0x38] sm:$0xff]  ;;  %v199_v21 = vld [vmem:[%s1186_s1 + $0x470] sm:$0xff] }
  0x44   :  { %329 = vmatpush.msrb.mxu0 %v124_v2  ;;  %358 = vmatpush.msrb.mxu1 %v140_v3  ;;  %v137_v15 = vld [vmem:[%s1186_s1 + $0x280] sm:$0xff]  ;;  %v200_v20 = vld [vmem:[%s1186_s1 + $0x478] sm:$0xff]  ;;  %v198_v22 = vld [vmem:[%s1186_s1 + $0x468] sm:$0xff] }
  0x45   :  { %388 = vmatpush.msrb.mxu2 %v155_v4  ;;  %417 = vmatpush.msrb.mxu3 %v171_v5  ;;  %v25_v16 = vld [vmem:[%s1185_s0 + $0x20] sm:$0xff]  ;;  %v34_v24 = vld [vmem:[%s1185_s0 + $0x68] sm:$0xff]  ;;  %v35_v25 = vld [vmem:[%s1185_s0 + $0x70] sm:$0xff] }
  0x46   :  { %330 = vmatpush.msrb.mxu0 %v123_v6  ;;  %359 = vmatpush.msrb.mxu1 %v139_v7  ;;  %v197_v23 = vld [vmem:[%s1186_s1 + $0x460] sm:$0xff]  ;;  %v36_v26 = vld [vmem:[%s1185_s0 + $0x78] sm:$0xff]  ;;  %v195_v29 = vld [vmem:[%s1186_s1 + $0x450] sm:$0xff] }
  0x47   :  { %389 = vmatpush.msrb.mxu2 %v154_v8  ;;  %418 = vmatpush.msrb.mxu3 %v170_v9  ;;  %v37_v27 = vld [vmem:[%s1185_s0 + $0x80] sm:$0xff]  ;;  %v196_v28 = vld [vmem:[%s1186_s1 + $0x458] sm:$0xff]  ;;  %v194_v30 = vld [vmem:[%s1186_s1 + $0x448] sm:$0xff] }
  0x48   :  { %331 = vmatpush.msrb.mxu0 %v122_v10  ;;  %360 = vmatpush.msrb.mxu1 %v138_v11  ;;  %v193_v31 = vld [vmem:[%s1186_s1 + $0x440] sm:$0xff]  ;;  %v43_v32 = vld [vmem:[%s1185_s0 + $0xb0] sm:$0xff]  ;;  %v44_v33 = vld [vmem:[%s1185_s0 + $0xb8] sm:$0xff] }
  0x49   :  { %390 = vmatpush.msrb.mxu2 %v153_v12  ;;  %419 = vmatpush.msrb.mxu3 %v169_v13  ;;  %v45_v34 = vld [vmem:[%s1185_s0 + $0xc0] sm:$0xff]  ;;  %v46_v35 = vld [vmem:[%s1185_s0 + $0xc8] sm:$0xff]  ;;  %v192_v36 = vld [vmem:[%s1186_s1 + $0x438] sm:$0xff] }
  0x4a   :  { %332 = vmatpush.msrb.mxu0 %v121_v14  ;;  %361 = vmatpush.msrb.mxu1 %v137_v15  ;;  %v191_v37 = vld [vmem:[%s1186_s1 + $0x430] sm:$0xff]  ;;  %v190_v38 = vld [vmem:[%s1186_s1 + $0x428] sm:$0xff]  ;;  %v189_v39 = vld [vmem:[%s1186_s1 + $0x420] sm:$0xff] }
  0x4b   :  { %333 = vmatmul.f32.vlgmr.msrb.gmra.mxu0 %v25_v16  ;;  %362 = vmatmul.f32.vlgmr.msrb.gmra.mxu1 %v26_v17  ;;  %v52_v40 = vld [vmem:[%s1185_s0 + $0xf8] sm:$0xff]  ;;  %v53_v41 = vld [vmem:[%s1185_s0 + $0x100] sm:$0xff]  ;;  %v54_v42 = vld [vmem:[%s1185_s0 + $0x108] sm:$0xff] }
  0x4c   :  { %391 = vmatmul.f32.vlgmr.msrb.gmra.mxu2 %v27_v18  ;;  %420 = vmatmul.f32.vlgmr.msrb.gmra.mxu3 %v28_v19  ;;  %v55_v43 = vld [vmem:[%s1185_s0 + $0x110] sm:$0xff]  ;;  %v188_v44 = vld [vmem:[%s1186_s1 + $0x418] sm:$0xff]  ;;  %v186_v46 = vld [vmem:[%s1186_s1 + $0x408] sm:$0xff] }
  0x4d   :  { %513 = vmatpush.msra.mxu2 %v200_v20  ;;  %514 = vmatpush.msra.mxu3 %v200_v20  ;;  %v187_v45 = vld [vmem:[%s1186_s1 + $0x410] sm:$0xff]  ;;  %v185_v47 = vld [vmem:[%s1186_s1 + $0x400] sm:$0xff]  ;;  %v38_v49 = vld [vmem:[%s1185_s0 + $0x88] sm:$0xff] }
  0x4e   :  { %433 = vmatpush.msra.mxu0 %v200_v20  ;;  %512 = vmatpush.msra.mxu1 %v200_v20  ;;  %v29_v48 = vld [vmem:[%s1185_s0 + $0x40] sm:$0xff]  ;;  %v47_v50 = vld [vmem:[%s1185_s0 + $0xd0] sm:$0xff]  ;;  %v56_v51 = vld [vmem:[%s1185_s0 + $0x118] sm:$0xff] }
  0x4f   :  { %516 = vmatpush.msra.mxu2 %v199_v21  ;;  %517 = vmatpush.msra.mxu3 %v199_v21 }
  0x50   :  { %434 = vmatpush.msra.mxu0 %v199_v21  ;;  %515 = vmatpush.msra.mxu1 %v199_v21 }
  0x51   :  { %519 = vmatpush.msra.mxu2 %v198_v22  ;;  %520 = vmatpush.msra.mxu3 %v198_v22 }
  0x52   :  { %435 = vmatpush.msra.mxu0 %v198_v22  ;;  %518 = vmatpush.msra.mxu1 %v198_v22 }
  0x53   :  { %522 = vmatpush.msra.mxu2 %v197_v23  ;;  %523 = vmatpush.msra.mxu3 %v197_v23 }
  0x54   :  { %436 = vmatpush.msra.mxu0 %v197_v23  ;;  %521 = vmatpush.msra.mxu1 %v197_v23 }
  0x55   :  { %336 = vmatmul.f32.gmra.mxu0 %v34_v24  ;;  %365 = vmatmul.f32.gmra.mxu1 %v35_v25 }
  0x56   :  { %394 = vmatmul.f32.gmra.mxu2 %v36_v26  ;;  %423 = vmatmul.f32.gmra.mxu3 %v37_v27 }
  0x57   :  { %525 = vmatpush.msra.mxu2 %v196_v28  ;;  %526 = vmatpush.msra.mxu3 %v196_v28 }
  0x58   :  { %437 = vmatpush.msra.mxu0 %v196_v28  ;;  %524 = vmatpush.msra.mxu1 %v196_v28 }
  0x59   :  { %528 = vmatpush.msra.mxu2 %v195_v29  ;;  %529 = vmatpush.msra.mxu3 %v195_v29 }
  0x5a   :  { %438 = vmatpush.msra.mxu0 %v195_v29  ;;  %527 = vmatpush.msra.mxu1 %v195_v29 }
  0x5b   :  { %531 = vmatpush.msra.mxu2 %v194_v30  ;;  %532 = vmatpush.msra.mxu3 %v194_v30 }
  0x5c   :  { %439 = vmatpush.msra.mxu0 %v194_v30  ;;  %530 = vmatpush.msra.mxu1 %v194_v30 }
  0x5d   :  { %534 = vmatpush.msra.mxu2 %v193_v31  ;;  %535 = vmatpush.msra.mxu3 %v193_v31 }
  0x5e   :  { %440 = vmatpush.msra.mxu0 %v193_v31  ;;  %533 = vmatpush.msra.mxu1 %v193_v31 }
  0x5f   :  { %339 = vmatmul.f32.gmra.mxu0 %v43_v32  ;;  %368 = vmatmul.f32.gmra.mxu1 %v44_v33 }
  0x60   :  { %397 = vmatmul.f32.gmra.mxu2 %v45_v34  ;;  %426 = vmatmul.f32.gmra.mxu3 %v46_v35 }
  0x61   :  { %537 = vmatpush.msra.mxu2 %v192_v36  ;;  %538 = vmatpush.msra.mxu3 %v192_v36 }
  0x62   :  { %441 = vmatpush.msra.mxu0 %v192_v36  ;;  %536 = vmatpush.msra.mxu1 %v192_v36 }
  0x63   :  { %540 = vmatpush.msra.mxu2 %v191_v37  ;;  %541 = vmatpush.msra.mxu3 %v191_v37 }
  0x64   :  { %442 = vmatpush.msra.mxu0 %v191_v37  ;;  %539 = vmatpush.msra.mxu1 %v191_v37 }
  0x65   :  { %543 = vmatpush.msra.mxu2 %v190_v38  ;;  %544 = vmatpush.msra.mxu3 %v190_v38 }
  0x66   :  { %443 = vmatpush.msra.mxu0 %v190_v38  ;;  %542 = vmatpush.msra.mxu1 %v190_v38 }
  0x67   :  { %546 = vmatpush.msra.mxu2 %v189_v39  ;;  %547 = vmatpush.msra.mxu3 %v189_v39 }
  0x68   :  { %444 = vmatpush.msra.mxu0 %v189_v39  ;;  %545 = vmatpush.msra.mxu1 %v189_v39 }
  0x69   :  { %342 = vmatmul.f32.gmra.mxu0 %v52_v40  ;;  %371 = vmatmul.f32.gmra.mxu1 %v53_v41 }
  0x6a   :  { %400 = vmatmul.f32.gmra.mxu2 %v54_v42  ;;  %429 = vmatmul.f32.gmra.mxu3 %v55_v43  ;;  %v563_v42 = vld [vmem:[%s1187_s2] ss:$0 sm:$0xff] }
  0x6b   :  { %549 = vmatpush.msra.mxu2 %v188_v44  ;;  %550 = vmatpush.msra.mxu3 %v188_v44 }
  0x6c   :  { %445 = vmatpush.msra.mxu0 %v188_v44  ;;  %548 = vmatpush.msra.mxu1 %v188_v44 }
  0x6d   :  { %552 = vmatpush.msra.mxu2 %v187_v45  ;;  %553 = vmatpush.msra.mxu3 %v187_v45 }
  0x6e   :  { %446 = vmatpush.msra.mxu0 %v187_v45  ;;  %551 = vmatpush.msra.mxu1 %v187_v45 }
  0x6f   :  { %555 = vmatpush.msra.mxu2 %v186_v46  ;;  %556 = vmatpush.msra.mxu3 %v186_v46 }
  0x70   :  { %447 = vmatpush.msra.mxu0 %v186_v46  ;;  %554 = vmatpush.msra.mxu1 %v186_v46 }
  0x71   :  { %558 = vmatpush.msra.mxu2 %v185_v47  ;;  %559 = vmatpush.msra.mxu3 %v185_v47 }
  0x72   :  { %448 = vmatpush.msra.mxu0 %v185_v47  ;;  %557 = vmatpush.msra.mxu1 %v185_v47 }
  0x73   :  { %449 = vmatmul.f32.vlgmr.msra.gmra.mxu0 %v29_v48  ;;  %452 = vmatmul.f32.vlgmr.msra.gmra.mxu1 %v38_v49  ;;  %v564_v48 = vld [vmem:[%s1188_s3] ss:$0 sm:$0xff] }
  0x74   :  { %455 = vmatmul.f32.vlgmr.msra.gmra.mxu2 %v47_v50  ;;  %458 = vmatmul.f32.vlgmr.msra.gmra.mxu3 %v56_v51 }
  0x9f   :  { %v218_v52 = vpop.f32.mrf.mxu0 }
  0xa0   :  { %v247_v53 = vpop.f32.mrf.mxu1 }
  0xa1   :  { %v248_v12 = vadd.f32 %v247_v53, %v218_v52 }
  0xa7   :  { %v276_v54 = vpop.f32.mrf.mxu2  ;;  %v305_v55 = vpop.f32.mrf.mxu3 }
  0xa8   :  { %v277_v16 = vadd.f32 %v276_v54, %v248_v12  ;;  %v478_v54 = vld [vmem:[%s1189_s4] sm:$0xff] }
  0xaa   :  { %v221_v56 = vpop.f32.mrf.mxu0  ;;  %v250_v57 = vpop.f32.mrf.mxu1  ;;  %v306_v20 = vadd.f32 %v305_v55, %v277_v16  ;;  %v479_v55 = vld [vmem:[%s1189_s4 + $0x8] sm:$0xff] }
  0xab   :  { %v251_v13 = vadd.f32 %v250_v57, %v221_v56 }
  0xb1   :  { %v279_v58 = vpop.f32.mrf.mxu2  ;;  %v308_v59 = vpop.f32.mrf.mxu3 }
  0xb2   :  { %v280_v17 = vadd.f32 %v279_v58, %v251_v13 }
  0xb4   :  { %v224_v60 = vpop.f32.mrf.mxu0  ;;  %v253_v61 = vpop.f32.mrf.mxu1  ;;  %v309_v21 = vadd.f32 %v308_v59, %v280_v17 }
  0xb5   :  { %v254_v18 = vadd.f32 %v253_v61, %v224_v60 }
  0xbb   :  { %v282_v62 = vpop.f32.mrf.mxu2  ;;  %v311_v63 = vpop.f32.mrf.mxu3 }
  0xbc   :  { %v283_v26 = vadd.f32 %v282_v62, %v254_v18 }
  0xbe   :  { %v227_v0 = vpop.f32.mrf.mxu0  ;;  %v256_v1 = vpop.f32.mrf.mxu1  ;;  %v312_v32 = vadd.f32 %v311_v63, %v283_v26 }
  0xbf   :  { %v257_v19 = vadd.f32 %v256_v1, %v227_v0 }
  0xc5   :  { %v285_v2 = vpop.f32.mrf.mxu2  ;;  %v314_v3 = vpop.f32.mrf.mxu3 }
  0xc6   :  { %v286_v27 = vadd.f32 %v285_v2, %v257_v19 }
  0xc8   :  { %v334_v4 = vpop.f32.mrf.mxu0  ;;  %v363_v5 = vpop.f32.mrf.mxu1  ;;  %v315_v33 = vadd.f32 %v314_v3, %v286_v27 }
  0xc9   :  { %v335_v24 = vadd.f32 %v334_v4, %v306_v20 }
  0xcb   :  { %v364_v30 = vadd.f32 %v363_v5, %v335_v24 }
  0xcf   :  { %v392_v6 = vpop.f32.mrf.mxu2  ;;  %v421_v7 = vpop.f32.mrf.mxu3 }
  0xd0   :  { %v393_v34 = vadd.f32 %v392_v6, %v364_v30  ;;  %v480_v6 = vld [vmem:[%s1189_s4 + $0x10] sm:$0xff] }
  0xd2   :  { %v337_v8 = vpop.f32.mrf.mxu0  ;;  %v366_v9 = vpop.f32.mrf.mxu1  ;;  %v422_v40 = vadd.f32 %v421_v7, %v393_v34  ;;  %v481_v7 = vld [vmem:[%s1189_s4 + $0x18] sm:$0xff] }
  0xd3   :  { %v338_v25 = vadd.f32 %v337_v8, %v309_v21 }
  0xd5   :  { %v367_v31 = vadd.f32 %v366_v9, %v338_v25 }
  0xd9   :  { %v395_v10 = vpop.f32.mrf.mxu2  ;;  %v424_v11 = vpop.f32.mrf.mxu3 }
  0xda   :  { %v396_v35 = vadd.f32 %v395_v10, %v367_v31 }
  0xdc   :  { %v340_v14 = vpop.f32.mrf.mxu0  ;;  %v369_v15 = vpop.f32.mrf.mxu1  ;;  %v425_v41 = vadd.f32 %v424_v11, %v396_v35 }
  0xdd   :  { %v341_v36 = vadd.f32 %v340_v14, %v312_v32 }
  0xdf   :  { %v370_v43 = vadd.f32 %v369_v15, %v341_v36 }
  0xe3   :  { %v398_v22 = vpop.f32.mrf.mxu2  ;;  %v427_v23 = vpop.f32.mrf.mxu3 }
  0xe4   :  { %v399_v50 = vadd.f32 %v398_v22, %v370_v43 }
  0xe6   :  { %v343_v28 = vpop.f32.mrf.mxu0  ;;  %v372_v29 = vpop.f32.mrf.mxu1  ;;  %v428_v58 = vadd.f32 %v427_v23, %v399_v50 }
  0xe7   :  { %v344_v37 = vadd.f32 %v343_v28, %v315_v33 }
  0xe9   :  { %v373_v44 = vadd.f32 %v372_v29, %v344_v37 }
  0xed   :  { %v401_v38 = vpop.f32.mrf.mxu2  ;;  %v430_v39 = vpop.f32.mrf.mxu3 }
  0xee   :  { %v402_v51 = vadd.f32 %v401_v38, %v373_v44 }
  0xf0   :  { %v450_v45 = vpop.f32.mrf.mxu0  ;;  %v453_v46 = vpop.f32.mrf.mxu1  ;;  %v431_v59 = vadd.f32 %v430_v39, %v402_v51 }
  0xf1   :  { %v451_v47 = vadd.f32 %v450_v45, %v422_v40  ;;  %v454_v49 = vadd.f32 %v453_v46, %v425_v41 }
  0xf3   :  { %v466_v52 = vmul.f32 %v563_v42, %v451_v47  ;;  %v467_v53 = vmul.f32 %v563_v42, %v454_v49 }
  0xf5   :  { %v474_v56 = vadd.f32 %v564_v48, %v466_v52  ;;  %v475_v57 = vadd.f32 %v564_v48, %v467_v53 }
  0xf7   :  { %v482_v60 = vadd.f32 %v478_v54, %v474_v56  ;;  %v483_v61 = vadd.f32 %v479_v55, %v475_v57  ;;  %v456_v62 = vpop.f32.mrf.mxu2  ;;  %v459_v63 = vpop.f32.mrf.mxu3 }
  0xf8   :  { %v457_v0 = vadd.f32 %v456_v62, %v428_v58  ;;  %v460_v1 = vadd.f32 %v459_v63, %v431_v59 }
  0xf9   :  { %v486_v2 = vmax.f32 %v482_v60, 0.0  ;;  %v487_v3 = vmax.f32 %v483_v61, 0.0 }
  0xfa   :  { %v468_v4 = vmul.f32 %v563_v42, %v457_v0  ;;  %v469_v5 = vmul.f32 %v563_v42, %v460_v1 }
  0xfb   :  { %490 = vst [vmem:[#allocation2] sm:$0xff] %v486_v2 }
  0xfc   :  { %491 = vst [vmem:[#allocation2 + $0x8] sm:$0xff] %v487_v3  ;;  %v476_v8 = vadd.f32 %v564_v48, %v468_v4  ;;  %v477_v9 = vadd.f32 %v564_v48, %v469_v5 }
  0xfe   :  { %v484_v10 = vadd.f32 %v480_v6, %v476_v8  ;;  %v485_v11 = vadd.f32 %v481_v7, %v477_v9 }
 0x100   :  { %v488_v12 = vmax.f32 %v484_v10, 0.0  ;;  %v489_v13 = vmax.f32 %v485_v11, 0.0 }
 0x102   :  { %492 = vst [vmem:[#allocation2 + $0x10] sm:$0xff] %v488_v12 }
 0x103   :  { %493 = vst [vmem:[#allocation2 + $0x18] sm:$0xff] %v489_v13 }
 0x104   :  { %506 = dma.vmem_to_hbm [thread:$0]  %s499_s12, 512, %s501_s15, [#allocation3], %s592_s16, %s592_s16, %s593_s17  }
 0x105   :  { %589 = dma.done.wait [#allocation3], 512  }
 0x106   :  { %590 = vsyncadd [#allocation3], 4294966784 }
 0x107   :  { %511 = vsyncpa [#allocation3], 1 }

</bundles_post_ra>
